<compile_context>
chip_gen: v7x
topology: tpu7x:2x2x1
jax: 0.10.0
libtpu: 0.0.40
codegen_flags: <defaults>
</compile_context>

<pallas_src>
import functools

import numpy as np
import jax
import jax.numpy as jnp
from jax.experimental import pallas as pl
from jax.experimental.pallas import tpu as pltpu

f32 = jnp.float32
bf16 = jnp.bfloat16
CP = 128  # class dim padded to a full 128-lane width (lane-dense stores)


def _round_up(v, m):
    return ((v + m - 1) // m) * m


def _vmem_capacity_bytes():
    """Physical per-core VMEM; conservative fallback (v7x = 64 MiB) if the query fails."""
    try:
        info = pltpu.get_tpu_info()
        cap = int(getattr(info, "vmem_capacity_bytes", 0) or 0)
        if cap > 0:
            return cap
    except Exception:
        pass
    return 64 * 1024 * 1024


def _prep_params(params, K, C, QD):
    """Host-side layout plumbing: pre-transpose to [in, out], pad classes to 128 lanes, fuse
    Wi|Wq1 into one [K, CP+QD] operand, cast matmul operands to bf16 (tiny tensors)."""
    wi_t = jnp.zeros((K, CP), f32).at[:, :C].set(params["wi"].T.astype(f32))
    w1 = jnp.concatenate([wi_t, params["wq1"].T.astype(f32)], axis=1).astype(bf16)   # [K, CP+QD]
    b1 = jnp.concatenate(
        [jnp.zeros((1, CP), f32).at[:, :C].set(params["bi"].astype(f32)),
         params["bq1"].astype(f32)], axis=1)                                          # [1, CP+QD]
    w2 = params["wq2"].T.astype(bf16)                                                 # [QD, QD]
    b2 = params["bq2"].astype(f32)                                                    # [1, QD]
    return w1, b1, w2, b2


def milnet_forward(x, params, *, tile_n=512, force_two_pass=False):
    """DSMIL MILNet forward. Returns (classes, prediction_bag, A, B)."""
    N, K = x.shape
    C = params["wi"].shape[0]
    QD = params["wq1"].shape[0]            # attention query dim (128 in DSMIL)
    assert C <= CP, "num_classes must fit a single 128-lane tile"
    assert QD % 128 == 0
    assert tile_n % 32 == 0

    tn = min(tile_n, _round_up(N, 32))     # don't over-pad tiny bags
    n_tiles = -(-N // tn)
    NP = n_tiles * tn

    bound = float(np.sqrt(QD))             # |logits| <= sqrt(QD): Q, q_max are tanh outputs
    inv_sqrt_qd = 1.0 / bound

    w1, b1, w2, b2 = _prep_params(params, K, C, QD)

    # feats stay f32 (no host bf16-cast round trip); zero-pad rows only if needed.
    x_p = x if NP == N else jnp.zeros((NP, K), f32).at[:N].set(x)

    # ---- VMEM budgeting: pick fused (bag-resident) vs two-pass streaming path ----------------
    cap = _vmem_capacity_bytes()
    weights_b = 2 * (K * (CP + QD) * 2 + (CP + QD) * 4 + QD * QD * 2 + QD * 4)
    stream_b = 2 * tn * K * 4 + 2 * tn * CP * 4 + 2 * tn * QD * 2     # double-buffered blocks
    small_b = CP * K * 4 + QD * CP * 4 + 8 * CP * 4
    fused_b = NP * (2 * K + 2 * QD + 4 * CP) + weights_b + stream_b + small_b
    twopass_b = weights_b + stream_b + small_b + 2 * tn * CP * 2

    use_fused = (not force_two_pass) and fused_b <= int(0.55 * cap)
    need_b = fused_b if use_fused else twopass_b
    vmem_limit = int(min(max(int(0.9 * cap), 32 * 2**20), max(2 * need_b, 32 * 2**20)))

    cparams = pltpu.CompilerParams(
        dimension_semantics=("arbitrary",),          # carried accumulators across tiles
        vmem_limit_bytes=vmem_limit,
    )

    if use_fused:
        # ======================= fused single-pass path (bag fits VMEM) ========================
        def fused_kernel(x_ref, w1_ref, b1_ref, w2_ref, b2_ref,
                         cls_ref, a_ref, bagf_ref,
                         xbuf, qbuf, max_sc, qmax_sc, l_sc):
            n = pl.program_id(0)
            off = pl.multiple_of(n * tn, tn)
            feats = x_ref[...].astype(bf16)                                     # [tn, K]
            xbuf[pl.ds(off, tn), :] = feats                                     # resident copy

            # fused i_classifier + q() first layer: a single MXU pass over feats
            z = jnp.dot(feats, w1_ref[...], preferred_element_type=f32) + b1_ref[...]
            classes = z[:, :CP]
            h = jnp.maximum(z[:, CP:], 0.0)
            q = jnp.tanh(jnp.dot(h.astype(bf16), w2_ref[...],
                                 preferred_element_type=f32) + b2_ref[...])
            q_bf = q.astype(bf16)
            cls_ref[...] = classes
            qbuf[pl.ds(off, tn), :] = q_bf                                      # resident Q

            # per-class within-tile argmax (first occurrence) and critical-instance gather via a
            # one-hot matmul -> running q_max^T carry, no scalar extraction / transposes.
            rows = jax.lax.broadcasted_iota(jnp.int32, (tn, CP), 0)
            valid = (rows + n * tn) < N
            cls_m = jnp.where(valid, classes, -jnp.inf)
            tile_max = jnp.max(cls_m, axis=0, keepdims=True)                    # [1, CP]
            cand = jnp.where(cls_m == tile_max, rows, tn)
            tile_arg = jnp.min(cand, axis=0, keepdims=True)                     # [1, CP]
            onehot = jnp.where(rows == tile_arg, 1.0, 0.0).astype(bf16)         # [tn, CP]
            tile_qmax_t = jax.lax.dot_general(                                  # [QD, CP]
                q_bf, onehot, (((0,), (0,)), ((), ())), preferred_element_type=f32)

            @pl.when(n == 0)
            def _init():
                max_sc[...] = tile_max
                qmax_sc[...] = tile_qmax_t

            @pl.when(n > 0)
            def _merge():
                better = tile_max > max_sc[...]
                max_sc[...] = jnp.where(better, tile_max, max_sc[...])
                qmax_sc[...] = jnp.where(better, tile_qmax_t, qmax_sc[...])

            # Attention + bag pooling run once after the last tile, entirely from VMEM-resident
            # copies of feats/Q -> no second HBM pass over the bag.
            @pl.when(n == n_tiles - 1)
            def _attention():
                qmax_bf = qmax_sc[...].astype(bf16)                             # [QD, CP]
                l_sc[...] = jnp.zeros_like(l_sc)
                bagf_ref[...] = jnp.zeros_like(bagf_ref)

                @pl.loop(0, n_tiles)
                def _exp_pass(t):
                    o = pl.multiple_of(t * tn, tn)
                    q_t = qbuf[pl.ds(o, tn), :]
                    logits = jnp.dot(q_t, qmax_bf, preferred_element_type=f32) * inv_sqrt_qd
                    r = jax.lax.broadcasted_iota(jnp.int32, (tn, CP), 0)
                    v = (r + t * tn) < N
                    # static softmax bound: |logits| <= sqrt(QD) because Q, q_max are tanh-bounded
                    e = jnp.where(v, jnp.exp(logits - bound), 0.0)
                    a_ref[pl.ds(o, tn), :] = e
                    l_sc[...] += jnp.sum(e, axis=0, keepdims=True)

                inv_l = 1.0 / l_sc[...]                                         # exact; runs once

                @pl.loop(0, n_tiles)
                def _norm_pass(t):
                    o = pl.multiple_of(t * tn, tn)
                    a_t = a_ref[pl.ds(o, tn), :] * inv_l                        # normalized A
                    a_ref[pl.ds(o, tn), :] = a_t
                    bagf_ref[...] += jax.lax.dot_general(                       # B += A_t^T feats_t
                        a_t.astype(bf16), xbuf[pl.ds(o, tn), :],
                        (((0,), (0,)), ((), ())), preferred_element_type=f32)

        classes_p, a_p, b_p = pl.pallas_call(
            fused_kernel,
            out_shape=(jax.ShapeDtypeStruct((NP, CP), f32),       # classes (padded lanes)
                       jax.ShapeDtypeStruct((NP, CP), f32),       # normalized A (padded lanes)
                       jax.ShapeDtypeStruct((CP, K), f32)),       # bag features B (padded rows)
            grid_spec=pltpu.PrefetchScalarGridSpec(
                num_scalar_prefetch=0,
                grid=(n_tiles,),
                in_specs=[
                    pl.BlockSpec((tn, K), lambda n: (n, 0)),          # streamed f32 feats
                    pl.BlockSpec((K, CP + QD), lambda n: (0, 0)),     # resident weights
                    pl.BlockSpec((1, CP + QD), lambda n: (0, 0)),
                    pl.BlockSpec((QD, QD), lambda n: (0, 0)),
                    pl.BlockSpec((1, QD), lambda n: (0, 0)),
                ],
                out_specs=[
                    pl.BlockSpec((tn, CP), lambda n: (n, 0)),         # streamed classes
                    pl.BlockSpec((NP, CP), lambda n: (0, 0)),         # VMEM-resident A
                    pl.BlockSpec((CP, K), lambda n: (0, 0)),          # resident B accumulator
                ],
                scratch_shapes=[
                    pltpu.VMEM((NP, K), bf16),     # resident bf16 feats
                    pltpu.VMEM((NP, QD), bf16),    # resident Q
                    pltpu.VMEM((1, CP), f32),      # running per-class max
                    pltpu.VMEM((QD, CP), f32),     # running critical-instance Q (transposed)
                    pltpu.VMEM((1, CP), f32),      # softmax denominators
                ],
            ),
            compiler_params=cparams,
        )(x_p, w1, b1, w2, b2)

        classes = classes_p[:N, :C]
        A = a_p[:N, :C]
        B = b_p[:C, :]

    else:
        # ================== two-pass streaming fallback (bag exceeds VMEM) =====================
        def p1_kernel(x_ref, w1_ref, b1_ref, w2_ref, b2_ref,
                      cls_ref, q_ref, qmax_ref, max_sc):
            n = pl.program_id(0)
            feats = x_ref[...].astype(bf16)
            z = jnp.dot(feats, w1_ref[...], preferred_element_type=f32) + b1_ref[...]
            classes = z[:, :CP]
            h = jnp.maximum(z[:, CP:], 0.0)
            q = jnp.tanh(jnp.dot(h.astype(bf16), w2_ref[...],
                                 preferred_element_type=f32) + b2_ref[...])
            q_bf = q.astype(bf16)
            cls_ref[...] = classes
            q_ref[...] = q_bf

            rows = jax.lax.broadcasted_iota(jnp.int32, (tn, CP), 0)
            valid = (rows + n * tn) < N
            cls_m = jnp.where(valid, classes, -jnp.inf)
            tile_max = jnp.max(cls_m, axis=0, keepdims=True)
            cand = jnp.where(cls_m == tile_max, rows, tn)
            tile_arg = jnp.min(cand, axis=0, keepdims=True)
            onehot = jnp.where(rows == tile_arg, 1.0, 0.0).astype(bf16)
            tile_qmax_t = jax.lax.dot_general(
                q_bf, onehot, (((0,), (0,)), ((), ())), preferred_element_type=f32)

            @pl.when(n == 0)
            def _init():
                max_sc[...] = tile_max
                qmax_ref[...] = tile_qmax_t

            @pl.when(n > 0)
            def _merge():
                better = tile_max > max_sc[...]
                max_sc[...] = jnp.where(better, tile_max, max_sc[...])
                qmax_ref[...] = jnp.where(better, tile_qmax_t, qmax_ref[...])

        classes_p, q_all, qmax_t = pl.pallas_call(
            p1_kernel,
            out_shape=(jax.ShapeDtypeStruct((NP, CP), f32),
                       jax.ShapeDtypeStruct((NP, QD), bf16),      # Q only feeds phase 2 -> bf16
                       jax.ShapeDtypeStruct((QD, CP), f32)),      # q_max^T (gather done in-kernel)
            grid_spec=pltpu.PrefetchScalarGridSpec(
                num_scalar_prefetch=0,
                grid=(n_tiles,),
                in_specs=[
                    pl.BlockSpec((tn, K), lambda n: (n, 0)),
                    pl.BlockSpec((K, CP + QD), lambda n: (0, 0)),
                    pl.BlockSpec((1, CP + QD), lambda n: (0, 0)),
                    pl.BlockSpec((QD, QD), lambda n: (0, 0)),
                    pl.BlockSpec((1, QD), lambda n: (0, 0)),
                ],
                out_specs=[
                    pl.BlockSpec((tn, CP), lambda n: (n, 0)),
                    pl.BlockSpec((tn, QD), lambda n: (n, 0)),
                    pl.BlockSpec((QD, CP), lambda n: (0, 0)),     # resident q_max^T carry
                ],
                scratch_shapes=[pltpu.VMEM((1, CP), f32)],
            ),
            compiler_params=cparams,
        )(x_p, w1, b1, w2, b2)

        def p2_kernel(x_ref, q_ref, qmax_ref, e_ref, l_ref, bagf_ref):
            n = pl.program_id(0)

            @pl.when(n == 0)
            def _init():
                l_ref[...] = jnp.zeros_like(l_ref)
                bagf_ref[...] = jnp.zeros_like(bagf_ref)

            logits = jnp.dot(q_ref[...], qmax_ref[...].astype(bf16),
                             preferred_element_type=f32) * inv_sqrt_qd
            rows = jax.lax.broadcasted_iota(jnp.int32, (tn, CP), 0)
            valid = (rows + n * tn) < N
            e = jnp.where(valid, jnp.exp(logits - bound), 0.0)
            e_ref[...] = e.astype(e_ref.dtype)               # bf16 store: halves padded writes
            l_ref[...] += jnp.sum(e, axis=0, keepdims=True)
            bagf_ref[...] += jax.lax.dot_general(            # unnormalized B += e^T feats
                e.astype(bf16), x_ref[...].astype(bf16),
                (((0,), (0,)), ((), ())), preferred_element_type=f32)

        e_p, l_p, b_p = pl.pallas_call(
            p2_kernel,
            out_shape=(jax.ShapeDtypeStruct((NP, CP), bf16),  # exp terms (A before normalization)
                       jax.ShapeDtypeStruct((1, CP), f32),    # per-class softmax denominator
                       jax.ShapeDtypeStruct((CP, K), f32)),   # unnormalized bag features
            grid_spec=pltpu.PrefetchScalarGridSpec(
                num_scalar_prefetch=0,
                grid=(n_tiles,),
                in_specs=[
                    pl.BlockSpec((tn, K), lambda n: (n, 0)),      # streamed f32 feats
                    pl.BlockSpec((tn, QD), lambda n: (n, 0)),     # streamed Q
                    pl.BlockSpec((QD, CP), lambda n: (0, 0)),     # resident q_max^T
                ],
                out_specs=[
                    pl.BlockSpec((tn, CP), lambda n: (n, 0)),
                    pl.BlockSpec((1, CP), lambda n: (0, 0)),
                    pl.BlockSpec((CP, K), lambda n: (0, 0)),
                ],
            ),
            compiler_params=cparams,
        )(x_p, q_all, qmax_t)

        l = l_p[:, :C]                                        # [1, C]
        classes = classes_p[:N, :C]
        A = e_p[:N, :C].astype(f32) * (1.0 / l)
        B = b_p[:C, :] / l.T

    # Conv1d(C, C, kernel_size=K) bag head == full (c, k) contraction: O(C^2*K) -> plain XLA.
    pred = B.reshape(1, C * K) @ params["wcc"].T.astype(f32) + params["bcc"].astype(f32)
    return classes, pred, A, B


# --------------------------------- references / test harness ----------------------------------
def milnet_reference_f32(x, params):
    """Pure-f32 reference faithful to the PyTorch module."""
    feats = x
    classes = feats @ params["wi"].T + params["bi"]
    h = jnp.maximum(feats @ params["wq1"].T + params["bq1"], 0.0)
    Q = jnp.tanh(h @ params["wq2"].T + params["bq2"])
    idx = jnp.argmax(classes, axis=0)
    q_max = Q[idx]
    A = jax.nn.softmax((Q @ q_max.T) / jnp.sqrt(jnp.float32(Q.shape[1])), axis=0)
    B = A.T @ feats
    pred = B.reshape(1, -1) @ params["wcc"].T + params["bcc"]
    return classes, pred, A, B


def milnet_reference_matched(x, params):
    """Reference applying the same bf16-operand rounding as the kernels, so the comparison
    isolates kernel bugs from the deliberate mixed-precision policy."""
    bf = lambda a: a.astype(jnp.bfloat16).astype(jnp.float32)
    qd = params["wq1"].shape[0]
    xq = bf(x)
    classes = xq @ bf(params["wi"]).T + params["bi"]
    h = jnp.maximum(xq @ bf(params["wq1"]).T + params["bq1"], 0.0)
    Q = bf(jnp.tanh(bf(h) @ bf(params["wq2"]).T + params["bq2"]))
    idx = jnp.argmax(classes, axis=0)
    q_max = Q[idx]
    bound = float(np.sqrt(qd))
    e = jnp.exp((Q @ q_max.T) / bound - bound)
    l = jnp.sum(e, axis=0, keepdims=True)
    A = e / l
    B = bf(A).T @ xq
    pred = B.reshape(1, -1) @ params["wcc"].T + params["bcc"]
    return classes, pred, A, B


def init_params(key, feature_size, num_classes, q_dim=128):
    ks = jax.random.split(key, 8)
    s = 0.1
    return {
        "wi":  s * jax.random.normal(ks[0], (num_classes, feature_size), jnp.float32),
        "bi":  s * jax.random.normal(ks[1], (1, num_classes), jnp.float32),
        "wq1": s * jax.random.normal(ks[2], (q_dim, feature_size), jnp.float32),
        "bq1": s * jax.random.normal(ks[3], (1, q_dim), jnp.float32),
        "wq2": s * jax.random.normal(ks[4], (q_dim, q_dim), jnp.float32),
        "bq2": s * jax.random.normal(ks[5], (1, q_dim), jnp.float32),
        # Conv1d(C, C, kernel_size=K) weight [C, C, K] flattened to [C, C*K]
        "wcc": s * jax.random.normal(ks[6], (num_classes, num_classes * feature_size), jnp.float32),
        "bcc": s * jax.random.normal(ks[7], (1, num_classes), jnp.float32),
    }


if __name__ == "__main__":
    # small but tiled demo: 600 instances (non-multiple of the 512-row tile), 256 features, 4 classes
    N, K, C = 600, 256, 4

    key = jax.random.PRNGKey(0)
    kx, kp = jax.random.split(key)
    x = jax.random.normal(kx, (N, K), jnp.float32)
    params = init_params(kp, K, C)

    fwd_fused = jax.jit(milnet_forward)                                     # bag-resident path
    fwd_stream = jax.jit(functools.partial(milnet_forward, force_two_pass=True))

    outs_fused = jax.block_until_ready(fwd_fused(x, params))
    outs_stream = jax.block_until_ready(fwd_stream(x, params))

    ref = milnet_reference_matched(x, params)
    names = ("classes", "pred", "A", "B")
    tol = dict(atol=2e-2, rtol=2e-2)
    for tag, outs in (("fused", outs_fused), ("two-pass", outs_stream)):
        for out, r, name in zip(outs, ref, names):
            assert out.shape == r.shape, (tag, name, out.shape, r.shape)
            assert np.allclose(np.asarray(out), np.asarray(r), **tol), (tag, name)

    # sanity check of the bf16 policy against the pure-f32 module semantics
    fc, _, _, _ = milnet_reference_f32(x, params)
    assert np.allclose(np.asarray(outs_fused[0]), np.asarray(fc), atol=5e-2, rtol=5e-2)

    print("KERNEL_OK")
</pallas_src>

<mosaic_0001>
module attributes {stable_mosaic.version = 11 : i64} {
  func.func @fused_kernel(%arg0: i32, %arg1: memref<512x256xf32, #tpu.memory_space<vmem>>, %arg2: memref<256x256xbf16, #tpu.memory_space<vmem>>, %arg3: memref<1x256xf32, #tpu.memory_space<vmem>>, %arg4: memref<128x128xbf16, #tpu.memory_space<vmem>>, %arg5: memref<1x128xf32, #tpu.memory_space<vmem>>, %arg6: memref<512x128xf32, #tpu.memory_space<vmem>>, %arg7: memref<1024x128xf32, #tpu.memory_space<vmem>>, %arg8: memref<128x256xf32, #tpu.memory_space<vmem>>, %arg9: memref<1024x256xbf16, #tpu.memory_space<vmem>>, %arg10: memref<1024x128xbf16, #tpu.memory_space<vmem>>, %arg11: memref<1x128xf32, #tpu.memory_space<vmem>>, %arg12: memref<128x128xf32, #tpu.memory_space<vmem>>, %arg13: memref<1x128xf32, #tpu.memory_space<vmem>>) attributes {dimension_semantics = [#tpu.dimension_semantics<arbitrary>], iteration_bounds = array<i64: 2>, scalar_prefetch = 0 : i64, scratch_operands = 5 : i64, tpu.core_type = #tpu.core_type<tc>, window_params = [{transform_indices = @transform_0, window_bounds = array<i64: 512, 256>}, {pipeline_mode = #tpu.pipeline_mode<synchronous>, transform_indices = @transform_1, window_bounds = array<i64: 256, 256>}, {pipeline_mode = #tpu.pipeline_mode<synchronous>, transform_indices = @transform_2, window_bounds = array<i64: 1, 256>}, {pipeline_mode = #tpu.pipeline_mode<synchronous>, transform_indices = @transform_3, window_bounds = array<i64: 128, 128>}, {pipeline_mode = #tpu.pipeline_mode<synchronous>, transform_indices = @transform_4, window_bounds = array<i64: 1, 128>}, {transform_indices = @transform_5, window_bounds = array<i64: 512, 128>}, {pipeline_mode = #tpu.pipeline_mode<synchronous>, transform_indices = @transform_6, window_bounds = array<i64: 1024, 128>}, {pipeline_mode = #tpu.pipeline_mode<synchronous>, transform_indices = @transform_7, window_bounds = array<i64: 128, 256>}]} {
    %c512_i32 = arith.constant 512 : i32
    %0 = arith.muli %arg0, %c512_i32 : i32
    %1 = tpu.assume_multiple %0, 512 : i32
    %c0 = arith.constant 0 : index
    %c0_0 = arith.constant 0 : index
    %2 = vector.load %arg1[%c0, %c0_0] : memref<512x256xf32, #tpu.memory_space<vmem>>, vector<512x256xf32>
    %3 = arith.truncf %2 : vector<512x256xf32> to vector<512x256xbf16>
    %4 = arith.index_cast %1 : i32 to index
    %c0_1 = arith.constant 0 : index
    %5 = vector.load %arg9[%4, %c0_1] : memref<1024x256xbf16, #tpu.memory_space<vmem>>, vector<512x256xbf16>
    tpu.vector_store %arg9[%4, %c0_1], %3 {strides = array<i32>} : memref<1024x256xbf16, #tpu.memory_space<vmem>>, vector<512x256xbf16>,
    %c0_2 = arith.constant 0 : index
    %c0_3 = arith.constant 0 : index
    %6 = vector.load %arg2[%c0_2, %c0_3] : memref<256x256xbf16, #tpu.memory_space<vmem>>, vector<256x256xbf16>
    %cst = arith.constant dense<0.000000e+00> : vector<512x256xf32>
    %7 = tpu.matmul %3, %6, %cst {dimension_numbers = #tpu.dot_dimension_numbers<[1], [0], [0], [1], [0, 0, 1, 1], [], []>} : vector<512x256xbf16>, vector<256x256xbf16>, vector<512x256xf32> -> vector<512x256xf32>
    %c0_4 = arith.constant 0 : index
    %c0_5 = arith.constant 0 : index
    %8 = vector.load %arg3[%c0_4, %c0_5] : memref<1x256xf32, #tpu.memory_space<vmem>>, vector<1x256xf32>
    %9 = vector.broadcast %8 : vector<1x256xf32> to vector<512x256xf32>
    %10 = arith.addf %7, %9 : vector<512x256xf32>
    %11 = vector.extract_strided_slice %10 {offsets = [0, 0], sizes = [512, 128], strides = [1, 1]} : vector<512x256xf32> to vector<512x128xf32>
    %12 = vector.extract_strided_slice %10 {offsets = [0, 128], sizes = [512, 128], strides = [1, 1]} : vector<512x256xf32> to vector<512x128xf32>
    %cst_6 = arith.constant 0.000000e+00 : f32
    %13 = vector.broadcast %cst_6 : f32 to vector<512x128xf32>
    %14 = arith.maximumf %12, %13 : vector<512x128xf32>
    %15 = arith.truncf %14 : vector<512x128xf32> to vector<512x128xbf16>
    %c0_7 = arith.constant 0 : index
    %c0_8 = arith.constant 0 : index
    %16 = vector.load %arg4[%c0_7, %c0_8] : memref<128x128xbf16, #tpu.memory_space<vmem>>, vector<128x128xbf16>
    %cst_9 = arith.constant dense<0.000000e+00> : vector<512x128xf32>
    %17 = tpu.matmul %15, %16, %cst_9 {dimension_numbers = #tpu.dot_dimension_numbers<[1], [0], [0], [1], [0, 0, 1, 1], [], []>} : vector<512x128xbf16>, vector<128x128xbf16>, vector<512x128xf32> -> vector<512x128xf32>
    %c0_10 = arith.constant 0 : index
    %c0_11 = arith.constant 0 : index
    %18 = vector.load %arg5[%c0_10, %c0_11] : memref<1x128xf32, #tpu.memory_space<vmem>>, vector<1x128xf32>
    %19 = vector.broadcast %18 : vector<1x128xf32> to vector<512x128xf32>
    %20 = arith.addf %17, %19 : vector<512x128xf32>
    %21 = math.tanh %20 : vector<512x128xf32>
    %22 = arith.truncf %21 : vector<512x128xf32> to vector<512x128xbf16>
    %c0_12 = arith.constant 0 : index
    %c0_13 = arith.constant 0 : index
    %23 = vector.load %arg6[%c0_12, %c0_13] : memref<512x128xf32, #tpu.memory_space<vmem>>, vector<512x128xf32>
    tpu.vector_store %arg6[%c0_12, %c0_13], %11 {strides = array<i32>} : memref<512x128xf32, #tpu.memory_space<vmem>>, vector<512x128xf32>,
    %24 = arith.index_cast %1 : i32 to index
    %c0_14 = arith.constant 0 : index
    %25 = vector.load %arg10[%24, %c0_14] : memref<1024x128xbf16, #tpu.memory_space<vmem>>, vector<512x128xbf16>
    tpu.vector_store %arg10[%24, %c0_14], %22 {strides = array<i32>} : memref<1024x128xbf16, #tpu.memory_space<vmem>>, vector<512x128xbf16>,
    %26 = tpu.iota {dimensions = array<i32: 0>} : vector<512x128xi32>
    %c512_i32_15 = arith.constant 512 : i32
    %27 = arith.muli %arg0, %c512_i32_15 : i32
    %28 = vector.broadcast %27 : i32 to vector<512x128xi32>
    %29 = arith.addi %26, %28 : vector<512x128xi32>
    %c600_i32 = arith.constant 600 : i32
    %30 = vector.broadcast %c600_i32 : i32 to vector<512x128xi32>
    %31 = arith.cmpi slt, %29, %30 : vector<512x128xi32>
    %cst_16 = arith.constant 0xFF800000 : f32
    %32 = vector.broadcast %cst_16 : f32 to vector<512x128xf32>
    %33 = arith.select %31, %11, %32 : vector<512x128xi1>, vector<512x128xf32>
    %cst_17 = arith.constant dense<0xFF800000> : vector<128xf32>
    %34 = vector.multi_reduction <maximumf>, %33, %cst_17 [0] : vector<512x128xf32> to vector<128xf32>
    %35 = vector.shape_cast %34 : vector<128xf32> to vector<1x128xf32>
    %36 = vector.broadcast %35 : vector<1x128xf32> to vector<512x128xf32>
    %37 = arith.cmpf oeq, %33, %36 : vector<512x128xf32>
    %c512_i32_18 = arith.constant 512 : i32
    %38 = vector.broadcast %c512_i32_18 : i32 to vector<512x128xi32>
    %39 = arith.select %37, %26, %38 : vector<512x128xi1>, vector<512x128xi32>
    %cst_19 = arith.constant dense<2147483647> : vector<128xi32>
    %40 = vector.multi_reduction <minsi>, %39, %cst_19 [0] : vector<512x128xi32> to vector<128xi32>
    %41 = vector.shape_cast %40 : vector<128xi32> to vector<1x128xi32>
    %42 = vector.broadcast %41 : vector<1x128xi32> to vector<512x128xi32>
    %43 = arith.cmpi eq, %26, %42 : vector<512x128xi32>
    %cst_20 = arith.constant 1.000000e+00 : f32
    %cst_21 = arith.constant 0.000000e+00 : f32
    %44 = vector.broadcast %cst_20 : f32 to vector<512x128xf32>
    %45 = vector.broadcast %cst_21 : f32 to vector<512x128xf32>
    %46 = arith.select %43, %44, %45 : vector<512x128xi1>, vector<512x128xf32>
    %47 = arith.truncf %46 : vector<512x128xf32> to vector<512x128xbf16>
    %cst_22 = arith.constant dense<0.000000e+00> : vector<128x128xf32>
    %48 = tpu.matmul %22, %47, %cst_22 {dimension_numbers = #tpu.dot_dimension_numbers<[0], [0], [1], [1], [0, 1, 1, 1], [], []>} : vector<512x128xbf16>, vector<512x128xbf16>, vector<128x128xf32> -> vector<128x128xf32>
    %c0_i32 = arith.constant 0 : i32
    %49 = arith.cmpi eq, %arg0, %c0_i32 : i32
    %50 = arith.extui %49 : i1 to i32
    %c0_i32_23 = arith.constant 0 : i32
    %51 = arith.cmpi ne, %50, %c0_i32_23 : i32
    scf.if %51 {
      %c0_27 = arith.constant 0 : index
      %c0_28 = arith.constant 0 : index
      %58 = vector.load %arg11[%c0_27, %c0_28] : memref<1x128xf32, #tpu.memory_space<vmem>>, vector<1x128xf32>
      tpu.vector_store %arg11[%c0_27, %c0_28], %35 {strides = array<i32>} : memref<1x128xf32, #tpu.memory_space<vmem>>, vector<1x128xf32>,
      %c0_29 = arith.constant 0 : index
      %c0_30 = arith.constant 0 : index
      %59 = vector.load %arg12[%c0_29, %c0_30] : memref<128x128xf32, #tpu.memory_space<vmem>>, vector<128x128xf32>
      tpu.vector_store %arg12[%c0_29, %c0_30], %48 {strides = array<i32>} : memref<128x128xf32, #tpu.memory_space<vmem>>, vector<128x128xf32>,
    } else {
    }
    %c0_i32_24 = arith.constant 0 : i32
    %52 = arith.cmpi sgt, %arg0, %c0_i32_24 : i32
    %53 = arith.extui %52 : i1 to i32
    %c0_i32_25 = arith.constant 0 : i32
    %54 = arith.cmpi ne, %53, %c0_i32_25 : i32
    scf.if %54 {
      %c0_27 = arith.constant 0 : index
      %c0_28 = arith.constant 0 : index
      %58 = vector.load %arg11[%c0_27, %c0_28] : memref<1x128xf32, #tpu.memory_space<vmem>>, vector<1x128xf32>
      %59 = arith.cmpf ogt, %35, %58 : vector<1x128xf32>
      %c0_29 = arith.constant 0 : index
      %c0_30 = arith.constant 0 : index
      %60 = vector.load %arg11[%c0_29, %c0_30] : memref<1x128xf32, #tpu.memory_space<vmem>>, vector<1x128xf32>
      %61 = arith.select %59, %35, %60 : vector<1x128xi1>, vector<1x128xf32>
      %c0_31 = arith.constant 0 : index
      %c0_32 = arith.constant 0 : index
      %62 = vector.load %arg11[%c0_31, %c0_32] : memref<1x128xf32, #tpu.memory_space<vmem>>, vector<1x128xf32>
      tpu.vector_store %arg11[%c0_31, %c0_32], %61 {strides = array<i32>} : memref<1x128xf32, #tpu.memory_space<vmem>>, vector<1x128xf32>,
      %c0_33 = arith.constant 0 : index
      %c0_34 = arith.constant 0 : index
      %63 = vector.load %arg12[%c0_33, %c0_34] : memref<128x128xf32, #tpu.memory_space<vmem>>, vector<128x128xf32>
      %64 = vector.shape_cast %59 : vector<1x128xi1> to vector<1x128xi1>
      %65 = vector.broadcast %64 : vector<1x128xi1> to vector<128x128xi1>
      %66 = arith.select %65, %48, %63 : vector<128x128xi1>, vector<128x128xf32>
      %c0_35 = arith.constant 0 : index
      %c0_36 = arith.constant 0 : index
      %67 = vector.load %arg12[%c0_35, %c0_36] : memref<128x128xf32, #tpu.memory_space<vmem>>, vector<128x128xf32>
      tpu.vector_store %arg12[%c0_35, %c0_36], %66 {strides = array<i32>} : memref<128x128xf32, #tpu.memory_space<vmem>>, vector<128x128xf32>,
    } else {
    }
    %c1_i32 = arith.constant 1 : i32
    %55 = arith.cmpi eq, %arg0, %c1_i32 : i32
    %56 = arith.extui %55 : i1 to i32
    %c0_i32_26 = arith.constant 0 : i32
    %57 = arith.cmpi ne, %56, %c0_i32_26 : i32
    scf.if %57 {
      %c0_27 = arith.constant 0 : index
      %c0_28 = arith.constant 0 : index
      %58 = vector.load %arg12[%c0_27, %c0_28] : memref<128x128xf32, #tpu.memory_space<vmem>>, vector<128x128xf32>
      %59 = arith.truncf %58 : vector<128x128xf32> to vector<128x128xbf16>
      %cst_29 = arith.constant 0.000000e+00 : f32
      %60 = vector.broadcast %cst_29 : f32 to vector<1x128xf32>
      %c0_30 = arith.constant 0 : index
      %c0_31 = arith.constant 0 : index
      %61 = vector.load %arg13[%c0_30, %c0_31] : memref<1x128xf32, #tpu.memory_space<vmem>>, vector<1x128xf32>
      tpu.vector_store %arg13[%c0_30, %c0_31], %60 {strides = array<i32>} : memref<1x128xf32, #tpu.memory_space<vmem>>, vector<1x128xf32>,
      %cst_32 = arith.constant 0.000000e+00 : f32
      %62 = vector.broadcast %cst_32 : f32 to vector<128x256xf32>
      %c0_33 = arith.constant 0 : index
      %c0_34 = arith.constant 0 : index
      %63 = vector.load %arg8[%c0_33, %c0_34] : memref<128x256xf32, #tpu.memory_space<vmem>>, vector<128x256xf32>
      tpu.vector_store %arg8[%c0_33, %c0_34], %62 {strides = array<i32>} : memref<128x256xf32, #tpu.memory_space<vmem>>, vector<128x256xf32>,
      %c0_i32_35 = arith.constant 0 : i32
      %c2_i32 = arith.constant 2 : i32
      %64 = arith.addi %c0_i32_35, %c2_i32 : i32
      %c1_i32_36 = arith.constant 1 : i32
      scf.for %arg14 = %c0_i32_35 to %64 step %c1_i32_36  : i32 {
        %c1_i32_45 = arith.constant 1 : i32
        %69 = arith.muli %arg14, %c1_i32_45 : i32
        %c0_i32_46 = arith.constant 0 : i32
        %70 = arith.addi %c0_i32_46, %69 : i32
        %c512_i32_47 = arith.constant 512 : i32
        %71 = arith.muli %70, %c512_i32_47 : i32
        %72 = tpu.assume_multiple %71, 512 : i32
        %73 = arith.index_cast %72 : i32 to index
        %c0_48 = arith.constant 0 : index
        %74 = vector.load %arg10[%73, %c0_48] : memref<1024x128xbf16, #tpu.memory_space<vmem>>, vector<512x128xbf16>
        %cst_49 = arith.constant dense<0.000000e+00> : vector<512x128xf32>
        %75 = tpu.matmul %74, %59, %cst_49 {dimension_numbers = #tpu.dot_dimension_numbers<[1], [0], [0], [1], [0, 0, 1, 1], [], []>} : vector<512x128xbf16>, vector<128x128xbf16>, vector<512x128xf32> -> vector<512x128xf32>
        %cst_50 = arith.constant 0.0883883461 : f32
        %76 = vector.broadcast %cst_50 : f32 to vector<512x128xf32>
        %77 = arith.mulf %75, %76 : vector<512x128xf32>
        %78 = tpu.iota {dimensions = array<i32: 0>} : vector<512x128xi32>
        %c512_i32_51 = arith.constant 512 : i32
        %79 = arith.muli %70, %c512_i32_51 : i32
        %80 = vector.broadcast %79 : i32 to vector<512x128xi32>
        %81 = arith.addi %78, %80 : vector<512x128xi32>
        %c600_i32_52 = arith.constant 600 : i32
        %82 = vector.broadcast %c600_i32_52 : i32 to vector<512x128xi32>
        %83 = arith.cmpi slt, %81, %82 : vector<512x128xi32>
        %cst_53 = arith.constant 11.3137083 : f32
        %84 = vector.broadcast %cst_53 : f32 to vector<512x128xf32>
        %85 = arith.subf %77, %84 : vector<512x128xf32>
        %86 = math.exp %85 : vector<512x128xf32>
        %cst_54 = arith.constant 0.000000e+00 : f32
        %87 = vector.broadcast %cst_54 : f32 to vector<512x128xf32>
        %88 = arith.select %83, %86, %87 : vector<512x128xi1>, vector<512x128xf32>
        %89 = arith.index_cast %72 : i32 to index
        %c0_55 = arith.constant 0 : index
        %90 = vector.load %arg7[%89, %c0_55] : memref<1024x128xf32, #tpu.memory_space<vmem>>, vector<512x128xf32>
        tpu.vector_store %arg7[%89, %c0_55], %88 {strides = array<i32>} : memref<1024x128xf32, #tpu.memory_space<vmem>>, vector<512x128xf32>,
        %c0_56 = arith.constant 0 : index
        %c0_57 = arith.constant 0 : index
        %91 = vector.load %arg13[%c0_56, %c0_57] : memref<1x128xf32, #tpu.memory_space<vmem>>, vector<1x128xf32>
        %cst_58 = arith.constant dense<0.000000e+00> : vector<128xf32>
        %92 = vector.multi_reduction <add>, %88, %cst_58 [0] : vector<512x128xf32> to vector<128xf32>
        %93 = vector.shape_cast %92 : vector<128xf32> to vector<1x128xf32>
        %94 = arith.addf %91, %93 : vector<1x128xf32>
        %c0_59 = arith.constant 0 : index
        %c0_60 = arith.constant 0 : index
        %95 = vector.load %arg13[%c0_59, %c0_60] : memref<1x128xf32, #tpu.memory_space<vmem>>, vector<1x128xf32>
        tpu.vector_store %arg13[%c0_59, %c0_60], %94 {strides = array<i32>} : memref<1x128xf32, #tpu.memory_space<vmem>>, vector<1x128xf32>,
      }
      %c2_i32_37 = arith.constant 2 : i32
      %c0_38 = arith.constant 0 : index
      %c0_39 = arith.constant 0 : index
      %65 = vector.load %arg13[%c0_38, %c0_39] : memref<1x128xf32, #tpu.memory_space<vmem>>, vector<1x128xf32>
      %cst_40 = arith.constant 1.000000e+00 : f32
      %66 = vector.broadcast %cst_40 : f32 to vector<1x128xf32>
      %67 = arith.divf %66, %65 : vector<1x128xf32>
      %c0_i32_41 = arith.constant 0 : i32
      %c2_i32_42 = arith.constant 2 : i32
      %68 = arith.addi %c0_i32_41, %c2_i32_42 : i32
      %c1_i32_43 = arith.constant 1 : i32
      scf.for %arg14 = %c0_i32_41 to %68 step %c1_i32_43  : i32 {
        %c1_i32_45 = arith.constant 1 : i32
        %69 = arith.muli %arg14, %c1_i32_45 : i32
        %c0_i32_46 = arith.constant 0 : i32
        %70 = arith.addi %c0_i32_46, %69 : i32
        %c512_i32_47 = arith.constant 512 : i32
        %71 = arith.muli %70, %c512_i32_47 : i32
        %72 = tpu.assume_multiple %71, 512 : i32
        %73 = arith.index_cast %72 : i32 to index
        %c0_48 = arith.constant 0 : index
        %74 = vector.load %arg7[%73, %c0_48] : memref<1024x128xf32, #tpu.memory_space<vmem>>, vector<512x128xf32>
        %75 = vector.broadcast %67 : vector<1x128xf32> to vector<512x128xf32>
        %76 = arith.mulf %74, %75 : vector<512x128xf32>
        %77 = arith.index_cast %72 : i32 to index
        %c0_49 = arith.constant 0 : index
        %78 = vector.load %arg7[%77, %c0_49] : memref<1024x128xf32, #tpu.memory_space<vmem>>, vector<512x128xf32>
        tpu.vector_store %arg7[%77, %c0_49], %76 {strides = array<i32>} : memref<1024x128xf32, #tpu.memory_space<vmem>>, vector<512x128xf32>,
        %c0_50 = arith.constant 0 : index
        %c0_51 = arith.constant 0 : index
        %79 = vector.load %arg8[%c0_50, %c0_51] : memref<128x256xf32, #tpu.memory_space<vmem>>, vector<128x256xf32>
        %80 = arith.truncf %76 : vector<512x128xf32> to vector<512x128xbf16>
        %81 = arith.index_cast %72 : i32 to index
        %c0_52 = arith.constant 0 : index
        %82 = vector.load %arg9[%81, %c0_52] : memref<1024x256xbf16, #tpu.memory_space<vmem>>, vector<512x256xbf16>
        %cst_53 = arith.constant dense<0.000000e+00> : vector<128x256xf32>
        %83 = tpu.matmul %80, %82, %cst_53 {dimension_numbers = #tpu.dot_dimension_numbers<[0], [0], [1], [1], [0, 1, 1, 1], [], []>} : vector<512x128xbf16>, vector<512x256xbf16>, vector<128x256xf32> -> vector<128x256xf32>
        %84 = arith.addf %79, %83 : vector<128x256xf32>
        %c0_54 = arith.constant 0 : index
        %c0_55 = arith.constant 0 : index
        %85 = vector.load %arg8[%c0_54, %c0_55] : memref<128x256xf32, #tpu.memory_space<vmem>>, vector<128x256xf32>
        tpu.vector_store %arg8[%c0_54, %c0_55], %84 {strides = array<i32>} : memref<128x256xf32, #tpu.memory_space<vmem>>, vector<128x256xf32>,
      }
      %c2_i32_44 = arith.constant 2 : i32
    } else {
    }
    return
  }
  func.func @transform_0(%arg0: i32) -> (i32, i32) {
    %c0_i32 = arith.constant 0 : i32
    %c0_i32_0 = arith.constant 0 : i32
    return %arg0, %c0_i32 : i32, i32
  }
  func.func @transform_1(%arg0: i32) -> (i32, i32) {
    %c0_i32 = arith.constant 0 : i32
    %c0_i32_0 = arith.constant 0 : i32
    %c0_i32_1 = arith.constant 0 : i32
    return %c0_i32, %c0_i32_0 : i32, i32
  }
  func.func @transform_2(%arg0: i32) -> (i32, i32) {
    %c0_i32 = arith.constant 0 : i32
    %c0_i32_0 = arith.constant 0 : i32
    %c0_i32_1 = arith.constant 0 : i32
    return %c0_i32, %c0_i32_0 : i32, i32
  }
  func.func @transform_3(%arg0: i32) -> (i32, i32) {
    %c0_i32 = arith.constant 0 : i32
    %c0_i32_0 = arith.constant 0 : i32
    %c0_i32_1 = arith.constant 0 : i32
    return %c0_i32, %c0_i32_0 : i32, i32
  }
  func.func @transform_4(%arg0: i32) -> (i32, i32) {
    %c0_i32 = arith.constant 0 : i32
    %c0_i32_0 = arith.constant 0 : i32
    %c0_i32_1 = arith.constant 0 : i32
    return %c0_i32, %c0_i32_0 : i32, i32
  }
  func.func @transform_5(%arg0: i32) -> (i32, i32) {
    %c0_i32 = arith.constant 0 : i32
    %c0_i32_0 = arith.constant 0 : i32
    return %arg0, %c0_i32 : i32, i32
  }
  func.func @transform_6(%arg0: i32) -> (i32, i32) {
    %c0_i32 = arith.constant 0 : i32
    %c0_i32_0 = arith.constant 0 : i32
    %c0_i32_1 = arith.constant 0 : i32
    return %c0_i32, %c0_i32_0 : i32, i32
  }
  func.func @transform_7(%arg0: i32) -> (i32, i32) {
    %c0_i32 = arith.constant 0 : i32
    %c0_i32_0 = arith.constant 0 : i32
    %c0_i32_1 = arith.constant 0 : i32
    return %c0_i32, %c0_i32_0 : i32, i32
  }
}

</mosaic_0001>

<bundles_post_ra>
// kernel: milnet_forward.1
= control target key start
LH: loop header
LB: loop body
LE: loop exit
PB: predicated region body
PF: predicated region fallthrough
CT: control target
= control target key end

     0   :  { %s5627_s24 = smov 0   ;;  %s9731_s0 = inlined_call_operand.vmem [shape: f32[1024,256], index: 0, kind: input, shape index: {}]   ;;  %s9732_s1 = inlined_call_operand.vmem [shape: bf16[256,256], index: 1, kind: input, shape index: {}]   ;;  %s9733_s2 = inlined_call_operand.vmem [shape: f32[1,256], index: 2, kind: input, shape index: {}]   ;;  %s9734_s3 = inlined_call_operand.vmem [shape: bf16[128,128], index: 3, kind: input, shape index: {}]   ;;  %s9735_s4 = inlined_call_operand.vmem [shape: f32[1,128], index: 4, kind: input, shape index: {}]   ;;  %s9736_s5 = inlined_call_operand.vmem [shape: f32[1024,128], index: 5, kind: output, shape index: {0}]   ;;  %s9737_s6 = inlined_call_operand.vmem [shape: f32[1024,128], index: 6, kind: output, shape index: {1}]   ;;  %s9738_s7 = inlined_call_operand.vmem [shape: f32[128,256], index: 7, kind: output, shape index: {2}]  }
   0x1 LB: > { %s5633_s25 = sadd.s32 4294967295, %s5574_s24   ;;  %p4610_p0 = scmp.ge.s32.totalorder %s5574_s24, 1  ;;  %s5574_s24 = sphi %s5627_s24, %s18_s24  }
   0x2   : > { %p234_p1 = scmp.lt.s32.totalorder %s5574_s24, 3 }
   0x4   : > { %p235_p2 = pnand %p4610_p0, %p234_p1 }
   0x6   : > { %238 = sbr.rel (%p235_p2) target bundleno = 2039 (0x7f7), region = 40 }
   0xd   : > { %v5245_v0 = vld [vmem:[%s9732_s1 + $0x4] ss:$8 sps:$4 sm:$0xff]   ;;  %v5247_v1 = vld [vmem:[%s9732_s1] ss:$8 sps:$4 sm:$0xff]   ;;  %v5248_v2 = vld [vmem:[%s9732_s1 + $0x14] ss:$8 sps:$4 sm:$0xff]  }
   0xe   : > { %747 = vmatprep.subr.bf16.mxu0 %v5245_v0  ;;  %v5250_v3 = vld [vmem:[%s9732_s1 + $0x10] ss:$8 sps:$4 sm:$0xff]   ;;  %v5251_v4 = vld [vmem:[%s9732_s1 + $0x24] ss:$8 sps:$4 sm:$0xff]   ;;  %s4611_s13 = sshll.u32 %s5633_s25, 6  ;;  %s5686_s14 = sshll.u32 %s5633_s25, 9 }
   0xf   : > { %748 = vmatpush1.bf16.msra.mxu0 %v5247_v1  ;;  %v5253_v5 = vld [vmem:[%s9732_s1 + $0x20] ss:$8 sps:$4 sm:$0xff]   ;;  %p268_p3 = scmp.lt.s32.totalorder %s4611_s13, 127  ;;  %v5254_v6 = vld [vmem:[%s9732_s1 + $0x34] ss:$8 sps:$4 sm:$0xff]   ;;  %s5705_s19 = scalar_lea.vmem [#allocation2], %s5686_s14 }
  0x10   : > { %749 = vmatprep.subr.bf16.mxu0 %v5248_v2  ;;  %v5256_v7 = vld [vmem:[%s9732_s1 + $0x30] ss:$8 sps:$4 sm:$0xff]   ;;  %v5257_v8 = vld [vmem:[%s9732_s1 + $0x44] ss:$8 sps:$4 sm:$0xff]   ;;  %v5259_v9 = vld [vmem:[%s9732_s1 + $0x40] ss:$8 sps:$4 sm:$0xff]  }
  0x11   : > { %s10385_s13 = smov (!%p268_p3, %s4611_s13), 127  ;;  %v5260_v10 = vld [vmem:[%s9732_s1 + $0x54] ss:$8 sps:$4 sm:$0xff]   ;;  %v5262_v11 = vld [vmem:[%s9732_s1 + $0x50] ss:$8 sps:$4 sm:$0xff]   ;;  %p4725_p4 = scmp.ne.s32.totalorder %s5633_s25, 0 }
  0x12   : > { %s4799_s26 = sshll.u32 %s10385_s13, 4  ;;  %v5263_v12 = vld [vmem:[%s9732_s1 + $0x64] ss:$8 sps:$4 sm:$0xff]   ;;  %v5265_v13 = vld [vmem:[%s9732_s1 + $0x60] ss:$8 sps:$4 sm:$0xff]   ;;  %s4615_s18 = sshll.u32 %s10385_s13, 3 }
  0x13   : > { %750 = vmatpush1.bf16.msra.mxu0 %v5250_v3  ;;  %s5677_s8 = scalar_lea.vmem %s9731_s0, %s4799_s26  ;;  %v5266_v16 = vld [vmem:[%s9732_s1 + $0x74] ss:$8 sps:$4 sm:$0xff]   ;;  %v5268_v30 = vld [vmem:[%s9732_s1 + $0x70] ss:$8 sps:$4 sm:$0xff]   ;;  %v5269_v35 = vld [vmem:[%s9732_s1 + $0x84] ss:$8 sps:$4 sm:$0xff]   ;;  %s6225_s22 = scalar_lea.vmem %s9736_s5, %s4615_s18 }
  0x14   : > { %751 = vmatprep.subr.bf16.mxu0 %v5251_v4  ;;  %v283_v14 = vld [vmem:[%s5677_s8 + $0x8] sm:$0xff]  ;;  %v285_v15 = vld [vmem:[%s5677_s8 + $0x18] sm:$0xff]  ;;  %v282_v18 = vld [vmem:[%s5677_s8] sm:$0xff]  ;;  %s474_s26 = sshra.s32 %s5686_s14, 4 }
  0x15   : > { %v411_v17 = vpack.c.bf16 %v285_v15, %v283_v14  ;;  %v284_v19 = vld [vmem:[%s5677_s8 + $0x10] sm:$0xff]  ;;  %v287_v20 = vld [vmem:[%s5677_s8 + $0x28] sm:$0xff]  ;;  %v289_v22 = vld [vmem:[%s5677_s8 + $0x38] sm:$0xff]  ;;  %s4660_s27 = sshll.u32 %s474_s26, 3 }
  0x16   : > { %v5699_v21 = vpack.c.bf16 %v284_v19, %v282_v18  ;;  %v286_v23 = vld [vmem:[%s5677_s8 + $0x20] sm:$0xff]  ;;  %v288_v24 = vld [vmem:[%s5677_s8 + $0x30] sm:$0xff]  ;;  %v5708_v25 = vpack.c.bf16 %v289_v22, %v287_v20  ;;  %v291_v27 = vld [vmem:[%s5677_s8 + $0x48] sm:$0xff] }
  0x17   : > { %752 = vmatpush1.bf16.msra.mxu0 %v5253_v5  ;;  %480 = vst [vmem:[%s5705_s19 + $0x8] sm:$0xff] %v411_v17  ;;  %779 = vmatprep.mubr.bf16.mxu0 %v411_v17  ;;  %v5710_v26 = vpack.c.bf16 %v288_v24, %v286_v23  ;;  %v293_v28 = vld [vmem:[%s5677_s8 + $0x58] sm:$0xff]  ;;  %v290_v29 = vld [vmem:[%s5677_s8 + $0x40] sm:$0xff]  ;;  %v292_v32 = vld [vmem:[%s5677_s8 + $0x50] sm:$0xff] }
  0x18   : > { %753 = vmatprep.subr.bf16.mxu0 %v5254_v6  ;;  %479 = vst [vmem:[%s5705_s19] sm:$0xff] %v5699_v21  ;;  %v5720_v31 = vpack.c.bf16 %v293_v28, %v291_v27  ;;  %v295_v33 = vld [vmem:[%s5677_s8 + $0x68] sm:$0xff]  ;;  %v297_v34 = vld [vmem:[%s5677_s8 + $0x78] sm:$0xff]  ;;  %482 = vst [vmem:[%s5705_s19 + $0x18] sm:$0xff] %v5708_v25  ;;  %v5732_v36 = vpack.c.bf16 %v292_v32, %v290_v29 }
  0x19   : > { %481 = vst [vmem:[%s5705_s19 + $0x10] sm:$0xff] %v5710_v26  ;;  %v5734_v37 = vpack.c.bf16 %v297_v34, %v295_v33  ;;  %v294_v38 = vld [vmem:[%s5677_s8 + $0x60] sm:$0xff]  ;;  %v296_v39 = vld [vmem:[%s5677_s8 + $0x70] sm:$0xff]  ;;  %v299_v40 = vld [vmem:[%s5677_s8 + $0x88] sm:$0xff] }
  0x1a   : > { %484 = vst [vmem:[%s5705_s19 + $0x28] sm:$0xff] %v5720_v31  ;;  %v5741_v41 = vpack.c.bf16 %v296_v39, %v294_v38  ;;  %v301_v42 = vld [vmem:[%s5677_s8 + $0x98] sm:$0xff]  ;;  %v298_v43 = vld [vmem:[%s5677_s8 + $0x80] sm:$0xff]  ;;  %v300_v44 = vld [vmem:[%s5677_s8 + $0x90] sm:$0xff] }
  0x1b   : > { %754 = vmatpush1.bf16.msra.mxu0 %v5256_v7  ;;  %483 = vst [vmem:[%s5705_s19 + $0x20] sm:$0xff] %v5732_v36  ;;  %486 = vst [vmem:[%s5705_s19 + $0x38] sm:$0xff] %v5734_v37  ;;  %v5750_v45 = vpack.c.bf16 %v301_v42, %v299_v40  ;;  %v5752_v46 = vpack.c.bf16 %v300_v44, %v298_v43  ;;  %v303_v47 = vld [vmem:[%s5677_s8 + $0xa8] sm:$0xff]  ;;  %v305_v48 = vld [vmem:[%s5677_s8 + $0xb8] sm:$0xff] }
  0x1c   : > { %755 = vmatprep.subr.bf16.mxu0 %v5257_v8  ;;  %v302_v49 = vld [vmem:[%s5677_s8 + $0xa0] sm:$0xff]  ;;  %485 = vst [vmem:[%s5705_s19 + $0x30] sm:$0xff] %v5741_v41  ;;  %v5762_v51 = vpack.c.bf16 %v305_v48, %v303_v47  ;;  %v304_v52 = vld [vmem:[%s5677_s8 + $0xb0] sm:$0xff]  ;;  %v307_v53 = vld [vmem:[%s5677_s8 + $0xc8] sm:$0xff] }
  0x1d   : > { %v5271_v50 = vld [vmem:[%s9732_s1 + $0x80] ss:$8 sps:$4 sm:$0xff]   ;;  %v309_v54 = vld [vmem:[%s5677_s8 + $0xd8] sm:$0xff]  ;;  %488 = vst [vmem:[%s5705_s19 + $0x48] sm:$0xff] %v5750_v45  ;;  %487 = vst [vmem:[%s5705_s19 + $0x40] sm:$0xff] %v5752_v46  ;;  %v5774_v56 = vpack.c.bf16 %v304_v52, %v302_v49 }
  0x1e   : > { %v5272_v55 = vld [vmem:[%s9732_s1 + $0x94] ss:$8 sps:$4 sm:$0xff]   ;;  %v5776_v57 = vpack.c.bf16 %v309_v54, %v307_v53  ;;  %v306_v58 = vld [vmem:[%s5677_s8 + $0xc0] sm:$0xff]  ;;  %v311_v60 = vld [vmem:[%s5677_s8 + $0xe8] sm:$0xff]  ;;  %490 = vst [vmem:[%s5705_s19 + $0x58] sm:$0xff] %v5762_v51 }
  0x1f   : > { %756 = vmatpush1.bf16.msra.mxu0 %v5259_v9  ;;  %v308_v59 = vld [vmem:[%s5677_s8 + $0xd0] sm:$0xff]  ;;  %v313_v62 = vld [vmem:[%s5677_s8 + $0xf8] sm:$0xff]  ;;  %v310_v63 = vld [vmem:[%s5677_s8 + $0xe0] sm:$0xff]  ;;  %489 = vst [vmem:[%s5705_s19 + $0x50] sm:$0xff] %v5774_v56 }
  0x20   : > { %757 = vmatprep.subr.bf16.mxu0 %v5260_v10  ;;  %v5783_v61 = vpack.c.bf16 %v308_v59, %v306_v58  ;;  %v312_v0 = vld [vmem:[%s5677_s8 + $0xf0] sm:$0xff]  ;;  %492 = vst [vmem:[%s5705_s19 + $0x68] sm:$0xff] %v5776_v57  ;;  %v5792_v1 = vpack.c.bf16 %v313_v62, %v311_v60  ;;  %v315_v3 = vld [vmem:[%s5677_s8 + $0x108] sm:$0xff]  ;;  %v317_v4 = vld [vmem:[%s5677_s8 + $0x118] sm:$0xff] }
  0x21   : > { %v5794_v2 = vpack.c.bf16 %v312_v0, %v310_v63  ;;  %v314_v5 = vld [vmem:[%s5677_s8 + $0x100] sm:$0xff]  ;;  %v5274_v6 = vld [vmem:[%s9732_s1 + $0x90] ss:$8 sps:$4 sm:$0xff]   ;;  %v5804_v7 = vpack.c.bf16 %v317_v4, %v315_v3  ;;  %v319_v9 = vld [vmem:[%s5677_s8 + $0x128] sm:$0xff] }
  0x22   : > { %491 = vst [vmem:[%s5705_s19 + $0x60] sm:$0xff] %v5783_v61  ;;  %v316_v8 = vld [vmem:[%s5677_s8 + $0x110] sm:$0xff]  ;;  %v321_v10 = vld [vmem:[%s5677_s8 + $0x138] sm:$0xff]  ;;  %494 = vst [vmem:[%s5705_s19 + $0x78] sm:$0xff] %v5792_v1 }
  0x23   : > { %758 = vmatpush1.bf16.msra.mxu0 %v5262_v11  ;;  %v5275_v11 = vld [vmem:[%s9732_s1 + $0xa4] ss:$8 sps:$4 sm:$0xff]   ;;  %493 = vst [vmem:[%s5705_s19 + $0x70] sm:$0xff] %v5794_v2  ;;  %v320_v15 = vld [vmem:[%s5677_s8 + $0x130] sm:$0xff]  ;;  %496 = vst [vmem:[%s5705_s19 + $0x88] sm:$0xff] %v5804_v7 }
  0x24   : > { %759 = vmatprep.subr.bf16.mxu0 %v5263_v12  ;;  %v5816_v12 = vpack.c.bf16 %v316_v8, %v314_v5  ;;  %v318_v14 = vld [vmem:[%s5677_s8 + $0x120] sm:$0xff]  ;;  %v325_v18 = vld [vmem:[%s5677_s8 + $0x158] sm:$0xff]  ;;  %v324_v20 = vld [vmem:[%s5677_s8 + $0x150] sm:$0xff] }
  0x25   : > { %v5825_v17 = vpack.c.bf16 %v320_v15, %v318_v14  ;;  %v322_v19 = vld [vmem:[%s5677_s8 + $0x140] sm:$0xff]  ;;  %v327_v24 = vld [vmem:[%s5677_s8 + $0x168] sm:$0xff]  ;;  %v329_v27 = vld [vmem:[%s5677_s8 + $0x178] sm:$0xff] }
  0x26   : > { %495 = vst [vmem:[%s5705_s19 + $0x80] sm:$0xff] %v5816_v12  ;;  %v5836_v23 = vpack.c.bf16 %v324_v20, %v322_v19  ;;  %v326_v28 = vld [vmem:[%s5677_s8 + $0x160] sm:$0xff]  ;;  %v328_v32 = vld [vmem:[%s5677_s8 + $0x170] sm:$0xff]  ;;  %v331_v33 = vld [vmem:[%s5677_s8 + $0x188] sm:$0xff] }
  0x27   : > { %760 = vmatpush1.bf16.msra.mxu0 %v5265_v13  ;;  %v5818_v13 = vpack.c.bf16 %v321_v10, %v319_v9  ;;  %v5277_v29 = vld [vmem:[%s9732_s1 + $0xa0] ss:$8 sps:$4 sm:$0xff]   ;;  %497 = vst [vmem:[%s5705_s19 + $0x90] sm:$0xff] %v5825_v17  ;;  %v333_v34 = vld [vmem:[%s5677_s8 + $0x198] sm:$0xff]  ;;  %v5858_v38 = vpack.c.bf16 %v328_v32, %v326_v28  ;;  %v332_v42 = vld [vmem:[%s5677_s8 + $0x190] sm:$0xff] }
  0x28   : > { %761 = vmatprep.subr.bf16.mxu0 %v5266_v16  ;;  %v323_v16 = vld [vmem:[%s5677_s8 + $0x148] sm:$0xff]  ;;  %499 = vst [vmem:[%s5705_s19 + $0xa0] sm:$0xff] %v5836_v23  ;;  %v5860_v39 = vpack.c.bf16 %v333_v34, %v331_v33  ;;  %v330_v40 = vld [vmem:[%s5677_s8 + $0x180] sm:$0xff]  ;;  %v337_v47 = vld [vmem:[%s5677_s8 + $0x1b8] sm:$0xff] }
  0x29   : > { %498 = vst [vmem:[%s5705_s19 + $0x98] sm:$0xff] %v5818_v13  ;;  %v5834_v22 = vpack.c.bf16 %v325_v18, %v323_v16  ;;  %v335_v43 = vld [vmem:[%s5677_s8 + $0x1a8] sm:$0xff]  ;;  %v5867_v44 = vpack.c.bf16 %v332_v42, %v330_v40  ;;  %v334_v48 = vld [vmem:[%s5677_s8 + $0x1a0] sm:$0xff]  ;;  %v336_v49 = vld [vmem:[%s5677_s8 + $0x1b0] sm:$0xff] }
  0x2a   : > { %501 = vst [vmem:[%s5705_s19 + $0xb0] sm:$0xff] %v5858_v38  ;;  %504 = vst [vmem:[%s5705_s19 + $0xc8] sm:$0xff] %v5860_v39  ;;  %v5878_v52 = vpack.c.bf16 %v336_v49, %v334_v48  ;;  %v5280_v53 = vld [vmem:[%s9732_s1 + $0xb0] ss:$8 sps:$4 sm:$0xff]   ;;  %v5281_v54 = vld [vmem:[%s9732_s1 + $0xc4] ss:$8 sps:$4 sm:$0xff]  }
  0x2b   : > { %762 = vmatpush1.bf16.msra.mxu0 %v5268_v30  ;;  %v5846_v30 = vpack.c.bf16 %v329_v27, %v327_v24  ;;  %500 = vst [vmem:[%s5705_s19 + $0xa8] sm:$0xff] %v5834_v22  ;;  %503 = vst [vmem:[%s5705_s19 + $0xc0] sm:$0xff] %v5867_v44  ;;  %v341_v58 = vld [vmem:[%s5677_s8 + $0x1d8] sm:$0xff]  ;;  %v338_v60 = vld [vmem:[%s5677_s8 + $0x1c0] sm:$0xff] }
  0x2c   : > { %763 = vmatprep.subr.bf16.mxu0 %v5269_v35  ;;  %v5278_v35 = vld [vmem:[%s9732_s1 + $0xb4] ss:$8 sps:$4 sm:$0xff]   ;;  %505 = vst [vmem:[%s5705_s19 + $0xd0] sm:$0xff] %v5878_v52  ;;  %v5283_v0 = vld [vmem:[%s9732_s1 + $0xc0] ss:$8 sps:$4 sm:$0xff]  }
  0x2d   : > { %502 = vst [vmem:[%s5705_s19 + $0xb8] sm:$0xff] %v5846_v30  ;;  %v340_v62 = vld [vmem:[%s5677_s8 + $0x1d0] sm:$0xff]  ;;  %v343_v4 = vld [vmem:[%s5677_s8 + $0x1e8] sm:$0xff]  ;;  %v345_v5 = vld [vmem:[%s5677_s8 + $0x1f8] sm:$0xff] }
  0x2e   : > { %v5898_v63 = vpack.c.bf16 %v340_v62, %v338_v60  ;;  %v5284_v3 = vld [vmem:[%s9732_s1 + $0xd4] ss:$8 sps:$4 sm:$0xff]   ;;  %v5915_v8 = vpack.c.bf16 %v345_v5, %v343_v4  ;;  %v342_v9 = vld [vmem:[%s5677_s8 + $0x1e0] sm:$0xff]  ;;  %v347_v18 = vld [vmem:[%s5677_s8 + $0x208] sm:$0xff] }
  0x2f   : > { %764 = vmatpush1.bf16.msra.mxu0 %v5271_v50  ;;  %v5876_v50 = vpack.c.bf16 %v337_v47, %v335_v43  ;;  %v344_v10 = vld [vmem:[%s5677_s8 + $0x1f0] sm:$0xff]  ;;  %v5289_v15 = vld [vmem:[%s9732_s1 + $0xe0] ss:$8 sps:$4 sm:$0xff]   ;;  %v349_v19 = vld [vmem:[%s5677_s8 + $0x218] sm:$0xff] }
  0x30   : > { %765 = vmatprep.subr.bf16.mxu0 %v5272_v55  ;;  %v339_v55 = vld [vmem:[%s5677_s8 + $0x1c8] sm:$0xff]  ;;  %507 = vst [vmem:[%s5705_s19 + $0xe0] sm:$0xff] %v5898_v63  ;;  %v5922_v14 = vpack.c.bf16 %v344_v10, %v342_v9  ;;  %510 = vst [vmem:[%s5705_s19 + $0xf8] sm:$0xff] %v5915_v8  ;;  %v5290_v16 = vld [vmem:[%s9732_s1 + $0xf4] ss:$8 sps:$4 sm:$0xff]   ;;  %v5939_v24 = vpack.c.bf16 %v349_v19, %v347_v18 }
  0x31   : > { %506 = vst [vmem:[%s5705_s19 + $0xd8] sm:$0xff] %v5876_v50  ;;  %v5894_v59 = vpack.c.bf16 %v341_v58, %v339_v55  ;;  %v5292_v20 = vld [vmem:[%s9732_s1 + $0xf0] ss:$8 sps:$4 sm:$0xff]   ;;  %v346_v27 = vld [vmem:[%s5677_s8 + $0x200] sm:$0xff]  ;;  %v351_v32 = vld [vmem:[%s5677_s8 + $0x228] sm:$0xff] }
  0x32   : > { %509 = vst [vmem:[%s5705_s19 + $0xf0] sm:$0xff] %v5922_v14  ;;  %v348_v28 = vld [vmem:[%s5677_s8 + $0x210] sm:$0xff]  ;;  %512 = vst [vmem:[%s5705_s19 + $0x108] sm:$0xff] %v5939_v24  ;;  %v353_v33 = vld [vmem:[%s5677_s8 + $0x238] sm:$0xff] }
  0x33   : > { %766 = vmatpush1.bf16.msra.mxu0 %v5274_v6  ;;  %508 = vst [vmem:[%s5705_s19 + $0xe8] sm:$0xff] %v5894_v59  ;;  %v5286_v6 = vld [vmem:[%s9732_s1 + $0xd0] ss:$8 sps:$4 sm:$0xff]   ;;  %v5953_v34 = vpack.c.bf16 %v353_v33, %v351_v32  ;;  %v354_v47 = vld [vmem:[%s5677_s8 + $0x240] sm:$0xff] }
  0x34   : > { %767 = vmatprep.subr.bf16.mxu0 %v5275_v11  ;;  %v5287_v11 = vld [vmem:[%s9732_s1 + $0xe4] ss:$8 sps:$4 sm:$0xff]   ;;  %v352_v40 = vld [vmem:[%s5677_s8 + $0x230] sm:$0xff]  ;;  %v357_v43 = vld [vmem:[%s5677_s8 + $0x258] sm:$0xff] }
  0x35   : > { %514 = vst [vmem:[%s5705_s19 + $0x118] sm:$0xff] %v5953_v34  ;;  %v356_v48 = vld [vmem:[%s5677_s8 + $0x250] sm:$0xff]  ;;  %v365_v60 = vld [vmem:[%s5677_s8 + $0x298] sm:$0xff]  ;;  %v362_v62 = vld [vmem:[%s5677_s8 + $0x280] sm:$0xff] }
  0x36   : > { %v5971_v49 = vpack.c.bf16 %v356_v48, %v354_v47  ;;  %v360_v55 = vld [vmem:[%s5677_s8 + $0x270] sm:$0xff]  ;;  %v369_v4 = vld [vmem:[%s5677_s8 + $0x2b8] sm:$0xff]  ;;  %v366_v5 = vld [vmem:[%s5677_s8 + $0x2a0] sm:$0xff] }
  0x37   : > { %768 = vmatpush1.bf16.msra.mxu0 %v5277_v29  ;;  %v5943_v29 = vpack.c.bf16 %v348_v28, %v346_v27  ;;  %v373_v10 = vld [vmem:[%s5677_s8 + $0x2d8] sm:$0xff]  ;;  %v374_v19 = vld [vmem:[%s5677_s8 + $0x2e0] sm:$0xff]  ;;  %v380_v33 = vld [vmem:[%s5677_s8 + $0x310] sm:$0xff] }
  0x38   : > { %769 = vmatprep.subr.bf16.mxu0 %v5278_v35  ;;  %v350_v35 = vld [vmem:[%s5677_s8 + $0x220] sm:$0xff]  ;;  %515 = vst [vmem:[%s5705_s19 + $0x120] sm:$0xff] %v5971_v49  ;;  %v377_v18 = vld [vmem:[%s5677_s8 + $0x2f8] sm:$0xff]  ;;  %v384_v47 = vld [vmem:[%s5677_s8 + $0x330] sm:$0xff] }
  0x39   : > { %511 = vst [vmem:[%s5705_s19 + $0x100] sm:$0xff] %v5943_v29  ;;  %v5957_v42 = vpack.c.bf16 %v352_v40, %v350_v35  ;;  %v381_v28 = vld [vmem:[%s5677_s8 + $0x318] sm:$0xff]  ;;  %v378_v32 = vld [vmem:[%s5677_s8 + $0x300] sm:$0xff] }
  0x3a   : > { %v6055_v35 = vpack.c.bf16 %v380_v33, %v378_v32  ;;  %v385_v40 = vld [vmem:[%s5677_s8 + $0x338] sm:$0xff] }
  0x3b   : > { %770 = vmatpush1.bf16.msra.mxu0 %v5280_v53  ;;  %513 = vst [vmem:[%s5705_s19 + $0x110] sm:$0xff] %v5957_v42  ;;  %v361_v53 = vld [vmem:[%s5677_s8 + $0x278] sm:$0xff] }
  0x3c   : > { %771 = vmatprep.subr.bf16.mxu0 %v5281_v54  ;;  %v358_v54 = vld [vmem:[%s5677_s8 + $0x260] sm:$0xff]  ;;  %527 = vst [vmem:[%s5705_s19 + $0x180] sm:$0xff] %v6055_v35 }
  0x3d   : > { %v5985_v58 = vpack.c.bf16 %v360_v55, %v358_v54  ;;  %v386_v55 = vld [vmem:[%s5677_s8 + $0x340] sm:$0xff] }
  0x3f   : > { %772 = vmatpush1.bf16.msra.mxu0 %v5283_v0  ;;  %517 = vst [vmem:[%s5705_s19 + $0x130] sm:$0xff] %v5985_v58  ;;  %v364_v0 = vld [vmem:[%s5677_s8 + $0x290] sm:$0xff] }
  0x40   : > { %773 = vmatprep.subr.bf16.mxu0 %v5284_v3  ;;  %v5999_v3 = vpack.c.bf16 %v364_v0, %v362_v62  ;;  %v391_v62 = vld [vmem:[%s5677_s8 + $0x368] sm:$0xff]  ;;  %v393_v0 = vld [vmem:[%s5677_s8 + $0x378] sm:$0xff] }
  0x42   : > { %519 = vst [vmem:[%s5705_s19 + $0x140] sm:$0xff] %v5999_v3 }
  0x43   : > { %774 = vmatpush1.bf16.msra.mxu0 %v5286_v6  ;;  %v368_v6 = vld [vmem:[%s5677_s8 + $0x2b0] sm:$0xff] }
  0x44   : > { %775 = vmatprep.subr.bf16.mxu0 %v5287_v11  ;;  %v6013_v9 = vpack.c.bf16 %v368_v6, %v366_v5  ;;  %v370_v11 = vld [vmem:[%s5677_s8 + $0x2c0] sm:$0xff]  ;;  %v392_v5 = vld [vmem:[%s5677_s8 + $0x370] sm:$0xff] }
  0x45   : > { %v5299_v6 = vld [vmem:[%s9734_s3 + $0x30] sm:$0xff]  }
  0x46   : > { %521 = vst [vmem:[%s5705_s19 + $0x150] sm:$0xff] %v6013_v9 }
  0x47   : > { %776 = vmatpush1.bf16.msra.mxu0 %v5289_v15  ;;  %v372_v15 = vld [vmem:[%s5677_s8 + $0x2d0] sm:$0xff] }
  0x48   : > { %777 = vmatprep.subr.bf16.mxu0 %v5290_v16  ;;  %v6027_v16 = vpack.c.bf16 %v372_v15, %v370_v11  ;;  %v396_v15 = vld [vmem:[%s5677_s8 + $0x390] sm:$0xff] }
  0x4a   : > { %523 = vst [vmem:[%s5705_s19 + $0x160] sm:$0xff] %v6027_v16 }
  0x4b   : > { %778 = vmatpush1.bf16.msra.mxu0 %v5292_v20  ;;  %v376_v20 = vld [vmem:[%s5677_s8 + $0x2f0] sm:$0xff] }
  0x4c   : > { %v6041_v27 = vpack.c.bf16 %v376_v20, %v374_v19  ;;  %v401_v19 = vld [vmem:[%s5677_s8 + $0x3b8] sm:$0xff] }
  0x4e   : > { %780 = vmatmul.mubr.bf16.vlgmr.msra.gmra.mrb[0].mxu0 %v5699_v21  ;;  %v355_v21 = vld [vmem:[%s5677_s8 + $0x248] sm:$0xff]  ;;  %525 = vst [vmem:[%s5705_s19 + $0x170] sm:$0xff] %v6041_v27 }
  0x4f   : > { %789 = vmatprep.mubr.bf16.mxu0 %v5708_v25  ;;  %v5967_v25 = vpack.c.bf16 %v357_v43, %v355_v21  ;;  %v382_v43 = vld [vmem:[%s5677_s8 + $0x320] sm:$0xff] }
  0x50   : > { %v6072_v48 = vpack.c.bf16 %v384_v47, %v382_v43  ;;  %v406_v47 = vld [vmem:[%s5677_s8 + $0x3e0] sm:$0xff] }
  0x51   : > { %516 = vst [vmem:[%s5705_s19 + $0x128] sm:$0xff] %v5967_v25 }
  0x52   : > { %529 = vst [vmem:[%s5705_s19 + $0x190] sm:$0xff] %v6072_v48 }
  0x56   : > { %790 = vmatmul.mubr.bf16.gmra.mrb[4].mxu0 %v5710_v26  ;;  %v359_v26 = vld [vmem:[%s5677_s8 + $0x268] sm:$0xff] }
  0x57   : > { %799 = vmatprep.mubr.bf16.mxu0 %v5720_v31  ;;  %v5981_v31 = vpack.c.bf16 %v361_v53, %v359_v26  ;;  %v387_v26 = vld [vmem:[%s5677_s8 + $0x348] sm:$0xff]  ;;  %v389_v53 = vld [vmem:[%s5677_s8 + $0x358] sm:$0xff] }
  0x58   : > { %v6088_v54 = vpack.c.bf16 %v389_v53, %v387_v26 }
  0x59   : > { %518 = vst [vmem:[%s5705_s19 + $0x138] sm:$0xff] %v5981_v31 }
  0x5a   : > { %532 = vst [vmem:[%s5705_s19 + $0x1a8] sm:$0xff] %v6088_v54 }
  0x5e   : > { %800 = vmatmul.mubr.bf16.gmra.mrb[8].mxu0 %v5732_v36  ;;  %v363_v36 = vld [vmem:[%s5677_s8 + $0x288] sm:$0xff] }
  0x5f   : > { %809 = vmatprep.mubr.bf16.mxu0 %v5734_v37  ;;  %v5995_v37 = vpack.c.bf16 %v365_v60, %v363_v36  ;;  %v388_v36 = vld [vmem:[%s5677_s8 + $0x350] sm:$0xff] }
  0x60   : > { %v6092_v60 = vpack.c.bf16 %v388_v36, %v386_v55 }
  0x61   : > { %520 = vst [vmem:[%s5705_s19 + $0x148] sm:$0xff] %v5995_v37 }
  0x62   : > { %531 = vst [vmem:[%s5705_s19 + $0x1a0] sm:$0xff] %v6092_v60 }
  0x66   : > { %810 = vmatmul.mubr.bf16.gmra.mrb[12].mxu0 %v5741_v41  ;;  %v367_v41 = vld [vmem:[%s5677_s8 + $0x2a8] sm:$0xff] }
  0x67   : > { %819 = vmatprep.mubr.bf16.mxu0 %v5750_v45  ;;  %v6009_v45 = vpack.c.bf16 %v369_v4, %v367_v41  ;;  %v6108_v41 = vpack.c.bf16 %v393_v0, %v391_v62  ;;  %v390_v4 = vld [vmem:[%s5677_s8 + $0x360] sm:$0xff] }
  0x69   : > { %522 = vst [vmem:[%s5705_s19 + $0x158] sm:$0xff] %v6009_v45  ;;  %534 = vst [vmem:[%s5705_s19 + $0x1b8] sm:$0xff] %v6108_v41 }
  0x6e   : > { %820 = vmatmul.mubr.bf16.gmra.mrb[16].mxu0 %v5752_v46  ;;  %v371_v46 = vld [vmem:[%s5677_s8 + $0x2c8] sm:$0xff] }
  0x6f   : > { %829 = vmatprep.mubr.bf16.mxu0 %v5762_v51  ;;  %v6023_v51 = vpack.c.bf16 %v373_v10, %v371_v46  ;;  %v395_v46 = vld [vmem:[%s5677_s8 + $0x388] sm:$0xff]  ;;  %v397_v10 = vld [vmem:[%s5677_s8 + $0x398] sm:$0xff] }
  0x70   : > { %v6128_v11 = vpack.c.bf16 %v397_v10, %v395_v46 }
  0x71   : > { %524 = vst [vmem:[%s5705_s19 + $0x168] sm:$0xff] %v6023_v51 }
  0x72   : > { %536 = vst [vmem:[%s5705_s19 + $0x1c8] sm:$0xff] %v6128_v11 }
  0x76   : > { %830 = vmatmul.mubr.bf16.gmra.mrb[20].mxu0 %v5774_v56  ;;  %v375_v56 = vld [vmem:[%s5677_s8 + $0x2e8] sm:$0xff] }
  0x77   : > { %839 = vmatprep.mubr.bf16.mxu0 %v5776_v57  ;;  %v6037_v57 = vpack.c.bf16 %v377_v18, %v375_v56  ;;  %v5300_v56 = vld [vmem:[%s9734_s3 + $0x38] sm:$0xff]   ;;  %v399_v18 = vld [vmem:[%s5677_s8 + $0x3a8] sm:$0xff] }
  0x78   : > { %v6145_v20 = vpack.c.bf16 %v401_v19, %v399_v18 }
  0x79   : > { %526 = vst [vmem:[%s5705_s19 + $0x178] sm:$0xff] %v6037_v57 }
  0x7a   : > { %538 = vst [vmem:[%s5705_s19 + $0x1d8] sm:$0xff] %v6145_v20 }
  0x7e   : > { %840 = vmatmul.mubr.bf16.gmra.mrb[24].mxu0 %v5783_v61  ;;  %v379_v61 = vld [vmem:[%s5677_s8 + $0x308] sm:$0xff] }
  0x7f   : > { %849 = vmatprep.mubr.bf16.mxu0 %v5792_v1  ;;  %v6051_v1 = vpack.c.bf16 %v381_v28, %v379_v61  ;;  %v398_v61 = vld [vmem:[%s5677_s8 + $0x3a0] sm:$0xff]  ;;  %v400_v28 = vld [vmem:[%s5677_s8 + $0x3b0] sm:$0xff] }
  0x80   : > { %v6149_v32 = vpack.c.bf16 %v400_v28, %v398_v61 }
  0x81   : > { %528 = vst [vmem:[%s5705_s19 + $0x188] sm:$0xff] %v6051_v1 }
  0x82   : > { %537 = vst [vmem:[%s5705_s19 + $0x1d0] sm:$0xff] %v6149_v32 }
  0x86   : > { %850 = vmatmul.mubr.bf16.gmra.mrb[28].mxu0 %v5794_v2  ;;  %v5293_v2 = vld [vmem:[%s9734_s3] sm:$0xff]  }
  0x87   : > { %859 = vmatprep.mubr.bf16.mxu0 %v5804_v7  ;;  %v383_v7 = vld [vmem:[%s5677_s8 + $0x328] sm:$0xff]  ;;  %5010 = vmatprep.subr.bf16.mxu1 %v5293_v2 }
  0x88   : > { %v6068_v21 = vpack.c.bf16 %v385_v40, %v383_v7  ;;  %5011 = vmatpush3.bf16.msra.mxu1 %v5293_v2  ;;  %v402_v2 = vld [vmem:[%s5677_s8 + $0x3c0] sm:$0xff]  ;;  %v404_v7 = vld [vmem:[%s5677_s8 + $0x3d0] sm:$0xff] }
  0x89   : > { %v6163_v40 = vpack.c.bf16 %v404_v7, %v402_v2 }
  0x8a   : > { %530 = vst [vmem:[%s5705_s19 + $0x198] sm:$0xff] %v6068_v21 }
  0x8b   : > { %539 = vst [vmem:[%s5705_s19 + $0x1e0] sm:$0xff] %v6163_v40 }
  0x8e   : > { %860 = vmatmul.mubr.bf16.gmra.mrb[32].mxu0 %v5816_v12  ;;  %v5294_v12 = vld [vmem:[%s9734_s3 + $0x8] sm:$0xff]  }
  0x8f   : > { %869 = vmatprep.mubr.bf16.mxu0 %v5818_v13  ;;  %v5295_v13 = vld [vmem:[%s9734_s3 + $0x10] sm:$0xff]   ;;  %5012 = vmatprep.subr.bf16.mxu1 %v5294_v12 }
  0x90   : > { %5013 = vmatpush3.bf16.msra.mxu1 %v5294_v12  ;;  %v408_v12 = vld [vmem:[%s5677_s8 + $0x3f0] sm:$0xff] }
  0x91   : > { %5014 = vmatprep.subr.bf16.mxu1 %v5295_v13 }
  0x94   : > { %5015 = vmatpush3.bf16.msra.mxu1 %v5295_v13  ;;  %v6177_v13 = vpack.c.bf16 %v408_v12, %v406_v47 }
  0x96   : > { %870 = vmatmul.mubr.bf16.gmra.mrb[36].mxu0 %v5825_v17  ;;  %v5296_v17 = vld [vmem:[%s9734_s3 + $0x18] sm:$0xff]   ;;  %541 = vst [vmem:[%s5705_s19 + $0x1f0] sm:$0xff] %v6177_v13 }
  0x97   : > { %879 = vmatprep.mubr.bf16.mxu0 %v5834_v22  ;;  %5016 = vmatprep.subr.bf16.mxu1 %v5296_v17  ;;  %v5297_v22 = vld [vmem:[%s9734_s3 + $0x20] sm:$0xff]  }
  0x98   : > { %5017 = vmatpush3.bf16.msra.mxu1 %v5296_v17 }
  0x99   : > { %5018 = vmatprep.subr.bf16.mxu1 %v5297_v22 }
  0x9c   : > { %5019 = vmatpush3.bf16.msra.mxu1 %v5297_v22 }
  0x9e   : > { %880 = vmatmul.mubr.bf16.gmra.mrb[40].mxu0 %v5836_v23  ;;  %v6112_v23 = vpack.c.bf16 %v392_v5, %v390_v4 }
  0x9f   : > { %889 = vmatprep.mubr.bf16.mxu0 %v5846_v30  ;;  %v5298_v30 = vld [vmem:[%s9734_s3 + $0x28] sm:$0xff]  }
  0xa0   : > { %533 = vst [vmem:[%s5705_s19 + $0x1b0] sm:$0xff] %v6112_v23  ;;  %5020 = vmatprep.subr.bf16.mxu1 %v5298_v30 }
  0xa1   : > { %5021 = vmatpush3.bf16.msra.mxu1 %v5298_v30 }
  0xa2   : > { %5022 = vmatprep.subr.bf16.mxu1 %v5299_v6 }
  0xa5   : > { %5023 = vmatpush3.bf16.msra.mxu1 %v5299_v6 }
  0xa6   : > { %890 = vmatmul.mubr.bf16.gmra.mrb[44].mxu0 %v5858_v38  ;;  %v394_v38 = vld [vmem:[%s5677_s8 + $0x380] sm:$0xff]  ;;  %5024 = vmatprep.subr.bf16.mxu1 %v5300_v56 }
  0xa7   : > { %899 = vmatprep.mubr.bf16.mxu0 %v5860_v39  ;;  %v6132_v39 = vpack.c.bf16 %v396_v15, %v394_v38 }
  0xa9   : > { %535 = vst [vmem:[%s5705_s19 + $0x1c0] sm:$0xff] %v6132_v39  ;;  %5025 = vmatpush3.bf16.msra.mxu1 %v5300_v56 }
  0xae   : > { %900 = vmatmul.mubr.bf16.gmra.mrb[48].mxu0 %v5867_v44  ;;  %v403_v44 = vld [vmem:[%s5677_s8 + $0x3c8] sm:$0xff] }
  0xaf   : > { %909 = vmatprep.mubr.bf16.mxu0 %v5876_v50  ;;  %v405_v50 = vld [vmem:[%s5677_s8 + $0x3d8] sm:$0xff] }
  0xb0   : > { %v6159_v33 = vpack.c.bf16 %v405_v50, %v403_v44 }
  0xb2   : > { %540 = vst [vmem:[%s5705_s19 + $0x1e8] sm:$0xff] %v6159_v33 }
  0xb6   : > { %910 = vmatmul.mubr.bf16.gmra.mrb[52].mxu0 %v5878_v52  ;;  %v407_v52 = vld [vmem:[%s5677_s8 + $0x3e8] sm:$0xff] }
  0xb7   : > { %919 = vmatprep.mubr.bf16.mxu0 %v5894_v59  ;;  %v409_v59 = vld [vmem:[%s5677_s8 + $0x3f8] sm:$0xff] }
  0xb8   : > { %v6173_v43 = vpack.c.bf16 %v409_v59, %v407_v52 }
  0xba   : > { %542 = vst [vmem:[%s5705_s19 + $0x1f8] sm:$0xff] %v6173_v43 }
  0xbe   : > { %920 = vmatmul.mubr.bf16.gmra.mrb[56].mxu0 %v5898_v63  ;;  %v577_v63 = vlaneseq }
  0xbf   : > { %929 = vmatprep.mubr.bf16.mxu0 %v5915_v8 }
  0xc0   : > { %v6204_v8 = vshrl.u32 %v577_v63, 7 }
  0xc2   : > { %9945 = vst [vmem:[#allocation7_spill] sm:$0xff] %v6204_v8 }
  0xc6   : > { %930 = vmatmul.mubr.bf16.gmra.mrb[60].mxu0 %v5922_v14  ;;  %v6208_v14 = vsub.s32 0, %v6204_v8 }
  0xc7   : > { %939 = vmatprep.mubr.bf16.mxu0 %v5939_v24  ;;  %v575_v24 = vld [vmem:[%s9733_s2] sm:$0x3] }
  0xc8   : > { %9946 = vst [vmem:[#allocation8_spill] sm:$0xff] %v6208_v14 }
  0xce   : > { %940 = vmatmul.mubr.bf16.gmra.mrb[64].mxu0 %v5943_v29  ;;  %v583_v29 = vsub.s32 1, %v6204_v8 }
  0xcf   : > { %949 = vmatprep.mubr.bf16.mxu0 %v5953_v34  ;;  %v6217_v34 = vrot.slane %v575_v24, %v6208_v14 }
  0xd6   : > { %950 = vmatmul.mubr.bf16.gmra.mrb[68].mxu0 %v5957_v42  ;;  %v6219_v42 = vrot.slane %v575_v24, %v583_v29 }
  0xd7   : > { %959 = vmatprep.mubr.bf16.mxu0 %v5967_v25 }
  0xde   : > { %960 = vmatmul.mubr.bf16.gmra.mrb[72].mxu0 %v5971_v49 }
  0xdf   : > { %969 = vmatprep.mubr.bf16.mxu0 %v5981_v31 }
  0xe6   : > { %970 = vmatmul.mubr.bf16.gmra.mrb[76].mxu0 %v5985_v58 }
  0xe7   : > { %979 = vmatprep.mubr.bf16.mxu0 %v5995_v37 }
  0xee   : > { %980 = vmatmul.mubr.bf16.gmra.mrb[80].mxu0 %v5999_v3 }
  0xef   : > { %989 = vmatprep.mubr.bf16.mxu0 %v6009_v45 }
  0xf6   : > { %990 = vmatmul.mubr.bf16.gmra.mrb[84].mxu0 %v6013_v9 }
  0xf7   : > { %999 = vmatprep.mubr.bf16.mxu0 %v6023_v51 }
  0xfe   : > { %1000 = vmatmul.mubr.bf16.gmra.mrb[88].mxu0 %v6027_v16 }
  0xff   : > { %1009 = vmatprep.mubr.bf16.mxu0 %v6037_v57 }
 0x106   : > { %1010 = vmatmul.mubr.bf16.gmra.mrb[92].mxu0 %v6041_v27 }
 0x107   : > { %1019 = vmatprep.mubr.bf16.mxu0 %v6051_v1 }
 0x10e   : > { %1020 = vmatmul.mubr.bf16.gmra.mrb[96].mxu0 %v6055_v35 }
 0x10f   : > { %1029 = vmatprep.mubr.bf16.mxu0 %v6068_v21 }
 0x116   : > { %1030 = vmatmul.mubr.bf16.gmra.mrb[100].mxu0 %v6072_v48 }
 0x117   : > { %1039 = vmatprep.mubr.bf16.mxu0 %v6088_v54 }
 0x11e   : > { %1040 = vmatmul.mubr.bf16.gmra.mrb[104].mxu0 %v6092_v60 }
 0x11f   : > { %1049 = vmatprep.mubr.bf16.mxu0 %v6108_v41 }
 0x121   : > { %v781_v25 = vpop.f32.mrb[0].mxu0 }
 0x122   : > { %v6228_v49 = vadd.f32 %v781_v25, %v6217_v34  ;;  %v783_v31 = vpop.f32.mrb[1].mxu0 }
 0x123   : > { %v784_v58 = vadd.f32 %v783_v31, %v6219_v42  ;;  %v785_v37 = vpop.f32.mrb[2].mxu0 }
 0x124   : > { %1652 = vst [vmem:[%s6225_s22] sm:$0xff] %v6228_v49  ;;  %v6234_v3 = vadd.f32 %v785_v37, %v6217_v34  ;;  %v787_v45 = vpop.f32.mrb[3].mxu0 }
 0x125   : > { %v788_v9 = vadd.f32 %v787_v45, %v6219_v42  ;;  %v1100_v51 = vmax.f32 %v784_v58, 0.0  ;;  %v6312_v45 = vstv %s5686_s14  ;;  %s7073_s14 = scalar_lea.vmem [#allocation3], %s4660_s27 }
 0x126   : > { %1653 = vst [vmem:[%s6225_s22 + $0x8] sm:$0xff] %v6234_v3  ;;  %1050 = vmatmul.mubr.bf16.gmra.mrb[108].mxu0 %v6112_v23 }
 0x127   : > { %v1101_v16 = vmax.f32 %v788_v9, 0.0  ;;  %1059 = vmatprep.mubr.bf16.mxu0 %v6128_v11  ;;  %v6315_v9 = vadd.s32 16, %v6204_v8 }
 0x129   : > { %v791_v57 = vpop.f32.mrb[4].mxu0  ;;  %v1164_v27 = vpack.c.bf16 %v1101_v16, %v1100_v51  ;;  %9948 = vst [vmem:[#allocation10_spill] sm:$0xff] %v6315_v9 }
 0x12a   : > { %v6242_v1 = vadd.f32 %v791_v57, %v6217_v34  ;;  %v793_v35 = vpop.f32.mrb[5].mxu0 }
 0x12b   : > { %v794_v21 = vadd.f32 %v793_v35, %v6219_v42  ;;  %v795_v48 = vpop.f32.mrb[6].mxu0  ;;  %5026 = vmatprep.mubr.bf16.mxu1 %v1164_v27 }
 0x12c   : > { %1654 = vst [vmem:[%s6225_s22 + $0x10] sm:$0xff] %v6242_v1  ;;  %v6248_v26 = vadd.f32 %v795_v48, %v6217_v34  ;;  %v797_v53 = vpop.f32.mrb[7].mxu0 }
 0x12d   : > { %v798_v54 = vadd.f32 %v797_v53, %v6219_v42  ;;  %v1102_v55 = vmax.f32 %v794_v21, 0.0  ;;  %v1816_v21 = vadd.s32 %v6312_v45, %v6204_v8 }
 0x12e   : > { %1655 = vst [vmem:[%s6225_s22 + $0x18] sm:$0xff] %v6248_v26  ;;  %1060 = vmatmul.mubr.bf16.gmra.mrb[112].mxu0 %v6132_v39 }
 0x12f   : > { %v1103_v36 = vmax.f32 %v798_v54, 0.0  ;;  %1069 = vmatprep.mubr.bf16.mxu0 %v6145_v20  ;;  %v1818_v54 = vadd.s32 %v6312_v45, %v6315_v9  ;;  %vm1880_vm1 = vcmp.lt.s32.totalorder %v1816_v21, 600 }
 0x131   : > { %v1165_v60 = vpack.c.bf16 %v1103_v36, %v1102_v55  ;;  %v801_v17 = vpop.f32.mrb[8].mxu0  ;;  %v6327_v55 = vadd.s32 24, %v6204_v8  ;;  %vm1882_vm2 = vcmp.lt.s32.totalorder %v1818_v54, 600  ;;  %v6410_v54 = vadd.s32 72, %v6204_v8 }
 0x132   : > { %v6256_v22 = vadd.f32 %v801_v17, %v6217_v34  ;;  %v803_v62 = vpop.f32.mrb[9].mxu0 }
 0x133   : > { %v804_v0 = vadd.f32 %v803_v62, %v6219_v42  ;;  %v805_v41 = vpop.f32.mrb[10].mxu0  ;;  %5027 = vmatmul.mubr.bf16.vlgmr.msra.gmra.mrb[0].mxu1 %v1165_v60  ;;  %9949 = vst [vmem:[#allocation11_spill] sm:$0xff] %v6327_v55  ;;  %9955 = vst [vmem:[#allocation17_spill] sm:$0xff] %v6410_v54 }
 0x134   : > { %1656 = vst [vmem:[%s6225_s22 + $0x20] sm:$0xff] %v6256_v22  ;;  %v6262_v4 = vadd.f32 %v805_v41, %v6217_v34  ;;  %v807_v5 = vpop.f32.mrb[11].mxu0 }
 0x135   : > { %v808_v23 = vadd.f32 %v807_v5, %v6219_v42  ;;  %v1104_v30 = vmax.f32 %v804_v0, 0.0  ;;  %v6336_v0 = vadd.s32 32, %v6204_v8  ;;  %v1819_v5 = vadd.s32 %v6312_v45, %v6327_v55 }
 0x136   : > { %1657 = vst [vmem:[%s6225_s22 + $0x28] sm:$0xff] %v6262_v4  ;;  %1070 = vmatmul.mubr.bf16.gmra.mrb[116].mxu0 %v6149_v32 }
 0x137   : > { %v1105_v6 = vmax.f32 %v808_v23, 0.0  ;;  %1079 = vmatprep.mubr.bf16.mxu0 %v6159_v33  ;;  %9950 = vst [vmem:[#allocation12_spill] sm:$0xff] %v6336_v0  ;;  %vm1883_vm3 = vcmp.lt.s32.totalorder %v1819_v5, 600 }
 0x139   : > { %v1166_v46 = vpack.c.bf16 %v1105_v6, %v1104_v30  ;;  %v811_v10 = vpop.f32.mrb[12].mxu0 }
 0x13a   : > { %v6270_v11 = vadd.f32 %v811_v10, %v6217_v34  ;;  %v813_v38 = vpop.f32.mrb[13].mxu0  ;;  %v6349_v10 = vadd.s32 40, %v6204_v8 }
 0x13b   : > { %v814_v15 = vadd.f32 %v813_v38, %v6219_v42  ;;  %v815_v39 = vpop.f32.mrb[14].mxu0  ;;  %5030 = vmatprep.mubr.bf16.mxu1 %v1166_v46  ;;  %v1820_v46 = vadd.s32 %v6312_v45, %v6336_v0 }
 0x13c   : > { %1658 = vst [vmem:[%s6225_s22 + $0x30] sm:$0xff] %v6270_v11  ;;  %v6276_v56 = vadd.f32 %v815_v39, %v6217_v34  ;;  %v817_v18 = vpop.f32.mrb[15].mxu0  ;;  %9951 = vst [vmem:[#allocation13_spill] sm:$0xff] %v6349_v10  ;;  %v6352_v39 = vsel %vm1880_vm1, %v6228_v49, -inf }
 0x13d   : > { %v818_v19 = vadd.f32 %v817_v18, %v6219_v42  ;;  %v1106_v20 = vmax.f32 %v814_v15, 0.0  ;;  %v6355_v18 = vsel %vm1882_vm2, %v6242_v1, -inf  ;;  %vm1884_vm4 = vcmp.lt.s32.totalorder %v1820_v46, 600 }
 0x13e   : > { %1659 = vst [vmem:[%s6225_s22 + $0x38] sm:$0xff] %v6276_v56  ;;  %1080 = vmatmul.mubr.bf16.gmra.mrb[120].mxu0 %v6163_v40 }
 0x13f   : > { %v1107_v61 = vmax.f32 %v818_v19, 0.0  ;;  %1089 = vmatprep.mubr.bf16.mxu0 %v6173_v43 }
 0x141   : > { %v1167_v28 = vpack.c.bf16 %v1107_v61, %v1106_v20  ;;  %v821_v32 = vpop.f32.mrb[16].mxu0  ;;  %v6363_v61 = vadd.s32 48, %v6204_v8 }
 0x142   : > { %v6284_v44 = vadd.f32 %v821_v32, %v6217_v34  ;;  %v823_v50 = vpop.f32.mrb[17].mxu0 }
 0x143   : > { %v824_v33 = vadd.f32 %v823_v50, %v6219_v42  ;;  %v825_v2 = vpop.f32.mrb[18].mxu0  ;;  %5031 = vmatmul.mubr.bf16.gmra.mrb[4].mxu1 %v1167_v28  ;;  %9952 = vst [vmem:[#allocation14_spill] sm:$0xff] %v6363_v61 }
 0x144   : > { %1660 = vst [vmem:[%s6225_s22 + $0x40] sm:$0xff] %v6284_v44  ;;  %v6290_v7 = vadd.f32 %v825_v2, %v6217_v34  ;;  %v827_v40 = vpop.f32.mrb[19].mxu0 }
 0x145   : > { %v828_v52 = vadd.f32 %v827_v40, %v6219_v42  ;;  %v1108_v59 = vmax.f32 %v824_v33, 0.0  ;;  %v1821_v33 = vadd.s32 %v6312_v45, %v6349_v10  ;;  %v6376_v40 = vsel %vm1883_vm3, %v6248_v26, -inf }
 0x146   : > { %1661 = vst [vmem:[%s6225_s22 + $0x48] sm:$0xff] %v6290_v7  ;;  %1090 = vmatmul.mubr.bf16.gmra.mrb[124].mxu0 %v6177_v13  ;;  %v6306_v13 = vadd.s32 8, %v6204_v8  ;;  %v6390_v26 = vadd.s32 64, %v6204_v8 }
 0x147   : > { %v1109_v43 = vmax.f32 %v828_v52, 0.0  ;;  %v1822_v52 = vadd.s32 %v6312_v45, %v6363_v61  ;;  %vm1885_vm5 = vcmp.lt.s32.totalorder %v1821_v33, 600 }
 0x148   : > { %9947 = vst [vmem:[#allocation9_spill] sm:$0xff] %v6306_v13  ;;  %v1817_v57 = vadd.s32 %v6312_v45, %v6306_v13  ;;  %9954 = vst [vmem:[#allocation16_spill] sm:$0xff] %v6390_v26 }
 0x149   : > { %v1168_v47 = vpack.c.bf16 %v1109_v43, %v1108_v59  ;;  %v831_v12 = vpop.f32.mrb[20].mxu0  ;;  %v6383_v59 = vadd.s32 56, %v6204_v8  ;;  %vm1886_vm6 = vcmp.lt.s32.totalorder %v1822_v52, 600  ;;  %v6447_v52 = vadd.s32 96, %v6204_v8 }
 0x14a   : > { %v6297_v63 = vadd.f32 %v831_v12, %v6217_v34  ;;  %v833_v24 = vpop.f32.mrb[21].mxu0  ;;  %vm1881_vm0 = vcmp.lt.s32.totalorder %v1817_v57, 600  ;;  %v6386_v12 = vsel %vm1884_vm4, %v6256_v22, -inf }
 0x14b   : > { %v834_v29 = vadd.f32 %v833_v24, %v6219_v42  ;;  %v835_v25 = vpop.f32.mrb[22].mxu0  ;;  %5034 = vmatprep.mubr.bf16.mxu1 %v1168_v47  ;;  %v6344_v6 = vsel %vm1881_vm0, %v6234_v3, -inf  ;;  %9953 = vst [vmem:[#allocation15_spill] sm:$0xff] %v6383_v59  ;;  %v1823_v22 = vadd.s32 %v6312_v45, %v6383_v59  ;;  %9958 = vst [vmem:[#allocation20_spill] sm:$0xff] %v6447_v52 }
 0x14c   : > { %1662 = vst [vmem:[%s6225_s22 + $0x50] sm:$0xff] %v6297_v63  ;;  %v6303_v31 = vadd.f32 %v835_v25, %v6217_v34  ;;  %v837_v58 = vpop.f32.mrb[23].mxu0  ;;  %v2008_v20 = vmax.f32 %v6352_v39, %v6344_v6 }
 0x14d   : > { %v838_v37 = vadd.f32 %v837_v58, %v6219_v42  ;;  %v1110_v51 = vmax.f32 %v834_v29, 0.0  ;;  %vm1887_vm7 = vcmp.lt.s32.totalorder %v1823_v22, 600 }
 0x14e   : > { %1663 = vst [vmem:[%s6225_s22 + $0x58] sm:$0xff] %v6303_v31  ;;  %v2009_v50 = vmax.f32 %v6355_v18, %v2008_v20 }
 0x14f   : > { %v1111_v16 = vmax.f32 %v838_v37, 0.0 }
 0x150   : > { %v2010_v24 = vmax.f32 %v6376_v40, %v2009_v50 }
 0x151   : > { %v1169_v27 = vpack.c.bf16 %v1111_v16, %v1110_v51  ;;  %v841_v35 = vpop.f32.mrb[24].mxu0 }
 0x152   : > { %v6322_v48 = vadd.f32 %v841_v35, %v6217_v34  ;;  %v843_v53 = vpop.f32.mrb[25].mxu0  ;;  %v2011_v51 = vmax.f32 %v6386_v12, %v2010_v24 }
 0x153   : > { %v844_v36 = vadd.f32 %v843_v53, %v6219_v42  ;;  %v845_v60 = vpop.f32.mrb[26].mxu0  ;;  %5035 = vmatmul.mubr.bf16.gmra.mrb[8].mxu1 %v1169_v27  ;;  %v6400_v27 = vsel %vm1885_vm5, %v6262_v4, -inf  ;;  %v1824_v53 = vadd.s32 %v6312_v45, %v6390_v26  ;;  %v6417_v4 = vadd.s32 80, %v6204_v8 }
 0x154   : > { %1664 = vst [vmem:[%s6225_s22 + $0x60] sm:$0xff] %v6322_v48  ;;  %v6333_v17 = vadd.f32 %v845_v60, %v6217_v34  ;;  %v847_v62 = vpop.f32.mrb[27].mxu0  ;;  %v6414_v60 = vsel %vm1886_vm6, %v6270_v11, -inf }
 0x155   : > { %v848_v41 = vadd.f32 %v847_v62, %v6219_v42  ;;  %v1112_v23 = vmax.f32 %v844_v36, 0.0  ;;  %9956 = vst [vmem:[#allocation18_spill] sm:$0xff] %v6417_v4  ;;  %v2012_v62 = vmax.f32 %v6400_v27, %v2011_v51  ;;  %vm1888_vm8 = vcmp.lt.s32.totalorder %v1824_v53, 600 }
 0x156   : > { %1665 = vst [vmem:[%s6225_s22 + $0x68] sm:$0xff] %v6333_v17  ;;  %v6438_v50 = vsel %vm1888_vm8, %v6284_v44, -inf  ;;  %v6461_v51 = vadd.s32 104, %v6204_v8 }
 0x157   : > { %v1113_v30 = vmax.f32 %v848_v41, 0.0 }
 0x158   : > { %9959 = vst [vmem:[#allocation21_spill] sm:$0xff] %v6461_v51 }
 0x159   : > { %v1170_v38 = vpack.c.bf16 %v1113_v30, %v1112_v23  ;;  %v851_v15 = vpop.f32.mrb[28].mxu0  ;;  %v2013_v23 = vmax.f32 %v6414_v60, %v2012_v62  ;;  %v1825_v30 = vadd.s32 %v6312_v45, %v6410_v54 }
 0x15a   : > { %v6358_v19 = vadd.f32 %v851_v15, %v6217_v34  ;;  %v853_v3 = vpop.f32.mrb[29].mxu0  ;;  %v1826_v15 = vadd.s32 %v6312_v45, %v6417_v4 }
 0x15b   : > { %v854_v28 = vadd.f32 %v853_v3, %v6219_v42  ;;  %v855_v32 = vpop.f32.mrb[30].mxu0  ;;  %5038 = vmatprep.mubr.bf16.mxu1 %v1170_v38  ;;  %v6426_v38 = vsel %vm1887_vm7, %v6276_v56, -inf  ;;  %vm1889_vm9 = vcmp.lt.s32.totalorder %v1825_v30, 600  ;;  %v1829_v30 = vadd.s32 %v6312_v45, %v6461_v51 }
 0x15c   : > { %1666 = vst [vmem:[%s6225_s22 + $0x70] sm:$0xff] %v6358_v19  ;;  %v6369_v49 = vadd.f32 %v855_v32, %v6217_v34  ;;  %v857_v1 = vpop.f32.mrb[31].mxu0  ;;  %vm1890_vm10 = vcmp.lt.s32.totalorder %v1826_v15, 600 }
 0x15d   : > { %v858_v2 = vadd.f32 %v857_v1, %v6219_v42  ;;  %v1114_v43 = vmax.f32 %v854_v28, 0.0  ;;  %v6434_v28 = vadd.s32 88, %v6204_v8  ;;  %vm1893_vm13 = vcmp.lt.s32.totalorder %v1829_v30, 600 }
 0x15e   : > { %1667 = vst [vmem:[%s6225_s22 + $0x78] sm:$0xff] %v6369_v49 }
 0x15f   : > { %v1115_v47 = vmax.f32 %v858_v2, 0.0  ;;  %9957 = vst [vmem:[#allocation19_spill] sm:$0xff] %v6434_v28  ;;  %v2014_v2 = vmax.f32 %v6426_v38, %v2013_v23 }
 0x161   : > { %v1171_v29 = vpack.c.bf16 %v1115_v47, %v1114_v43  ;;  %v861_v25 = vpop.f32.mrb[32].mxu0  ;;  %v2015_v44 = vmax.f32 %v6438_v50, %v2014_v2  ;;  %v1827_v47 = vadd.s32 %v6312_v45, %v6434_v28 }
 0x162   : > { %v6393_v58 = vadd.f32 %v861_v25, %v6217_v34  ;;  %v863_v37 = vpop.f32.mrb[33].mxu0  ;;  %v6456_v25 = vsel %vm1889_vm9, %v6290_v7, -inf  ;;  %v6471_v7 = vadd.s32 112, %v6204_v8 }
 0x163   : > { %v864_v16 = vadd.f32 %v863_v37, %v6219_v42  ;;  %v865_v57 = vpop.f32.mrb[34].mxu0  ;;  %5039 = vmatmul.mubr.bf16.gmra.mrb[12].mxu1 %v1171_v29  ;;  %v1828_v37 = vadd.s32 %v6312_v45, %v6447_v52  ;;  %vm1891_vm11 = vcmp.lt.s32.totalorder %v1827_v47, 600 }
 0x164   : > { %1668 = vst [vmem:[%s6225_s22 + $0x80] sm:$0xff] %v6393_v58  ;;  %v6405_v35 = vadd.f32 %v865_v57, %v6217_v34  ;;  %v867_v21 = vpop.f32.mrb[35].mxu0  ;;  %v6464_v57 = vsel %vm1890_vm10, %v6297_v63, -inf  ;;  %9960 = vst [vmem:[#allocation22_spill] sm:$0xff] %v6471_v7  ;;  %v1830_v15 = vadd.s32 %v6312_v45, %v6471_v7 }
 0x165   : > { %v868_v36 = vadd.f32 %v867_v21, %v6219_v42  ;;  %v1116_v41 = vmax.f32 %v864_v16, 0.0  ;;  %vm1892_vm12 = vcmp.lt.s32.totalorder %v1828_v37, 600 }
 0x166   : > { %1669 = vst [vmem:[%s6225_s22 + $0x88] sm:$0xff] %v6405_v35  ;;  %vm1894_vm14 = vcmp.lt.s32.totalorder %v1830_v15, 600 }
 0x167   : > { %v1117_v5 = vmax.f32 %v868_v36, 0.0  ;;  %v2016_v36 = vmax.f32 %v6456_v25, %v2015_v44 }
 0x169   : > { %v1172_v46 = vpack.c.bf16 %v1117_v5, %v1116_v41  ;;  %v871_v11 = vpop.f32.mrb[36].mxu0  ;;  %v2017_v23 = vmax.f32 %v6464_v57, %v2016_v36 }
 0x16a   : > { %v6431_v3 = vadd.f32 %v871_v11, %v6217_v34  ;;  %v873_v20 = vpop.f32.mrb[37].mxu0  ;;  %v6484_v11 = vsel %vm1891_vm11, %v6303_v31, -inf  ;;  %v6498_v31 = vadd.s32 128, %v6204_v8 }
 0x16b   : > { %v874_v32 = vadd.f32 %v873_v20, %v6219_v42  ;;  %v875_v1 = vpop.f32.mrb[38].mxu0  ;;  %5042 = vmatprep.mubr.bf16.mxu1 %v1172_v46  ;;  %v6491_v20 = vadd.s32 120, %v6204_v8  ;;  %v2018_v2 = vmax.f32 %v6484_v11, %v2017_v23  ;;  %v6522_v23 = vsel %vm1894_vm14, %v6358_v19, -inf }
 0x16c   : > { %1670 = vst [vmem:[%s6225_s22 + $0x90] sm:$0xff] %v6431_v3  ;;  %v6443_v56 = vadd.f32 %v875_v1, %v6217_v34  ;;  %v877_v33 = vpop.f32.mrb[39].mxu0  ;;  %9962 = vst [vmem:[#allocation24_spill] sm:$0xff] %v6498_v31 }
 0x16d   : > { %v878_v43 = vadd.f32 %v877_v33, %v6219_v42  ;;  %v1118_v24 = vmax.f32 %v874_v32, 0.0  ;;  %9961 = vst [vmem:[#allocation23_spill] sm:$0xff] %v6491_v20  ;;  %v6494_v33 = vsel %vm1892_vm12, %v6322_v48, -inf  ;;  %v1831_v48 = vadd.s32 %v6312_v45, %v6491_v20 }
 0x16e   : > { %1671 = vst [vmem:[%s6225_s22 + $0x98] sm:$0xff] %v6443_v56 }
 0x16f   : > { %v1119_v29 = vmax.f32 %v878_v43, 0.0  ;;  %vm1895_vm15 = vcmp.lt.s32.totalorder %v1831_v48, 600  ;;  %v6542_v48 = vadd.s32 152, %v6204_v8 }
 0x171   : > { %v1173_v22 = vpack.c.bf16 %v1119_v29, %v1118_v24  ;;  %v881_v16 = vpop.f32.mrb[40].mxu0  ;;  %v2019_v29 = vmax.f32 %v6494_v33, %v2018_v2  ;;  %9965 = vst [vmem:[#allocation27_spill] sm:$0xff] %v6542_v48 }
 0x172   : > { %v6467_v21 = vadd.f32 %v881_v16, %v6217_v34  ;;  %v883_v53 = vpop.f32.mrb[41].mxu0  ;;  %v6508_v16 = vsel %vm1893_vm13, %v6333_v17, -inf  ;;  %v6525_v17 = vadd.s32 144, %v6204_v8 }
 0x173   : > { %v884_v62 = vadd.f32 %v883_v53, %v6219_v42  ;;  %v885_v41 = vpop.f32.mrb[42].mxu0  ;;  %5043 = vmatmul.mubr.bf16.gmra.mrb[16].mxu1 %v1173_v22  ;;  %v2020_v30 = vmax.f32 %v6508_v16, %v2019_v29 }
 0x174   : > { %1672 = vst [vmem:[%s6225_s22 + $0xa0] sm:$0xff] %v6467_v21  ;;  %v6477_v63 = vadd.f32 %v885_v41, %v6217_v34  ;;  %v887_v5 = vpop.f32.mrb[43].mxu0  ;;  %v6518_v41 = vadd.s32 136, %v6204_v8  ;;  %9964 = vst [vmem:[#allocation26_spill] sm:$0xff] %v6525_v17 }
 0x175   : > { %v888_v46 = vadd.f32 %v887_v5, %v6219_v42  ;;  %v1120_v32 = vmax.f32 %v884_v62, 0.0  ;;  %v1832_v62 = vadd.s32 %v6312_v45, %v6498_v31 }
 0x176   : > { %1673 = vst [vmem:[%s6225_s22 + $0xa8] sm:$0xff] %v6477_v63  ;;  %9963 = vst [vmem:[#allocation25_spill] sm:$0xff] %v6518_v41 }
 0x177   : > { %v1121_v1 = vmax.f32 %v888_v46, 0.0  ;;  %vm1896_vm0 = vcmp.lt.s32.totalorder %v1832_v62, 600 }
 0x179   : > { %v1174_v43 = vpack.c.bf16 %v1121_v1, %v1120_v32  ;;  %v891_v44 = vpop.f32.mrb[44].mxu0  ;;  %v2021_v32 = vmax.f32 %v6522_v23, %v2020_v30  ;;  %v1833_v1 = vadd.s32 %v6312_v45, %v6518_v41  ;;  %v6555_v30 = vadd.s32 160, %v6204_v8 }
 0x17a   : > { %v6501_v47 = vadd.f32 %v891_v44, %v6217_v34  ;;  %v893_v24 = vpop.f32.mrb[45].mxu0  ;;  %v1834_v44 = vadd.s32 %v6312_v45, %v6525_v17 }
 0x17b   : > { %v894_v37 = vadd.f32 %v893_v24, %v6219_v42  ;;  %v895_v22 = vpop.f32.mrb[46].mxu0  ;;  %5046 = vmatprep.mubr.bf16.mxu1 %v1174_v43  ;;  %v6534_v43 = vsel %vm1895_vm15, %v6369_v49, -inf  ;;  %vm1897_vm1 = vcmp.lt.s32.totalorder %v1833_v1, 600  ;;  %9966 = vst [vmem:[#allocation28_spill] sm:$0xff] %v6555_v30  ;;  %v6569_v1 = vadd.s32 168, %v6204_v8 }
 0x17c   : > { %1674 = vst [vmem:[%s6225_s22 + $0xb0] sm:$0xff] %v6501_v47  ;;  %v6513_v53 = vadd.f32 %v895_v22, %v6217_v34  ;;  %v897_v36 = vpop.f32.mrb[47].mxu0  ;;  %vm1898_vm2 = vcmp.lt.s32.totalorder %v1834_v44, 600 }
 0x17d   : > { %v898_v5 = vadd.f32 %v897_v36, %v6219_v42  ;;  %v1122_v46 = vmax.f32 %v894_v37, 0.0  ;;  %v6546_v36 = vsel %vm1896_vm0, %v6393_v58, -inf  ;;  %9967 = vst [vmem:[#allocation29_spill] sm:$0xff] %v6569_v1 }
 0x17e   : > { %1675 = vst [vmem:[%s6225_s22 + $0xb8] sm:$0xff] %v6513_v53 }
 0x17f   : > { %v1123_v15 = vmax.f32 %v898_v5, 0.0  ;;  %v2022_v5 = vmax.f32 %v6534_v43, %v2021_v32  ;;  %v1836_v32 = vadd.s32 %v6312_v45, %v6555_v30 }
 0x181   : > { %v1175_v2 = vpack.c.bf16 %v1123_v15, %v1122_v46  ;;  %v901_v19 = vpop.f32.mrb[48].mxu0  ;;  %v2023_v58 = vmax.f32 %v6546_v36, %v2022_v5  ;;  %v1835_v15 = vadd.s32 %v6312_v45, %v6542_v48  ;;  %vm1900_vm4 = vcmp.lt.s32.totalorder %v1836_v32, 600 }
 0x182   : > { %v6539_v24 = vadd.f32 %v901_v19, %v6217_v34  ;;  %v903_v29 = vpop.f32.mrb[49].mxu0  ;;  %v6602_v32 = vsel %vm1900_vm4, %v6467_v21, -inf }
 0x183   : > { %v904_v37 = vadd.f32 %v903_v29, %v6219_v42  ;;  %v905_v22 = vpop.f32.mrb[50].mxu0  ;;  %5047 = vmatmul.mubr.bf16.gmra.mrb[20].mxu1 %v1175_v2  ;;  %v6564_v29 = vsel %vm1897_vm1, %v6405_v35, -inf  ;;  %vm1899_vm3 = vcmp.lt.s32.totalorder %v1835_v15, 600  ;;  %v6579_v35 = vadd.s32 176, %v6204_v8 }
 0x184   : > { %1676 = vst [vmem:[%s6225_s22 + $0xc0] sm:$0xff] %v6539_v24  ;;  %v6551_v49 = vadd.f32 %v905_v22, %v6217_v34  ;;  %v907_v62 = vpop.f32.mrb[51].mxu0 }
 0x185   : > { %v908_v46 = vadd.f32 %v907_v62, %v6219_v42  ;;  %v1124_v2 = vmax.f32 %v904_v37, 0.0  ;;  %v6572_v62 = vsel %vm1898_vm2, %v6431_v3, -inf  ;;  %9968 = vst [vmem:[#allocation30_spill] sm:$0xff] %v6579_v35 }
 0x186   : > { %1677 = vst [vmem:[%s6225_s22 + $0xc8] sm:$0xff] %v6551_v49 }
 0x187   : > { %v1125_v19 = vmax.f32 %v908_v46, 0.0  ;;  %v2024_v46 = vmax.f32 %v6564_v29, %v2023_v58  ;;  %v1837_v58 = vadd.s32 %v6312_v45, %v6569_v1 }
 0x189   : > { %v1176_v44 = vpack.c.bf16 %v1125_v19, %v1124_v2  ;;  %v911_v22 = vpop.f32.mrb[52].mxu0  ;;  %v2025_v19 = vmax.f32 %v6572_v62, %v2024_v46  ;;  %vm1901_vm5 = vcmp.lt.s32.totalorder %v1837_v58, 600 }
 0x18a   : > { %v6575_v5 = vadd.f32 %v911_v22, %v6217_v34  ;;  %v913_v37 = vpop.f32.mrb[53].mxu0  ;;  %v6592_v22 = vsel %vm1899_vm3, %v6443_v56, -inf  ;;  %v6606_v56 = vadd.s32 192, %v6204_v8  ;;  %v6616_v58 = vsel %vm1901_vm5, %v6477_v63, -inf }
 0x18b   : > { %v914_v14 = vadd.f32 %v913_v37, %v6219_v42  ;;  %v915_v30 = vpop.f32.mrb[54].mxu0  ;;  %5050 = vmatprep.mubr.bf16.mxu1 %v1176_v44  ;;  %v1838_v44 = vadd.s32 %v6312_v45, %v6579_v35  ;;  %v2026_v46 = vmax.f32 %v6592_v22, %v2025_v19  ;;  %v6633_v63 = vadd.s32 208, %v6204_v8 }
 0x18c   : > { %1678 = vst [vmem:[%s6225_s22 + $0xd0] sm:$0xff] %v6575_v5  ;;  %v6585_v3 = vadd.f32 %v915_v30, %v6217_v34  ;;  %v917_v2 = vpop.f32.mrb[55].mxu0  ;;  %v6599_v30 = vadd.s32 184, %v6204_v8  ;;  %9970 = vst [vmem:[#allocation32_spill] sm:$0xff] %v6606_v56 }
 0x18d   : > { %v918_v15 = vadd.f32 %v917_v2, %v6219_v42  ;;  %v1126_v37 = vmax.f32 %v914_v14, 0.0  ;;  %v2027_v14 = vmax.f32 %v6602_v32, %v2026_v46  ;;  %vm1902_vm6 = vcmp.lt.s32.totalorder %v1838_v44, 600  ;;  %9972 = vst [vmem:[#allocation34_spill] sm:$0xff] %v6633_v63 }
 0x18e   : > { %1679 = vst [vmem:[%s6225_s22 + $0xd8] sm:$0xff] %v6585_v3  ;;  %9969 = vst [vmem:[#allocation31_spill] sm:$0xff] %v6599_v30  ;;  %v1839_v21 = vadd.s32 %v6312_v45, %v6599_v30  ;;  %v6626_v44 = vadd.s32 200, %v6204_v8  ;;  %v1842_v20 = vadd.s32 %v6312_v45, %v6633_v63 }
 0x18f   : > { %v1127_v48 = vmax.f32 %v918_v15, 0.0 }
 0x190   : > { %9971 = vst [vmem:[#allocation33_spill] sm:$0xff] %v6626_v44  ;;  %vm1903_vm7 = vcmp.lt.s32.totalorder %v1839_v21, 600  ;;  %vm1906_vm10 = vcmp.lt.s32.totalorder %v1842_v20, 600 }
 0x191   : > { %v1177_v2 = vpack.c.bf16 %v1127_v48, %v1126_v37  ;;  %v921_v1 = vpop.f32.mrb[56].mxu0  ;;  %v1840_v37 = vadd.s32 %v6312_v45, %v6606_v56  ;;  %v6642_v31 = vsel %vm1903_vm7, %v6513_v53, -inf  ;;  %v6680_v7 = vsel %vm1906_vm10, %v6575_v5, -inf }
 0x192   : > { %v6609_v17 = vadd.f32 %v921_v1, %v6217_v34  ;;  %v923_v35 = vpop.f32.mrb[57].mxu0 }
 0x193   : > { %v924_v15 = vadd.f32 %v923_v35, %v6219_v42  ;;  %v925_v19 = vpop.f32.mrb[58].mxu0  ;;  %5051 = vmatmul.mubr.bf16.gmra.mrb[24].mxu1 %v1177_v2  ;;  %v6630_v35 = vsel %vm1902_vm6, %v6501_v47, -inf  ;;  %v2028_v2 = vmax.f32 %v6616_v58, %v2027_v14  ;;  %vm1904_vm8 = vcmp.lt.s32.totalorder %v1840_v37, 600 }
 0x194   : > { %1680 = vst [vmem:[%s6225_s22 + $0xe0] sm:$0xff] %v6609_v17  ;;  %v6621_v48 = vadd.f32 %v925_v19, %v6217_v34  ;;  %v927_v1 = vpop.f32.mrb[59].mxu0 }
 0x195   : > { %v928_v46 = vadd.f32 %v927_v1, %v6219_v42  ;;  %v1128_v19 = vmax.f32 %v924_v15, 0.0  ;;  %v2029_v56 = vmax.f32 %v6630_v35, %v2028_v2  ;;  %v1841_v1 = vadd.s32 %v6312_v45, %v6626_v44 }
 0x196   : > { %1681 = vst [vmem:[%s6225_s22 + $0xe8] sm:$0xff] %v6621_v48  ;;  %v6650_v15 = vadd.s32 216, %v6204_v8 }
 0x197   : > { %v1129_v30 = vmax.f32 %v928_v46, 0.0  ;;  %vm1905_vm9 = vcmp.lt.s32.totalorder %v1841_v1, 600  ;;  %v6677_v1 = vadd.s32 232, %v6204_v8 }
 0x198   : > { %9973 = vst [vmem:[#allocation35_spill] sm:$0xff] %v6650_v15  ;;  %v6672_v44 = vsel %vm1905_vm9, %v6551_v49, -inf  ;;  %v6685_v49 = vadd.s32 240, %v6204_v8 }
 0x199   : > { %v1178_v41 = vpack.c.bf16 %v1129_v30, %v1128_v19  ;;  %v931_v47 = vpop.f32.mrb[60].mxu0  ;;  %v6654_v30 = vsel %vm1904_vm8, %v6539_v24, -inf  ;;  %v2030_v19 = vmax.f32 %v6642_v31, %v2029_v56  ;;  %v1843_v24 = vadd.s32 %v6312_v45, %v6650_v15  ;;  %9975 = vst [vmem:[#allocation37_spill] sm:$0xff] %v6677_v1 }
 0x19a   : > { %v6647_v14 = vadd.f32 %v931_v47, %v6217_v34  ;;  %v933_v21 = vpop.f32.mrb[61].mxu0  ;;  %v6663_v47 = vadd.s32 224, %v6204_v8  ;;  %9976 = vst [vmem:[#allocation38_spill] sm:$0xff] %v6685_v49 }
 0x19b   : > { %v934_v37 = vadd.f32 %v933_v21, %v6219_v42  ;;  %v935_v46 = vpop.f32.mrb[62].mxu0  ;;  %5054 = vmatprep.mubr.bf16.mxu1 %v1178_v41  ;;  %v2031_v41 = vmax.f32 %v6654_v30, %v2030_v19  ;;  %vm1907_vm11 = vcmp.lt.s32.totalorder %v1843_v24, 600 }
 0x19c   : > { %1682 = vst [vmem:[%s6225_s22 + $0xf0] sm:$0xff] %v6647_v14  ;;  %v6659_v53 = vadd.f32 %v935_v46, %v6217_v34  ;;  %v937_v2 = vpop.f32.mrb[63].mxu0  ;;  %9974 = vst [vmem:[#allocation36_spill] sm:$0xff] %v6663_v47  ;;  %v1844_v56 = vadd.s32 %v6312_v45, %v6663_v47  ;;  %v6697_v24 = vsel %vm1907_vm11, %v6585_v3, -inf  ;;  %v6711_v3 = vadd.s32 256, %v6204_v8 }
 0x19d   : > { %v938_v63 = vadd.f32 %v937_v2, %v6219_v42  ;;  %v1130_v21 = vmax.f32 %v934_v37, 0.0 }
 0x19e   : > { %1683 = vst [vmem:[%s6225_s22 + $0xf8] sm:$0xff] %v6659_v53  ;;  %vm1908_vm12 = vcmp.lt.s32.totalorder %v1844_v56, 600  ;;  %9978 = vst [vmem:[#allocation40_spill] sm:$0xff] %v6711_v3 }
 0x19f   : > { %v1131_v46 = vmax.f32 %v938_v63, 0.0  ;;  %v2032_v63 = vmax.f32 %v6672_v44, %v2031_v41  ;;  %v6707_v56 = vsel %vm1908_vm12, %v6609_v17, -inf }
 0x1a1   : > { %v1179_v20 = vpack.c.bf16 %v1131_v46, %v1130_v21  ;;  %v941_v2 = vpop.f32.mrb[64].mxu0  ;;  %v2033_v46 = vmax.f32 %v6680_v7, %v2032_v63 }
 0x1a2   : > { %v942_v19 = vadd.f32 %v941_v2, %v6217_v34  ;;  %v943_v37 = vpop.f32.mrb[65].mxu0  ;;  %v1845_v2 = vadd.s32 %v6312_v45, %v6677_v1 }
 0x1a3   : > { %v944_v47 = vadd.f32 %v943_v37, %v6219_v42  ;;  %v945_v15 = vpop.f32.mrb[66].mxu0  ;;  %5055 = vmatmul.mubr.bf16.gmra.mrb[28].mxu1 %v1179_v20  ;;  %v1846_v20 = vadd.s32 %v6312_v45, %v6685_v49  ;;  %v2034_v63 = vmax.f32 %v6697_v24, %v2033_v46 }
 0x1a4   : > { %1684 = vst [vmem:[%s6225_s22 + $0x100] sm:$0xff] %v942_v19  ;;  %v6690_v21 = vadd.f32 %v945_v15, %v6217_v34  ;;  %v947_v5 = vpop.f32.mrb[67].mxu0  ;;  %v6704_v15 = vadd.s32 248, %v6204_v8  ;;  %vm1909_vm13 = vcmp.lt.s32.totalorder %v1845_v2, 600 }
 0x1a5   : > { %v948_v41 = vadd.f32 %v947_v5, %v6219_v42  ;;  %v1132_v37 = vmax.f32 %v944_v47, 0.0  ;;  %v2035_v28 = vmax.f32 %v6707_v56, %v2034_v63  ;;  %vm1910_vm14 = vcmp.lt.s32.totalorder %v1846_v20, 600 }
 0x1a6   : > { %1685 = vst [vmem:[%s6225_s22 + $0x108] sm:$0xff] %v6690_v21  ;;  %9977 = vst [vmem:[#allocation39_spill] sm:$0xff] %v6704_v15  ;;  %v1847_v47 = vadd.s32 %v6312_v45, %v6704_v15  ;;  %v6719_v46 = vsel %vm1909_vm13, %v6621_v48, -inf  ;;  %v6730_v63 = vsel %vm1910_vm14, %v6647_v14, -inf }
 0x1a7   : > { %v1133_v51 = vmax.f32 %v948_v41, 0.0  ;;  %v2036_v48 = vmax.f32 %v6719_v46, %v2035_v28 }
 0x1a8   : > { %vm1911_vm15 = vcmp.lt.s32.totalorder %v1847_v47, 600 }
 0x1a9   : > { %v1180_v5 = vpack.c.bf16 %v1133_v51, %v1132_v37  ;;  %v951_v1 = vpop.f32.mrb[68].mxu0  ;;  %v6726_v37 = vadd.s32 264, %v6204_v8  ;;  %v6741_v14 = vsel %vm1911_vm15, %v6659_v53, -inf }
 0x1aa   : > { %v952_v52 = vadd.f32 %v951_v1, %v6217_v34  ;;  %v953_v49 = vpop.f32.mrb[69].mxu0  ;;  %v1848_v1 = vadd.s32 %v6312_v45, %v6711_v3  ;;  %v2037_v3 = vmax.f32 %v6730_v63, %v2036_v48 }
 0x1ab   : > { %v954_v17 = vadd.f32 %v953_v49, %v6219_v42  ;;  %v955_v41 = vpop.f32.mrb[70].mxu0  ;;  %5058 = vmatprep.mubr.bf16.mxu1 %v1180_v5  ;;  %9979 = vst [vmem:[#allocation41_spill] sm:$0xff] %v6726_v37  ;;  %v6733_v49 = vadd.s32 272, %v6204_v8  ;;  %v1849_v15 = vadd.s32 %v6312_v45, %v6726_v37 }
 0x1ac   : > { %1686 = vst [vmem:[%s6225_s22 + $0x110] sm:$0xff] %v952_v52  ;;  %v956_v51 = vadd.f32 %v955_v41, %v6217_v34  ;;  %v957_v2 = vpop.f32.mrb[71].mxu0  ;;  %vm1912_vm0 = vcmp.lt.s32.totalorder %v1848_v1, 600 }
 0x1ad   : > { %v958_v20 = vadd.f32 %v957_v2, %v6219_v42  ;;  %9980 = vst [vmem:[#allocation42_spill] sm:$0xff] %v6733_v49  ;;  %v1134_v5 = vmax.f32 %v954_v17, 0.0  ;;  %v1850_v54 = vadd.s32 %v6312_v45, %v6733_v49  ;;  %v6747_v17 = vadd.s32 280, %v6204_v8 }
 0x1ae   : > { %1687 = vst [vmem:[%s6225_s22 + $0x118] sm:$0xff] %v956_v51  ;;  %v6750_v48 = vsel %vm1912_vm0, %v942_v19, -inf  ;;  %vm1913_vm1 = vcmp.lt.s32.totalorder %v1849_v15, 600  ;;  %v6756_v49 = vadd.s32 288, %v6204_v8 }
 0x1af   : > { %v1135_v41 = vmax.f32 %v958_v20, 0.0  ;;  %9981 = vst [vmem:[#allocation43_spill] sm:$0xff] %v6747_v17  ;;  %vm1914_vm2 = vcmp.lt.s32.totalorder %v1850_v54, 600  ;;  %v1851_v19 = vadd.s32 %v6312_v45, %v6747_v17 }
 0x1b0   : > { %9982 = vst [vmem:[#allocation44_spill] sm:$0xff] %v6756_v49  ;;  %v1852_v15 = vadd.s32 %v6312_v45, %v6756_v49  ;;  %v6771_v26 = vsel %vm1914_vm2, %v952_v52, -inf }
 0x1b1   : > { %v1181_v2 = vpack.c.bf16 %v1135_v41, %v1134_v5  ;;  %v961_v4 = vpop.f32.mrb[72].mxu0  ;;  %v2038_v41 = vmax.f32 %v6741_v14, %v2037_v3  ;;  %v6769_v3 = vadd.s32 296, %v6204_v8  ;;  %vm1915_vm3 = vcmp.lt.s32.totalorder %v1851_v19, 600 }
 0x1b2   : > { %v962_v28 = vadd.f32 %v961_v4, %v6217_v34  ;;  %v963_v47 = vpop.f32.mrb[73].mxu0  ;;  %vm1916_vm4 = vcmp.lt.s32.totalorder %v1852_v15, 600  ;;  %v6785_v19 = vsel %vm1915_vm3, %v956_v51, -inf  ;;  %v6797_v51 = vadd.s32 320, %v6204_v8 }
 0x1b3   : > { %v964_v1 = vadd.f32 %v963_v47, %v6219_v42  ;;  %v965_v20 = vpop.f32.mrb[74].mxu0  ;;  %5059 = vmatmul.mubr.bf16.gmra.mrb[32].mxu1 %v1181_v2  ;;  %v2039_v47 = vmax.f32 %v6750_v48, %v2038_v41  ;;  %9983 = vst [vmem:[#allocation45_spill] sm:$0xff] %v6769_v3  ;;  %9985 = vst [vmem:[#allocation47_spill] sm:$0xff] %v6785_v19 }
 0x1b4   : > { %1688 = vst [vmem:[%s6225_s22 + $0x120] sm:$0xff] %v962_v28  ;;  %v966_v53 = vadd.f32 %v965_v20, %v6217_v34  ;;  %v967_v5 = vpop.f32.mrb[75].mxu0  ;;  %v6764_v20 = vsel %vm1913_vm1, %v6690_v21, -inf  ;;  %v6776_v21 = vadd.s32 304, %v6204_v8  ;;  %v6793_v61 = vsel %vm1916_vm4, %v962_v28, -inf  ;;  %9988 = vst [vmem:[#allocation50_spill] sm:$0xff] %v6797_v51 }
 0x1b5   : > { %v968_v4 = vadd.f32 %v967_v5, %v6219_v42  ;;  %v1136_v2 = vmax.f32 %v964_v1, 0.0  ;;  %v2040_v1 = vmax.f32 %v6764_v20, %v2039_v47  ;;  %9987 = vst [vmem:[#allocation49_spill] sm:$0xff] %v6793_v61 }
 0x1b6   : > { %1689 = vst [vmem:[%s6225_s22 + $0x128] sm:$0xff] %v966_v53  ;;  %9984 = vst [vmem:[#allocation46_spill] sm:$0xff] %v6776_v21 }
 0x1b7   : > { %v1137_v37 = vmax.f32 %v968_v4, 0.0  ;;  %v2041_v52 = vmax.f32 %v6771_v26, %v2040_v1 }
 0x1b9   : > { %v1182_v5 = vpack.c.bf16 %v1137_v37, %v1136_v2  ;;  %v971_v54 = vpop.f32.mrb[76].mxu0  ;;  %v2042_v15 = vmax.f32 %v6785_v19, %v2041_v52 }
 0x1ba   : > { %v972_v41 = vadd.f32 %v971_v54, %v6217_v34  ;;  %v973_v17 = vpop.f32.mrb[77].mxu0  ;;  %v1853_v54 = vadd.s32 %v6312_v45, %v6769_v3 }
 0x1bb   : > { %v974_v4 = vadd.f32 %v973_v17, %v6219_v42  ;;  %v975_v49 = vpop.f32.mrb[78].mxu0  ;;  %5062 = vmatprep.mubr.bf16.mxu1 %v1182_v5  ;;  %v1854_v17 = vadd.s32 %v6312_v45, %v6776_v21  ;;  %v6791_v5 = vadd.s32 312, %v6204_v8 }
 0x1bc   : > { %1690 = vst [vmem:[%s6225_s22 + $0x130] sm:$0xff] %v972_v41  ;;  %v976_v37 = vadd.f32 %v975_v49, %v6217_v34  ;;  %v977_v2 = vpop.f32.mrb[79].mxu0  ;;  %vm1917_vm5 = vcmp.lt.s32.totalorder %v1853_v54, 600 }
 0x1bd   : > { %v978_v47 = vadd.f32 %v977_v2, %v6219_v42  ;;  %v1138_v59 = vmax.f32 %v974_v4, 0.0  ;;  %9986 = vst [vmem:[#allocation48_spill] sm:$0xff] %v6791_v5  ;;  %v2043_v4 = vmax.f32 %v6793_v61, %v2042_v15  ;;  %vm1918_vm6 = vcmp.lt.s32.totalorder %v1854_v17, 600 }
 0x1be   : > { %1691 = vst [vmem:[%s6225_s22 + $0x138] sm:$0xff] %v976_v37  ;;  %v6804_v52 = vsel %vm1917_vm5, %v966_v53, -inf  ;;  %v6814_v15 = vsel %vm1918_vm6, %v972_v41, -inf }
 0x1bf   : > { %v1139_v49 = vmax.f32 %v978_v47, 0.0  ;;  %v1855_v47 = vadd.s32 %v6312_v45, %v6791_v5  ;;  %9989 = vst [vmem:[#allocation51_spill] sm:$0xff] %v6804_v52  ;;  %9991 = vst [vmem:[#allocation53_spill] sm:$0xff] %v6814_v15  ;;  %v2044_v53 = vmax.f32 %v6804_v52, %v2043_v4 }
 0x1c1   : > { %v1183_v1 = vpack.c.bf16 %v1139_v49, %v1138_v59  ;;  %v981_v3 = vpop.f32.mrb[80].mxu0  ;;  %v6811_v49 = vadd.s32 328, %v6204_v8  ;;  %vm1919_vm7 = vcmp.lt.s32.totalorder %v1855_v47, 600  ;;  %v2045_v5 = vmax.f32 %v6814_v15, %v2044_v53 }
 0x1c2   : > { %v982_v2 = vadd.f32 %v981_v3, %v6217_v34  ;;  %v983_v21 = vpop.f32.mrb[81].mxu0  ;;  %v1856_v3 = vadd.s32 %v6312_v45, %v6797_v51  ;;  %v6824_v41 = vsel %vm1919_vm7, %v976_v37, -inf  ;;  %v6831_v53 = vadd.s32 344, %v6204_v8 }
 0x1c3   : > { %v984_v28 = vadd.f32 %v983_v21, %v6219_v42  ;;  %v985_v10 = vpop.f32.mrb[82].mxu0  ;;  %5063 = vmatmul.mubr.bf16.gmra.mrb[36].mxu1 %v1183_v1  ;;  %9990 = vst [vmem:[#allocation52_spill] sm:$0xff] %v6811_v49  ;;  %v6818_v21 = vadd.s32 336, %v6204_v8  ;;  %v1857_v51 = vadd.s32 %v6312_v45, %v6811_v49  ;;  %9993 = vst [vmem:[#allocation55_spill] sm:$0xff] %v6824_v41 }
 0x1c4   : > { %1692 = vst [vmem:[%s6225_s22 + $0x140] sm:$0xff] %v982_v2  ;;  %v986_v59 = vadd.f32 %v985_v10, %v6217_v34  ;;  %v987_v54 = vpop.f32.mrb[83].mxu0  ;;  %vm1920_vm8 = vcmp.lt.s32.totalorder %v1856_v3, 600  ;;  %9994 = vst [vmem:[#allocation56_spill] sm:$0xff] %v6831_v53 }
 0x1c5   : > { %v988_v17 = vadd.f32 %v987_v54, %v6219_v42  ;;  %9992 = vst [vmem:[#allocation54_spill] sm:$0xff] %v6818_v21  ;;  %v1140_v1 = vmax.f32 %v984_v28, 0.0  ;;  %v1858_v4 = vadd.s32 %v6312_v45, %v6818_v21  ;;  %v6833_v3 = vsel %vm1920_vm8, %v982_v2, -inf }
 0x1c6   : > { %1693 = vst [vmem:[%s6225_s22 + $0x148] sm:$0xff] %v986_v59  ;;  %9995 = vst [vmem:[#allocation57_spill] sm:$0xff] %v6833_v3  ;;  %vm1921_vm9 = vcmp.lt.s32.totalorder %v1857_v51, 600  ;;  %v6840_v21 = vadd.s32 352, %v6204_v8 }
 0x1c7   : > { %v1141_v10 = vmax.f32 %v988_v17, 0.0  ;;  %vm1922_vm10 = vcmp.lt.s32.totalorder %v1858_v4, 600 }
 0x1c8   : > { %9996 = vst [vmem:[#allocation58_spill] sm:$0xff] %v6840_v21  ;;  %v1860_v51 = vadd.s32 %v6312_v45, %v6840_v21 }
 0x1c9   : > { %v1184_v0 = vpack.c.bf16 %v1141_v10, %v1140_v1  ;;  %v991_v54 = vpop.f32.mrb[84].mxu0  ;;  %v2046_v10 = vmax.f32 %v6824_v41, %v2045_v5 }
 0x1ca   : > { %v992_v55 = vadd.f32 %v991_v54, %v6217_v34  ;;  %v993_v47 = vpop.f32.mrb[85].mxu0  ;;  %vm1924_vm12 = vcmp.lt.s32.totalorder %v1860_v51, 600 }
 0x1cb   : > { %v994_v28 = vadd.f32 %v993_v47, %v6219_v42  ;;  %v995_v17 = vpop.f32.mrb[86].mxu0  ;;  %5066 = vmatprep.mubr.bf16.mxu1 %v1184_v0  ;;  %v2047_v47 = vmax.f32 %v6833_v3, %v2046_v10  ;;  %v1859_v0 = vadd.s32 %v6312_v45, %v6831_v53 }
 0x1cc   : > { %1694 = vst [vmem:[%s6225_s22 + $0x150] sm:$0xff] %v992_v55  ;;  %v996_v37 = vadd.f32 %v995_v17, %v6217_v34  ;;  %v997_v1 = vpop.f32.mrb[87].mxu0  ;;  %v6846_v17 = vsel %vm1921_vm9, %v986_v59, -inf  ;;  %v6853_v4 = vsel %vm1922_vm10, %v992_v55, -inf }
 0x1cd   : > { %v998_v54 = vadd.f32 %v997_v1, %v6219_v42  ;;  %v1142_v49 = vmax.f32 %v994_v28, 0.0  ;;  %9997 = vst [vmem:[#allocation59_spill] sm:$0xff] %v6846_v17  ;;  %v6851_v1 = vadd.s32 360, %v6204_v8  ;;  %9999 = vst [vmem:[#allocation61_spill] sm:$0xff] %v6853_v4  ;;  %v2048_v53 = vmax.f32 %v6846_v17, %v2047_v47 }
 0x1ce   : > { %1695 = vst [vmem:[%s6225_s22 + $0x158] sm:$0xff] %v996_v37  ;;  %vm1923_vm11 = vcmp.lt.s32.totalorder %v1859_v0, 600  ;;  %v6873_v17 = vadd.s32 376, %v6204_v8 }
 0x1cf   : > { %v1143_v2 = vmax.f32 %v998_v54, 0.0  ;;  %9998 = vst [vmem:[#allocation60_spill] sm:$0xff] %v6851_v1  ;;  %v2049_v55 = vmax.f32 %v6853_v4, %v2048_v53  ;;  %v6867_v0 = vsel %vm1923_vm11, %v996_v37, -inf  ;;  %v6878_v53 = vadd.s32 384, %v6204_v8 }
 0x1d0   : > { %10001 = vst [vmem:[#allocation63_spill] sm:$0xff] %v6867_v0  ;;  %10002 = vst [vmem:[#allocation64_spill] sm:$0xff] %v6873_v17 }
 0x1d1   : > { %v1185_v9 = vpack.c.bf16 %v1143_v2, %v1142_v49  ;;  %v1001_v5 = vpop.f32.mrb[88].mxu0  ;;  %v6859_v49 = vadd.s32 368, %v6204_v8  ;;  %10004 = vst [vmem:[#allocation66_spill] sm:$0xff] %v6878_v53  ;;  %v2050_v51 = vmax.f32 %v6867_v0, %v2049_v55 }
 0x1d2   : > { %v1002_v10 = vadd.f32 %v1001_v5, %v6217_v34  ;;  %v1003_v28 = vpop.f32.mrb[89].mxu0  ;;  %v1861_v5 = vadd.s32 %v6312_v45, %v6851_v1 }
 0x1d3   : > { %v1004_v59 = vadd.f32 %v1003_v28, %v6219_v42  ;;  %v1005_v54 = vpop.f32.mrb[90].mxu0  ;;  %5067 = vmatmul.mubr.bf16.gmra.mrb[40].mxu1 %v1185_v9  ;;  %10000 = vst [vmem:[#allocation62_spill] sm:$0xff] %v6859_v49  ;;  %v1862_v13 = vadd.s32 %v6312_v45, %v6859_v49 }
 0x1d4   : > { %1696 = vst [vmem:[%s6225_s22 + $0x160] sm:$0xff] %v1002_v10  ;;  %v1006_v2 = vadd.f32 %v1005_v54, %v6217_v34  ;;  %v1007_v21 = vpop.f32.mrb[91].mxu0  ;;  %v6875_v54 = vsel %vm1924_vm12, %v1002_v10, -inf  ;;  %vm1925_vm13 = vcmp.lt.s32.totalorder %v1861_v5, 600  ;;  %v1863_v10 = vadd.s32 %v6312_v45, %v6873_v17 }
 0x1d5   : > { %v1008_v47 = vadd.f32 %v1007_v21, %v6219_v42  ;;  %v1144_v28 = vmax.f32 %v1004_v59, 0.0  ;;  %10003 = vst [vmem:[#allocation65_spill] sm:$0xff] %v6875_v54  ;;  %v2051_v49 = vmax.f32 %v6875_v54, %v2050_v51  ;;  %vm1926_vm14 = vcmp.lt.s32.totalorder %v1862_v13, 600 }
 0x1d6   : > { %1697 = vst [vmem:[%s6225_s22 + $0x168] sm:$0xff] %v1006_v2  ;;  %v6886_v3 = vsel %vm1925_vm13, %v1006_v2, -inf  ;;  %v6894_v13 = vadd.s32 392, %v6204_v8  ;;  %vm1927_vm15 = vcmp.lt.s32.totalorder %v1863_v10, 600 }
 0x1d7   : > { %v1145_v9 = vmax.f32 %v1008_v47, 0.0  ;;  %10005 = vst [vmem:[#allocation67_spill] sm:$0xff] %v6886_v3 }
 0x1d8   : > { %10006 = vst [vmem:[#allocation68_spill] sm:$0xff] %v6894_v13 }
 0x1d9   : > { %v1186_v21 = vpack.c.bf16 %v1145_v9, %v1144_v28  ;;  %v1011_v37 = vpop.f32.mrb[92].mxu0  ;;  %v1864_v28 = vadd.s32 %v6312_v45, %v6878_v53  ;;  %v6904_v53 = vadd.s32 400, %v6204_v8 }
 0x1da   : > { %v1012_v59 = vadd.f32 %v1011_v37, %v6217_v34  ;;  %v1013_v47 = vpop.f32.mrb[93].mxu0  ;;  %v2052_v37 = vmax.f32 %v6886_v3, %v2051_v49 }
 0x1db   : > { %v1014_v1 = vadd.f32 %v1013_v47, %v6219_v42  ;;  %v1015_v4 = vpop.f32.mrb[94].mxu0  ;;  %5070 = vmatprep.mubr.bf16.mxu1 %v1186_v21  ;;  %vm1928_vm0 = vcmp.lt.s32.totalorder %v1864_v28, 600  ;;  %10008 = vst [vmem:[#allocation70_spill] sm:$0xff] %v6904_v53  ;;  %v6911_v28 = vadd.s32 408, %v6204_v8 }
 0x1dc   : > { %1698 = vst [vmem:[%s6225_s22 + $0x170] sm:$0xff] %v1012_v59  ;;  %v1016_v55 = vadd.f32 %v1015_v4, %v6217_v34  ;;  %v1017_v5 = vpop.f32.mrb[95].mxu0  ;;  %v6896_v51 = vsel %vm1926_vm14, %v1012_v59, -inf }
 0x1dd   : > { %v1018_v9 = vadd.f32 %v1017_v5, %v6219_v42  ;;  %10007 = vst [vmem:[#allocation69_spill] sm:$0xff] %v6896_v51  ;;  %v1146_v21 = vmax.f32 %v1014_v1, 0.0  ;;  %v2053_v4 = vmax.f32 %v6896_v51, %v2052_v37  ;;  %v1865_v5 = vadd.s32 %v6312_v45, %v6894_v13  ;;  %10010 = vst [vmem:[#allocation72_spill] sm:$0xff] %v6911_v28 }
 0x1de   : > { %1699 = vst [vmem:[%s6225_s22 + $0x178] sm:$0xff] %v1016_v55  ;;  %v6906_v59 = vsel %vm1927_vm15, %v1016_v55, -inf }
 0x1df   : > { %v1147_v2 = vmax.f32 %v1018_v9, 0.0  ;;  %10009 = vst [vmem:[#allocation71_spill] sm:$0xff] %v6906_v59  ;;  %v2054_v13 = vmax.f32 %v6906_v59, %v2053_v4  ;;  %vm1929_vm1 = vcmp.lt.s32.totalorder %v1865_v5, 600  ;;  %v6928_v4 = vadd.s32 416, %v6204_v8 }
 0x1e1   : > { %v1187_v47 = vpack.c.bf16 %v1147_v2, %v1146_v21  ;;  %v1021_v17 = vpop.f32.mrb[96].mxu0  ;;  %10012 = vst [vmem:[#allocation74_spill] sm:$0xff] %v6928_v4 }
 0x1e2   : > { %v1022_v49 = vadd.f32 %v1021_v17, %v6217_v34  ;;  %v1023_v1 = vpop.f32.mrb[97].mxu0  ;;  %v1866_v17 = vadd.s32 %v6312_v45, %v6904_v53 }
 0x1e3   : > { %v1024_v10 = vadd.f32 %v1023_v1, %v6219_v42  ;;  %v1025_v9 = vpop.f32.mrb[98].mxu0  ;;  %5071 = vmatmul.mubr.bf16.gmra.mrb[44].mxu1 %v1187_v47 }
 0x1e4   : > { %1700 = vst [vmem:[%s6225_s22 + $0x180] sm:$0xff] %v1022_v49  ;;  %v6914_v37 = vsel %vm1928_vm0, %v1022_v49, -inf  ;;  %v1026_v21 = vadd.f32 %v1025_v9, %v6217_v34  ;;  %v1027_v2 = vpop.f32.mrb[99].mxu0  ;;  %v1867_v49 = vadd.s32 %v6312_v45, %v6911_v28  ;;  %vm1930_vm2 = vcmp.lt.s32.totalorder %v1866_v17, 600 }
 0x1e5   : > { %10011 = vst [vmem:[#allocation73_spill] sm:$0xff] %v6914_v37  ;;  %v1028_v55 = vadd.f32 %v1027_v2, %v6219_v42  ;;  %v2055_v47 = vmax.f32 %v6914_v37, %v2054_v13  ;;  %v1148_v1 = vmax.f32 %v1024_v10, 0.0 }
 0x1e6   : > { %1701 = vst [vmem:[%s6225_s22 + $0x188] sm:$0xff] %v1026_v21  ;;  %v6925_v3 = vsel %vm1929_vm1, %v1026_v21, -inf  ;;  %vm1931_vm3 = vcmp.lt.s32.totalorder %v1867_v49, 600  ;;  %v6934_v21 = vadd.s32 424, %v6204_v8 }
 0x1e7   : > { %v1149_v51 = vmax.f32 %v1028_v55, 0.0  ;;  %v2056_v13 = vmax.f32 %v6925_v3, %v2055_v47  ;;  %v1868_v47 = vadd.s32 %v6312_v45, %v6928_v4 }
 0x1e8   : > { %10013 = vst [vmem:[#allocation75_spill] sm:$0xff] %v6934_v21 }
 0x1e9   : > { %v1188_v9 = vpack.c.bf16 %v1149_v51, %v1148_v1  ;;  %v1031_v54 = vpop.f32.mrb[100].mxu0  ;;  %vm1932_vm4 = vcmp.lt.s32.totalorder %v1868_v47, 600 }
 0x1ea   : > { %v1032_v5 = vadd.f32 %v1031_v54, %v6217_v34  ;;  %v1033_v2 = vpop.f32.mrb[101].mxu0 }
 0x1eb   : > { %v1034_v10 = vadd.f32 %v1033_v2, %v6219_v42  ;;  %v1035_v55 = vpop.f32.mrb[102].mxu0  ;;  %5074 = vmatprep.mubr.bf16.mxu1 %v1188_v9 }
 0x1ec   : > { %1702 = vst [vmem:[%s6225_s22 + $0x190] sm:$0xff] %v1032_v5  ;;  %v6937_v51 = vsel %vm1930_vm2, %v1032_v5, -inf  ;;  %v1036_v17 = vadd.f32 %v1035_v55, %v6217_v34  ;;  %v1037_v1 = vpop.f32.mrb[103].mxu0  ;;  %v1869_v5 = vadd.s32 %v6312_v45, %v6934_v21 }
 0x1ed   : > { %v2057_v28 = vmax.f32 %v6937_v51, %v2056_v13  ;;  %v1038_v54 = vadd.f32 %v1037_v1, %v6219_v42  ;;  %v1150_v49 = vmax.f32 %v1034_v10, 0.0  ;;  %v6951_v13 = vadd.s32 432, %v6204_v8 }
 0x1ee   : > { %1703 = vst [vmem:[%s6225_s22 + $0x198] sm:$0xff] %v1036_v17  ;;  %v6945_v2 = vsel %vm1931_vm3, %v1036_v17, -inf  ;;  %vm1933_vm5 = vcmp.lt.s32.totalorder %v1869_v5, 600 }
 0x1ef   : > { %v2058_v9 = vmax.f32 %v6945_v2, %v2057_v28  ;;  %v1151_v53 = vmax.f32 %v1038_v54, 0.0  ;;  %10014 = vst [vmem:[#allocation76_spill] sm:$0xff] %v6951_v13  ;;  %v6956_v28 = vadd.s32 440, %v6204_v8 }
 0x1f1   : > { %v1189_v55 = vpack.c.bf16 %v1151_v53, %v1150_v49  ;;  %v1041_v37 = vpop.f32.mrb[104].mxu0  ;;  %10015 = vst [vmem:[#allocation77_spill] sm:$0xff] %v6956_v28 }
 0x1f2   : > { %v1042_v1 = vadd.f32 %v1041_v37, %v6217_v34  ;;  %v1043_v4 = vpop.f32.mrb[105].mxu0  ;;  %v1870_v37 = vadd.s32 %v6312_v45, %v6951_v13 }
 0x1f3   : > { %v1044_v17 = vadd.f32 %v1043_v4, %v6219_v42  ;;  %v1045_v59 = vpop.f32.mrb[106].mxu0  ;;  %5075 = vmatmul.mubr.bf16.gmra.mrb[48].mxu1 %v1189_v55 }
 0x1f4   : > { %1704 = vst [vmem:[%s6225_s22 + $0x1a0] sm:$0xff] %v1042_v1  ;;  %v6959_v10 = vsel %vm1932_vm4, %v1042_v1, -inf  ;;  %v1046_v53 = vadd.f32 %v1045_v59, %v6217_v34  ;;  %v1047_v54 = vpop.f32.mrb[107].mxu0  ;;  %v1871_v1 = vadd.s32 %v6312_v45, %v6956_v28  ;;  %vm1934_vm6 = vcmp.lt.s32.totalorder %v1870_v37, 600 }
 0x1f5   : > { %10016 = vst [vmem:[#allocation78_spill] sm:$0xff] %v6959_v10  ;;  %v2059_v47 = vmax.f32 %v6959_v10, %v2058_v9  ;;  %v1048_v49 = vadd.f32 %v1047_v54, %v6219_v42  ;;  %v1152_v5 = vmax.f32 %v1044_v17, 0.0  ;;  %v6973_v9 = vadd.s32 448, %v6204_v8 }
 0x1f6   : > { %1705 = vst [vmem:[%s6225_s22 + $0x1a8] sm:$0xff] %v1046_v53  ;;  %v6967_v4 = vsel %vm1933_vm5, %v1046_v53, -inf  ;;  %vm1935_vm7 = vcmp.lt.s32.totalorder %v1871_v1, 600  ;;  %v6978_v17 = vadd.s32 456, %v6204_v8 }
 0x1f7   : > { %10017 = vst [vmem:[#allocation79_spill] sm:$0xff] %v6967_v4  ;;  %v2060_v55 = vmax.f32 %v6967_v4, %v2059_v47  ;;  %v1153_v21 = vmax.f32 %v1048_v49, 0.0  ;;  %10018 = vst [vmem:[#allocation80_spill] sm:$0xff] %v6973_v9 }
 0x1f8   : > { %10019 = vst [vmem:[#allocation81_spill] sm:$0xff] %v6978_v17 }
 0x1f9   : > { %v1190_v59 = vpack.c.bf16 %v1153_v21, %v1152_v5  ;;  %v1051_v0 = vpop.f32.mrb[108].mxu0 }
 0x1fa   : > { %v1052_v54 = vadd.f32 %v1051_v0, %v6217_v34  ;;  %v1053_v13 = vpop.f32.mrb[109].mxu0  ;;  %v1872_v0 = vadd.s32 %v6312_v45, %v6973_v9 }
 0x1fb   : > { %v1054_v53 = vadd.f32 %v1053_v13, %v6219_v42  ;;  %v1055_v41 = vpop.f32.mrb[110].mxu0  ;;  %5078 = vmatprep.mubr.bf16.mxu1 %v1190_v59 }
 0x1fc   : > { %1706 = vst [vmem:[%s6225_s22 + $0x1b0] sm:$0xff] %v1052_v54  ;;  %v6981_v47 = vsel %vm1934_vm6, %v1052_v54, -inf  ;;  %v1056_v21 = vadd.f32 %v1055_v41, %v6217_v34  ;;  %v1057_v49 = vpop.f32.mrb[111].mxu0  ;;  %v1873_v54 = vadd.s32 %v6312_v45, %v6978_v17  ;;  %v6995_v41 = vadd.s32 464, %v6204_v8 }
 0x1fd   : > { %10020 = vst [vmem:[#allocation82_spill] sm:$0xff] %v6981_v47  ;;  %v2061_v37 = vmax.f32 %v6981_v47, %v2060_v55  ;;  %v1058_v5 = vadd.f32 %v1057_v49, %v6219_v42  ;;  %v1154_v1 = vmax.f32 %v1054_v53, 0.0  ;;  %vm1936_vm8 = vcmp.lt.s32.totalorder %v1872_v0, 600  ;;  %v7009_v0 = vld [vmem:[%s9735_s4] ss:$0 sm:$0xff] }
 0x1fe   : > { %1707 = vst [vmem:[%s6225_s22 + $0x1b8] sm:$0xff] %v1056_v21  ;;  %v6989_v13 = vsel %vm1935_vm7, %v1056_v21, -inf  ;;  %10022 = vst [vmem:[#allocation84_spill] sm:$0xff] %v6995_v41  ;;  %v6999_v21 = vadd.s32 472, %v6204_v8  ;;  %vm1937_vm9 = vcmp.lt.s32.totalorder %v1873_v54, 600 }
 0x1ff   : > { %10021 = vst [vmem:[#allocation83_spill] sm:$0xff] %v6989_v13  ;;  %v2062_v59 = vmax.f32 %v6989_v13, %v2061_v37  ;;  %v1155_v28 = vmax.f32 %v1058_v5, 0.0  ;;  %10025 = vst [vmem:[#allocation87_spill] sm:$0xff] %v7009_v0 }
 0x200   : > { %10023 = vst [vmem:[#allocation85_spill] sm:$0xff] %v6999_v21 }
 0x201   : > { %v1191_v55 = vpack.c.bf16 %v1155_v28, %v1154_v1  ;;  %v1061_v15 = vpop.f32.mrb[112].mxu0 }
 0x202   : > { %v1062_v49 = vadd.f32 %v1061_v15, %v6217_v34  ;;  %v1063_v9 = vpop.f32.mrb[113].mxu0  ;;  %v1874_v15 = vadd.s32 %v6312_v45, %v6995_v41 }
 0x203   : > { %v1064_v53 = vadd.f32 %v1063_v9, %v6219_v42  ;;  %v1065_v37 = vpop.f32.mrb[114].mxu0  ;;  %5079 = vmatmul.mubr.bf16.gmra.mrb[52].mxu1 %v1191_v55 }
 0x204   : > { %1708 = vst [vmem:[%s6225_s22 + $0x1c0] sm:$0xff] %v1062_v49  ;;  %v7003_v5 = vsel %vm1936_vm8, %v1062_v49, -inf  ;;  %v1066_v17 = vadd.f32 %v1065_v37, %v6217_v34  ;;  %v1067_v28 = vpop.f32.mrb[115].mxu0  ;;  %v1875_v49 = vadd.s32 %v6312_v45, %v6999_v21  ;;  %vm1938_vm10 = vcmp.lt.s32.totalorder %v1874_v15, 600 }
 0x205   : > { %10024 = vst [vmem:[#allocation86_spill] sm:$0xff] %v7003_v5  ;;  %v2063_v1 = vmax.f32 %v7003_v5, %v2062_v59  ;;  %v1068_v9 = vadd.f32 %v1067_v28, %v6219_v42  ;;  %v1156_v37 = vmax.f32 %v1064_v53, 0.0  ;;  %v7025_v21 = vadd.s32 480, %v6204_v8 }
 0x206   : > { %1709 = vst [vmem:[%s6225_s22 + $0x1c8] sm:$0xff] %v1066_v17  ;;  %v7016_v54 = vsel %vm1937_vm9, %v1066_v17, -inf  ;;  %v5028_v55 = vpop.f32.mrb[0].mxu1  ;;  %vm1939_vm11 = vcmp.lt.s32.totalorder %v1875_v49, 600 }
 0x207   : > { %10026 = vst [vmem:[#allocation88_spill] sm:$0xff] %v7016_v54  ;;  %v2064_v52 = vmax.f32 %v7016_v54, %v2063_v1  ;;  %v1157_v61 = vmax.f32 %v1068_v9, 0.0  ;;  %v1310_v13 = vadd.f32 %v5028_v55, %v7009_v0  ;;  %v1301_v47 = vpop.f32.mrb[1].mxu1  ;;  %10027 = vst [vmem:[#allocation89_spill] sm:$0xff] %v7025_v21  ;;  %v1876_v49 = vadd.s32 %v6312_v45, %v7025_v21 }
 0x208   : > { %v1302_v41 = vadd.f32 %v7009_v0, %v1301_v47  ;;  %v5029_v4 = vpop.f32.mrb[2].mxu1 }
 0x209   : > { %v1192_v59 = vpack.c.bf16 %v1157_v61, %v1156_v37  ;;  %5301 = vtanh.f32 %v1310_v13  ;;  %v1313_v17 = vadd.f32 %v5029_v4, %v7009_v0  ;;  %v1071_v28 = vpop.f32.mrb[116].mxu0  ;;  %v1304_v5 = vpop.f32.mrb[3].mxu1  ;;  %v7031_v4 = vadd.s32 488, %v6204_v8 }
 0x20a   : > { %5303 = vtanh.f32 %v1302_v41  ;;  %v1072_v53 = vadd.f32 %v1071_v28, %v6217_v34  ;;  %v1305_v1 = vadd.f32 %v7009_v0, %v1304_v5  ;;  %v1073_v9 = vpop.f32.mrb[117].mxu0  ;;  %vm1940_vm12 = vcmp.lt.s32.totalorder %v1876_v49, 600 }
 0x20b   : > { %5305 = vtanh.f32 %v1313_v17  ;;  %v1074_v47 = vadd.f32 %v1073_v9, %v6219_v42  ;;  %v1075_v61 = vpop.f32.mrb[118].mxu0  ;;  %5082 = vmatprep.mubr.bf16.mxu1 %v1192_v59  ;;  %10028 = vst [vmem:[#allocation90_spill] sm:$0xff] %v7031_v4 }
 0x20c   : > { %1710 = vst [vmem:[%s6225_s22 + $0x1d0] sm:$0xff] %v1072_v53  ;;  %v7035_v13 = vsel %vm1938_vm10, %v1072_v53, -inf  ;;  %5307 = vtanh.f32 %v1305_v1  ;;  %v1076_v41 = vadd.f32 %v1075_v61, %v6217_v34  ;;  %v1077_v5 = vpop.f32.mrb[119].mxu0  ;;  %v1877_v53 = vadd.s32 %v6312_v45, %v7031_v4 }
 0x20d   : > { %10029 = vst [vmem:[#allocation91_spill] sm:$0xff] %v7035_v13  ;;  %v2065_v55 = vmax.f32 %v7035_v13, %v2064_v52  ;;  %v1078_v37 = vadd.f32 %v1077_v5, %v6219_v42  ;;  %v1158_v17 = vmax.f32 %v1074_v47, 0.0  ;;  %v7050_v52 = vadd.s32 496, %v6204_v8 }
 0x20e   : > { %1711 = vst [vmem:[%s6225_s22 + $0x1d8] sm:$0xff] %v1076_v41  ;;  %v7043_v59 = vsel %vm1939_vm11, %v1076_v41, -inf  ;;  %v7054_v47 = vadd.s32 504, %v6204_v8  ;;  %vm1941_vm13 = vcmp.lt.s32.totalorder %v1877_v53, 600 }
 0x20f   : > { %10030 = vst [vmem:[#allocation92_spill] sm:$0xff] %v7043_v59  ;;  %v2068_v28 = vmax.f32 %v7043_v59, %v2065_v55  ;;  %v1159_v15 = vmax.f32 %v1078_v37, 0.0  ;;  %10031 = vst [vmem:[#allocation93_spill] sm:$0xff] %v7050_v52  ;;  %v1878_v59 = vadd.s32 %v6312_v45, %v7050_v52 }
 0x210   : > { %10032 = vst [vmem:[#allocation94_spill] sm:$0xff] %v7054_v47 }
 0x211   : > { %v1193_v1 = vpack.c.bf16 %v1159_v15, %v1158_v17  ;;  %v1081_v9 = vpop.f32.mrb[120].mxu0  ;;  %vm1942_vm14 = vcmp.lt.s32.totalorder %v1878_v59, 600 }
 0x212   : > { %v1082_v61 = vadd.f32 %v1081_v9, %v6217_v34  ;;  %v1083_v5 = vpop.f32.mrb[121].mxu0 }
 0x213   : > { %v5302_v41 = vpop.eup %5301  ;;  %v1084_v55 = vadd.f32 %v1083_v5, %v6219_v42  ;;  %v1085_v37 = vpop.f32.mrb[122].mxu0  ;;  %5083 = vmatmul.mubr.bf16.gmra.mrb[56].mxu1 %v1193_v1 }
 0x214   : > { %v5304_v17 = vpop.eup %5303  ;;  %1712 = vst [vmem:[%s6225_s22 + $0x1e0] sm:$0xff] %v1082_v61  ;;  %v7058_v49 = vsel %vm1940_vm12, %v1082_v61, -inf  ;;  %v1086_v15 = vadd.f32 %v1085_v37, %v6217_v34  ;;  %v1087_v4 = vpop.f32.mrb[123].mxu0  ;;  %v1879_v61 = vadd.s32 %v6312_v45, %v7054_v47  ;;  %v10067_v47 = vld [vmem:[#allocation71_spill] sm:$0xff] }
 0x215   : > { %10033 = vst [vmem:[#allocation95_spill] sm:$0xff] %v7058_v49  ;;  %v5306_v9 = vpop.eup %5305  ;;  %v2066_v21 = vmax.f32 %v7058_v49, %v2068_v28  ;;  %v1088_v8 = vadd.f32 %v1087_v4, %v6219_v42  ;;  %v1160_v5 = vmax.f32 %v1084_v55, 0.0 }
 0x216   : > { %v5308_v13 = vpop.eup %5307  ;;  %1713 = vst [vmem:[%s6225_s22 + $0x1e8] sm:$0xff] %v1086_v15  ;;  %v7066_v53 = vsel %vm1941_vm13, %v1086_v15, -inf  ;;  %v5032_v1 = vpop.f32.mrb[4].mxu1  ;;  %v1621_v54 = vpack.c.bf16 %v5306_v9, %v5302_v41  ;;  %vm1943_vm15 = vcmp.lt.s32.totalorder %v1879_v61, 600 }
 0x217   : > { %10034 = vst [vmem:[#allocation96_spill] sm:$0xff] %v7066_v53  ;;  %v2067_v37 = vmax.f32 %v7066_v53, %v2066_v21  ;;  %v1161_v10 = vmax.f32 %v1088_v8, 0.0  ;;  %v1326_v28 = vadd.f32 %v5032_v1, %v7009_v0  ;;  %v1317_v49 = vpop.f32.mrb[5].mxu1  ;;  %v1620_v4 = vpack.c.bf16 %v5308_v13, %v5304_v17 }
 0x218   : > { %v1318_v19 = vadd.f32 %v7009_v0, %v1317_v49  ;;  %v5033_v52 = vpop.f32.mrb[6].mxu1  ;;  %1719 = vst [vmem:[%s7073_s14 + $0x8] sm:$0xff] %v1621_v54 }
 0x219   : > { %v1194_v55 = vpack.c.bf16 %v1161_v10, %v1160_v5  ;;  %5309 = vtanh.f32 %v1326_v28  ;;  %v1329_v45 = vadd.f32 %v5033_v52, %v7009_v0  ;;  %v1091_v41 = vpop.f32.mrb[124].mxu0  ;;  %v1320_v8 = vpop.f32.mrb[7].mxu1  ;;  %2500 = vxpose.xlu1.c.b16.start [1/8] %v1620_v4, 128  ;;  %1718 = vst [vmem:[%s7073_s14] sm:$0xff] %v1620_v4 }
 0x21a   : > { %5311 = vtanh.f32 %v1318_v19  ;;  %v1092_v21 = vadd.f32 %v1091_v41, %v6217_v34  ;;  %v1321_v13 = vadd.f32 %v7009_v0, %v1320_v8  ;;  %v1093_v17 = vpop.f32.mrb[125].mxu0 }
 0x21b   : > { %5313 = vtanh.f32 %v1329_v45  ;;  %v1094_v49 = vadd.f32 %v1093_v17, %v6219_v42  ;;  %v1095_v10 = vpop.f32.mrb[126].mxu0  ;;  %5086 = vmatprep.mubr.bf16.mxu1 %v1194_v55 }
 0x21c   : > { %1714 = vst [vmem:[%s6225_s22 + $0x1f0] sm:$0xff] %v1092_v21  ;;  %v7082_v52 = vsel %vm1942_vm14, %v1092_v21, -inf  ;;  %5315 = vtanh.f32 %v1321_v13  ;;  %v1096_v59 = vadd.f32 %v1095_v10, %v6217_v34  ;;  %v1097_v15 = vpop.f32.mrb[127].mxu0 }
 0x21d   : > { %10035 = vst [vmem:[#allocation97_spill] sm:$0xff] %v7082_v52  ;;  %v2069_v19 = vmax.f32 %v7082_v52, %v2067_v37  ;;  %v1098_v9 = vadd.f32 %v1097_v15, %v6219_v42  ;;  %2501 = vxpose.xlu1.c.b16.cont [2/8] %v1621_v54, 128  ;;  %v1162_v1 = vmax.f32 %v1094_v49, 0.0 }
 0x21e   : > { %1715 = vst [vmem:[%s6225_s22 + $0x1f8] sm:$0xff] %v1096_v59  ;;  %v7088_v5 = vsel %vm1943_vm15, %v1096_v59, -inf }
 0x21f   : > { %10036 = vst [vmem:[#allocation98_spill] sm:$0xff] %v7088_v5  ;;  %v2070_v28 = vmax.f32 %v7088_v5, %v2069_v19  ;;  %v1163_v61 = vmax.f32 %v1098_v9, 0.0 }
 0x221   : > { %v2071_v4 = vrot.slane %v2070_v28, 4  ;;  %v1195_v55 = vpack.c.bf16 %v1163_v61, %v1162_v1 }
 0x223   : > { %v5310_v45 = vpop.eup %5309  ;;  %v2072_v41 = vmax.f32 %v2070_v28, %v2071_v4  ;;  %5087 = vmatmul.mubr.bf16.gmra.mrb[60].mxu1 %v1195_v55 }
 0x224   : > { %v5312_v34 = vpop.eup %5311 }
 0x225   : > { %v5314_v8 = vpop.eup %5313  ;;  %v2073_v37 = vrot.slane %v2072_v41, 2 }
 0x226   : > { %v5316_v21 = vpop.eup %5315  ;;  %v5036_v42 = vpop.f32.mrb[8].mxu1  ;;  %v1623_v54 = vpack.c.bf16 %v5314_v8, %v5310_v45 }
 0x227   : > { %v2074_v13 = vmax.f32 %v2072_v41, %v2073_v37  ;;  %v1333_v17 = vpop.f32.mrb[9].mxu1  ;;  %v1622_v10 = vpack.c.bf16 %v5316_v21, %v5312_v34  ;;  %v1342_v19 = vadd.f32 %v5036_v42, %v7009_v0  ;;  %v10045_v21 = vld [vmem:[#allocation47_spill] sm:$0xff]  ;;  %v10046_v42 = vld [vmem:[#allocation78_spill] sm:$0xff] }
 0x228   : > { %v5037_v49 = vpop.f32.mrb[10].mxu1  ;;  %1721 = vst [vmem:[%s7073_s14 + $0x18] sm:$0xff] %v1623_v54  ;;  %v1334_v9 = vadd.f32 %v7009_v0, %v1333_v17  ;;  %v10049_v17 = vld [vmem:[#allocation83_spill] sm:$0xff] }
 0x229   : > { %v1336_v59 = vpop.f32.mrb[11].mxu1  ;;  %1720 = vst [vmem:[%s7073_s14 + $0x10] sm:$0xff] %v1622_v10  ;;  %2502 = vxpose.xlu1.c.b16.cont [3/8] %v1622_v10, 128  ;;  %v2075_v15 = vrot.slane %v2074_v13, 1  ;;  %v1345_v1 = vadd.f32 %v5037_v49, %v7009_v0  ;;  %5317 = vtanh.f32 %v1342_v19  ;;  %v10051_v49 = vld [vmem:[#allocation49_spill] sm:$0xff]  ;;  %v10054_v19 = vld [vmem:[#allocation55_spill] sm:$0xff] }
 0x22a   : > { %v1337_v28 = vadd.f32 %v7009_v0, %v1336_v59  ;;  %5319 = vtanh.f32 %v1334_v9  ;;  %v10052_v59 = vld [vmem:[#allocation51_spill] sm:$0xff]  ;;  %v10066_v0 = vld [vmem:[#allocation69_spill] sm:$0xff] }
 0x22b   : > { %v7097_v61 = vmax.f32 %v2074_v13, %v2075_v15  ;;  %5321 = vtanh.f32 %v1345_v1  ;;  %v10048_v13 = vld [vmem:[#allocation82_spill] sm:$0xff]  ;;  %v10053_v15 = vld [vmem:[#allocation53_spill] sm:$0xff]  ;;  %v10071_v1 = vld [vmem:[#allocation11_spill] sm:$0xff] }
 0x22c   : > { %5323 = vtanh.f32 %v1337_v28 }
 0x22d   : > { %2503 = vxpose.xlu1.c.b16.cont [4/8] %v1623_v54, 128  ;;  %10037 = vst [vmem:[#allocation99_spill] sm:$0xff] %v7097_v61  ;;  %vm2077_vm0 = vcmp.eq.f32.partialorder %v6352_v39, %v7097_v61  ;;  %vm2078_vm1 = vcmp.eq.f32.partialorder %v6344_v6, %v7097_v61  ;;  %vm2079_vm2 = vcmp.eq.f32.partialorder %v6355_v18, %v7097_v61  ;;  %v10047_v54 = vld [vmem:[#allocation79_spill] sm:$0xff]  ;;  %v10073_v39 = vld [vmem:[#allocation73_spill] sm:$0xff] }
 0x22e   : > { %vm2080_vm3 = vcmp.eq.f32.partialorder %v6376_v40, %v7097_v61  ;;  %vm2081_vm4 = vcmp.eq.f32.partialorder %v6386_v12, %v7097_v61  ;;  %vm2082_vm5 = vcmp.eq.f32.partialorder %v6400_v27, %v7097_v61  ;;  %vm2083_vm6 = vcmp.eq.f32.partialorder %v6414_v60, %v7097_v61  ;;  %v10078_v12 = vld [vmem:[#allocation16_spill] sm:$0xff]  ;;  %v10079_v27 = vld [vmem:[#allocation17_spill] sm:$0xff]  ;;  %v10081_v60 = vld [vmem:[#allocation18_spill] sm:$0xff] }
 0x22f   : > { %vm2084_vm7 = vcmp.eq.f32.partialorder %v6426_v38, %v7097_v61  ;;  %vm2085_vm8 = vcmp.eq.f32.partialorder %v6438_v50, %v7097_v61  ;;  %vm2138_vm12 = vcmp.eq.f32.partialorder %v7066_v53, %v7097_v61  ;;  %vm2139_vm11 = vcmp.eq.f32.partialorder %v7082_v52, %v7097_v61  ;;  %v10069_v53 = vld [vmem:[#allocation9_spill] sm:$0xff]  ;;  %v10083_v38 = vld [vmem:[#allocation19_spill] sm:$0xff]  ;;  %v10085_v50 = vld [vmem:[#allocation20_spill] sm:$0xff] }
 0x230   : > { %vm2140_vm14 = vcmp.eq.f32.partialorder %v7088_v5, %v7097_v61  ;;  %vm2123_vm10 = vcmp.eq.f32.partialorder %v10066_v0, %v7097_v61  ;;  %vm2124_vm9 = vcmp.eq.f32.partialorder %v10067_v47, %v7097_v61  ;;  %v7251_v5 = vsel %vm2078_vm1, %v10069_v53, 512  ;;  %v10075_v53 = vld [vmem:[#allocation13_spill] sm:$0xff] }
 0x231   : > { %v7263_v9 = vsel %vm2080_vm3, %v10071_v1, 512  ;;  %v7277_v18 = vsel %vm2082_vm5, %v10075_v53, 512  ;;  %v10077_v1 = vld [vmem:[#allocation15_spill] sm:$0xff]  ;;  %vm10080_vm1 = vcmp.eq.f32.partialorder %v6456_v25, %v7097_v61  ;;  %vm10084_vm3 = vcmp.eq.f32.partialorder %v6484_v11, %v7097_v61  ;;  %v10087_v25 = vld [vmem:[#allocation21_spill] sm:$0xff] }
 0x232   : > { %10072 = vst [vmem:[#allocation78_spill] sm:$0xff] %v7263_v9  ;;  %v7289_v9 = vsel %vm2084_vm7, %v10077_v1, 512  ;;  %v7301_v53 = vsel %vm10080_vm1, %v10079_v27, 512  ;;  %v7313_v1 = vsel %vm10084_vm3, %v10083_v38, 512  ;;  %vm10088_vm5 = vcmp.eq.f32.partialorder %v6508_v16, %v7097_v61  ;;  %v10091_v11 = vld [vmem:[#allocation23_spill] sm:$0xff]  ;;  %v10095_v16 = vld [vmem:[#allocation25_spill] sm:$0xff] }
 0x233   : > { %v7151_v45 = vpop.eup %5317  ;;  %v7325_v27 = vsel %vm10088_vm5, %v10087_v25, 512  ;;  %vm10092_vm7 = vcmp.eq.f32.partialorder %v6534_v43, %v7097_v61  ;;  %vm10096_vm1 = vcmp.eq.f32.partialorder %v6564_v29, %v7097_v61  ;;  %v10099_v43 = vld [vmem:[#allocation27_spill] sm:$0xff]  ;;  %vm10100_vm3 = vcmp.eq.f32.partialorder %v6592_v22, %v7097_v61  ;;  %v10103_v29 = vld [vmem:[#allocation29_spill] sm:$0xff] }
 0x234   : > { %10040 = vst [vmem:[#allocation102_spill] sm:$0xff] %v7151_v45  ;;  %v7163_v34 = vpop.eup %5319  ;;  %v10059_v45 = vld [vmem:[#allocation57_spill] sm:$0xff]  ;;  %v7337_v38 = vsel %vm10092_vm7, %v10091_v11, 512  ;;  %v7349_v25 = vsel %vm10096_vm1, %v10095_v16, 512  ;;  %v7361_v11 = vsel %vm10100_vm3, %v10099_v43, 512  ;;  %vm10104_vm5 = vcmp.eq.f32.partialorder %v6616_v58, %v7097_v61  ;;  %v10107_v22 = vld [vmem:[#allocation31_spill] sm:$0xff] }
 0x235   : > { %10042 = vst [vmem:[#allocation104_spill] sm:$0xff] %v7163_v34  ;;  %v7181_v37 = vpop.eup %5321  ;;  %v10061_v34 = vld [vmem:[#allocation61_spill] sm:$0xff]  ;;  %v7373_v16 = vsel %vm10104_vm5, %v10103_v29, 512  ;;  %vm10108_vm7 = vcmp.eq.f32.partialorder %v6642_v31, %v7097_v61  ;;  %vm10112_vm1 = vcmp.eq.f32.partialorder %v6672_v44, %v7097_v61  ;;  %v10115_v31 = vld [vmem:[#allocation35_spill] sm:$0xff]  ;;  %vm10116_vm3 = vcmp.eq.f32.partialorder %v6697_v24, %v7097_v61 }
 0x236   : > { %v7139_v4 = vpop.f32.mrb[12].mxu1  ;;  %10044 = vst [vmem:[#allocation106_spill] sm:$0xff] %v7181_v37  ;;  %v7199_v10 = vpop.eup %5323  ;;  %v10070_v37 = vld [vmem:[#allocation10_spill] sm:$0xff]  ;;  %v7385_v43 = vsel %vm10108_vm7, %v10107_v22, 512  ;;  %v10111_v58 = vld [vmem:[#allocation33_spill] sm:$0xff]  ;;  %v7409_v22 = vsel %vm10116_vm3, %v10115_v31, 512  ;;  %vm10120_vm5 = vcmp.eq.f32.partialorder %v6719_v46, %v7097_v61  ;;  %vm10124_vm7 = vcmp.eq.f32.partialorder %v6741_v14, %v7097_v61 }
 0x237   : > { %10038 = vst [vmem:[#allocation100_spill] sm:$0xff] %v7139_v4  ;;  %v7149_v55 = vpop.f32.mrb[13].mxu1  ;;  %10050 = vst [vmem:[#allocation47_spill] sm:$0xff] %v7199_v10  ;;  %v10060_v10 = vld [vmem:[#allocation59_spill] sm:$0xff]  ;;  %v7257_v28 = vsel %vm2079_vm2, %v10070_v37, 512  ;;  %v10076_v37 = vld [vmem:[#allocation14_spill] sm:$0xff]  ;;  %vm10082_vm2 = vcmp.eq.f32.partialorder %v6464_v57, %v7097_v61  ;;  %vm10132_vm3 = vcmp.eq.f32.partialorder %v10045_v21, %v7097_v61 }
 0x238   : > { %10039 = vst [vmem:[#allocation101_spill] sm:$0xff] %v7149_v55  ;;  %v7161_v41 = vpop.f32.mrb[14].mxu1  ;;  %v10064_v55 = vld [vmem:[#allocation65_spill] sm:$0xff]  ;;  %v10065_v4 = vld [vmem:[#allocation67_spill] sm:$0xff]  ;;  %v7283_v40 = vsel %vm2083_vm6, %v10076_v37, 512  ;;  %v7307_v37 = vsel %vm10082_vm2, %v10081_v60, 512  ;;  %vm10090_vm6 = vcmp.eq.f32.partialorder %v6522_v23, %v7097_v61  ;;  %vm10098_vm2 = vcmp.eq.f32.partialorder %v6572_v62, %v7097_v61 }
 0x239   : > { %10041 = vst [vmem:[#allocation103_spill] sm:$0xff] %v7161_v41  ;;  %v7179_v8 = vpop.f32.mrb[15].mxu1  ;;  %vm2121_vm15 = vcmp.eq.f32.partialorder %v10064_v55, %v7097_v61  ;;  %vm2122_vm13 = vcmp.eq.f32.partialorder %v10065_v4, %v7097_v61  ;;  %v10068_v41 = vld [vmem:[#allocation7_spill] sm:$0xff]  ;;  %v10089_v57 = vld [vmem:[#allocation22_spill] sm:$0xff]  ;;  %v7397_v29 = vsel %vm10112_vm1, %v10111_v58, 512  ;;  %v10119_v44 = vld [vmem:[#allocation37_spill] sm:$0xff]  ;;  %vm10128_vm1 = vcmp.eq.f32.partialorder %v6764_v20, %v7097_v61 }
 0x23a   : > { %10043 = vst [vmem:[#allocation105_spill] sm:$0xff] %v7179_v8  ;;  %v10062_v8 = vld [vmem:[#allocation63_spill] sm:$0xff]  ;;  %v7245_v52 = vsel %vm2077_vm0, %v10068_v41, 512  ;;  %vm2125_vm0 = vcmp.eq.f32.partialorder %v10073_v39, %v7097_v61  ;;  %v10074_v41 = vld [vmem:[#allocation12_spill] sm:$0xff]  ;;  %v7331_v60 = vsel %vm10090_vm6, %v10089_v57, 512  ;;  %v10097_v23 = vld [vmem:[#allocation26_spill] sm:$0xff]  ;;  %vm10106_vm6 = vcmp.eq.f32.partialorder %v6630_v35, %v7097_v61 }
 0x23b   : > { %v7271_v6 = vsel %vm2081_vm4, %v10074_v41, 512  ;;  %v7295_v41 = vsel %vm2085_vm8, %v10078_v12, 512  ;;  %vm10086_vm4 = vcmp.eq.f32.partialorder %v6494_v33, %v7097_v61  ;;  %v10093_v33 = vld [vmem:[#allocation24_spill] sm:$0xff]  ;;  %vm10094_vm8 = vcmp.eq.f32.partialorder %v6546_v36, %v7097_v61  ;;  %v10105_v62 = vld [vmem:[#allocation30_spill] sm:$0xff]  ;;  %v10123_v24 = vld [vmem:[#allocation39_spill] sm:$0xff] }
 0x23c   : > { %v7319_v12 = vsel %vm10086_vm4, %v10085_v50, 512  ;;  %v7343_v50 = vsel %vm10094_vm8, %v10093_v33, 512  ;;  %v7355_v57 = vsel %vm10098_vm2, %v10097_v23, 512  ;;  %v10101_v36 = vld [vmem:[#allocation28_spill] sm:$0xff]  ;;  %vm10102_vm4 = vcmp.eq.f32.partialorder %v6602_v32, %v7097_v61  ;;  %v10113_v35 = vld [vmem:[#allocation34_spill] sm:$0xff]  ;;  %v10127_v46 = vld [vmem:[#allocation41_spill] sm:$0xff] }
 0x23d   : > { %v7367_v33 = vsel %vm10102_vm4, %v10101_v36, 512  ;;  %v7379_v23 = vsel %vm10106_vm6, %v10105_v62, 512  ;;  %v10109_v32 = vld [vmem:[#allocation32_spill] sm:$0xff]  ;;  %vm10110_vm8 = vcmp.eq.f32.partialorder %v6654_v30, %v7097_v61  ;;  %vm10114_vm2 = vcmp.eq.f32.partialorder %v6680_v7, %v7097_v61  ;;  %v10121_v7 = vld [vmem:[#allocation38_spill] sm:$0xff]  ;;  %v10131_v14 = vld [vmem:[#allocation43_spill] sm:$0xff] }
 0x23e   : > { %v7391_v36 = vsel %vm10110_vm8, %v10109_v32, 512  ;;  %v7403_v62 = vsel %vm10114_vm2, %v10113_v35, 512  ;;  %v10117_v30 = vld [vmem:[#allocation36_spill] sm:$0xff]  ;;  %vm10118_vm4 = vcmp.eq.f32.partialorder %v6707_v56, %v7097_v61  ;;  %v7421_v58 = vsel %vm10120_vm5, %v10119_v44, 512  ;;  %v10135_v20 = vld [vmem:[#allocation45_spill] sm:$0xff] }
 0x23f   : > { %v7415_v32 = vsel %vm10118_vm4, %v10117_v30, 512  ;;  %vm10122_vm6 = vcmp.eq.f32.partialorder %v6730_v63, %v7097_v61  ;;  %v7433_v31 = vsel %vm10124_vm7, %v10123_v24, 512  ;;  %v10125_v56 = vld [vmem:[#allocation40_spill] sm:$0xff]  ;;  %vm10126_vm8 = vcmp.eq.f32.partialorder %v6750_v48, %v7097_v61  ;;  %v10129_v63 = vld [vmem:[#allocation42_spill] sm:$0xff] }
 0x240   : > { %v7427_v35 = vsel %vm10122_vm6, %v10121_v7, 512  ;;  %v7439_v30 = vsel %vm10126_vm8, %v10125_v56, 512  ;;  %v7445_v44 = vsel %vm10128_vm1, %v10127_v46, 512  ;;  %vm10130_vm2 = vcmp.eq.f32.partialorder %v6771_v26, %v7097_v61  ;;  %v10133_v48 = vld [vmem:[#allocation44_spill] sm:$0xff]  ;;  %v10137_v26 = vld [vmem:[#allocation46_spill] sm:$0xff] }
 0x241   : > { %v7451_v7 = vsel %vm10130_vm2, %v10129_v63, 512  ;;  %v7457_v24 = vsel %vm10132_vm3, %v10131_v14, 512  ;;  %vm10134_vm4 = vcmp.eq.f32.partialorder %v10051_v49, %v7097_v61  ;;  %vm10136_vm5 = vcmp.eq.f32.partialorder %v10052_v59, %v7097_v61  ;;  %v10139_v21 = vld [vmem:[#allocation48_spill] sm:$0xff] }
 0x242   : > { %v7463_v56 = vsel %vm10134_vm4, %v10133_v48, 512  ;;  %v7469_v46 = vsel %vm10136_vm5, %v10135_v20, 512  ;;  %vm10138_vm6 = vcmp.eq.f32.partialorder %v10053_v15, %v7097_v61  ;;  %vm10140_vm7 = vcmp.eq.f32.partialorder %v10054_v19, %v7097_v61  ;;  %v10142_v48 = vld [vmem:[#allocation50_spill] sm:$0xff]  ;;  %v10144_v20 = vld [vmem:[#allocation52_spill] sm:$0xff] }
 0x243   : > { %v7475_v63 = vsel %vm10138_vm6, %v10137_v26, 512  ;;  %v7481_v14 = vsel %vm10140_vm7, %v10139_v21, 512  ;;  %vm10143_vm8 = vcmp.eq.f32.partialorder %v10059_v45, %v7097_v61  ;;  %vm10145_vm1 = vcmp.eq.f32.partialorder %v10060_v10, %v7097_v61  ;;  %v10146_v26 = vld [vmem:[#allocation54_spill] sm:$0xff]  ;;  %v10148_v21 = vld [vmem:[#allocation56_spill] sm:$0xff] }
 0x244   : > { %v7489_v59 = vsel %vm10143_vm8, %v10142_v48, 512  ;;  %v7495_v15 = vsel %vm10145_vm1, %v10144_v20, 512  ;;  %vm10147_vm2 = vcmp.eq.f32.partialorder %v10061_v34, %v7097_v61  ;;  %vm10149_vm3 = vcmp.eq.f32.partialorder %v10062_v8, %v7097_v61  ;;  %v10151_v48 = vld [vmem:[#allocation58_spill] sm:$0xff]  ;;  %v10152_v20 = vld [vmem:[#allocation60_spill] sm:$0xff] }
 0x245   : > { %v7501_v19 = vsel %vm10147_vm2, %v10146_v26, 512  ;;  %v7515_v10 = vsel %vm2121_vm15, %v10151_v48, 512  ;;  %v7521_v34 = vsel %vm2122_vm13, %v10152_v20, 512  ;;  %v10153_v26 = vld [vmem:[#allocation62_spill] sm:$0xff]  ;;  %v10157_v20 = vld [vmem:[#allocation68_spill] sm:$0xff]  ;;  %vm10158_vm13 = vcmp.eq.f32.partialorder %v6925_v3, %v7097_v61 }
 0x246   : > { %v7483_v49 = vpop.f32.mrb[16].mxu1  ;;  %v7527_v8 = vsel %vm2123_vm10, %v10153_v26, 512  ;;  %v10156_v48 = vld [vmem:[#allocation66_spill] sm:$0xff]  ;;  %v7547_v0 = vsel %vm10158_vm13, %v10157_v20, 512  ;;  %vm10160_vm10 = vcmp.eq.f32.partialorder %v6937_v51, %v7097_v61  ;;  %vm10165_vm15 = vcmp.eq.f32.partialorder %v10046_v42, %v7097_v61  ;;  %v10167_v20 = vld [vmem:[#allocation75_spill] sm:$0xff]  ;;  %v10176_v42 = vld [vmem:[#allocation80_spill] sm:$0xff] }
 0x247   : > { %10141 = vst [vmem:[#allocation79_spill] sm:$0xff] %v7483_v49  ;;  %v7507_v49 = vsel %vm10149_vm3, %v10148_v21, 512  ;;  %v7509_v45 = vpop.f32.mrb[17].mxu1  ;;  %v10154_v21 = vld [vmem:[#allocation64_spill] sm:$0xff]  ;;  %v7541_v4 = vsel %vm2125_vm0, %v10156_v48, 512  ;;  %v10159_v26 = vld [vmem:[#allocation70_spill] sm:$0xff]  ;;  %vm10168_vm0 = vcmp.eq.f32.partialorder %v10047_v54, %v7097_v61  ;;  %vm10171_vm4 = vcmp.eq.f32.partialorder %v10048_v13, %v7097_v61 }
 0x248   : > { %10150 = vst [vmem:[#allocation82_spill] sm:$0xff] %v7509_v45  ;;  %v7533_v45 = vsel %vm2124_vm9, %v10154_v21, 512  ;;  %v7535_v55 = vpop.f32.mrb[18].mxu1  ;;  %v7553_v47 = vsel %vm10160_vm10, %v10159_v26, 512  ;;  %v10161_v21 = vld [vmem:[#allocation72_spill] sm:$0xff]  ;;  %vm10162_vm9 = vcmp.eq.f32.partialorder %v6945_v2, %v7097_v61  ;;  %v10164_v48 = vld [vmem:[#allocation74_spill] sm:$0xff]  ;;  %vm10174_vm5 = vcmp.eq.f32.partialorder %v10049_v17, %v7097_v61 }
 0x249   : > { %10155 = vst [vmem:[#allocation83_spill] sm:$0xff] %v7535_v55  ;;  %v7559_v55 = vsel %vm10162_vm9, %v10161_v21, 512  ;;  %v7561_v39 = vpop.f32.mrb[19].mxu1  ;;  %v7567_v3 = vsel %vm10165_vm15, %v10164_v48, 512  ;;  %v7573_v51 = vsel %vm10168_vm0, %v10167_v20, 512  ;;  %v10170_v26 = vld [vmem:[#allocation76_spill] sm:$0xff]  ;;  %vm2205_vm3 = vcmp.lt.s32.totalorder %v7245_v52, %v7271_v6 }
 0x24a   : > { %10163 = vst [vmem:[#allocation49_spill] sm:$0xff] %v7561_v39  ;;  %10166 = vst [vmem:[#allocation51_spill] sm:$0xff] %v7567_v3  ;;  %v7579_v2 = vsel %vm10171_vm4, %v10170_v26, 512  ;;  %v10173_v21 = vld [vmem:[#allocation77_spill] sm:$0xff]  ;;  %v10177_v48 = vld [vmem:[#allocation86_spill] sm:$0xff]  ;;  %vm2207_vm13 = vcmp.lt.s32.totalorder %v7251_v5, %v7277_v18 }
 0x24b   : > { %10169 = vst [vmem:[#allocation53_spill] sm:$0xff] %v7573_v51  ;;  %10172 = vst [vmem:[#allocation55_spill] sm:$0xff] %v7579_v2  ;;  %v7585_v39 = vsel %vm10174_vm5, %v10173_v21, 512  ;;  %vm10178_vm6 = vcmp.eq.f32.partialorder %v10177_v48, %v7097_v61  ;;  %v10180_v54 = vld [vmem:[#allocation81_spill] sm:$0xff]  ;;  %v10181_v20 = vld [vmem:[#allocation88_spill] sm:$0xff] }
 0x24c   : > { %10175 = vst [vmem:[#allocation57_spill] sm:$0xff] %v7585_v39  ;;  %v7591_v3 = vsel %vm10178_vm6, %v10176_v42, 512  ;;  %vm10182_vm7 = vcmp.eq.f32.partialorder %v10181_v20, %v7097_v61  ;;  %v10184_v13 = vld [vmem:[#allocation84_spill] sm:$0xff]  ;;  %v10185_v26 = vld [vmem:[#allocation91_spill] sm:$0xff]  ;;  %v10188_v17 = vld [vmem:[#allocation85_spill] sm:$0xff] }
 0x24d   : > { %10179 = vst [vmem:[#allocation59_spill] sm:$0xff] %v7591_v3  ;;  %v7597_v51 = vsel %vm10182_vm7, %v10180_v54, 512  ;;  %vm10186_vm8 = vcmp.eq.f32.partialorder %v10185_v26, %v7097_v61  ;;  %v10189_v21 = vld [vmem:[#allocation92_spill] sm:$0xff]  ;;  %v10192_v48 = vld [vmem:[#allocation89_spill] sm:$0xff]  ;;  %v10193_v42 = vld [vmem:[#allocation95_spill] sm:$0xff]  ;;  %v2206_v54 = vsel %vm2205_vm3, %v7245_v52, %v7271_v6 }
 0x24e   : > { %10183 = vst [vmem:[#allocation61_spill] sm:$0xff] %v7597_v51  ;;  %v7603_v2 = vsel %vm10186_vm8, %v10184_v13, 512  ;;  %vm10190_vm1 = vcmp.eq.f32.partialorder %v10189_v21, %v7097_v61  ;;  %vm10194_vm2 = vcmp.eq.f32.partialorder %v10193_v42, %v7097_v61  ;;  %v10195_v20 = vld [vmem:[#allocation90_spill] sm:$0xff]  ;;  %v10197_v26 = vld [vmem:[#allocation93_spill] sm:$0xff]  ;;  %v2208_v13 = vsel %vm2207_vm13, %v7251_v5, %v7277_v18 }
 0x24f   : > { %10187 = vst [vmem:[#allocation63_spill] sm:$0xff] %v7603_v2  ;;  %v7609_v39 = vsel %vm10190_vm1, %v10188_v17, 512  ;;  %v7615_v3 = vsel %vm10194_vm2, %v10192_v48, 512  ;;  %v7621_v51 = vsel %vm2138_vm12, %v10195_v20, 512  ;;  %v7627_v2 = vsel %vm2139_vm11, %v10197_v26, 512  ;;  %v10199_v21 = vld [vmem:[#allocation94_spill] sm:$0xff] }
 0x250   : > { %10191 = vst [vmem:[#allocation65_spill] sm:$0xff] %v7609_v39  ;;  %v7633_v39 = vsel %vm2140_vm14, %v10199_v21, 512  ;;  %vm2209_vm12 = vcmp.lt.s32.totalorder %v7257_v28, %v7283_v40  ;;  %v10201_v42 = vld [vmem:[#allocation78_spill] sm:$0xff]  ;;  %vm2213_vm11 = vcmp.lt.s32.totalorder %v2206_v54, %v7295_v41  ;;  %vm2215_vm14 = vcmp.lt.s32.totalorder %v2208_v13, %v7301_v53 }
 0x251   : > { %vm2211_vm10 = vcmp.lt.s32.totalorder %v10201_v42, %v7289_v9  ;;  %v2210_v17 = vsel %vm2209_vm12, %v7257_v28, %v7283_v40  ;;  %v2214_v21 = vsel %vm2213_vm11, %v2206_v54, %v7295_v41  ;;  %v2216_v52 = vsel %vm2215_vm14, %v2208_v13, %v7301_v53 }
 0x252   : > { %v2212_v61 = vsel %vm2211_vm10, %v10201_v42, %v7289_v9  ;;  %vm2217_vm9 = vcmp.lt.s32.totalorder %v2210_v17, %v7307_v37  ;;  %vm2221_vm0 = vcmp.lt.s32.totalorder %v2214_v21, %v7319_v12  ;;  %vm2223_vm4 = vcmp.lt.s32.totalorder %v2216_v52, %v7325_v27  ;;  %v10202_v42 = vld [vmem:[#allocation51_spill] sm:$0xff] }
 0x253   : > { %vm2219_vm15 = vcmp.lt.s32.totalorder %v2212_v61, %v7313_v1  ;;  %v2218_v5 = vsel %vm2217_vm9, %v2210_v17, %v7307_v37  ;;  %v2222_v9 = vsel %vm2221_vm0, %v2214_v21, %v7319_v12  ;;  %v2224_v28 = vsel %vm2223_vm4, %v2216_v52, %v7325_v27  ;;  %v10205_v54 = vld [vmem:[#allocation57_spill] sm:$0xff] }
 0x254   : > { %v2220_v6 = vsel %vm2219_vm15, %v2212_v61, %v7313_v1  ;;  %vm2225_vm5 = vcmp.lt.s32.totalorder %v2218_v5, %v7331_v60  ;;  %vm2229_vm7 = vcmp.lt.s32.totalorder %v2222_v9, %v7343_v50  ;;  %vm2231_vm8 = vcmp.lt.s32.totalorder %v2224_v28, %v7349_v25 }
 0x255   : > { %vm2227_vm6 = vcmp.lt.s32.totalorder %v2220_v6, %v7337_v38  ;;  %v2226_v41 = vsel %vm2225_vm5, %v2218_v5, %v7331_v60  ;;  %v2230_v61 = vsel %vm2229_vm7, %v2222_v9, %v7343_v50  ;;  %v2232_v37 = vsel %vm2231_vm8, %v2224_v28, %v7349_v25 }
 0x256   : > { %v2228_v53 = vsel %vm2227_vm6, %v2220_v6, %v7337_v38  ;;  %vm2233_vm1 = vcmp.lt.s32.totalorder %v2226_v41, %v7355_v57  ;;  %vm2237_vm3 = vcmp.lt.s32.totalorder %v2230_v61, %v7367_v33  ;;  %vm2239_vm13 = vcmp.lt.s32.totalorder %v2232_v37, %v7373_v16  ;;  %v7683_v38 = vpop.f32.mrb[20].mxu1  ;;  %v10208_v5 = vld [vmem:[#allocation63_spill] sm:$0xff] }
 0x257   : > { %vm2235_vm2 = vcmp.lt.s32.totalorder %v2228_v53, %v7361_v11  ;;  %v2234_v1 = vsel %vm2233_vm1, %v2226_v41, %v7355_v57  ;;  %v2238_v40 = vsel %vm2237_vm3, %v2230_v61, %v7367_v33  ;;  %v2240_v12 = vsel %vm2239_vm13, %v2232_v37, %v7373_v16  ;;  %v7689_v50 = vpop.f32.mrb[21].mxu1  ;;  %v10209_v6 = vld [vmem:[#allocation65_spill] sm:$0xff] }
 0x258   : > { %v2236_v18 = vsel %vm2235_vm2, %v2228_v53, %v7361_v11  ;;  %vm2241_vm12 = vcmp.lt.s32.totalorder %v2234_v1, %v7379_v23  ;;  %vm2245_vm11 = vcmp.lt.s32.totalorder %v2238_v40, %v7391_v36  ;;  %vm2247_vm14 = vcmp.lt.s32.totalorder %v2240_v12, %v7397_v29  ;;  %v7695_v16 = vpop.f32.mrb[22].mxu1 }
 0x259   : > { %vm2243_vm10 = vcmp.lt.s32.totalorder %v2236_v18, %v7385_v43  ;;  %v2242_v27 = vsel %vm2241_vm12, %v2234_v1, %v7379_v23  ;;  %v2246_v25 = vsel %vm2245_vm11, %v2238_v40, %v7391_v36  ;;  %v2248_v57 = vsel %vm2247_vm14, %v2240_v12, %v7397_v29  ;;  %v7701_v23 = vpop.f32.mrb[23].mxu1 }
 0x25a   : > { %v2244_v60 = vsel %vm2243_vm10, %v2236_v18, %v7385_v43  ;;  %vm2249_vm9 = vcmp.lt.s32.totalorder %v2242_v27, %v7403_v62  ;;  %vm2253_vm0 = vcmp.lt.s32.totalorder %v2246_v25, %v7415_v32  ;;  %vm2255_vm4 = vcmp.lt.s32.totalorder %v2248_v57, %v7421_v58 }
 0x25b   : > { %vm2251_vm15 = vcmp.lt.s32.totalorder %v2244_v60, %v7409_v22  ;;  %v2250_v11 = vsel %vm2249_vm9, %v2242_v27, %v7403_v62  ;;  %v2254_v43 = vsel %vm2253_vm0, %v2246_v25, %v7415_v32  ;;  %v2256_v36 = vsel %vm2255_vm4, %v2248_v57, %v7421_v58  ;;  %v10211_v25 = vld [vmem:[#allocation100_spill] sm:$0xff] }
 0x25c   : > { %v2252_v33 = vsel %vm2251_vm15, %v2244_v60, %v7409_v22  ;;  %vm2257_vm5 = vcmp.lt.s32.totalorder %v2250_v11, %v7427_v35  ;;  %vm2261_vm7 = vcmp.lt.s32.totalorder %v2254_v43, %v7439_v30  ;;  %vm2263_vm8 = vcmp.lt.s32.totalorder %v2256_v36, %v7445_v44  ;;  %v10210_v60 = vld [vmem:[#allocation87_spill] sm:$0xff] }
 0x25d   : > { %vm2259_vm6 = vcmp.lt.s32.totalorder %v2252_v33, %v7433_v31  ;;  %v2258_v29 = vsel %vm2257_vm5, %v2250_v11, %v7427_v35  ;;  %v2262_v22 = vsel %vm2261_vm7, %v2254_v43, %v7439_v30  ;;  %v2264_v21 = vsel %vm2263_vm8, %v2256_v36, %v7445_v44  ;;  %v10212_v11 = vld [vmem:[#allocation101_spill] sm:$0xff] }
 0x25e   : > { %v2260_v62 = vsel %vm2259_vm6, %v2252_v33, %v7433_v31  ;;  %vm2265_vm1 = vcmp.lt.s32.totalorder %v2258_v29, %v7451_v7  ;;  %vm2269_vm3 = vcmp.lt.s32.totalorder %v2262_v22, %v7463_v56  ;;  %vm2271_vm13 = vcmp.lt.s32.totalorder %v2264_v21, %v7469_v46 }
 0x25f   : > { %vm2267_vm2 = vcmp.lt.s32.totalorder %v2260_v62, %v7457_v24  ;;  %v2266_v32 = vsel %vm2265_vm1, %v2258_v29, %v7451_v7  ;;  %v2270_v35 = vsel %vm2269_vm3, %v2262_v22, %v7463_v56  ;;  %v2272_v31 = vsel %vm2271_vm13, %v2264_v21, %v7469_v46  ;;  %v10217_v21 = vld [vmem:[#allocation102_spill] sm:$0xff] }
 0x260   : > { %v2268_v58 = vsel %vm2267_vm2, %v2260_v62, %v7457_v24  ;;  %vm2273_vm12 = vcmp.lt.s32.totalorder %v2266_v32, %v7475_v63  ;;  %vm2277_vm11 = vcmp.lt.s32.totalorder %v2270_v35, %v7489_v59  ;;  %vm2279_vm14 = vcmp.lt.s32.totalorder %v2272_v31, %v7495_v15  ;;  %v10216_v62 = vld [vmem:[#allocation47_spill] sm:$0xff] }
 0x261   : > { %vm2275_vm10 = vcmp.lt.s32.totalorder %v2268_v58, %v7481_v14  ;;  %v2274_v30 = vsel %vm2273_vm12, %v2266_v32, %v7475_v63  ;;  %v2278_v7 = vsel %vm2277_vm11, %v2270_v35, %v7489_v59  ;;  %v2280_v24 = vsel %vm2279_vm14, %v2272_v31, %v7495_v15  ;;  %v10218_v32 = vld [vmem:[#allocation106_spill] sm:$0xff]  ;;  %v10219_v31 = vld [vmem:[#allocation79_spill] sm:$0xff] }
 0x262   : > { %v2276_v44 = vsel %vm2275_vm10, %v2268_v58, %v7481_v14  ;;  %vm2281_vm9 = vcmp.lt.s32.totalorder %v2274_v30, %v7501_v19  ;;  %vm2285_vm0 = vcmp.lt.s32.totalorder %v2278_v7, %v7515_v10  ;;  %vm2287_vm4 = vcmp.lt.s32.totalorder %v2280_v24, %v7521_v34 }
 0x263   : > { %vm2283_vm15 = vcmp.lt.s32.totalorder %v2276_v44, %v7507_v49  ;;  %v2282_v56 = vsel %vm2281_vm9, %v2274_v30, %v7501_v19  ;;  %v2286_v63 = vsel %vm2285_vm0, %v2278_v7, %v7515_v10  ;;  %v2288_v14 = vsel %vm2287_vm4, %v2280_v24, %v7521_v34 }
 0x264   : > { %v2284_v46 = vsel %vm2283_vm15, %v2276_v44, %v7507_v49  ;;  %vm2289_vm5 = vcmp.lt.s32.totalorder %v2282_v56, %v7527_v8  ;;  %vm2293_vm7 = vcmp.lt.s32.totalorder %v2286_v63, %v7541_v4  ;;  %vm2295_vm8 = vcmp.lt.s32.totalorder %v2288_v14, %v7547_v0  ;;  %v10220_v44 = vld [vmem:[#allocation82_spill] sm:$0xff] }
 0x265   : > { %vm2291_vm6 = vcmp.lt.s32.totalorder %v2284_v46, %v7533_v45  ;;  %v2290_v59 = vsel %vm2289_vm5, %v2282_v56, %v7527_v8  ;;  %v2294_v49 = vsel %vm2293_vm7, %v2286_v63, %v7541_v4  ;;  %v2296_v19 = vsel %vm2295_vm8, %v2288_v14, %v7547_v0  ;;  %v10203_v8 = vld [vmem:[#allocation53_spill] sm:$0xff]  ;;  %v10221_v56 = vld [vmem:[#allocation83_spill] sm:$0xff] }
 0x266   : > { %v2292_v15 = vsel %vm2291_vm6, %v2284_v46, %v7533_v45  ;;  %vm2297_vm1 = vcmp.lt.s32.totalorder %v2290_v59, %v7553_v47  ;;  %vm2301_vm3 = vcmp.lt.s32.totalorder %v2294_v49, %v10202_v42  ;;  %vm2303_vm13 = vcmp.lt.s32.totalorder %v2296_v19, %v10203_v8  ;;  %v10204_v45 = vld [vmem:[#allocation55_spill] sm:$0xff]  ;;  %v5052_v52 = vpop.f32.mrb[24].mxu1  ;;  %v10222_v63 = vld [vmem:[#allocation49_spill] sm:$0xff] }
 0x267   : > { %vm2299_vm2 = vcmp.lt.s32.totalorder %v2292_v15, %v7559_v55  ;;  %v2298_v10 = vsel %vm2297_vm1, %v2290_v59, %v7553_v47  ;;  %v2302_v13 = vsel %vm2301_vm3, %v2294_v49, %v10202_v42  ;;  %v2304_v17 = vsel %vm2303_vm13, %v2296_v19, %v10203_v8  ;;  %v10206_v47 = vld [vmem:[#allocation59_spill] sm:$0xff]  ;;  %v1397_v9 = vpop.f32.mrb[25].mxu1 }
 0x268   : > { %v2300_v34 = vsel %vm2299_vm2, %v2292_v15, %v7559_v55  ;;  %vm2305_vm12 = vcmp.lt.s32.totalorder %v2298_v10, %v10204_v45  ;;  %vm2309_vm11 = vcmp.lt.s32.totalorder %v2302_v13, %v10206_v47  ;;  %v10207_v55 = vld [vmem:[#allocation61_spill] sm:$0xff]  ;;  %v5053_v37 = vpop.f32.mrb[26].mxu1  ;;  %v1358_v57 = vadd.f32 %v10211_v25, %v10210_v60 }
 0x269   : > { %vm2307_vm10 = vcmp.lt.s32.totalorder %v2300_v34, %v10205_v54  ;;  %v2306_v4 = vsel %vm2305_vm12, %v2298_v10, %v10204_v45  ;;  %vm2311_vm14 = vcmp.lt.s32.totalorder %v2304_v17, %v10207_v55  ;;  %v2310_v28 = vsel %vm2309_vm11, %v2302_v13, %v10206_v47  ;;  %v1400_v1 = vpop.f32.mrb[27].mxu1 }
 0x26a   : > { %v2308_v0 = vsel %vm2307_vm10, %v2300_v34, %v10205_v54  ;;  %vm2313_vm9 = vcmp.lt.s32.totalorder %v2306_v4, %v10208_v5  ;;  %v2312_v41 = vsel %vm2311_vm14, %v2304_v17, %v10207_v55  ;;  %vm2317_vm0 = vcmp.lt.s32.totalorder %v2310_v28, %v7615_v3 }
 0x26b   : > { %vm2315_vm15 = vcmp.lt.s32.totalorder %v2308_v0, %v10209_v6  ;;  %v2314_v53 = vsel %vm2313_vm9, %v2306_v4, %v10208_v5  ;;  %vm2319_vm4 = vcmp.lt.s32.totalorder %v2312_v41, %v7621_v51  ;;  %v2318_v18 = vsel %vm2317_vm0, %v2310_v28, %v7615_v3  ;;  %v10213_v3 = vld [vmem:[#allocation103_spill] sm:$0xff]  ;;  %v10223_v28 = vld [vmem:[#allocation24_spill] sm:$0xff] }
 0x26c   : > { %v2316_v61 = vsel %vm2315_vm15, %v2308_v0, %v10209_v6  ;;  %vm2321_vm5 = vcmp.lt.s32.totalorder %v2314_v53, %v7627_v2  ;;  %v2320_v40 = vsel %vm2319_vm4, %v2312_v41, %v7621_v51  ;;  %v1350_v33 = vadd.f32 %v10210_v60, %v10212_v11  ;;  %v10214_v51 = vld [vmem:[#allocation105_spill] sm:$0xff]  ;;  %v10229_v11 = vld [vmem:[#allocation10_spill] sm:$0xff] }
 0x26d   : > { %vm2323_vm6 = vcmp.lt.s32.totalorder %v2316_v61, %v7633_v39  ;;  %v2322_v12 = vsel %vm2321_vm5, %v2314_v53, %v7627_v2  ;;  %vm2325_vm7 = vcmp.lt.s32.totalorder %v2318_v18, %v2320_v40  ;;  %v1361_v29 = vadd.f32 %v10213_v3, %v10210_v60  ;;  %v10224_v41 = vld [vmem:[#allocation25_spill] sm:$0xff]  ;;  %v10225_v53 = vld [vmem:[#allocation7_spill] sm:$0xff] }
 0x26e   : > { %v2324_v27 = vsel %vm2323_vm6, %v2316_v61, %v7633_v39  ;;  %v2326_v43 = vsel %vm2325_vm7, %v2318_v18, %v2320_v40  ;;  %v1353_v2 = vadd.f32 %v10210_v60, %v10214_v51  ;;  %5325 = vtanh.f32 %v1358_v57  ;;  %v10215_v39 = vld [vmem:[#allocation104_spill] sm:$0xff]  ;;  %v10228_v18 = vld [vmem:[#allocation27_spill] sm:$0xff]  ;;  %v10232_v51 = vld [vmem:[#allocation29_spill] sm:$0xff] }
 0x26f   : > { %vm2327_vm8 = vcmp.lt.s32.totalorder %v2322_v12, %v2324_v27  ;;  %v1624_v22 = vpack.c.bf16 %v10216_v62, %v10215_v39  ;;  %v1625_v58 = vpack.c.bf16 %v10218_v32, %v10217_v21  ;;  %5327 = vtanh.f32 %v1350_v33  ;;  %v10230_v33 = vld [vmem:[#allocation11_spill] sm:$0xff]  ;;  %v10234_v32 = vld [vmem:[#allocation13_spill] sm:$0xff] }
 0x270   : > { %v2328_v36 = vsel %vm2327_vm8, %v2322_v12, %v2324_v27  ;;  %v1374_v30 = vadd.f32 %v10219_v31, %v10210_v60  ;;  %v1366_v7 = vadd.f32 %v10210_v60, %v10220_v44  ;;  %5329 = vtanh.f32 %v1361_v29  ;;  %v10231_v29 = vld [vmem:[#allocation28_spill] sm:$0xff]  ;;  %v10236_v44 = vld [vmem:[#allocation31_spill] sm:$0xff] }
 0x271   : > { %vm2329_vm1 = vcmp.lt.s32.totalorder %v2326_v43, %v2328_v36  ;;  %1722 = vst [vmem:[%s7073_s14 + $0x20] sm:$0xff] %v1624_v22  ;;  %2504 = vxpose.xlu1.c.b16.cont [5/8] %v1624_v22, 128  ;;  %1723 = vst [vmem:[%s7073_s14 + $0x28] sm:$0xff] %v1625_v58  ;;  %v1377_v46 = vadd.f32 %v10221_v56, %v10210_v60  ;;  %5331 = vtanh.f32 %v1353_v2  ;;  %v5584_v12 = vmov 1.0|1.0   ;;  %v10237_v56 = vld [vmem:[#allocation14_spill] sm:$0xff] }
 0x272   : > { %v2330_v35 = vsel %vm2329_vm1, %v2326_v43, %v2328_v36  ;;  %v1369_v14 = vadd.f32 %v10210_v60, %v10222_v63  ;;  %5333 = vtanh.f32 %v1374_v30  ;;  %v1390_v59 = vadd.f32 %v7683_v38, %v10210_v60  ;;  %v10235_v30 = vld [vmem:[#allocation30_spill] sm:$0xff] }
 0x273   : > { %v2331_v24 = vrot.slane %v2330_v35, 4  ;;  %5335 = vtanh.f32 %v1366_v7  ;;  %v1382_v49 = vadd.f32 %v10210_v60, %v7689_v50  ;;  %v1393_v10 = vadd.f32 %v7695_v16, %v10210_v60 }
 0x274   : > { %5337 = vtanh.f32 %v1377_v46  ;;  %v1385_v34 = vadd.f32 %v10210_v60, %v7701_v23  ;;  %v1406_v42 = vadd.f32 %v5052_v52, %v10210_v60  ;;  %v1398_v8 = vadd.f32 %v10210_v60, %v1397_v9  ;;  %v10238_v46 = vld [vmem:[#allocation15_spill] sm:$0xff] }
 0x275   : > { %vm2332_vm2 = vcmp.lt.s32.totalorder %v2330_v35, %v2331_v24  ;;  %2505 = vxpose.xlu1.c.b16.cont [6/8] %v1625_v58, 128  ;;  %5339 = vtanh.f32 %v1369_v14  ;;  %v1409_v16 = vadd.f32 %v5053_v37, %v10210_v60  ;;  %v1401_v0 = vadd.f32 %v10210_v60, %v1400_v1  ;;  %v10226_v37 = vld [vmem:[#allocation9_spill] sm:$0xff]  ;;  %v10227_v1 = vld [vmem:[#allocation26_spill] sm:$0xff] }
 0x276   : > { %v2333_v15 = vsel %vm2332_vm2, %v2330_v35, %v2331_v24  ;;  %5341 = vtanh.f32 %v1390_v59  ;;  %v5056_v45 = vpop.f32.mrb[28].mxu1  ;;  %v10239_v59 = vld [vmem:[#allocation32_spill] sm:$0xff] }
 0x277   : > { %v2334_v19 = vrot.slane %v2333_v15, 2  ;;  %5343 = vtanh.f32 %v1382_v49  ;;  %v1413_v13 = vpop.f32.mrb[29].mxu1  ;;  %v1422_v27 = vadd.f32 %v5056_v45, %v10210_v60 }
 0x278   : > { %v5326_v50 = vpop.eup %5325  ;;  %5345 = vtanh.f32 %v1393_v10  ;;  %v5057_v4 = vpop.f32.mrb[30].mxu1  ;;  %v1414_v43 = vadd.f32 %v10210_v60, %v1413_v13  ;;  %v10242_v13 = vld [vmem:[#allocation17_spill] sm:$0xff] }
 0x279   : > { %vm2335_vm3 = vcmp.lt.s32.totalorder %v2333_v15, %v2334_v19  ;;  %v5328_v17 = vpop.eup %5327  ;;  %5347 = vtanh.f32 %v1385_v34  ;;  %v1416_v52 = vpop.f32.mrb[31].mxu1  ;;  %v1425_v2 = vadd.f32 %v5057_v4, %v10210_v60  ;;  %v10243_v4 = vld [vmem:[#allocation34_spill] sm:$0xff] }
 0x27a   : > { %v2336_v38 = vsel %vm2335_vm3, %v2333_v15, %v2334_v19  ;;  %v5330_v23 = vpop.eup %5329  ;;  %5349 = vtanh.f32 %v1406_v42  ;;  %v1417_v62 = vadd.f32 %v10210_v60, %v1416_v52  ;;  %v10233_v60 = vld [vmem:[#allocation12_spill] sm:$0xff]  ;;  %v10240_v15 = vld [vmem:[#allocation33_spill] sm:$0xff]  ;;  %v7872_v19 = vld [vmem:[%s9735_s4] ss:$0 sm:$0xff] }
 0x27b   : > { %v2337_v54 = vrot.slane %v2336_v38, 1  ;;  %v5332_v47 = vpop.eup %5331  ;;  %v1627_v5 = vpack.c.bf16 %v5330_v23, %v5326_v50  ;;  %5351 = vtanh.f32 %v1398_v8  ;;  %v10244_v23 = vld [vmem:[#allocation35_spill] sm:$0xff] }
 0x27c   : > { %v5334_v6 = vpop.eup %5333  ;;  %v1626_v9 = vpack.c.bf16 %v5332_v47, %v5328_v17  ;;  %5353 = vtanh.f32 %v1409_v16 }
 0x27d   : > { %vm2338_vm13 = vcmp.lt.s32.totalorder %v2336_v38, %v2337_v54  ;;  %v5336_v61 = vpop.eup %5335  ;;  %1725 = vst [vmem:[%s7073_s14 + $0x38] sm:$0xff] %v1627_v5  ;;  %5355 = vtanh.f32 %v1401_v0 }
 0x27e   : > { %v7805_v55 = vsel %vm2338_vm13, %v2336_v38, %v2337_v54  ;;  %v5338_v40 = vpop.eup %5337  ;;  %1724 = vst [vmem:[%s7073_s14 + $0x30] sm:$0xff] %v1626_v9  ;;  %2506 = vxpose.xlu1.c.b16.cont [7/8] %v1626_v9, 128  ;;  %5357 = vtanh.f32 %v1422_v27  ;;  %v10241_v54 = vld [vmem:[#allocation16_spill] sm:$0xff] }
 0x27f   : > { %vm2356_vm12 = vcmp.eq.s32.totalorder %v10223_v28, %v7805_v55  ;;  %vm2357_vm10 = vcmp.eq.s32.totalorder %v10224_v41, %v7805_v55  ;;  %vm2340_vm11 = vcmp.eq.s32.totalorder %v10225_v53, %v7805_v55  ;;  %vm2341_vm9 = vcmp.eq.s32.totalorder %v10226_v37, %v7805_v55  ;;  %v5340_v25 = vpop.eup %5339  ;;  %v10247_v28 = vld [vmem:[#allocation36_spill] sm:$0xff]  ;;  %v10248_v41 = vld [vmem:[#allocation37_spill] sm:$0xff] }
 0x280   : > { %vm4677_vm14 = vmpackc.low %vm2357_vm10, %vm2356_vm12  ;;  %vm2358_vm15 = vcmp.eq.s32.totalorder %v10227_v1, %v7805_v55  ;;  %vm2359_vm0 = vcmp.eq.s32.totalorder %v10228_v18, %v7805_v55  ;;  %v1629_v57 = vpack.c.bf16 %v5338_v40, %v5334_v6  ;;  %vm2342_vm6 = vcmp.eq.s32.totalorder %v10229_v11, %v7805_v55  ;;  %v5342_v36 = vpop.eup %5341  ;;  %v10246_v6 = vld [vmem:[#allocation19_spill] sm:$0xff]  ;;  %v10250_v37 = vld [vmem:[#allocation21_spill] sm:$0xff] }
 0x281   : > { %4842 = vmatprep.subr.msk.bf16.mxu1 %vm4677_vm14, %v5584_v12  ;;  %vm4661_vm4 = vmpackc.low %vm2341_vm9, %vm2340_vm11  ;;  %vm2343_vm7 = vcmp.eq.s32.totalorder %v10230_v33, %v7805_v55  ;;  %v1628_v3 = vpack.c.bf16 %v5340_v25, %v5336_v61  ;;  %vm2360_vm8 = vcmp.eq.s32.totalorder %v10231_v29, %v7805_v55  ;;  %vm2361_vm1 = vcmp.eq.s32.totalorder %v10232_v51, %v7805_v55  ;;  %v5344_v39 = vpop.eup %5343  ;;  %v10249_v61 = vld [vmem:[#allocation20_spill] sm:$0xff]  ;;  %v10251_v18 = vld [vmem:[#allocation38_spill] sm:$0xff] }
 0x282   : > { %4843 = vmatpush3.bf16.msk.msra.mxu1 %vm4661_vm4, %v5584_v12  ;;  %vm4679_vm5 = vmpackc.low %vm2359_vm0, %vm2358_vm15  ;;  %1727 = vst [vmem:[%s7073_s14 + $0x48] sm:$0xff] %v1629_v57  ;;  %v5346_v22 = vpop.eup %5345  ;;  %2507 = vxpose.xlu1.c.b16.end [8/8] %v1627_v5, 128  ;;  %vm2344_vm13 = vcmp.eq.s32.totalorder %v10233_v60, %v7805_v55  ;;  %vm2345_vm12 = vcmp.eq.s32.totalorder %v10234_v32, %v7805_v55  ;;  %5359 = vtanh.f32 %v1414_v43  ;;  %v10245_v5 = vld [vmem:[#allocation18_spill] sm:$0xff]  ;;  %v10252_v40 = vld [vmem:[#allocation39_spill] sm:$0xff] }
 0x283   : > { %4844 = vmatprep.subr.msk.bf16.mxu1 %vm4679_vm5, %v5584_v12  ;;  %2516 = vxpose.xlu0.c.b16.start [1/8] %v1628_v3, 128  ;;  %1726 = vst [vmem:[%s7073_s14 + $0x40] sm:$0xff] %v1628_v3  ;;  %vm4663_vm2 = vmpackc.low %vm2343_vm7, %vm2342_vm6  ;;  %v5348_v21 = vpop.eup %5347  ;;  %v1631_v58 = vpack.c.bf16 %v5346_v22, %v5342_v36  ;;  %vm2362_vm10 = vcmp.eq.s32.totalorder %v10235_v30, %v7805_v55  ;;  %5361 = vtanh.f32 %v1425_v2  ;;  %v10253_v11 = vld [vmem:[#allocation22_spill] sm:$0xff]  ;;  %v10254_v33 = vld [vmem:[#allocation23_spill] sm:$0xff] }
 0x284   : > { %vm4681_vm3 = vmpackc.low %vm2361_vm1, %vm2360_vm8  ;;  %v5350_v35 = vpop.eup %5349  ;;  %v1630_v31 = vpack.c.bf16 %v5348_v21, %v5344_v39  ;;  %vm2363_vm11 = vcmp.eq.s32.totalorder %v10236_v44, %v7805_v55  ;;  %5363 = vtanh.f32 %v1417_v62  ;;  %vm2346_vm15 = vcmp.eq.s32.totalorder %v10237_v56, %v7805_v55  ;;  %v10255_v3 = vld [vmem:[#allocation66_spill] sm:$0xff]  ;;  %v10256_v29 = vld [vmem:[#allocation68_spill] sm:$0xff] }
 0x285   : > { %v5352_v7 = vpop.eup %5351  ;;  %1729 = vst [vmem:[%s7073_s14 + $0x58] sm:$0xff] %v1631_v58  ;;  %vm4665_vm14 = vmpackc.low %vm2345_vm12, %vm2344_vm13  ;;  %vm2347_vm0 = vcmp.eq.s32.totalorder %v10238_v46, %v7805_v55  ;;  %vm2364_vm4 = vcmp.eq.s32.totalorder %v10239_v59, %v7805_v55  ;;  %vm2365_vm5 = vcmp.eq.s32.totalorder %v10240_v15, %v7805_v55  ;;  %vm2348_vm8 = vcmp.eq.s32.totalorder %v10241_v54, %v7805_v55 }
 0x286   : > { %4845 = vmatpush3.bf16.msk.msra.mxu1 %vm4663_vm2, %v5584_v12  ;;  %1728 = vst [vmem:[%s7073_s14 + $0x50] sm:$0xff] %v1630_v31  ;;  %v5354_v24 = vpop.eup %5353  ;;  %vm4683_vm9 = vmpackc.low %vm2363_vm11, %vm2362_vm10  ;;  %v5060_v63 = vpop.f32.mrb[32].mxu1  ;;  %vm2349_vm1 = vcmp.eq.s32.totalorder %v10242_v13, %v7805_v55  ;;  %vm2366_vm2 = vcmp.eq.s32.totalorder %v10243_v4, %v7805_v55  ;;  %vm2350_vm10 = vcmp.eq.s32.totalorder %v10245_v5, %v7805_v55 }
 0x287   : > { %4846 = vmatprep.subr.msk.bf16.mxu1 %vm4681_vm3, %v5584_v12  ;;  %2517 = vxpose.xlu0.c.b16.cont [2/8] %v1629_v57, 128  ;;  %v5356_v14 = vpop.eup %5355  ;;  %v1633_v49 = vpack.c.bf16 %v5354_v24, %v5350_v35  ;;  %v1438_v10 = vadd.f32 %v7872_v19, %v5060_v63  ;;  %v1429_v34 = vpop.f32.mrb[33].mxu1  ;;  %vm4667_vm6 = vmpackc.low %vm2347_vm0, %vm2346_vm15  ;;  %vm2367_vm3 = vcmp.eq.s32.totalorder %v10244_v23, %v7805_v55 }
 0x288   : > { %v1632_v42 = vpack.c.bf16 %v5356_v14, %v5352_v7  ;;  %v1430_v38 = vadd.f32 %v7872_v19, %v1429_v34  ;;  %v5061_v8 = vpop.f32.mrb[34].mxu1  ;;  %vm4685_vm7 = vmpackc.low %vm2365_vm5, %vm2364_vm4  ;;  %v5358_v16 = vpop.eup %5357  ;;  %vm2351_vm11 = vcmp.eq.s32.totalorder %v10246_v6, %v7805_v55  ;;  %vm2352_vm4 = vcmp.eq.s32.totalorder %v10249_v61, %v7805_v55 }
 0x289   : > { %1731 = vst [vmem:[%s7073_s14 + $0x68] sm:$0xff] %v1633_v49  ;;  %5365 = vtanh.f32 %v1438_v10  ;;  %v1441_v45 = vadd.f32 %v7872_v19, %v5061_v8  ;;  %v1432_v50 = vpop.f32.mrb[35].mxu1  ;;  %vm4669_vm13 = vmpackc.low %vm2349_vm1, %vm2348_vm8  ;;  %vm2353_vm5 = vcmp.eq.s32.totalorder %v10250_v37, %v7805_v55 }
 0x28a   : > { %4847 = vmatpush3.bf16.msk.msra.mxu1 %vm4665_vm14, %v5584_v12  ;;  %1730 = vst [vmem:[%s7073_s14 + $0x60] sm:$0xff] %v1632_v42  ;;  %5367 = vtanh.f32 %v1430_v38  ;;  %v1433_v17 = vadd.f32 %v7872_v19, %v1432_v50  ;;  %vm4687_vm12 = vmpackc.low %vm2367_vm3, %vm2366_vm2  ;;  %vm2368_vm14 = vcmp.eq.s32.totalorder %v10247_v28, %v7805_v55  ;;  %vm2354_vm2 = vcmp.eq.s32.totalorder %v10253_v11, %v7805_v55 }
 0x28b   : > { %4848 = vmatprep.subr.msk.bf16.mxu1 %vm4683_vm9, %v5584_v12  ;;  %2518 = vxpose.xlu0.c.b16.cont [3/8] %v1630_v31, 128  ;;  %5369 = vtanh.f32 %v1441_v45  ;;  %vm2369_vm9 = vcmp.eq.s32.totalorder %v10248_v41, %v7805_v55  ;;  %vm4671_vm15 = vmpackc.low %vm2351_vm11, %vm2350_vm10  ;;  %vm2355_vm3 = vcmp.eq.s32.totalorder %v10254_v33, %v7805_v55 }
 0x28c   : > { %v5360_v0 = vpop.eup %5359  ;;  %5371 = vtanh.f32 %v1433_v17  ;;  %vm4689_vm0 = vmpackc.low %vm2369_vm9, %vm2368_vm14 }
 0x28d   : > { %v5362_v52 = vpop.eup %5361  ;;  %vm4673_vm8 = vmpackc.low %vm2353_vm5, %vm2352_vm4 }
 0x28e   : > { %4849 = vmatpush3.bf16.msk.msra.mxu1 %vm4667_vm6, %v5584_v12  ;;  %v5364_v47 = vpop.eup %5363  ;;  %v1635_v9 = vpack.c.bf16 %v5362_v52, %v5358_v16  ;;  %vm2370_vm6 = vcmp.eq.s32.totalorder %v10251_v18, %v7805_v55  ;;  %vm4675_vm10 = vmpackc.low %vm2355_vm3, %vm2354_vm2 }
 0x28f   : > { %4850 = vmatprep.subr.msk.bf16.mxu1 %vm4685_vm7, %v5584_v12  ;;  %2519 = vxpose.xlu0.c.b16.cont [4/8] %v1631_v58, 128  ;;  %v1634_v53 = vpack.c.bf16 %v5364_v47, %v5360_v0  ;;  %vm2371_vm7 = vcmp.eq.s32.totalorder %v10252_v40, %v7805_v55 }
 0x290   : > { %1733 = vst [vmem:[%s7073_s14 + $0x78] sm:$0xff] %v1635_v9  ;;  %vm4691_vm1 = vmpackc.low %vm2371_vm7, %vm2370_vm6 }
 0x291   : > { %1732 = vst [vmem:[%s7073_s14 + $0x70] sm:$0xff] %v1634_v53 }
 0x292   : > { %4851 = vmatpush3.bf16.msk.msra.mxu1 %vm4669_vm13, %v5584_v12  ;;  %vm2388_vm13 = vcmp.eq.s32.totalorder %v10255_v3, %v7805_v55 }
 0x293   : > { %4852 = vmatprep.subr.msk.bf16.mxu1 %vm4687_vm12, %v5584_v12  ;;  %2520 = vxpose.xlu0.c.b16.cont [5/8] %v1632_v42, 128  ;;  %v5366_v1 = vpop.eup %5365  ;;  %vm2389_vm12 = vcmp.eq.s32.totalorder %v10256_v29, %v7805_v55 }
 0x294   : > { %v5368_v27 = vpop.eup %5367  ;;  %vm4709_vm11 = vmpackc.low %vm2389_vm12, %vm2388_vm13 }
 0x295   : > { %v5370_v25 = vpop.eup %5369 }
 0x296   : > { %4853 = vmatpush3.bf16.msk.msra.mxu1 %vm4671_vm15, %v5584_v12  ;;  %v5372_v57 = vpop.eup %5371  ;;  %v5064_v43 = vpop.f32.mrb[36].mxu1  ;;  %v1637_v36 = vpack.c.bf16 %v5370_v25, %v5366_v1 }
 0x297   : > { %4854 = vmatprep.subr.msk.bf16.mxu1 %vm4689_vm0, %v5584_v12  ;;  %2521 = vxpose.xlu0.c.b16.cont [6/8] %v1633_v49, 128  ;;  %v1454_v51 = vadd.f32 %v7872_v19, %v5064_v43  ;;  %v1445_v2 = vpop.f32.mrb[37].mxu1  ;;  %v1636_v39 = vpack.c.bf16 %v5372_v57, %v5368_v27 }
 0x298   : > { %v1446_v62 = vadd.f32 %v7872_v19, %v1445_v2  ;;  %v5065_v22 = vpop.f32.mrb[38].mxu1  ;;  %1735 = vst [vmem:[%s7073_s14 + $0x88] sm:$0xff] %v1637_v36 }
 0x299   : > { %5373 = vtanh.f32 %v1454_v51  ;;  %v1457_v21 = vadd.f32 %v7872_v19, %v5065_v22  ;;  %v1448_v60 = vpop.f32.mrb[39].mxu1  ;;  %1734 = vst [vmem:[%s7073_s14 + $0x80] sm:$0xff] %v1636_v39  ;;  %2532 = vxpose.xlu1.c.b16.start [1/8] %v1636_v39, 128 }
 0x29a   : > { %4855 = vmatpush3.bf16.msk.msra.mxu1 %vm4673_vm8, %v5584_v12  ;;  %5375 = vtanh.f32 %v1446_v62  ;;  %v1449_v32 = vadd.f32 %v7872_v19, %v1448_v60 }
 0x29b   : > { %4856 = vmatprep.subr.msk.bf16.mxu1 %vm4691_vm1, %v5584_v12  ;;  %2522 = vxpose.xlu0.c.b16.cont [7/8] %v1634_v53, 128  ;;  %5377 = vtanh.f32 %v1457_v21 }
 0x29c   : > { %5379 = vtanh.f32 %v1449_v32 }
 0x29d   : > { %2533 = vxpose.xlu1.c.b16.cont [2/8] %v1637_v36, 128 }
 0x29e   : > { %4857 = vmatpush3.bf16.msk.msra.mxu1 %vm4675_vm10, %v5584_v12 }
 0x29f   : > { %4906 = vmatprep.subr.msk.bf16.mxu1 %vm4709_vm11, %v5584_v12  ;;  %2523 = vxpose.xlu0.c.b16.end [8/8] %v1635_v9, 128 }
 0x2a3   : > { %v5374_v58 = vpop.eup %5373 }
 0x2a4   : > { %v5376_v35 = vpop.eup %5375 }
 0x2a5   : > { %v5378_v31 = vpop.eup %5377 }
 0x2a6   : > { %v5380_v30 = vpop.eup %5379  ;;  %v5068_v44 = vpop.f32.mrb[40].mxu1  ;;  %v1639_v7 = vpack.c.bf16 %v5378_v31, %v5374_v58 }
 0x2a7   : > { %v1470_v24 = vadd.f32 %v7872_v19, %v5068_v44  ;;  %v1461_v56 = vpop.f32.mrb[41].mxu1  ;;  %v1638_v46 = vpack.c.bf16 %v5380_v30, %v5376_v35  ;;  %v10257_v30 = vld [vmem:[#allocation40_spill] sm:$0xff]  ;;  %v10258_v44 = vld [vmem:[#allocation41_spill] sm:$0xff] }
 0x2a8   : > { %v1462_v63 = vadd.f32 %v7872_v19, %v1461_v56  ;;  %v5069_v14 = vpop.f32.mrb[42].mxu1  ;;  %1737 = vst [vmem:[%s7073_s14 + $0x98] sm:$0xff] %v1639_v7  ;;  %vm2372_vm14 = vcmp.eq.s32.totalorder %v10257_v30, %v7805_v55  ;;  %vm2373_vm9 = vcmp.eq.s32.totalorder %v10258_v44, %v7805_v55 }
 0x2a9   : > { %5381 = vtanh.f32 %v1470_v24  ;;  %v1473_v59 = vadd.f32 %v7872_v19, %v5069_v14  ;;  %v1464_v15 = vpop.f32.mrb[43].mxu1  ;;  %1736 = vst [vmem:[%s7073_s14 + $0x90] sm:$0xff] %v1638_v46  ;;  %2534 = vxpose.xlu1.c.b16.cont [3/8] %v1638_v46, 128  ;;  %v10259_v46 = vld [vmem:[#allocation70_spill] sm:$0xff]  ;;  %vm4693_vm4 = vmpackc.low %vm2373_vm9, %vm2372_vm14 }
 0x2aa   : > { %5383 = vtanh.f32 %v1462_v63  ;;  %v1465_v49 = vadd.f32 %v7872_v19, %v1464_v15  ;;  %vm2390_vm15 = vcmp.eq.s32.totalorder %v10259_v46, %v7805_v55  ;;  %v10260_v63 = vld [vmem:[#allocation72_spill] sm:$0xff] }
 0x2ab   : > { %5385 = vtanh.f32 %v1473_v59  ;;  %vm2391_vm0 = vcmp.eq.s32.totalorder %v10260_v63, %v7805_v55 }
 0x2ac   : > { %5387 = vtanh.f32 %v1465_v49  ;;  %vm4711_vm5 = vmpackc.low %vm2391_vm0, %vm2390_vm15 }
 0x2ad   : > { %2535 = vxpose.xlu1.c.b16.cont [4/8] %v1639_v7, 128 }
 0x2b3   : > { %v5382_v10 = vpop.eup %5381 }
 0x2b4   : > { %v5384_v34 = vpop.eup %5383 }
 0x2b5   : > { %v5386_v42 = vpop.eup %5385 }
 0x2b6   : > { %v5388_v38 = vpop.eup %5387  ;;  %v5072_v8 = vpop.f32.mrb[44].mxu1  ;;  %v1641_v45 = vpack.c.bf16 %v5386_v42, %v5382_v10 }
 0x2b7   : > { %v1486_v50 = vadd.f32 %v7872_v19, %v5072_v8  ;;  %v1477_v54 = vpop.f32.mrb[45].mxu1  ;;  %v1640_v13 = vpack.c.bf16 %v5388_v38, %v5384_v34  ;;  %v10261_v38 = vld [vmem:[#allocation42_spill] sm:$0xff]  ;;  %v10262_v8 = vld [vmem:[#allocation43_spill] sm:$0xff] }
 0x2b8   : > { %v1478_v17 = vadd.f32 %v7872_v19, %v1477_v54  ;;  %v5073_v16 = vpop.f32.mrb[46].mxu1  ;;  %1739 = vst [vmem:[%s7073_s14 + $0xa8] sm:$0xff] %v1641_v45  ;;  %vm2374_vm6 = vcmp.eq.s32.totalorder %v10261_v38, %v7805_v55  ;;  %vm2375_vm7 = vcmp.eq.s32.totalorder %v10262_v8, %v7805_v55  ;;  %v10264_v54 = vld [vmem:[#allocation75_spill] sm:$0xff] }
 0x2b9   : > { %5389 = vtanh.f32 %v1486_v50  ;;  %v1489_v4 = vadd.f32 %v7872_v19, %v5073_v16  ;;  %v1480_v23 = vpop.f32.mrb[47].mxu1  ;;  %1738 = vst [vmem:[%s7073_s14 + $0xa0] sm:$0xff] %v1640_v13  ;;  %2536 = vxpose.xlu1.c.b16.cont [5/8] %v1640_v13, 128  ;;  %v10263_v50 = vld [vmem:[#allocation74_spill] sm:$0xff]  ;;  %vm2393_vm1 = vcmp.eq.s32.totalorder %v10264_v54, %v7805_v55  ;;  %vm4695_vm2 = vmpackc.low %vm2375_vm7, %vm2374_vm6  ;;  %v10266_v16 = vld [vmem:[#allocation45_spill] sm:$0xff] }
 0x2ba   : > { %5391 = vtanh.f32 %v1478_v17  ;;  %v1481_v0 = vadd.f32 %v7872_v19, %v1480_v23  ;;  %vm2392_vm8 = vcmp.eq.s32.totalorder %v10263_v50, %v7805_v55  ;;  %v10265_v17 = vld [vmem:[#allocation44_spill] sm:$0xff]  ;;  %vm2377_vm12 = vcmp.eq.s32.totalorder %v10266_v16, %v7805_v55 }
 0x2bb   : > { %5393 = vtanh.f32 %v1489_v4  ;;  %vm4713_vm3 = vmpackc.low %vm2393_vm1, %vm2392_vm8  ;;  %vm2376_vm13 = vcmp.eq.s32.totalorder %v10265_v17, %v7805_v55  ;;  %v10267_v23 = vld [vmem:[#allocation76_spill] sm:$0xff] }
 0x2bc   : > { %5395 = vtanh.f32 %v1481_v0  ;;  %vm2394_vm10 = vcmp.eq.s32.totalorder %v10267_v23, %v7805_v55  ;;  %v10268_v0 = vld [vmem:[#allocation77_spill] sm:$0xff]  ;;  %vm4697_vm14 = vmpackc.low %vm2377_vm12, %vm2376_vm13 }
 0x2bd   : > { %2537 = vxpose.xlu1.c.b16.cont [6/8] %v1641_v45, 128  ;;  %vm2395_vm11 = vcmp.eq.s32.totalorder %v10268_v0, %v7805_v55 }
 0x2be   : > { %vm4715_vm9 = vmpackc.low %vm2395_vm11, %vm2394_vm10 }
 0x2c3   : > { %v5390_v52 = vpop.eup %5389 }
 0x2c4   : > { %v5392_v47 = vpop.eup %5391 }
 0x2c5   : > { %v5394_v5 = vpop.eup %5393 }
 0x2c6   : > { %v5396_v6 = vpop.eup %5395  ;;  %v5076_v9 = vpop.f32.mrb[48].mxu1  ;;  %v1643_v28 = vpack.c.bf16 %v5394_v5, %v5390_v52  ;;  %v10270_v5 = vld [vmem:[#allocation48_spill] sm:$0xff] }
 0x2c7   : > { %v1502_v41 = vadd.f32 %v7872_v19, %v5076_v9  ;;  %v1493_v53 = vpop.f32.mrb[49].mxu1  ;;  %v1642_v61 = vpack.c.bf16 %v5396_v6, %v5392_v47  ;;  %v10269_v47 = vld [vmem:[#allocation46_spill] sm:$0xff]  ;;  %vm2379_vm0 = vcmp.eq.s32.totalorder %v10270_v5, %v7805_v55  ;;  %v10271_v9 = vld [vmem:[#allocation80_spill] sm:$0xff] }
 0x2c8   : > { %v1494_v37 = vadd.f32 %v7872_v19, %v1493_v53  ;;  %v5077_v1 = vpop.f32.mrb[50].mxu1  ;;  %1741 = vst [vmem:[%s7073_s14 + $0xb8] sm:$0xff] %v1643_v28  ;;  %vm2378_vm15 = vcmp.eq.s32.totalorder %v10269_v47, %v7805_v55 }
 0x2c9   : > { %5397 = vtanh.f32 %v1502_v41  ;;  %v1505_v18 = vadd.f32 %v7872_v19, %v5077_v1  ;;  %v1496_v40 = vpop.f32.mrb[51].mxu1  ;;  %1740 = vst [vmem:[%s7073_s14 + $0xb0] sm:$0xff] %v1642_v61  ;;  %2538 = vxpose.xlu1.c.b16.cont [7/8] %v1642_v61, 128  ;;  %vm4699_vm6 = vmpackc.low %vm2379_vm0, %vm2378_vm15  ;;  %v10274_v1 = vld [vmem:[#allocation52_spill] sm:$0xff] }
 0x2ca   : > { %5399 = vtanh.f32 %v1494_v37  ;;  %v1497_v27 = vadd.f32 %v7872_v19, %v1496_v40  ;;  %v10273_v37 = vld [vmem:[#allocation50_spill] sm:$0xff]  ;;  %vm2381_vm1 = vcmp.eq.s32.totalorder %v10274_v1, %v7805_v55 }
 0x2cb   : > { %5401 = vtanh.f32 %v1505_v18  ;;  %vm2380_vm8 = vcmp.eq.s32.totalorder %v10273_v37, %v7805_v55 }
 0x2cc   : > { %5403 = vtanh.f32 %v1497_v27  ;;  %v2508_v31 = vpop.trf.xlu1  ;;  %vm4701_vm13 = vmpackc.low %vm2381_vm1, %vm2380_vm8 }
 0x2cd   : > { %2539 = vxpose.xlu1.c.b16.end [8/8] %v1643_v28, 128  ;;  %v10272_v28 = vld [vmem:[#allocation81_spill] sm:$0xff] }
 0x2d0   : > { %v2509_v4 = vpop.trf.xlu1 }
 0x2d3   : > { %v5398_v25 = vpop.eup %5397 }
 0x2d4   : > { %v5400_v57 = vpop.eup %5399  ;;  %v2510_v27 = vpop.trf.xlu1 }
 0x2d5   : > { %v5402_v11 = vpop.eup %5401 }
 0x2d6   : > { %v5404_v33 = vpop.eup %5403  ;;  %v5080_v43 = vpop.f32.mrb[52].mxu1  ;;  %v1645_v36 = vpack.c.bf16 %v5402_v11, %v5398_v25  ;;  %v10275_v25 = vld [vmem:[#allocation84_spill] sm:$0xff] }
 0x2d7   : > { %v1518_v3 = vadd.f32 %v7872_v19, %v5080_v43  ;;  %v1509_v29 = vpop.f32.mrb[53].mxu1  ;;  %v1644_v51 = vpack.c.bf16 %v5404_v33, %v5400_v57  ;;  %v10276_v57 = vld [vmem:[#allocation85_spill] sm:$0xff] }
 0x2d8   : > { %v1510_v2 = vadd.f32 %v7872_v19, %v1509_v29  ;;  %v5081_v39 = vpop.f32.mrb[54].mxu1  ;;  %1743 = vst [vmem:[%s7073_s14 + $0xc8] sm:$0xff] %v1645_v36 }
 0x2d9   : > { %5405 = vtanh.f32 %v1518_v3  ;;  %v1521_v62 = vadd.f32 %v7872_v19, %v5081_v39  ;;  %v1512_v22 = vpop.f32.mrb[55].mxu1  ;;  %1742 = vst [vmem:[%s7073_s14 + $0xc0] sm:$0xff] %v1644_v51  ;;  %2548 = vxpose.xlu0.c.b16.start [1/8] %v1644_v51, 128  ;;  %v10277_v39 = vld [vmem:[#allocation54_spill] sm:$0xff] }
 0x2da   : > { %5407 = vtanh.f32 %v1510_v2  ;;  %v1513_v21 = vadd.f32 %v7872_v19, %v1512_v22  ;;  %vm2382_vm10 = vcmp.eq.s32.totalorder %v10277_v39, %v7805_v55 }
 0x2db   : > { %5409 = vtanh.f32 %v1521_v62  ;;  %v10278_v62 = vld [vmem:[#allocation56_spill] sm:$0xff] }
 0x2dc   : > { %5411 = vtanh.f32 %v1513_v21  ;;  %vm2383_vm11 = vcmp.eq.s32.totalorder %v10278_v62, %v7805_v55  ;;  %v10279_v21 = vld [vmem:[#allocation58_spill] sm:$0xff] }
 0x2dd   : > { %2549 = vxpose.xlu0.c.b16.cont [2/8] %v1645_v36, 128  ;;  %vm4703_vm15 = vmpackc.low %vm2383_vm11, %vm2382_vm10 }
 0x2e3   : > { %v5406_v60 = vpop.eup %5405 }
 0x2e4   : > { %v5408_v32 = vpop.eup %5407 }
 0x2e5   : > { %v5410_v58 = vpop.eup %5409 }
 0x2e6   : > { %v5412_v35 = vpop.eup %5411  ;;  %v5084_v7 = vpop.f32.mrb[56].mxu1  ;;  %v1647_v24 = vpack.c.bf16 %v5410_v58, %v5406_v60  ;;  %v10283_v58 = vld [vmem:[#allocation64_spill] sm:$0xff] }
 0x2e7   : > { %v1534_v14 = vadd.f32 %v7872_v19, %v5084_v7  ;;  %v1525_v59 = vpop.f32.mrb[57].mxu1  ;;  %v1646_v15 = vpack.c.bf16 %v5412_v35, %v5408_v32  ;;  %v2511_v60 = vpop.trf.xlu1  ;;  %v10282_v32 = vld [vmem:[#allocation62_spill] sm:$0xff] }
 0x2e8   : > { %v1526_v49 = vadd.f32 %v7872_v19, %v1525_v59  ;;  %v5085_v10 = vpop.f32.mrb[58].mxu1  ;;  %1745 = vst [vmem:[%s7073_s14 + $0xd8] sm:$0xff] %v1647_v24 }
 0x2e9   : > { %v2524_v56 = vpop.trf.xlu0  ;;  %5413 = vtanh.f32 %v1534_v14  ;;  %v1537_v34 = vadd.f32 %v7872_v19, %v5085_v10  ;;  %v1528_v42 = vpop.f32.mrb[59].mxu1  ;;  %1744 = vst [vmem:[%s7073_s14 + $0xd0] sm:$0xff] %v1646_v15  ;;  %2550 = vxpose.xlu0.c.b16.cont [3/8] %v1646_v15, 128 }
 0x2ea   : > { %2596 = vmatprep.mubr.bf16.mxu1 %v2524_v56  ;;  %5415 = vtanh.f32 %v1526_v49  ;;  %v1529_v45 = vadd.f32 %v7872_v19, %v1528_v42 }
 0x2eb   : > { %2597 = vmatmul.mubr.bf16.vlgmr.msra.gmra.mrb[64].mxu1 %v2508_v31  ;;  %5417 = vtanh.f32 %v1537_v34  ;;  %v2512_v7 = vpop.trf.xlu1 }
 0x2ec   : > { %4907 = vmatpush3.bf16.msk.msra.mxu1 %vm4693_vm4, %v5584_v12  ;;  %5419 = vtanh.f32 %v1529_v45  ;;  %vm2396_vm4 = vcmp.eq.s32.totalorder %v10271_v9, %v7805_v55 }
 0x2ed   : > { %4908 = vmatprep.subr.msk.bf16.mxu1 %vm4711_vm5, %v5584_v12  ;;  %v2525_v13 = vpop.trf.xlu0  ;;  %2551 = vxpose.xlu0.c.b16.cont [4/8] %v1647_v24, 128  ;;  %vm2397_vm5 = vcmp.eq.s32.totalorder %v10272_v28, %v7805_v55 }
 0x2ee   : > { %2604 = vmatprep.mubr.bf16.mxu1 %v2525_v13  ;;  %vm4717_vm7 = vmpackc.low %vm2397_vm5, %vm2396_vm4  ;;  %vm2384_vm4 = vcmp.eq.s32.totalorder %v10279_v21, %v7805_v55 }
 0x2f0   : > { %4909 = vmatpush3.bf16.msk.msra.mxu1 %vm4695_vm2, %v5584_v12  ;;  %vm2398_vm2 = vcmp.eq.s32.totalorder %v10275_v25, %v7805_v55 }
 0x2f1   : > { %4910 = vmatprep.subr.msk.bf16.mxu1 %vm4713_vm3, %v5584_v12  ;;  %v2526_v52 = vpop.trf.xlu0  ;;  %vm2399_vm3 = vcmp.eq.s32.totalorder %v10276_v57, %v7805_v55 }
 0x2f2   : > { %vm4719_vm12 = vmpackc.low %vm2399_vm3, %vm2398_vm2  ;;  %vm2386_vm2 = vcmp.eq.s32.totalorder %v10282_v32, %v7805_v55  ;;  %vm2387_vm3 = vcmp.eq.s32.totalorder %v10283_v58, %v7805_v55 }
 0x2f3   : > { %2605 = vmatmul.mubr.bf16.gmra.mrb[68].mxu1 %v2509_v4  ;;  %v5414_v6 = vpop.eup %5413 }
 0x2f4   : > { %4911 = vmatpush3.bf16.msk.msra.mxu1 %vm4697_vm14, %v5584_v12  ;;  %2612 = vmatprep.mubr.bf16.mxu1 %v2526_v52  ;;  %v5416_v41 = vpop.eup %5415  ;;  %vm2400_vm14 = vcmp.eq.s32.totalorder %v10192_v48, %v7805_v55  ;;  %v10281_v48 = vld [vmem:[#allocation94_spill] sm:$0xff] }
 0x2f5   : > { %4912 = vmatprep.subr.msk.bf16.mxu1 %vm4715_vm9, %v5584_v12  ;;  %v5418_v53 = vpop.eup %5417  ;;  %v2527_v36 = vpop.trf.xlu0  ;;  %vm2401_vm9 = vcmp.eq.s32.totalorder %v10195_v20, %v7805_v55 }
 0x2f6   : > { %v5420_v61 = vpop.eup %5419  ;;  %v5088_v18 = vpop.f32.mrb[60].mxu1  ;;  %v1649_v40 = vpack.c.bf16 %v5418_v53, %v5414_v6  ;;  %vm4721_vm0 = vmpackc.low %vm2401_vm9, %vm2400_vm14 }
 0x2f7   : > { %v1550_v11 = vadd.f32 %v7872_v19, %v5088_v18  ;;  %v1541_v33 = vpop.f32.mrb[61].mxu1  ;;  %v1648_v43 = vpack.c.bf16 %v5420_v61, %v5416_v41 }
 0x2f8   : > { %4913 = vmatpush3.bf16.msk.msra.mxu1 %vm4699_vm6, %v5584_v12  ;;  %v1542_v3 = vadd.f32 %v7872_v19, %v1541_v33  ;;  %v5089_v29 = vpop.f32.mrb[62].mxu1  ;;  %1747 = vst [vmem:[%s7073_s14 + $0xe8] sm:$0xff] %v1649_v40  ;;  %vm2402_vm6 = vcmp.eq.s32.totalorder %v10197_v26, %v7805_v55 }
 0x2f9   : > { %4914 = vmatprep.subr.msk.bf16.mxu1 %vm4717_vm7, %v5584_v12  ;;  %5421 = vtanh.f32 %v1550_v11  ;;  %v1553_v51 = vadd.f32 %v7872_v19, %v5089_v29  ;;  %v1544_v2 = vpop.f32.mrb[63].mxu1  ;;  %1746 = vst [vmem:[%s7073_s14 + $0xe0] sm:$0xff] %v1648_v43  ;;  %2552 = vxpose.xlu0.c.b16.cont [5/8] %v1648_v43, 128  ;;  %vm2403_vm7 = vcmp.eq.s32.totalorder %v10281_v48, %v7805_v55  ;;  %v2528_v20 = vpop.trf.xlu0 }
 0x2fa   : > { %5423 = vtanh.f32 %v1542_v3  ;;  %v1545_v22 = vadd.f32 %v7872_v19, %v1544_v2  ;;  %v10280_v19 = vld [vmem:[#allocation60_spill] sm:$0xff]  ;;  %vm4723_vm1 = vmpackc.low %vm2403_vm7, %vm2402_vm6 }
 0x2fb   : > { %2613 = vmatmul.mubr.bf16.gmra.mrb[72].mxu1 %v2510_v27  ;;  %5425 = vtanh.f32 %v1553_v51  ;;  %vm2385_vm5 = vcmp.eq.s32.totalorder %v10280_v19, %v7805_v55  ;;  %v2513_v55 = vpop.trf.xlu1 }
 0x2fc   : > { %4915 = vmatpush3.bf16.msk.msra.mxu1 %vm4701_vm13, %v5584_v12  ;;  %2620 = vmatprep.mubr.bf16.mxu1 %v2527_v36  ;;  %5427 = vtanh.f32 %v1545_v22  ;;  %vm4705_vm8 = vmpackc.low %vm2385_vm5, %vm2384_vm4 }
 0x2fd   : > { %4916 = vmatprep.subr.msk.bf16.mxu1 %vm4719_vm12, %v5584_v12  ;;  %2553 = vxpose.xlu0.c.b16.cont [6/8] %v1649_v40, 128  ;;  %vm4707_vm13 = vmpackc.low %vm2387_vm3, %vm2386_vm2  ;;  %v2529_v56 = vpop.trf.xlu0 }
 0x2ff   : > { %v2514_v63 = vpop.trf.xlu1 }
 0x300   : > { %4917 = vmatpush3.bf16.msk.msra.mxu1 %vm4703_vm15, %v5584_v12 }
 0x301   : > { %4918 = vmatprep.subr.msk.bf16.mxu1 %vm4721_vm0, %v5584_v12  ;;  %v2530_v46 = vpop.trf.xlu0 }
 0x303   : > { %2621 = vmatmul.mubr.bf16.gmra.mrb[76].mxu1 %v2511_v60  ;;  %v5422_v35 = vpop.eup %5421  ;;  %v2515_v59 = vpop.trf.xlu1 }
 0x304   : > { %4919 = vmatpush3.bf16.msk.msra.mxu1 %vm4705_vm8, %v5584_v12  ;;  %2628 = vmatprep.mubr.bf16.mxu1 %v2528_v20  ;;  %v5424_v26 = vpop.eup %5423 }
 0x305   : > { %4920 = vmatprep.subr.msk.bf16.mxu1 %vm4723_vm1, %v5584_v12  ;;  %v5426_v31 = vpop.eup %5425  ;;  %v2531_v14 = vpop.trf.xlu0 }
 0x306   : > { %v5428_v30 = vpop.eup %5427  ;;  %v1651_v44 = vpack.c.bf16 %v5426_v31, %v5422_v35 }
 0x307   : > { %v1650_v24 = vpack.c.bf16 %v5428_v30, %v5424_v26 }
 0x308   : > { %4921 = vmatpush3.bf16.msk.msra.mxu1 %vm4707_vm13, %v5584_v12  ;;  %1749 = vst [vmem:[%s7073_s14 + $0xf8] sm:$0xff] %v1651_v44 }
 0x309   : > { %1748 = vst [vmem:[%s7073_s14 + $0xf0] sm:$0xff] %v1650_v24  ;;  %2554 = vxpose.xlu0.c.b16.cont [7/8] %v1650_v24, 128 }
 0x30b   : > { %2629 = vmatmul.mubr.bf16.gmra.mrb[80].mxu1 %v2512_v7 }
 0x30c   : > { %2636 = vmatprep.mubr.bf16.mxu1 %v2529_v56 }
 0x30d   : > { %2555 = vxpose.xlu0.c.b16.end [8/8] %v1651_v44, 128 }
 0x313   : > { %2637 = vmatmul.mubr.bf16.gmra.mrb[84].mxu1 %v2513_v55 }
 0x314   : > { %2644 = vmatprep.mubr.bf16.mxu1 %v2530_v46 }
 0x317   : > { %v2540_v12 = vpop.trf.xlu1 }
 0x31b   : > { %2645 = vmatmul.mubr.bf16.gmra.mrb[88].mxu1 %v2514_v63  ;;  %v2541_v10 = vpop.trf.xlu1 }
 0x31c   : > { %2652 = vmatprep.mubr.bf16.mxu1 %v2531_v14 }
 0x31f   : > { %v2542_v42 = vpop.trf.xlu1 }
 0x323   : > { %2653 = vmatmul.mubr.bf16.gmra.mrb[92].mxu1 %v2515_v59  ;;  %v2543_v8 = vpop.trf.xlu1 }
 0x327   : > { %v2544_v50 = vpop.trf.xlu1 }
 0x32b   : > { %v2545_v13 = vpop.trf.xlu1 }
 0x32f   : > { %v2546_v16 = vpop.trf.xlu1 }
 0x333   : > { %v2547_v23 = vpop.trf.xlu1 }
 0x357   : > { %v2556_v15 = vpop.trf.xlu0 }
 0x358   : > { %2693 = vmatprep.mubr.bf16.mxu1 %v2556_v15 }
 0x359   : > { %2694 = vmatmul.mubr.bf16.vlgmr.msra.gmra.mrb[96].mxu1 %v2540_v12 }
 0x35b   : > { %v2557_v49 = vpop.trf.xlu0 }
 0x35c   : > { %2701 = vmatprep.mubr.bf16.mxu1 %v2557_v49 }
 0x35f   : > { %v2558_v34 = vpop.trf.xlu0 }
 0x361   : > { %2702 = vmatmul.mubr.bf16.gmra.mrb[100].mxu1 %v2541_v10 }
 0x362   : > { %2709 = vmatprep.mubr.bf16.mxu1 %v2558_v34 }
 0x363   : > { %v2559_v38 = vpop.trf.xlu0 }
 0x367   : > { %v2560_v45 = vpop.trf.xlu0 }
 0x369   : > { %2710 = vmatmul.mubr.bf16.gmra.mrb[104].mxu1 %v2542_v42 }
 0x36a   : > { %2717 = vmatprep.mubr.bf16.mxu1 %v2559_v38 }
 0x36b   : > { %v2561_v54 = vpop.trf.xlu0 }
 0x36f   : > { %v2562_v17 = vpop.trf.xlu0 }
 0x371   : > { %2718 = vmatmul.mubr.bf16.gmra.mrb[108].mxu1 %v2543_v8 }
 0x372   : > { %2725 = vmatprep.mubr.bf16.mxu1 %v2560_v45 }
 0x373   : > { %v2563_v4 = vpop.trf.xlu0 }
 0x379   : > { %2726 = vmatmul.mubr.bf16.gmra.mrb[112].mxu1 %v2544_v50 }
 0x37a   : > { %2733 = vmatprep.mubr.bf16.mxu1 %v2561_v54 }
 0x381   : > { %2734 = vmatmul.mubr.bf16.gmra.mrb[116].mxu1 %v2545_v13 }
 0x382   : > { %2741 = vmatprep.mubr.bf16.mxu1 %v2562_v17 }
 0x389   : > { %2742 = vmatmul.mubr.bf16.gmra.mrb[120].mxu1 %v2546_v16 }
 0x38a   : > { %2749 = vmatprep.mubr.bf16.mxu1 %v2563_v4 }
 0x391   : > { %2750 = vmatmul.mubr.bf16.gmra.mrb[124].mxu1 %v2547_v23 }
 0x3be   : > { %v4858_v0 = vpop.f32.mrb[64].mxu1 }
 0x3bf   : > { %v4859_v52 = vpop.f32.mrb[65].mxu1 }
 0x3c0   : > { %v4860_v47 = vadd.f32 %v4859_v52, %v4858_v0  ;;  %v4861_v5 = vpop.f32.mrb[66].mxu1 }
 0x3c1   : > { %v4862_v6 = vpop.f32.mrb[67].mxu1 }
 0x3c2   : > { %v4863_v9 = vadd.f32 %v4862_v6, %v4861_v5 }
 0x3c6   : > { %v4864_v28 = vpop.f32.mrb[68].mxu1 }
 0x3c7   : > { %v4865_v41 = vpop.f32.mrb[69].mxu1 }
 0x3c8   : > { %v4866_v53 = vadd.f32 %v4865_v41, %v4864_v28  ;;  %v4867_v61 = vpop.f32.mrb[70].mxu1 }
 0x3c9   : > { %v4868_v37 = vpop.f32.mrb[71].mxu1 }
 0x3ca   : > { %v4869_v1 = vadd.f32 %v4868_v37, %v4867_v61 }
 0x3ce   : > { %v4870_v18 = vpop.f32.mrb[72].mxu1 }
 0x3cf   : > { %v4871_v40 = vpop.f32.mrb[73].mxu1 }
 0x3d0   : > { %v4872_v27 = vadd.f32 %v4871_v40, %v4870_v18  ;;  %v4873_v25 = vpop.f32.mrb[74].mxu1 }
 0x3d1   : > { %v4874_v57 = vpop.f32.mrb[75].mxu1 }
 0x3d2   : > { %v4875_v11 = vadd.f32 %v4874_v57, %v4873_v25 }
 0x3d6   : > { %v4876_v33 = vpop.f32.mrb[76].mxu1 }
 0x3d7   : > { %v4877_v43 = vpop.f32.mrb[77].mxu1 }
 0x3d8   : > { %v4878_v36 = vadd.f32 %v4877_v43, %v4876_v33  ;;  %v4879_v3 = vpop.f32.mrb[78].mxu1 }
 0x3d9   : > { %v4880_v29 = vpop.f32.mrb[79].mxu1 }
 0x3da   : > { %v4881_v51 = vadd.f32 %v4880_v29, %v4879_v3 }
 0x3de   : > { %v4882_v2 = vpop.f32.mrb[80].mxu1 }
 0x3df   : > { %v4883_v39 = vpop.f32.mrb[81].mxu1 }
 0x3e0   : > { %v4884_v62 = vadd.f32 %v4883_v39, %v4882_v2  ;;  %v4885_v22 = vpop.f32.mrb[82].mxu1 }
 0x3e1   : > { %v4886_v21 = vpop.f32.mrb[83].mxu1 }
 0x3e2   : > { %v4887_v19 = vadd.f32 %v4886_v21, %v4885_v22 }
 0x3e6   : > { %v4888_v60 = vpop.f32.mrb[84].mxu1 }
 0x3e7   : > { %v4889_v48 = vpop.f32.mrb[85].mxu1 }
 0x3e8   : > { %v4890_v20 = vadd.f32 %v4889_v48, %v4888_v60  ;;  %v4891_v32 = vpop.f32.mrb[86].mxu1 }
 0x3e9   : > { %v4892_v58 = vpop.f32.mrb[87].mxu1 }
 0x3ea   : > { %v4893_v35 = vadd.f32 %v4892_v58, %v4891_v32 }
 0x3ee   : > { %v4894_v26 = vpop.f32.mrb[88].mxu1 }
 0x3ef   : > { %v4895_v31 = vpop.f32.mrb[89].mxu1 }
 0x3f0   : > { %v8076_v30 = vadd.f32 %v4895_v31, %v4894_v26  ;;  %v4897_v44 = vpop.f32.mrb[90].mxu1 }
 0x3f1   : > { %v4898_v7 = vpop.f32.mrb[91].mxu1 }
 0x3f2   : > { %v4899_v24 = vadd.f32 %v4898_v7, %v4897_v44 }
 0x3f6   : > { %v4900_v56 = vpop.f32.mrb[92].mxu1 }
 0x3f7   : > { %v4901_v55 = vpop.f32.mrb[93].mxu1 }
 0x3f8   : > { %v8078_v46 = vadd.f32 %v4901_v55, %v4900_v56  ;;  %v4903_v63 = vpop.f32.mrb[94].mxu1 }
 0x3f9   : > { %v4904_v14 = vpop.f32.mrb[95].mxu1 }
 0x3fa   : > { %v8080_v59 = vadd.f32 %v4904_v14, %v4903_v63 }
 0x42c   : > { %v4922_v12 = vpop.f32.mrb[96].mxu1 }
 0x42d   : > { %v4923_v15 = vpop.f32.mrb[97].mxu1 }
 0x42e   : > { %v4924_v49 = vadd.f32 %v4923_v15, %v4922_v12  ;;  %v4925_v10 = vpop.f32.mrb[98].mxu1 }
 0x42f   : > { %v4926_v34 = vpop.f32.mrb[99].mxu1 }
 0x430   : > { %v8082_v42 = vadd.f32 %v4924_v49, %v4860_v47  ;;  %v4927_v38 = vadd.f32 %v4926_v34, %v4925_v10 }
 0x432   : > { %v8084_v8 = vadd.f32 %v4927_v38, %v4863_v9  ;;  %2763 = vst [vmem:[#allocation5] sm:$0xff] (!%p4725_p4), %v8082_v42 }
 0x434   : > { %v4928_v45 = vpop.f32.mrb[100].mxu1  ;;  %2764 = vst [vmem:[#allocation5 + $0x8] sm:$0xff] (!%p4725_p4), %v8084_v8 }
 0x435   : > { %v4929_v50 = vpop.f32.mrb[101].mxu1 }
 0x436   : > { %v4930_v54 = vadd.f32 %v4929_v50, %v4928_v45  ;;  %v4931_v13 = vpop.f32.mrb[102].mxu1 }
 0x437   : > { %v4932_v17 = vpop.f32.mrb[103].mxu1 }
 0x438   : > { %v8086_v16 = vadd.f32 %v4930_v54, %v4866_v53  ;;  %v4933_v4 = vadd.f32 %v4932_v17, %v4931_v13 }
 0x43a   : > { %v8088_v23 = vadd.f32 %v4933_v4, %v4869_v1  ;;  %2765 = vst [vmem:[#allocation5 + $0x10] sm:$0xff] (!%p4725_p4), %v8086_v16 }
 0x43c   : > { %v4934_v0 = vpop.f32.mrb[104].mxu1  ;;  %2766 = vst [vmem:[#allocation5 + $0x18] sm:$0xff] (!%p4725_p4), %v8088_v23 }
 0x43d   : > { %v4935_v52 = vpop.f32.mrb[105].mxu1 }
 0x43e   : > { %v4936_v5 = vadd.f32 %v4935_v52, %v4934_v0  ;;  %v4937_v6 = vpop.f32.mrb[106].mxu1 }
 0x43f   : > { %v4938_v28 = vpop.f32.mrb[107].mxu1 }
 0x440   : > { %v8090_v47 = vadd.f32 %v4936_v5, %v4872_v27  ;;  %v4939_v41 = vadd.f32 %v4938_v28, %v4937_v6 }
 0x442   : > { %v8092_v9 = vadd.f32 %v4939_v41, %v4875_v11  ;;  %2767 = vst [vmem:[#allocation5 + $0x20] sm:$0xff] (!%p4725_p4), %v8090_v47 }
 0x444   : > { %v4940_v61 = vpop.f32.mrb[108].mxu1  ;;  %2768 = vst [vmem:[#allocation5 + $0x28] sm:$0xff] (!%p4725_p4), %v8092_v9 }
 0x445   : > { %v4941_v37 = vpop.f32.mrb[109].mxu1 }
 0x446   : > { %v4942_v18 = vadd.f32 %v4941_v37, %v4940_v61  ;;  %v4943_v40 = vpop.f32.mrb[110].mxu1 }
 0x447   : > { %v4944_v25 = vpop.f32.mrb[111].mxu1 }
 0x448   : > { %v8094_v53 = vadd.f32 %v4942_v18, %v4878_v36  ;;  %v4945_v57 = vadd.f32 %v4944_v25, %v4943_v40 }
 0x44a   : > { %v8096_v1 = vadd.f32 %v4945_v57, %v4881_v51  ;;  %2769 = vst [vmem:[#allocation5 + $0x30] sm:$0xff] (!%p4725_p4), %v8094_v53 }
 0x44c   : > { %v4946_v33 = vpop.f32.mrb[112].mxu1  ;;  %2770 = vst [vmem:[#allocation5 + $0x38] sm:$0xff] (!%p4725_p4), %v8096_v1 }
 0x44d   : > { %v4947_v43 = vpop.f32.mrb[113].mxu1 }
 0x44e   : > { %v4948_v3 = vadd.f32 %v4947_v43, %v4946_v33  ;;  %v4949_v29 = vpop.f32.mrb[114].mxu1 }
 0x44f   : > { %v4950_v2 = vpop.f32.mrb[115].mxu1 }
 0x450   : > { %v8098_v27 = vadd.f32 %v4948_v3, %v4884_v62  ;;  %v4951_v39 = vadd.f32 %v4950_v2, %v4949_v29 }
 0x452   : > { %v8100_v11 = vadd.f32 %v4951_v39, %v4887_v19  ;;  %2771 = vst [vmem:[#allocation5 + $0x40] sm:$0xff] (!%p4725_p4), %v8098_v27 }
 0x454   : > { %v4952_v22 = vpop.f32.mrb[116].mxu1  ;;  %2772 = vst [vmem:[#allocation5 + $0x48] sm:$0xff] (!%p4725_p4), %v8100_v11 }
 0x455   : > { %v4953_v21 = vpop.f32.mrb[117].mxu1 }
 0x456   : > { %v4954_v60 = vadd.f32 %v4953_v21, %v4952_v22  ;;  %v4955_v48 = vpop.f32.mrb[118].mxu1 }
 0x457   : > { %v4956_v32 = vpop.f32.mrb[119].mxu1 }
 0x458   : > { %v8102_v36 = vadd.f32 %v4954_v60, %v4890_v20  ;;  %v4957_v58 = vadd.f32 %v4956_v32, %v4955_v48 }
 0x45a   : > { %v8104_v51 = vadd.f32 %v4957_v58, %v4893_v35  ;;  %2773 = vst [vmem:[#allocation5 + $0x50] sm:$0xff] (!%p4725_p4), %v8102_v36 }
 0x45c   : > { %v4958_v26 = vpop.f32.mrb[120].mxu1  ;;  %2774 = vst [vmem:[#allocation5 + $0x58] sm:$0xff] (!%p4725_p4), %v8104_v51 }
 0x45d   : > { %v4959_v31 = vpop.f32.mrb[121].mxu1 }
 0x45e   : > { %v4960_v44 = vadd.f32 %v4959_v31, %v4958_v26  ;;  %v4961_v7 = vpop.f32.mrb[122].mxu1 }
 0x45f   : > { %v4962_v56 = vpop.f32.mrb[123].mxu1 }
 0x460   : > { %v8107_v62 = vadd.f32 %v4960_v44, %v8076_v30  ;;  %v4963_v19 = vadd.f32 %v4962_v56, %v4961_v7  ;;  %v10284_v30 = vld [vmem:[#allocation99_spill] sm:$0xff] (!%p4725_p4) }
 0x461   : > { %2762 = vst [vmem:[#allocation4] sm:$0x1] (!%p4725_p4), %v10284_v30 }
 0x462   : > { %v8109_v55 = vadd.f32 %v4963_v19, %v4899_v24  ;;  %2775 = vst [vmem:[#allocation5 + $0x60] sm:$0xff] (!%p4725_p4), %v8107_v62 }
 0x464   : > { %v4964_v63 = vpop.f32.mrb[124].mxu1  ;;  %2761 = sbr.rel (%p4725_p4) target bundleno = 1133 (0x46d), region = 44  ;;  %2776 = vst [vmem:[#allocation5 + $0x68] sm:$0xff] (!%p4725_p4), %v8109_v55 }
 0x465   : > { %v4965_v14 = vpop.f32.mrb[125].mxu1 }
 0x466   : > { %v4966_v12 = vadd.f32 %v4965_v14, %v4964_v63  ;;  %v4967_v15 = vpop.f32.mrb[126].mxu1 }
 0x467   : > { %v4968_v20 = vpop.f32.mrb[127].mxu1 }
 0x468   : > { %v8112_v49 = vadd.f32 %v4966_v12, %v8078_v46  ;;  %v4969_v35 = vadd.f32 %v4968_v20, %v4967_v15 }
 0x46a   : > { %v8115_v10 = vadd.f32 %v4969_v35, %v8080_v59  ;;  %2777 = vst [vmem:[#allocation5 + $0x70] sm:$0xff] (!%p4725_p4), %v8112_v49 }
 0x46c   : > { %2778 = vst [vmem:[#allocation5 + $0x78] sm:$0xff] %v8115_v10 }
 0x46d PF: > { %p4726_p5 = scmp.le.s32.totalorder %s5633_s25, 0 }
 0x46e   : > { %v2783_v24 = vld [vmem:[#allocation4] sm:$0x1] (!%p4726_p5)  ;;  %v10285_v46 = vld [vmem:[#allocation99_spill] sm:$0xff] (!%p4726_p5)  ;;  %v5585_v38 = vmov (!%p4726_p5), 0   ;;  %v2789_v54 = vld [vmem:[#allocation5 + $0x10] sm:$0xff] (!%p4726_p5) }
 0x46f   : > { %2782 = sbr.rel (%p4726_p5) target bundleno = 1149 (0x47d), region = 48  ;;  %vm2784_vm12 = vcmp.gt.f32.partialorder (!%p4726_p5), %v10285_v46, %v2783_v24  ;;  %v2787_v59 = vld [vmem:[#allocation5] sm:$0xff] (!%p4726_p5)  ;;  %v2788_v50 = vld [vmem:[#allocation5 + $0x8] sm:$0xff] (!%p4726_p5)  ;;  %v2790_v13 = vld [vmem:[#allocation5 + $0x18] sm:$0xff] (!%p4726_p5) }
 0x470   : > { %v2785_v34 = vsel (!%p4726_p5), %vm2784_vm12, %v10285_v46, %v2783_v24  ;;  %v2803_v45 = vsel (!%p4726_p5), %vm2784_vm12, 1, %v5585_v38  ;;  %v10286_v17 = vld [vmem:[#allocation8_spill] sm:$0xff] (!%p4726_p5)  ;;  %v2791_v0 = vld [vmem:[#allocation5 + $0x20] sm:$0xff] (!%p4726_p5)  ;;  %v2794_v6 = vld [vmem:[#allocation5 + $0x38] sm:$0xff] (!%p4726_p5) }
 0x471   : > { %2786 = vst [vmem:[#allocation4] sm:$0x1] (!%p4726_p5), %v2785_v34  ;;  %v2807_v4 = vrot.slane (!%p4726_p5), %v2803_v45, %v10286_v17  ;;  %v2792_v52 = vld [vmem:[#allocation5 + $0x28] sm:$0xff] (!%p4726_p5)  ;;  %v2793_v5 = vld [vmem:[#allocation5 + $0x30] sm:$0xff] (!%p4726_p5)  ;;  %v2795_v28 = vld [vmem:[#allocation5 + $0x40] sm:$0xff] (!%p4726_p5) }
 0x472   : > { %v2796_v41 = vld [vmem:[#allocation5 + $0x48] sm:$0xff] (!%p4726_p5)  ;;  %v2797_v37 = vld [vmem:[#allocation5 + $0x50] sm:$0xff] (!%p4726_p5)  ;;  %v2798_v18 = vld [vmem:[#allocation5 + $0x58] sm:$0xff] (!%p4726_p5) }
 0x473   : > { %vm8139_vm10 = vcmp.eq.s32.totalorder (!%p4726_p5), %v2807_v4, 1  ;;  %v2799_v40 = vld [vmem:[#allocation5 + $0x60] sm:$0xff] (!%p4726_p5)  ;;  %v2800_v3 = vld [vmem:[#allocation5 + $0x68] sm:$0xff] (!%p4726_p5)  ;;  %v2801_v29 = vld [vmem:[#allocation5 + $0x70] sm:$0xff] (!%p4726_p5) }
 0x474   : > { %v2809_v25 = vsel (!%p4726_p5), %vm8139_vm10, %v8082_v42, %v2787_v59  ;;  %v2810_v57 = vsel (!%p4726_p5), %vm8139_vm10, %v8084_v8, %v2788_v50  ;;  %v2811_v33 = vsel (!%p4726_p5), %vm8139_vm10, %v8086_v16, %v2789_v54  ;;  %v2812_v43 = vsel (!%p4726_p5), %vm8139_vm10, %v8088_v23, %v2790_v13  ;;  %v2802_v2 = vld [vmem:[#allocation5 + $0x78] sm:$0xff] (!%p4726_p5) }
 0x475   : > { %2825 = vst [vmem:[#allocation5] sm:$0xff] (!%p4726_p5), %v2809_v25  ;;  %2826 = vst [vmem:[#allocation5 + $0x8] sm:$0xff] (!%p4726_p5), %v2810_v57  ;;  %v2813_v42 = vsel (!%p4726_p5), %vm8139_vm10, %v8090_v47, %v2791_v0  ;;  %v2814_v8 = vsel (!%p4726_p5), %vm8139_vm10, %v8092_v9, %v2792_v52  ;;  %v2815_v16 = vsel (!%p4726_p5), %vm8139_vm10, %v8094_v53, %v2793_v5 }
 0x476   : > { %2827 = vst [vmem:[#allocation5 + $0x10] sm:$0xff] %v2811_v33  ;;  %2828 = vst [vmem:[#allocation5 + $0x18] sm:$0xff] %v2812_v43  ;;  %v2816_v23 = vsel %vm8139_vm10, %v8096_v1, %v2794_v6  ;;  %v2817_v47 = vsel %vm8139_vm10, %v8098_v27, %v2795_v28  ;;  %v2818_v9 = vsel %vm8139_vm10, %v8100_v11, %v2796_v41 }
 0x477   : > { %2829 = vst [vmem:[#allocation5 + $0x20] sm:$0xff] %v2813_v42  ;;  %2830 = vst [vmem:[#allocation5 + $0x28] sm:$0xff] %v2814_v8  ;;  %v2819_v53 = vsel %vm8139_vm10, %v8102_v36, %v2797_v37  ;;  %v2820_v1 = vsel %vm8139_vm10, %v8104_v51, %v2798_v18  ;;  %v2821_v27 = vsel %vm8139_vm10, %v8107_v62, %v2799_v40 }
 0x478   : > { %2831 = vst [vmem:[#allocation5 + $0x30] sm:$0xff] %v2815_v16  ;;  %2832 = vst [vmem:[#allocation5 + $0x38] sm:$0xff] %v2816_v23  ;;  %v2822_v39 = vsel %vm8139_vm10, %v8109_v55, %v2800_v3  ;;  %v2823_v11 = vsel %vm8139_vm10, %v8112_v49, %v2801_v29  ;;  %v2824_v22 = vsel %vm8139_vm10, %v8115_v10, %v2802_v2 }
 0x479   : > { %2833 = vst [vmem:[#allocation5 + $0x40] sm:$0xff] %v2817_v47  ;;  %2834 = vst [vmem:[#allocation5 + $0x48] sm:$0xff] %v2818_v9 }
 0x47a   : > { %2835 = vst [vmem:[#allocation5 + $0x50] sm:$0xff] %v2819_v53  ;;  %2836 = vst [vmem:[#allocation5 + $0x58] sm:$0xff] %v2820_v1 }
 0x47b   : > { %2837 = vst [vmem:[#allocation5 + $0x60] sm:$0xff] %v2821_v27  ;;  %2838 = vst [vmem:[#allocation5 + $0x68] sm:$0xff] %v2822_v39 }
 0x47c   : > { %2839 = vst [vmem:[#allocation5 + $0x70] sm:$0xff] %v2823_v11  ;;  %2840 = vst [vmem:[#allocation5 + $0x78] sm:$0xff] %v2824_v22 }
 0x47d PF: > { %p4727_p6 = scmp.ne.s32.totalorder %s5633_s25, 1 }
 0x47f   : > { %2844 = sbr.rel (%p4727_p6) target bundleno = 2039 (0x7f7), region = 52 }
 0x486   : > { %v2845_v21 = vld [vmem:[#allocation5] sm:$0xff]  ;;  %v2846_v60 = vld [vmem:[#allocation5 + $0x8] sm:$0xff]  ;;  %v2847_v48 = vld [vmem:[#allocation5 + $0x10] sm:$0xff]  ;;  %v5586_v26 = vmov 0.0   ;;  %s8304_s28 = smov 0  }
 0x487   : > { %v2848_v32 = vld [vmem:[#allocation5 + $0x18] sm:$0xff]  ;;  %v2849_v36 = vld [vmem:[#allocation5 + $0x20] sm:$0xff]  ;;  %v2850_v58 = vld [vmem:[#allocation5 + $0x28] sm:$0xff]  ;;  %v8192_v51 = vpack.c.bf16 %v2846_v60, %v2845_v21  ;;  %2869 = vst [vmem:[#allocation6] sm:$0x1] %v5586_v26 }
 0x488   : > { %2870 = vst [vmem:[%s9738_s7] sm:$0xff] %v5586_v26  ;;  %2871 = vst [vmem:[%s9738_s7 + $0x8] sm:$0xff] %v5586_v26  ;;  %v2851_v31 = vld [vmem:[#allocation5 + $0x30] sm:$0xff]  ;;  %v2852_v44 = vld [vmem:[#allocation5 + $0x38] sm:$0xff]  ;;  %v8290_v56 = vpack.c.bf16 %v2848_v32, %v2847_v48  ;;  %v8292_v62 = vpack.c.bf16 %v2850_v58, %v2849_v36 }
 0x489   : > { %10289 = vst [vmem:[#allocation107_spill] sm:$0xff] %v8192_v51  ;;  %2872 = vst [vmem:[%s9738_s7 + $0x10] sm:$0xff] %v5586_v26  ;;  %v2853_v7 = vld [vmem:[#allocation5 + $0x40] sm:$0xff]  ;;  %v2854_v19 = vld [vmem:[#allocation5 + $0x48] sm:$0xff]  ;;  %v8294_v14 = vpack.c.bf16 %v2852_v44, %v2851_v31 }
 0x48a   : > { %2873 = vst [vmem:[%s9738_s7 + $0x18] sm:$0xff] %v5586_v26  ;;  %2874 = vst [vmem:[%s9738_s7 + $0x20] sm:$0xff] %v5586_v26  ;;  %v2855_v55 = vld [vmem:[#allocation5 + $0x50] sm:$0xff]  ;;  %v2856_v63 = vld [vmem:[#allocation5 + $0x58] sm:$0xff]  ;;  %v8296_v49 = vpack.c.bf16 %v2854_v19, %v2853_v7 }
 0x48b   : > { %2875 = vst [vmem:[%s9738_s7 + $0x28] sm:$0xff] %v5586_v26  ;;  %2876 = vst [vmem:[%s9738_s7 + $0x30] sm:$0xff] %v5586_v26  ;;  %v2857_v12 = vld [vmem:[#allocation5 + $0x60] sm:$0xff]  ;;  %v2858_v15 = vld [vmem:[#allocation5 + $0x68] sm:$0xff]  ;;  %v8298_v35 = vpack.c.bf16 %v2856_v63, %v2855_v55 }
 0x48c   : > { %2877 = vst [vmem:[%s9738_s7 + $0x38] sm:$0xff] %v5586_v26  ;;  %2878 = vst [vmem:[%s9738_s7 + $0x40] sm:$0xff] %v5586_v26  ;;  %v2859_v20 = vld [vmem:[#allocation5 + $0x70] sm:$0xff]  ;;  %v2860_v10 = vld [vmem:[#allocation5 + $0x78] sm:$0xff]  ;;  %v8300_v30 = vpack.c.bf16 %v2858_v15, %v2857_v12 }
 0x48d   : > { %2879 = vst [vmem:[%s9738_s7 + $0x48] sm:$0xff] %v5586_v26  ;;  %2880 = vst [vmem:[%s9738_s7 + $0x50] sm:$0xff] %v5586_v26  ;;  %v8302_v24 = vpack.c.bf16 %v2860_v10, %v2859_v20 }
 0x48e   : > { %2881 = vst [vmem:[%s9738_s7 + $0x58] sm:$0xff] %v5586_v26  ;;  %2882 = vst [vmem:[%s9738_s7 + $0x60] sm:$0xff] %v5586_v26 }
 0x48f   : > { %2883 = vst [vmem:[%s9738_s7 + $0x68] sm:$0xff] %v5586_v26  ;;  %2884 = vst [vmem:[%s9738_s7 + $0x70] sm:$0xff] %v5586_v26 }
 0x490   : > { %2885 = vst [vmem:[%s9738_s7 + $0x78] sm:$0xff] %v5586_v26  ;;  %2886 = vst [vmem:[%s9738_s7 + $0x80] sm:$0xff] %v5586_v26 }
 0x491   : > { %2887 = vst [vmem:[%s9738_s7 + $0x88] sm:$0xff] %v5586_v26  ;;  %2888 = vst [vmem:[%s9738_s7 + $0x90] sm:$0xff] %v5586_v26 }
 0x492   : > { %2889 = vst [vmem:[%s9738_s7 + $0x98] sm:$0xff] %v5586_v26  ;;  %2890 = vst [vmem:[%s9738_s7 + $0xa0] sm:$0xff] %v5586_v26 }
 0x493   : > { %2891 = vst [vmem:[%s9738_s7 + $0xa8] sm:$0xff] %v5586_v26  ;;  %2892 = vst [vmem:[%s9738_s7 + $0xb0] sm:$0xff] %v5586_v26 }
 0x494   : > { %2893 = vst [vmem:[%s9738_s7 + $0xb8] sm:$0xff] %v5586_v26  ;;  %2894 = vst [vmem:[%s9738_s7 + $0xc0] sm:$0xff] %v5586_v26 }
 0x495   : > { %2895 = vst [vmem:[%s9738_s7 + $0xc8] sm:$0xff] %v5586_v26  ;;  %2896 = vst [vmem:[%s9738_s7 + $0xd0] sm:$0xff] %v5586_v26 }
 0x496   : > { %2897 = vst [vmem:[%s9738_s7 + $0xd8] sm:$0xff] %v5586_v26  ;;  %2898 = vst [vmem:[%s9738_s7 + $0xe0] sm:$0xff] %v5586_v26 }
 0x497   : > { %2899 = vst [vmem:[%s9738_s7 + $0xe8] sm:$0xff] %v5586_v26  ;;  %2900 = vst [vmem:[%s9738_s7 + $0xf0] sm:$0xff] %v5586_v26 }
 0x498   : > { %2901 = vst [vmem:[%s9738_s7 + $0xf8] sm:$0xff] %v5586_v26  ;;  %10290 = vst [vmem:[#allocation108_spill] sm:$0xff] %v8290_v56 }
 0x499   : > { %10291 = vst [vmem:[#allocation109_spill] sm:$0xff] %v8292_v62  ;;  %10292 = vst [vmem:[#allocation110_spill] sm:$0xff] %v8294_v14 }
 0x49a   : > { %10293 = vst [vmem:[#allocation111_spill] sm:$0xff] %v8296_v49  ;;  %10294 = vst [vmem:[#allocation112_spill] sm:$0xff] %v8298_v35 }
 0x49b   : > { %10295 = vst [vmem:[#allocation113_spill] sm:$0xff] %v8300_v30  ;;  %10296 = vst [vmem:[#allocation114_spill] sm:$0xff] %v8302_v24 }
 0x49c LB: >> { %v10299_v51 = vld [vmem:[#allocation107_spill] sm:$0xff]  ;;  %s8315_s29 = sshll.u32 %s5578_s28, 9  ;;  %v10305_v53 = vld [vmem:[#allocation10_spill] sm:$0xff]  ;;  %v10308_v21 = vld [vmem:[#allocation9_spill] sm:$0xff]  ;;  %s2907_s28 = sadd.s32 1, %s5578_s28   ;;  %s5578_s28 = sphi %s8304_s28, %s2907_s28  }
 0x49d   : >> { %5090 = vmatprep.subr.bf16.mxu0 %v10299_v51  ;;  %5170 = vmatprep.subr.bf16.mxu1 %v10299_v51  ;;  %s2909_s30 = sshra.s32 %s8315_s29, 4  ;;  %v8380_v9 = vstv %s8315_s29  ;;  %v10306_v27 = vld [vmem:[#allocation7_spill] sm:$0xff]  ;;  %v10309_v48 = vld [vmem:[#allocation14_spill] sm:$0xff]  ;;  %v10310_v36 = vld [vmem:[#allocation12_spill] sm:$0xff]  ;;  %s8570_s12 = scalar_lea.vmem %s9737_s6, %s8315_s29 }
 0x49e   : >> { %5091 = vmatpush3.bf16.msra.mxu0 %v10299_v51  ;;  %5178 = vmatpush3.bf16.msra.mxu1 %v10299_v51  ;;  %s4729_s9 = sshll.u32 %s2909_s30, 3  ;;  %v8384_v1 = vadd.s32 %v8380_v9, %v10305_v53  ;;  %v8388_v39 = vadd.s32 %v8380_v9, %v10306_v27  ;;  %v10307_v11 = vld [vmem:[#allocation11_spill] sm:$0xff]  ;;  %v8396_v60 = vadd.s32 %v8380_v9, %v10308_v21  ;;  %v10312_v44 = vld [vmem:[#allocation13_spill] sm:$0xff]  ;;  %v10313_v19 = vld [vmem:[#allocation18_spill] sm:$0xff]  ;;  %p2904_p7 = scmp.ge.s32.totalorder %s2907_s28, 2  }
 0x49f   : >> { %v10298_v56 = vld [vmem:[#allocation108_spill] sm:$0xff]  ;;  %s8322_s10 = scalar_lea.vmem [#allocation3], %s4729_s9  ;;  %v8392_v22 = vadd.s32 %v8380_v9, %v10307_v11  ;;  %v8400_v32 = vadd.s32 %v8380_v9, %v10309_v48  ;;  %v8404_v58 = vadd.s32 %v8380_v9, %v10310_v36  ;;  %v10311_v26 = vld [vmem:[#allocation15_spill] sm:$0xff]  ;;  %v8412_v7 = vadd.s32 %v8380_v9, %v10312_v44  ;;  %v10316_v10 = vld [vmem:[#allocation17_spill] sm:$0xff]  ;;  %s9028_s15 = smov (%p2904_p7), 0  }
 0x4a0   : >> { %v10297_v62 = vld [vmem:[#allocation109_spill] sm:$0xff]  ;;  %v10304_v14 = vld [vmem:[#allocation110_spill] sm:$0xff]  ;;  %5092 = vmatprep.subr.bf16.mxu0 %v10298_v56  ;;  %5171 = vmatprep.subr.bf16.mxu1 %v10298_v56  ;;  %v2914_v34 = vld [vmem:[%s8322_s10 + $0x8] sm:$0xff]  ;;  %v8408_v31 = vadd.s32 %v8380_v9, %v10311_v26  ;;  %v8416_v55 = vadd.s32 %v8380_v9, %v10313_v19  ;;  %vm3365_vm11 = vcmp.lt.s32.totalorder %v8384_v1, 600  ;;  %vm3363_vm14 = vcmp.lt.s32.totalorder %v8388_v39, 600 }
 0x4a1   : >> { %v10300_v49 = vld [vmem:[#allocation111_spill] sm:$0xff]  ;;  %v10301_v35 = vld [vmem:[#allocation112_spill] sm:$0xff]  ;;  %v2916_v54 = vld [vmem:[%s8322_s10 + $0x18] sm:$0xff]  ;;  %vm3366_vm9 = vcmp.lt.s32.totalorder %v8392_v22, 600  ;;  %vm3364_vm15 = vcmp.lt.s32.totalorder %v8396_v60, 600  ;;  %vm3369_vm6 = vcmp.lt.s32.totalorder %v8400_v32, 600 }
 0x4a2   : >> { %v10302_v30 = vld [vmem:[#allocation113_spill] sm:$0xff]  ;;  %v10303_v24 = vld [vmem:[#allocation114_spill] sm:$0xff]  ;;  %5093 = vmatpush3.bf16.msra.mxu0 %v10298_v56  ;;  %5179 = vmatpush3.bf16.msra.mxu1 %v10298_v56  ;;  %v2930_v38 = vld [vmem:[%s8322_s10 + $0x88] sm:$0xff]  ;;  %vm3367_vm7 = vcmp.lt.s32.totalorder %v8404_v58, 600  ;;  %vm3370_vm8 = vcmp.lt.s32.totalorder %v8408_v31, 600  ;;  %vm3368_vm1 = vcmp.lt.s32.totalorder %v8412_v7, 600 }
 0x4a3   : >> { %5094 = vmatprep.subr.bf16.mxu0 %v10297_v62  ;;  %v2913_v46 = vld [vmem:[%s8322_s10] sm:$0xff]  ;;  %5172 = vmatprep.subr.bf16.mxu1 %v10297_v62  ;;  %v2915_v45 = vld [vmem:[%s8322_s10 + $0x10] sm:$0xff]  ;;  %v2932_v13 = vld [vmem:[%s8322_s10 + $0x98] sm:$0xff]  ;;  %vm3373_vm13 = vcmp.lt.s32.totalorder %v8416_v55, 600 }
 0x4a4   : >> { %5106 = vmatprep.mubr.bf16.mxu0 %v2913_v46  ;;  %v2929_v59 = vld [vmem:[%s8322_s10 + $0x80] sm:$0xff]  ;;  %v2931_v50 = vld [vmem:[%s8322_s10 + $0x90] sm:$0xff]  ;;  %v2918_v0 = vld [vmem:[%s8322_s10 + $0x28] sm:$0xff]  ;;  %v8428_v46 = vadd.s32 %v8380_v9, %v10316_v10 }
 0x4a5   : >> { %5138 = vmatprep.mubr.bf16.mxu1 %v2929_v59  ;;  %v2917_v17 = vld [vmem:[%s8322_s10 + $0x20] sm:$0xff]  ;;  %v2934_v52 = vld [vmem:[%s8322_s10 + $0xa8] sm:$0xff]  ;;  %v2919_v5 = vld [vmem:[%s8322_s10 + $0x30] sm:$0xff] }
 0x4a6   : >> { %5095 = vmatpush3.bf16.msra.mxu0 %v10297_v62  ;;  %5180 = vmatpush3.bf16.msra.mxu1 %v10297_v62  ;;  %v2933_v4 = vld [vmem:[%s8322_s10 + $0xa0] sm:$0xff]  ;;  %v2935_v6 = vld [vmem:[%s8322_s10 + $0xb0] sm:$0xff]  ;;  %v2920_v28 = vld [vmem:[%s8322_s10 + $0x38] sm:$0xff] }
 0x4a7   : >> { %5096 = vmatprep.subr.bf16.mxu0 %v10304_v14  ;;  %5173 = vmatprep.subr.bf16.mxu1 %v10304_v14  ;;  %v2936_v41 = vld [vmem:[%s8322_s10 + $0xb8] sm:$0xff]  ;;  %v2921_v61 = vld [vmem:[%s8322_s10 + $0x40] sm:$0xff]  ;;  %v2922_v18 = vld [vmem:[%s8322_s10 + $0x48] sm:$0xff] }
 0x4a8   : >> { %v2937_v37 = vld [vmem:[%s8322_s10 + $0xc0] sm:$0xff]  ;;  %v2938_v40 = vld [vmem:[%s8322_s10 + $0xc8] sm:$0xff]  ;;  %v2923_v25 = vld [vmem:[%s8322_s10 + $0x50] sm:$0xff] }
 0x4a9   : >> { %v2939_v57 = vld [vmem:[%s8322_s10 + $0xd0] sm:$0xff]  ;;  %v2924_v33 = vld [vmem:[%s8322_s10 + $0x58] sm:$0xff]  ;;  %v2925_v3 = vld [vmem:[%s8322_s10 + $0x60] sm:$0xff] }
 0x4aa   : >> { %5097 = vmatpush3.bf16.msra.mxu0 %v10304_v14  ;;  %5181 = vmatpush3.bf16.msra.mxu1 %v10304_v14  ;;  %v2940_v43 = vld [vmem:[%s8322_s10 + $0xd8] sm:$0xff]  ;;  %v2941_v29 = vld [vmem:[%s8322_s10 + $0xe0] sm:$0xff]  ;;  %v2926_v2 = vld [vmem:[%s8322_s10 + $0x68] sm:$0xff] }
 0x4ab   : >> { %5098 = vmatprep.subr.bf16.mxu0 %v10300_v49  ;;  %5174 = vmatprep.subr.bf16.mxu1 %v10300_v49  ;;  %v2942_v42 = vld [vmem:[%s8322_s10 + $0xe8] sm:$0xff]  ;;  %v2927_v8 = vld [vmem:[%s8322_s10 + $0x70] sm:$0xff]  ;;  %v2928_v23 = vld [vmem:[%s8322_s10 + $0x78] sm:$0xff] }
 0x4ac   : >> { %v2943_v16 = vld [vmem:[%s8322_s10 + $0xf0] sm:$0xff]  ;;  %v2944_v47 = vld [vmem:[%s8322_s10 + $0xf8] sm:$0xff]  ;;  %v10315_v15 = vld [vmem:[#allocation19_spill] sm:$0xff] }
 0x4ad   : >> { %v10314_v63 = vld [vmem:[#allocation16_spill] sm:$0xff]  ;;  %v8424_v20 = vadd.s32 %v8380_v9, %v10315_v15  ;;  %v10317_v59 = vld [vmem:[#allocation22_spill] sm:$0xff]  ;;  %v10332_v53 = vld [vmem:[#allocation33_spill] sm:$0xff] }
 0x4ae   : >> { %5099 = vmatpush3.bf16.msra.mxu0 %v10300_v49  ;;  %5182 = vmatpush3.bf16.msra.mxu1 %v10300_v49  ;;  %v8420_v12 = vadd.s32 %v8380_v9, %v10314_v63  ;;  %v8492_v27 = vadd.s32 %v8380_v9, %v10332_v53  ;;  %v10333_v11 = vld [vmem:[#allocation38_spill] sm:$0xff]  ;;  %v10334_v44 = vld [vmem:[#allocation36_spill] sm:$0xff]  ;;  %v10336_v63 = vld [vmem:[#allocation39_spill] sm:$0xff] }
 0x4af   : >> { %5100 = vmatprep.subr.bf16.mxu0 %v10301_v35  ;;  %5175 = vmatprep.subr.bf16.mxu1 %v10301_v35  ;;  %v8496_v21 = vadd.s32 %v8380_v9, %v10333_v11  ;;  %v8500_v19 = vadd.s32 %v8380_v9, %v10334_v44  ;;  %v8504_v15 = vadd.s32 %v8380_v9, %v10336_v63  ;;  %v10343_v44 = vld [vmem:[#allocation41_spill] sm:$0xff]  ;;  %v10350_v56 = vld [vmem:[#allocation56_spill] sm:$0xff]  ;;  %vm3374_vm10 = vcmp.lt.s32.totalorder %v8424_v20, 600 }
 0x4b0   : >> { %v8524_v63 = vadd.s32 %v8380_v9, %v10343_v44  ;;  %v8560_v62 = vadd.s32 %v8380_v9, %v10350_v56  ;;  %vm3371_vm12 = vcmp.lt.s32.totalorder %v8420_v12, 600 }
 0x4b1   : >> { %10335 = vst [vmem:[#allocation115_spill] sm:$0xff] %v8500_v19  ;;  %10337 = vst [vmem:[#allocation116_spill] sm:$0xff] %v8504_v15  ;;  %v10355_v15 = vld [vmem:[#allocation58_spill] sm:$0xff] }
 0x4b2   : >> { %5101 = vmatpush3.bf16.msra.mxu0 %v10301_v35  ;;  %5183 = vmatpush3.bf16.msra.mxu1 %v10301_v35  ;;  %vm3396_vm2 = vcmp.lt.s32.totalorder %v8524_v63, 600  ;;  %v8606_v22 = vadd.s32 %v8380_v9, %v10355_v15 }
 0x4b3   : >> { %5102 = vmatprep.subr.bf16.mxu0 %v10302_v30  ;;  %5176 = vmatprep.subr.bf16.mxu1 %v10302_v30 }
 0x4b6   : >> { %5103 = vmatpush3.bf16.msra.mxu0 %v10302_v30  ;;  %5184 = vmatpush3.bf16.msra.mxu1 %v10302_v30 }
 0x4b7   : >> { %5104 = vmatprep.subr.bf16.mxu0 %v10303_v24  ;;  %5177 = vmatprep.subr.bf16.mxu1 %v10303_v24 }
 0x4ba   : >> { %5105 = vmatpush3.bf16.msra.mxu0 %v10303_v24  ;;  %5185 = vmatpush3.bf16.msra.mxu1 %v10303_v24 }
 0x4bd   : >> { %5107 = vmatmul.mubr.bf16.vlgmr.msra.gmra.mrb[0].mxu0 %v2914_v34  ;;  %5139 = vmatmul.mubr.bf16.vlgmr.msra.gmra.mrb[0].mxu1 %v2930_v38  ;;  %v8432_v34 = vadd.s32 %v8380_v9, %v10317_v59  ;;  %v10318_v38 = vld [vmem:[#allocation20_spill] sm:$0xff] }
 0x4be   : >> { %5110 = vmatprep.mubr.bf16.mxu0 %v2915_v45  ;;  %5142 = vmatprep.mubr.bf16.mxu1 %v2931_v50  ;;  %v8436_v45 = vadd.s32 %v8380_v9, %v10318_v38  ;;  %v10319_v50 = vld [vmem:[#allocation23_spill] sm:$0xff] }
 0x4c5   : >> { %5111 = vmatmul.mubr.bf16.gmra.mrb[4].mxu0 %v2916_v54  ;;  %5143 = vmatmul.mubr.bf16.gmra.mrb[4].mxu1 %v2932_v13  ;;  %v8440_v54 = vadd.s32 %v8380_v9, %v10319_v50  ;;  %v10320_v13 = vld [vmem:[#allocation21_spill] sm:$0xff] }
 0x4c6   : >> { %5114 = vmatprep.mubr.bf16.mxu0 %v2917_v17  ;;  %5146 = vmatprep.mubr.bf16.mxu1 %v2933_v4  ;;  %v8444_v17 = vadd.s32 %v8380_v9, %v10320_v13  ;;  %v10321_v4 = vld [vmem:[#allocation26_spill] sm:$0xff]  ;;  %v10338_v13 = vld [vmem:[#allocation37_spill] sm:$0xff] }
 0x4cd   : >> { %5115 = vmatmul.mubr.bf16.gmra.mrb[8].mxu0 %v2918_v0  ;;  %5147 = vmatmul.mubr.bf16.gmra.mrb[8].mxu1 %v2934_v52  ;;  %v8448_v0 = vadd.s32 %v8380_v9, %v10321_v4  ;;  %v10322_v52 = vld [vmem:[#allocation24_spill] sm:$0xff]  ;;  %v8508_v4 = vadd.s32 %v8380_v9, %v10338_v13  ;;  %v10344_v13 = vld [vmem:[#allocation46_spill] sm:$0xff] }
 0x4ce   : >> { %5118 = vmatprep.mubr.bf16.mxu0 %v2919_v5  ;;  %5150 = vmatprep.mubr.bf16.mxu1 %v2935_v6  ;;  %v8452_v5 = vadd.s32 %v8380_v9, %v10322_v52  ;;  %v10323_v6 = vld [vmem:[#allocation27_spill] sm:$0xff]  ;;  %v10340_v52 = vld [vmem:[#allocation42_spill] sm:$0xff] }
 0x4cf   : >> { %10339 = vst [vmem:[#allocation117_spill] sm:$0xff] %v8508_v4 }
 0x4d5   : >> { %5119 = vmatmul.mubr.bf16.gmra.mrb[12].mxu0 %v2920_v28  ;;  %5151 = vmatmul.mubr.bf16.gmra.mrb[12].mxu1 %v2936_v41  ;;  %v8456_v28 = vadd.s32 %v8380_v9, %v10323_v6  ;;  %v10324_v41 = vld [vmem:[#allocation25_spill] sm:$0xff]  ;;  %v8512_v6 = vadd.s32 %v8380_v9, %v10340_v52  ;;  %v8528_v52 = vadd.s32 %v8380_v9, %v10344_v13 }
 0x4d6   : >> { %5122 = vmatprep.mubr.bf16.mxu0 %v2921_v61  ;;  %5154 = vmatprep.mubr.bf16.mxu1 %v2937_v37  ;;  %v8460_v61 = vadd.s32 %v8380_v9, %v10324_v41  ;;  %v10325_v37 = vld [vmem:[#allocation30_spill] sm:$0xff] }
 0x4d7   : >> { %vm3397_vm0 = vcmp.lt.s32.totalorder %v8512_v6, 600  ;;  %vm3401_vm3 = vcmp.lt.s32.totalorder %v8528_v52, 600 }
 0x4dd   : >> { %5123 = vmatmul.mubr.bf16.gmra.mrb[16].mxu0 %v2922_v18  ;;  %5155 = vmatmul.mubr.bf16.gmra.mrb[16].mxu1 %v2938_v40  ;;  %v8464_v18 = vadd.s32 %v8380_v9, %v10325_v37  ;;  %v10326_v40 = vld [vmem:[#allocation28_spill] sm:$0xff] }
 0x4de   : >> { %5126 = vmatprep.mubr.bf16.mxu0 %v2923_v25  ;;  %5158 = vmatprep.mubr.bf16.mxu1 %v2939_v57  ;;  %v8468_v25 = vadd.s32 %v8380_v9, %v10326_v40  ;;  %v10327_v57 = vld [vmem:[#allocation31_spill] sm:$0xff] }
 0x4e5   : >> { %5127 = vmatmul.mubr.bf16.gmra.mrb[20].mxu0 %v2924_v33  ;;  %5159 = vmatmul.mubr.bf16.gmra.mrb[20].mxu1 %v2940_v43  ;;  %v8472_v33 = vadd.s32 %v8380_v9, %v10327_v57  ;;  %v10328_v43 = vld [vmem:[#allocation29_spill] sm:$0xff] }
 0x4e6   : >> { %5130 = vmatprep.mubr.bf16.mxu0 %v2925_v3  ;;  %5162 = vmatprep.mubr.bf16.mxu1 %v2941_v29  ;;  %v8476_v3 = vadd.s32 %v8380_v9, %v10328_v43  ;;  %v10329_v29 = vld [vmem:[#allocation34_spill] sm:$0xff] }
 0x4ed   : >> { %5131 = vmatmul.mubr.bf16.gmra.mrb[24].mxu0 %v2926_v2  ;;  %5163 = vmatmul.mubr.bf16.gmra.mrb[24].mxu1 %v2942_v42  ;;  %v8480_v2 = vadd.s32 %v8380_v9, %v10329_v29  ;;  %v10341_v29 = vld [vmem:[#allocation40_spill] sm:$0xff] }
 0x4ee   : >> { %5134 = vmatprep.mubr.bf16.mxu0 %v2927_v8  ;;  %5166 = vmatprep.mubr.bf16.mxu1 %v2943_v16  ;;  %v10330_v8 = vld [vmem:[#allocation32_spill] sm:$0xff] }
 0x4ef   : >> { %v8484_v16 = vadd.s32 %v8380_v9, %v10330_v8  ;;  %v10342_v8 = vld [vmem:[#allocation43_spill] sm:$0xff] }
 0x4f5   : >> { %5135 = vmatmul.mubr.bf16.gmra.mrb[28].mxu0 %v2928_v23  ;;  %5167 = vmatmul.mubr.bf16.gmra.mrb[28].mxu1 %v2944_v47  ;;  %v10331_v23 = vld [vmem:[#allocation35_spill] sm:$0xff] }
 0x4f6   : >> { %v8488_v47 = vadd.s32 %v8380_v9, %v10331_v23  ;;  %v8520_v23 = vadd.s32 %v8380_v9, %v10342_v8  ;;  %v10345_v8 = vld [vmem:[#allocation44_spill] sm:$0xff] }
 0x4f7   : >> { %v8532_v30 = vadd.s32 %v8380_v9, %v10345_v8 }
 0x4f8   : >> { %vm3398_vm5 = vcmp.lt.s32.totalorder %v8520_v23, 600 }
 0x590   : >> { %v5108_v42 = vpop.f32.mrb[0].mxu0  ;;  %v5140_v48 = vpop.f32.mrb[0].mxu1 }
 0x591   : >> { %v3236_v36 = vmul.f32 0.088388346, %v5108_v42  ;;  %v2979_v26 = vpop.f32.mrb[1].mxu0  ;;  %v3268_v10 = vmul.f32 0.088388346, %v5140_v48  ;;  %v3107_v59 = vpop.f32.mrb[1].mxu1  ;;  %v8516_v42 = vadd.s32 %v8380_v9, %v10341_v29 }
 0x592   : >> { %v3234_v38 = vmul.f32 0.088388346, %v2979_v26  ;;  %v5109_v50 = vpop.f32.mrb[2].mxu0  ;;  %v3266_v41 = vmul.f32 0.088388346, %v3107_v59  ;;  %v5141_v37 = vpop.f32.mrb[2].mxu1 }
 0x593   : >> { %v4732_v40 = vadd.f32 -11.313708, %v3236_v36  ;;  %v3237_v57 = vmul.f32 0.088388346, %v5109_v50  ;;  %v2982_v43 = vpop.f32.mrb[3].mxu0  ;;  %v3110_v53 = vpop.f32.mrb[3].mxu1 }
 0x594   : >> { %v4730_v11 = vadd.f32 -11.313708, %v3234_v38  ;;  %v3235_v48 = vmul.f32 0.088388346, %v2982_v43  ;;  %v4764_v26 = vadd.f32 -11.313708, %v3268_v10 }
 0x595   : >> { %v3495_v59 = vmul.f32 1.442695, %v4732_v40  ;;  %v4733_v36 = vadd.f32 -11.313708, %v3237_v57  ;;  %v4762_v50 = vadd.f32 -11.313708, %v3266_v41 }
 0x596   : >> { %v3491_v29 = vmul.f32 1.442695, %v4730_v11  ;;  %v4731_v14 = vadd.f32 -11.313708, %v3235_v48  ;;  %v3559_v24 = vmul.f32 1.442695, %v4764_v26 }
 0x597   : >> { %5430 = vpow2.f32 %v3495_v59  ;;  %v3497_v10 = vmul.f32 1.442695, %v4733_v36  ;;  %v3555_v38 = vmul.f32 1.442695, %v4762_v50  ;;  %v3269_v43 = vmul.f32 0.088388346, %v5141_v37 }
 0x598   : >> { %5432 = vpow2.f32 %v3491_v29  ;;  %v3493_v41 = vmul.f32 1.442695, %v4731_v14  ;;  %v5112_v40 = vpop.f32.mrb[4].mxu0  ;;  %v3267_v57 = vmul.f32 0.088388346, %v3110_v53  ;;  %v5144_v44 = vpop.f32.mrb[4].mxu1 }
 0x599   : >> { %v10346_v11 = vld [vmem:[#allocation48_spill] sm:$0xff]  ;;  %5434 = vpow2.f32 %v3497_v10  ;;  %v3240_v26 = vmul.f32 0.088388346, %v5112_v40  ;;  %v2995_v13 = vpop.f32.mrb[5].mxu0  ;;  %v4765_v59 = vadd.f32 -11.313708, %v3269_v43 }
 0x59a   : >> { %v8538_v48 = vadd.s32 %v8380_v9, %v10346_v11  ;;  %v3123_v36 = vpop.f32.mrb[5].mxu1  ;;  %v10347_v50 = vld [vmem:[#allocation45_spill] sm:$0xff]  ;;  %5436 = vpow2.f32 %v3493_v41  ;;  %v3238_v14 = vmul.f32 0.088388346, %v2995_v13  ;;  %v5113_v53 = vpop.f32.mrb[6].mxu0  ;;  %v10348_v11 = vld [vmem:[#allocation54_spill] sm:$0xff] }
 0x59b   : >> { %v8543_v37 = vadd.s32 %v8380_v9, %v10347_v50  ;;  %v4763_v29 = vadd.f32 -11.313708, %v3267_v57  ;;  %v5145_v8 = vpop.f32.mrb[6].mxu1  ;;  %v8548_v35 = vadd.s32 %v8380_v9, %v10348_v11  ;;  %v4736_v10 = vadd.f32 -11.313708, %v3240_v26  ;;  %v2998_v49 = vpop.f32.mrb[7].mxu0 }
 0x59c   : >> { %v3241_v40 = vmul.f32 0.088388346, %v5113_v53  ;;  %5438 = vpow2.f32 %v3559_v24  ;;  %v8551_v43 = vpop.f32.mrb[7].mxu1  ;;  %v10349_v50 = vld [vmem:[#allocation50_spill] sm:$0xff]  ;;  %v4734_v41 = vadd.f32 -11.313708, %v3238_v14 }
 0x59d   : >> { %v8555_v51 = vadd.s32 %v8380_v9, %v10349_v50  ;;  %v3239_v13 = vmul.f32 0.088388346, %v2998_v49  ;;  %vm3395_vm4 = vcmp.lt.s32.totalorder %v8516_v42, 600  ;;  %5440 = vpow2.f32 %v3555_v38 }
 0x59e   : >> { %v3561_v57 = vmul.f32 1.442695, %v4765_v59  ;;  %v3503_v11 = vmul.f32 1.442695, %v4736_v10  ;;  %v4737_v26 = vadd.f32 -11.313708, %v3241_v40 }
 0x59f   : >> { %v3557_v53 = vmul.f32 1.442695, %v4763_v29  ;;  %v3499_v24 = vmul.f32 1.442695, %v4734_v41  ;;  %v4735_v4 = vadd.f32 -11.313708, %v3239_v13 }
 0x5a0   : >> { %5442 = vpow2.f32 %v3561_v57  ;;  %v3272_v50 = vmul.f32 0.088388346, %v5144_v44  ;;  %v3505_v49 = vmul.f32 1.442695, %v4737_v26  ;;  %v3270_v38 = vmul.f32 0.088388346, %v3123_v36 }
 0x5a1   : >> { %5444 = vpow2.f32 %v3503_v11  ;;  %v8564_v14 = vmul.f32 0.088388346, %v5145_v8  ;;  %v3501_v56 = vmul.f32 1.442695, %v4735_v4  ;;  %v5116_v59 = vpop.f32.mrb[8].mxu0  ;;  %v8573_v10 = vpop.f32.mrb[8].mxu1 }
 0x5a2   : >> { %5446 = vpow2.f32 %v3499_v24  ;;  %v4768_v29 = vadd.f32 -11.313708, %v3272_v50  ;;  %v10351_v44 = vld [vmem:[#allocation52_spill] sm:$0xff]  ;;  %v5431_v36 = vpop.eup %5430  ;;  %v3244_v8 = vmul.f32 0.088388346, %v5116_v59  ;;  %v3011_v41 = vpop.f32.mrb[9].mxu0 }
 0x5a3   : >> { %v8577_v40 = vadd.s32 %v8380_v9, %v10351_v44  ;;  %5448 = vpow2.f32 %v3505_v49  ;;  %v4766_v13 = vadd.f32 -11.313708, %v3270_v38  ;;  %v8580_v57 = vpop.f32.mrb[9].mxu1  ;;  %v10353_v11 = vld [vmem:[#allocation62_spill] sm:$0xff]  ;;  %v5433_v26 = vpop.eup %5432  ;;  %v3621_v24 = vsel %vm3365_vm11, %v5431_v36, 0.0 }
 0x5a4   : >> { %v8584_v4 = vadd.s32 %v8380_v9, %v10353_v11  ;;  %5450 = vpow2.f32 %v3501_v56  ;;  %v3242_v50 = vmul.f32 0.088388346, %v3011_v41  ;;  %v5117_v44 = vpop.f32.mrb[10].mxu0  ;;  %v3567_v49 = vmul.f32 1.442695, %v4768_v29  ;;  %v5435_v59 = vpop.eup %5434  ;;  %3686 = vst [vmem:[%s8570_s12 + $0x10] sm:$0xff] %v3621_v24 }
 0x5a5   : >> { %10352 = vst [vmem:[#allocation118_spill] sm:$0xff] %v8577_v40  ;;  %v3619_v38 = vsel %vm3363_vm14, %v5433_v26, 0.0  ;;  %v4740_v40 = vadd.f32 -11.313708, %v3244_v8  ;;  %v3245_v11 = vmul.f32 0.088388346, %v5117_v44  ;;  %5452 = vpow2.f32 %v3557_v53  ;;  %v5437_v1 = vpop.eup %5436 }
 0x5a6   : >> { %10354 = vst [vmem:[#allocation119_spill] sm:$0xff] %v8584_v4  ;;  %v3014_v4 = vpop.f32.mrb[11].mxu0  ;;  %3684 = vst [vmem:[%s8570_s12] sm:$0xff] %v3619_v38  ;;  %v3622_v56 = vsel %vm3366_vm9, %v5435_v59, 0.0  ;;  %v4738_v36 = vadd.f32 -11.313708, %v3242_v50  ;;  %5454 = vpow2.f32 %v3567_v49  ;;  %v8597_v39 = vpop.f32.mrb[10].mxu1 }
 0x5a7   : >> { %v3243_v29 = vmul.f32 0.088388346, %v3014_v4  ;;  %v5439_v41 = vpop.eup %5438  ;;  %3687 = vst [vmem:[%s8570_s12 + $0x18] sm:$0xff] %v3622_v56  ;;  %v3620_v8 = vsel %vm3364_vm15, %v5437_v1, 0.0  ;;  %v3511_v53 = vmul.f32 1.442695, %v4740_v40 }
 0x5a8   : >> { %v4741_v26 = vadd.f32 -11.313708, %v3245_v11  ;;  %v8602_v44 = vpop.f32.mrb[11].mxu1  ;;  %v5441_v4 = vpop.eup %5440  ;;  %3685 = vst [vmem:[%s8570_s12 + $0x8] sm:$0xff] %v3620_v8  ;;  %v3749_v50 = vadd.f32 %v3620_v8, %v3619_v38  ;;  %v3507_v49 = vmul.f32 1.442695, %v4738_v36 }
 0x5a9   : >> { %v4739_v59 = vadd.f32 -11.313708, %v3243_v29  ;;  %v8611_v19 = vsel %vm3397_vm0, %v5439_v41, 0.0  ;;  %5456 = vpow2.f32 %v3511_v53  ;;  %v8618_v15 = vsel %vm3395_vm4, %v5441_v4, 0.0  ;;  %v5120_v6 = vpop.f32.mrb[12].mxu0  ;;  %v8624_v29 = vpop.f32.mrb[12].mxu1 }
 0x5aa   : >> { %v3513_v60 = vmul.f32 1.442695, %v4741_v26  ;;  %3718 = vst [vmem:[%s8570_s12 + $0x110] sm:$0xff] %v8611_v19  ;;  %v3563_v40 = vmul.f32 1.442695, %v4766_v13  ;;  %v5443_v11 = vpop.eup %5442  ;;  %v3750_v38 = vadd.f32 %v3749_v50, %v3621_v24  ;;  %5458 = vpow2.f32 %v3507_v49  ;;  %3716 = vst [vmem:[%s8570_s12 + $0x100] sm:$0xff] %v8618_v15 }
 0x5ab   : >> { %v3509_v1 = vmul.f32 1.442695, %v4739_v59  ;;  %v4769_v36 = vadd.f32 -11.313708, %v8564_v14  ;;  %v5445_v41 = vpop.eup %5444  ;;  %v3248_v42 = vmul.f32 0.088388346, %v5120_v6 }
 0x5ac   : >> { %5460 = vpow2.f32 %v3513_v60  ;;  %v3027_v13 = vpop.f32.mrb[13].mxu0  ;;  %v8629_v24 = vsel %vm3398_vm5, %v5443_v11, 0.0  ;;  %v3271_v8 = vmul.f32 0.088388346, %v8551_v43  ;;  %v5447_v53 = vpop.eup %5446  ;;  %v3625_v14 = vsel %vm3369_vm6, %v5445_v41, 0.0 }
 0x5ad   : >> { %10356 = vst [vmem:[#allocation120_spill] sm:$0xff] %v8629_v24  ;;  %v3751_v26 = vadd.f32 %v3750_v38, %v3622_v56  ;;  %vm3372_vm11 = vcmp.lt.s32.totalorder %v8428_v46, 600  ;;  %5462 = vpow2.f32 %v3509_v1  ;;  %v3246_v4 = vmul.f32 0.088388346, %v3027_v13  ;;  %v5121_v50 = vpop.f32.mrb[14].mxu0  ;;  %3719 = vst [vmem:[%s8570_s12 + $0x118] sm:$0xff] %v8629_v24  ;;  %v5449_v23 = vpop.eup %5448 }
 0x5ae   : >> { %v8637_v49 = vpop.f32.mrb[13].mxu1  ;;  %3690 = vst [vmem:[%s8570_s12 + $0x30] sm:$0xff] %v3625_v14  ;;  %v3623_v43 = vsel %vm3367_vm7, %v5447_v53, 0.0  ;;  %v4744_v59 = vadd.f32 -11.313708, %v3248_v42  ;;  %v3030_v60 = vpop.f32.mrb[15].mxu0  ;;  %5464 = vpow2.f32 %v3563_v40 }
 0x5af   : >> { %v3249_v32 = vmul.f32 0.088388346, %v5121_v50  ;;  %vm3399_vm14 = vcmp.lt.s32.totalorder %v8532_v30, 600  ;;  %v5451_v56 = vpop.eup %5450  ;;  %3688 = vst [vmem:[%s8570_s12 + $0x20] sm:$0xff] %v3623_v43  ;;  %v3752_v11 = vadd.f32 %v3751_v26, %v3623_v43  ;;  %v3626_v38 = vsel %vm3370_vm8, %v5449_v23, 0.0  ;;  %v8646_v41 = vpop.f32.mrb[14].mxu1 }
 0x5b0   : >> { %v4742_v1 = vadd.f32 -11.313708, %v3246_v4  ;;  %v3247_v6 = vmul.f32 0.088388346, %v3030_v60  ;;  %v5453_v13 = vpop.eup %5452  ;;  %3691 = vst [vmem:[%s8570_s12 + $0x38] sm:$0xff] %v3626_v38  ;;  %v3624_v58 = vsel %vm3368_vm1, %v5451_v56, 0.0 }
 0x5b1   : >> { %v3519_v42 = vmul.f32 1.442695, %v4744_v59  ;;  %v4745_v53 = vadd.f32 -11.313708, %v3249_v32  ;;  %v10357_v40 = vld [vmem:[#allocation64_spill] sm:$0xff]  ;;  %v8655_v26 = vpop.f32.mrb[15].mxu1  ;;  %v5455_v31 = vpop.eup %5454  ;;  %v3753_v4 = vadd.f32 %v3752_v11, %v3624_v58 }
 0x5b2   : >> { %v8653_v50 = vadd.s32 %v8380_v9, %v10357_v40  ;;  %3689 = vst [vmem:[%s8570_s12 + $0x28] sm:$0xff] %v3624_v58  ;;  %v3515_v23 = vmul.f32 1.442695, %v4742_v1  ;;  %v4743_v43 = vadd.f32 -11.313708, %v3247_v6  ;;  %v8660_v60 = vsel %vm3396_vm2, %v5453_v13, 0.0 }
 0x5b3   : >> { %vm3377_vm9 = vcmp.lt.s32.totalorder %v8432_v34, 600  ;;  %5466 = vpow2.f32 %v3519_v42  ;;  %v3521_v7 = vmul.f32 1.442695, %v4745_v53  ;;  %3717 = vst [vmem:[%s8570_s12 + $0x108] sm:$0xff] %v8660_v60  ;;  %v8667_v59 = vsel %vm3401_vm3, %v5455_v31, 0.0  ;;  %v5124_v1 = vpop.f32.mrb[16].mxu0  ;;  %v5457_v13 = vpop.eup %5456 }
 0x5b4   : >> { %10358 = vst [vmem:[#allocation121_spill] sm:$0xff] %v8667_v59  ;;  %v3569_v32 = vmul.f32 1.442695, %v4769_v36  ;;  %v3754_v56 = vadd.f32 %v3753_v4, %v3625_v14  ;;  %vm3375_vm15 = vcmp.lt.s32.totalorder %v8436_v45, 600  ;;  %5468 = vpow2.f32 %v3515_v23  ;;  %3722 = vst [vmem:[%s8570_s12 + $0x130] sm:$0xff] %v8667_v59  ;;  %v8672_v6 = vpop.f32.mrb[16].mxu1  ;;  %v5459_v40 = vpop.eup %5458 }
 0x5b5   : >> { %v3517_v11 = vmul.f32 1.442695, %v4743_v43  ;;  %v4767_v63 = vadd.f32 -11.313708, %v3271_v8  ;;  %vm3378_vm0 = vcmp.lt.s32.totalorder %v8440_v54, 600  ;;  %5470 = vpow2.f32 %v3521_v7  ;;  %v3043_v58 = vpop.f32.mrb[17].mxu0 }
 0x5b6   : >> { %v3252_v52 = vmul.f32 0.088388346, %v5124_v1  ;;  %v3276_v36 = vmul.f32 0.088388346, %v8573_v10  ;;  %v10359_v14 = vld [vmem:[#allocation60_spill] sm:$0xff]  ;;  %v8680_v53 = vpop.f32.mrb[17].mxu1  ;;  %v3755_v31 = vadd.f32 %v3754_v56, %v3626_v38  ;;  %v5461_v10 = vpop.eup %5460 }
 0x5b7   : >> { %v8678_v42 = vadd.s32 %v8380_v9, %v10359_v14  ;;  %v3629_v8 = vsel %vm3373_vm13, %v5457_v13, 0.0  ;;  %vm3376_vm4 = vcmp.lt.s32.totalorder %v8444_v17, 600  ;;  %5472 = vpow2.f32 %v3517_v11  ;;  %v5125_v23 = vpop.f32.mrb[18].mxu0  ;;  %v8685_v43 = vpop.f32.mrb[18].mxu1  ;;  %v10360_v24 = vld [vmem:[#allocation70_spill] sm:$0xff] }
 0x5b8   : >> { %v3250_v4 = vmul.f32 0.088388346, %v3043_v58  ;;  %3694 = vst [vmem:[%s8570_s12 + $0x50] sm:$0xff] %v3629_v8  ;;  %v3627_v7 = vsel %vm3371_vm12, %v5459_v40, 0.0  ;;  %v4748_v1 = vadd.f32 -11.313708, %v3252_v52  ;;  %5474 = vpow2.f32 %v3569_v32  ;;  %v5463_v55 = vpop.eup %5462 }
 0x5b9   : >> { %v3253_v14 = vmul.f32 0.088388346, %v5125_v23  ;;  %v3046_v59 = vpop.f32.mrb[19].mxu0  ;;  %vm3402_vm5 = vcmp.lt.s32.totalorder %v8538_v48, 600  ;;  %3692 = vst [vmem:[%s8570_s12 + $0x40] sm:$0xff] %v3627_v7  ;;  %v3756_v38 = vadd.f32 %v3755_v31, %v3627_v7  ;;  %v3630_v56 = vsel %vm3374_vm10, %v5461_v10, 0.0  ;;  %v5465_v12 = vpop.eup %5464 }
 0x5ba   : >> { %v4746_v11 = vadd.f32 -11.313708, %v3250_v4  ;;  %v3251_v13 = vmul.f32 0.088388346, %v3046_v59  ;;  %v8694_v58 = vpop.f32.mrb[19].mxu1  ;;  %3695 = vst [vmem:[%s8570_s12 + $0x58] sm:$0xff] %v3630_v56  ;;  %v8701_v32 = vadd.s32 %v8380_v9, %v10360_v24 }
 0x5bb   : >> { %v3628_v52 = vsel %vm3372_vm11, %v5463_v55, 0.0  ;;  %v3527_v40 = vmul.f32 1.442695, %v4748_v1  ;;  %v4749_v23 = vadd.f32 -11.313708, %v3253_v14  ;;  %v8706_v59 = vsel %vm3399_vm14, %v5465_v12, 0.0 }
 0x5bc   : >> { %3693 = vst [vmem:[%s8570_s12 + $0x48] sm:$0xff] %v3628_v52  ;;  %v3757_v31 = vadd.f32 %v3756_v38, %v3628_v52  ;;  %v3523_v20 = vmul.f32 1.442695, %v4746_v11  ;;  %v4747_v10 = vadd.f32 -11.313708, %v3251_v13  ;;  %vm3381_vm6 = vcmp.lt.s32.totalorder %v8448_v0, 600 }
 0x5bd   : >> { %5476 = vpow2.f32 %v3527_v40  ;;  %v3529_v4 = vmul.f32 1.442695, %v4749_v23  ;;  %3720 = vst [vmem:[%s8570_s12 + $0x120] sm:$0xff] %v8706_v59  ;;  %v3565_v46 = vmul.f32 1.442695, %v4767_v63  ;;  %vm3379_vm7 = vcmp.lt.s32.totalorder %v8452_v5, 600  ;;  %v5467_v30 = vpop.eup %5466 }
 0x5be   : >> { %v4772_v7 = vadd.f32 -11.313708, %v3276_v36  ;;  %v3758_v1 = vadd.f32 %v3757_v31, %v3629_v8  ;;  %5478 = vpow2.f32 %v3523_v20  ;;  %v3525_v24 = vmul.f32 1.442695, %v4747_v10  ;;  %v5128_v14 = vpop.f32.mrb[20].mxu0  ;;  %v8713_v38 = vpop.f32.mrb[20].mxu1 }
 0x5bf   : >> { %v3274_v55 = vmul.f32 0.088388346, %v8580_v57  ;;  %vm3382_vm8 = vcmp.lt.s32.totalorder %v8456_v28, 600  ;;  %5480 = vpow2.f32 %v3529_v4  ;;  %v3256_v11 = vmul.f32 0.088388346, %v5128_v14  ;;  %v3059_v13 = vpop.f32.mrb[21].mxu0  ;;  %v5469_v52 = vpop.eup %5468 }
 0x5c0   : >> { %v3575_v12 = vmul.f32 1.442695, %v4772_v7  ;;  %v10361_v63 = vld [vmem:[#allocation66_spill] sm:$0xff]  ;;  %v8720_v8 = vpop.f32.mrb[21].mxu1  ;;  %v3633_v57 = vsel %vm3377_vm9, %v5467_v30, 0.0  ;;  %v3759_v40 = vadd.f32 %v3758_v1, %v3630_v56  ;;  %vm3380_vm1 = vcmp.lt.s32.totalorder %v8460_v61, 600  ;;  %v5471_v10 = vpop.eup %5470 }
 0x5c1   : >> { %v8718_v36 = vadd.s32 %v8380_v9, %v10361_v63  ;;  %5482 = vpow2.f32 %v3525_v24  ;;  %v3254_v23 = vmul.f32 0.088388346, %v3059_v13  ;;  %v5129_v31 = vpop.f32.mrb[22].mxu0  ;;  %v8725_v20 = vpop.f32.mrb[22].mxu1  ;;  %3698 = vst [vmem:[%s8570_s12 + $0x70] sm:$0xff] %v3633_v57  ;;  %v3631_v4 = vsel %vm3375_vm15, %v5469_v52, 0.0 }
 0x5c2   : >> { %v4752_v7 = vadd.f32 -11.313708, %v3256_v11  ;;  %v3257_v14 = vmul.f32 0.088388346, %v5129_v31  ;;  %v3062_v63 = vpop.f32.mrb[23].mxu0  ;;  %vm3400_vm2 = vcmp.lt.s32.totalorder %v8543_v37, 600  ;;  %5484 = vpow2.f32 %v3565_v46  ;;  %v5473_v34 = vpop.eup %5472 }
 0x5c3   : >> { %3696 = vst [vmem:[%s8570_s12 + $0x60] sm:$0xff] %v3631_v4  ;;  %v3760_v56 = vadd.f32 %v3759_v40, %v3631_v4  ;;  %v3634_v1 = vsel %vm3378_vm0, %v5471_v10, 0.0  ;;  %v4750_v24 = vadd.f32 -11.313708, %v3254_v23  ;;  %v3255_v30 = vmul.f32 0.088388346, %v3062_v63  ;;  %v5475_v45 = vpop.eup %5474 }
 0x5c4   : >> { %v8734_v13 = vpop.f32.mrb[23].mxu1  ;;  %3699 = vst [vmem:[%s8570_s12 + $0x78] sm:$0xff] %v3634_v1  ;;  %v3632_v11 = vsel %vm3376_vm4, %v5473_v34, 0.0  ;;  %v3535_v52 = vmul.f32 1.442695, %v4752_v7  ;;  %vm3405_vm3 = vcmp.lt.s32.totalorder %v8548_v35, 600  ;;  %5486 = vpow2.f32 %v3575_v12 }
 0x5c5   : >> { %v4753_v31 = vadd.f32 -11.313708, %v3257_v14  ;;  %3697 = vst [vmem:[%s8570_s12 + $0x68] sm:$0xff] %v3632_v11  ;;  %v3761_v46 = vadd.f32 %v3760_v56, %v3632_v11  ;;  %v3531_v40 = vmul.f32 1.442695, %v4750_v24  ;;  %v8743_v23 = vsel %vm3402_vm5, %v5475_v45, 0.0 }
 0x5c6   : >> { %v4751_v54 = vadd.f32 -11.313708, %v3255_v30  ;;  %vm3385_vm13 = vcmp.lt.s32.totalorder %v8464_v18, 600  ;;  %5488 = vpow2.f32 %v3535_v52  ;;  %3723 = vst [vmem:[%s8570_s12 + $0x138] sm:$0xff] %v8743_v23  ;;  %v4770_v17 = vadd.f32 -11.313708, %v3274_v55 }
 0x5c7   : >> { %v3537_v10 = vmul.f32 1.442695, %v4753_v31  ;;  %v3277_v4 = vmul.f32 0.088388346, %v8597_v39  ;;  %v3762_v7 = vadd.f32 %v3761_v46, %v3633_v57  ;;  %vm3383_vm12 = vcmp.lt.s32.totalorder %v8468_v25, 600  ;;  %v5132_v14 = vpop.f32.mrb[24].mxu0  ;;  %v5477_v34 = vpop.eup %5476 }
 0x5c8   : >> { %5490 = vpow2.f32 %v3531_v40  ;;  %v3533_v12 = vmul.f32 1.442695, %v4751_v54  ;;  %v3275_v63 = vmul.f32 0.088388346, %v8602_v44  ;;  %v8751_v48 = vpop.f32.mrb[24].mxu1  ;;  %vm3386_vm10 = vcmp.lt.s32.totalorder %v8472_v33, 600  ;;  %v5479_v45 = vpop.eup %5478 }
 0x5c9   : >> { %5492 = vpow2.f32 %v3537_v10  ;;  %v3260_v56 = vmul.f32 0.088388346, %v5132_v14  ;;  %v3075_v24 = vpop.f32.mrb[25].mxu0  ;;  %v3571_v55 = vmul.f32 1.442695, %v4770_v17  ;;  %v10362_v30 = vld [vmem:[#allocation72_spill] sm:$0xff]  ;;  %v3763_v11 = vadd.f32 %v3762_v7, %v3634_v1  ;;  %v5481_v40 = vpop.eup %5480 }
 0x5ca   : >> { %v8756_v39 = vadd.s32 %v8380_v9, %v10362_v30  ;;  %v8758_v57 = vpop.f32.mrb[25].mxu1  ;;  %v3637_v44 = vsel %vm3381_vm6, %v5477_v34, 0.0  ;;  %vm3384_vm11 = vcmp.lt.s32.totalorder %v8476_v3, 600  ;;  %5494 = vpow2.f32 %v3533_v12  ;;  %v5133_v31 = vpop.f32.mrb[26].mxu0 }
 0x5cb   : >> { %v3258_v52 = vmul.f32 0.088388346, %v3075_v24  ;;  %v8763_v46 = vpop.f32.mrb[26].mxu1  ;;  %3702 = vst [vmem:[%s8570_s12 + $0x90] sm:$0xff] %v3637_v44  ;;  %v3635_v54 = vsel %vm3379_vm7, %v5479_v45, 0.0  ;;  %v3078_v14 = vpop.f32.mrb[27].mxu0  ;;  %5496 = vpow2.f32 %v3571_v55 }
 0x5cc   : >> { %v4756_v10 = vadd.f32 -11.313708, %v3260_v56  ;;  %v3261_v17 = vmul.f32 0.088388346, %v5133_v31  ;;  %vm3403_vm14 = vcmp.lt.s32.totalorder %v8555_v51, 600  ;;  %v5483_v0 = vpop.eup %5482  ;;  %3700 = vst [vmem:[%s8570_s12 + $0x80] sm:$0xff] %v3635_v54  ;;  %v3764_v1 = vadd.f32 %v3763_v11, %v3635_v54 }
 0x5cd   : >> { %v3638_v7 = vsel %vm3382_vm8, %v5481_v40, 0.0  ;;  %v4754_v12 = vadd.f32 -11.313708, %v3258_v52  ;;  %v3259_v34 = vmul.f32 0.088388346, %v3078_v14  ;;  %v8772_v24 = vpop.f32.mrb[27].mxu1  ;;  %v5485_v5 = vpop.eup %5484 }
 0x5ce   : >> { %3703 = vst [vmem:[%s8570_s12 + $0x98] sm:$0xff] %v3638_v7  ;;  %v3636_v56 = vsel %vm3380_vm1, %v5483_v0, 0.0  ;;  %v3543_v30 = vmul.f32 1.442695, %v4756_v10  ;;  %v4757_v45 = vadd.f32 -11.313708, %v3261_v17  ;;  %v5487_v54 = vpop.eup %5486 }
 0x5cf   : >> { %v10363_v31 = vld [vmem:[#allocation68_spill] sm:$0xff]  ;;  %3701 = vst [vmem:[%s8570_s12 + $0x88] sm:$0xff] %v3636_v56  ;;  %v3765_v11 = vadd.f32 %v3764_v1, %v3636_v56  ;;  %v3539_v28 = vmul.f32 1.442695, %v4754_v12  ;;  %v4755_v40 = vadd.f32 -11.313708, %v3259_v34 }
 0x5d0   : >> { %v8779_v55 = vadd.s32 %v8380_v9, %v10363_v31  ;;  %v8784_v52 = vsel %vm3400_vm2, %v5485_v5, 0.0  ;;  %vm3389_vm9 = vcmp.lt.s32.totalorder %v8480_v2, 600  ;;  %5498 = vpow2.f32 %v3543_v30  ;;  %v5136_v1 = vpop.f32.mrb[28].mxu0  ;;  %v8794_v12 = vpop.f32.mrb[28].mxu1 }
 0x5d1   : >> { %v3545_v61 = vmul.f32 1.442695, %v4757_v45  ;;  %3721 = vst [vmem:[%s8570_s12 + $0x128] sm:$0xff] %v8784_v52  ;;  %v4773_v10 = vadd.f32 -11.313708, %v3277_v4  ;;  %v3766_v14 = vadd.f32 %v3765_v11, %v3637_v44  ;;  %vm3387_vm15 = vcmp.lt.s32.totalorder %v8484_v16, 600  ;;  %v5489_v34 = vpop.eup %5488 }
 0x5d2   : >> { %v4771_v17 = vadd.f32 -11.313708, %v3275_v63  ;;  %5500 = vpow2.f32 %v3539_v28  ;;  %v3541_v0 = vmul.f32 1.442695, %v4755_v40  ;;  %v8792_v37 = vsel %vm3405_vm3, %v5487_v54, 0.0  ;;  %v3091_v4 = vpop.f32.mrb[29].mxu0  ;;  %v5491_v30 = vpop.eup %5490 }
 0x5d3   : >> { %vm3390_vm0 = vcmp.lt.s32.totalorder %v8488_v47, 600  ;;  %5502 = vpow2.f32 %v3545_v61  ;;  %v3264_v5 = vmul.f32 0.088388346, %v5136_v1  ;;  %3726 = vst [vmem:[%s8570_s12 + $0x150] sm:$0xff] %v8792_v37  ;;  %v3577_v63 = vmul.f32 1.442695, %v4773_v10  ;;  %v5493_v40 = vpop.eup %5492 }
 0x5d4   : >> { %v10364_v44 = vld [vmem:[#allocation76_spill] sm:$0xff]  ;;  %v3641_v35 = vsel %vm3385_vm13, %v5489_v34, 0.0  ;;  %v3767_v45 = vadd.f32 %v3766_v14, %v3638_v7  ;;  %vm3388_vm4 = vcmp.lt.s32.totalorder %v8492_v27, 600  ;;  %5504 = vpow2.f32 %v3541_v0  ;;  %v5137_v11 = vpop.f32.mrb[30].mxu0  ;;  %v8806_v28 = vpop.f32.mrb[29].mxu1 }
 0x5d5   : >> { %v8801_v56 = vadd.s32 %v8380_v9, %v10364_v44  ;;  %v3262_v31 = vmul.f32 0.088388346, %v3091_v4  ;;  %3706 = vst [vmem:[%s8570_s12 + $0xb0] sm:$0xff] %v3641_v35  ;;  %v3639_v54 = vsel %vm3383_vm12, %v5491_v30, 0.0  ;;  %v4760_v61 = vadd.f32 -11.313708, %v3264_v5  ;;  %v5495_v18 = vpop.eup %5494 }
 0x5d6   : >> { %v3265_v10 = vmul.f32 0.088388346, %v5137_v11  ;;  %v3094_v1 = vpop.f32.mrb[31].mxu0  ;;  %vm3406_vm5 = vcmp.lt.s32.totalorder %v8560_v62, 600  ;;  %5506 = vpow2.f32 %v3577_v63  ;;  %3704 = vst [vmem:[%s8570_s12 + $0xa0] sm:$0xff] %v3639_v54  ;;  %v3768_v7 = vadd.f32 %v3767_v45, %v3639_v54  ;;  %v8815_v4 = vpop.f32.mrb[30].mxu1 }
 0x5d7   : >> { %v3642_v14 = vsel %vm3386_vm10, %v5493_v40, 0.0  ;;  %v4758_v0 = vadd.f32 -11.313708, %v3262_v31  ;;  %v3263_v34 = vmul.f32 0.088388346, %v3094_v1  ;;  %v5497_v25 = vpop.eup %5496  ;;  %v3640_v5 = vsel %vm3384_vm11, %v5495_v18, 0.0 }
 0x5d8   : >> { %3707 = vst [vmem:[%s8570_s12 + $0xb8] sm:$0xff] %v3642_v14  ;;  %v3551_v44 = vmul.f32 1.442695, %v4760_v61  ;;  %v4761_v30 = vadd.f32 -11.313708, %v3265_v10  ;;  %v10365_v11 = vld [vmem:[#allocation74_spill] sm:$0xff]  ;;  %v3769_v45 = vadd.f32 %v3768_v7, %v3640_v5 }
 0x5d9   : >> { %v8822_v63 = vadd.s32 %v8380_v9, %v10365_v11  ;;  %3705 = vst [vmem:[%s8570_s12 + $0xa8] sm:$0xff] %v3640_v5  ;;  %v3547_v33 = vmul.f32 1.442695, %v4758_v0  ;;  %v4759_v40 = vadd.f32 -11.313708, %v3263_v34  ;;  %v8827_v31 = vsel %vm3403_vm14, %v5497_v25, 0.0 }
 0x5da   : >> { %v8829_v54 = vpop.f32.mrb[31].mxu1  ;;  %vm3393_vm6 = vcmp.lt.s32.totalorder %v8496_v21, 600  ;;  %5508 = vpow2.f32 %v3551_v44  ;;  %v3553_v3 = vmul.f32 1.442695, %v4761_v30  ;;  %3724 = vst [vmem:[%s8570_s12 + $0x140] sm:$0xff] %v8827_v31  ;;  %v3770_v1 = vadd.f32 %v3769_v45, %v3641_v35  ;;  %v10366_v18 = vld [vmem:[#allocation115_spill] sm:$0xff]  ;;  %v5499_v0 = vpop.eup %5498 }
 0x5db   : >> { %v3573_v61 = vmul.f32 1.442695, %v4771_v17  ;;  %v3280_v10 = vmul.f32 0.088388346, %v8624_v29  ;;  %vm3391_vm7 = vcmp.lt.s32.totalorder %v10366_v18, 600  ;;  %5510 = vpow2.f32 %v3547_v33  ;;  %v10367_v34 = vld [vmem:[#allocation116_spill] sm:$0xff] }
 0x5dc   : >> { %v3549_v7 = vmul.f32 1.442695, %v4759_v40  ;;  %v3278_v51 = vmul.f32 0.088388346, %v8637_v49  ;;  %vm3394_vm8 = vcmp.lt.s32.totalorder %v10367_v34, 600  ;;  %5512 = vpow2.f32 %v3553_v3  ;;  %v5501_v44 = vpop.eup %5500  ;;  %v10368_v30 = vld [vmem:[#allocation117_spill] sm:$0xff] }
 0x5dd   : >> { %v4776_v25 = vadd.f32 -11.313708, %v3280_v10  ;;  %v3281_v5 = vmul.f32 0.088388346, %v8646_v41  ;;  %v3279_v17 = vmul.f32 0.088388346, %v8655_v26  ;;  %v3771_v35 = vadd.f32 %v3770_v1, %v3642_v14  ;;  %v5503_v11 = vpop.eup %5502 }
 0x5de   : >> { %v3645_v29 = vsel %vm3389_vm9, %v5499_v0, 0.0  ;;  %vm3392_vm1 = vcmp.lt.s32.totalorder %v10368_v30, 600  ;;  %5514 = vpow2.f32 %v3549_v7  ;;  %v4774_v49 = vadd.f32 -11.313708, %v3278_v51  ;;  %v10369_v33 = vld [vmem:[#allocation118_spill] sm:$0xff]  ;;  %v5505_v40 = vpop.eup %5504  ;;  %v10370_v7 = vld [vmem:[#allocation119_spill] sm:$0xff] }
 0x5df   : >> { %3710 = vst [vmem:[%s8570_s12 + $0xd0] sm:$0xff] %v3645_v29  ;;  %v3643_v45 = vsel %vm3387_vm15, %v5501_v44, 0.0  ;;  %vm3404_vm2 = vcmp.lt.s32.totalorder %v10369_v33, 600  ;;  %5516 = vpow2.f32 %v3573_v61  ;;  %v3583_v41 = vmul.f32 1.442695, %v4776_v25 }
 0x5e0   : >> { %v4777_v26 = vadd.f32 -11.313708, %v3281_v5  ;;  %3708 = vst [vmem:[%s8570_s12 + $0xc0] sm:$0xff] %v3643_v45  ;;  %v3772_v2 = vadd.f32 %v3771_v35, %v3643_v45  ;;  %v3646_v14 = vsel %vm3390_vm0, %v5503_v11, 0.0  ;;  %v3579_v3 = vmul.f32 1.442695, %v4774_v49  ;;  %v5507_v1 = vpop.eup %5506 }
 0x5e1   : >> { %v4775_v10 = vadd.f32 -11.313708, %v3279_v17  ;;  %3711 = vst [vmem:[%s8570_s12 + $0xd8] sm:$0xff] %v3646_v14  ;;  %v3644_v16 = vsel %vm3388_vm4, %v5505_v40, 0.0  ;;  %vm3409_vm3 = vcmp.lt.s32.totalorder %v10370_v7, 600  ;;  %5518 = vpow2.f32 %v3583_v41  ;;  %v10371_v41 = vld [vmem:[#allocation77_spill] sm:$0xff] }
 0x5e2   : >> { %v3585_v61 = vmul.f32 1.442695, %v4777_v26  ;;  %v3284_v51 = vmul.f32 0.088388346, %v8672_v6  ;;  %3709 = vst [vmem:[%s8570_s12 + $0xc8] sm:$0xff] %v3644_v16  ;;  %v3773_v0 = vadd.f32 %v3772_v2, %v3644_v16  ;;  %v8858_v47 = vsel %vm3406_vm5, %v5507_v1, 0.0 }
 0x5e3   : >> { %vm3407_vm13 = vcmp.lt.s32.totalorder %v8606_v22, 600  ;;  %5520 = vpow2.f32 %v3579_v3  ;;  %v3581_v25 = vmul.f32 1.442695, %v4775_v10  ;;  %3727 = vst [vmem:[%s8570_s12 + $0x158] sm:$0xff] %v8858_v47  ;;  %vm3410_vm12 = vcmp.lt.s32.totalorder %v8653_v50, 600 }
 0x5e4   : >> { %5522 = vpow2.f32 %v3585_v61  ;;  %v4780_v27 = vadd.f32 -11.313708, %v3284_v51  ;;  %v3282_v5 = vmul.f32 0.088388346, %v8680_v53  ;;  %v3285_v6 = vmul.f32 0.088388346, %v8685_v43  ;;  %v5509_v35 = vpop.eup %5508 }
 0x5e5   : >> { %v3774_v17 = vadd.f32 %v3773_v0, %v3645_v29  ;;  %vm3408_vm10 = vcmp.lt.s32.totalorder %v8678_v42, 600  ;;  %5524 = vpow2.f32 %v3581_v25  ;;  %v3283_v62 = vmul.f32 0.088388346, %v8694_v58  ;;  %v5511_v53 = vpop.eup %5510 }
 0x5e6   : >> { %v3288_v44 = vmul.f32 0.088388346, %v8713_v38  ;;  %v3591_v49 = vmul.f32 1.442695, %v4780_v27  ;;  %v4778_v11 = vadd.f32 -11.313708, %v3282_v5  ;;  %v8871_v26 = vadd.s32 %v8380_v9, %v10371_v41  ;;  %v5513_v58 = vpop.eup %5512 }
 0x5e7   : >> { %v4781_v45 = vadd.f32 -11.313708, %v3285_v6  ;;  %v3649_v43 = vsel %vm3393_vm6, %v5509_v35, 0.0  ;;  %v3775_v29 = vadd.f32 %v3774_v17, %v3646_v14  ;;  %v4779_v40 = vadd.f32 -11.313708, %v3283_v62 }
 0x5e8   : >> { %v4784_v2 = vadd.f32 -11.313708, %v3288_v44  ;;  %3714 = vst [vmem:[%s8570_s12 + $0xf0] sm:$0xff] %v3649_v43  ;;  %v3647_v38 = vsel %vm3391_vm7, %v5511_v53, 0.0  ;;  %vm3413_vm11 = vcmp.lt.s32.totalorder %v8701_v32, 600  ;;  %5526 = vpow2.f32 %v3591_v49  ;;  %v5515_v1 = vpop.eup %5514 }
 0x5e9   : >> { %v3587_v3 = vmul.f32 1.442695, %v4778_v11  ;;  %v3593_v10 = vmul.f32 1.442695, %v4781_v45  ;;  %3712 = vst [vmem:[%s8570_s12 + $0xe0] sm:$0xff] %v3647_v38  ;;  %v3776_v16 = vadd.f32 %v3775_v29, %v3647_v38  ;;  %v3650_v21 = vsel %vm3394_vm8, %v5513_v58, 0.0  ;;  %v5517_v51 = vpop.eup %5516 }
 0x5ea   : >> { %v3589_v14 = vmul.f32 1.442695, %v4779_v40  ;;  %v3599_v61 = vmul.f32 1.442695, %v4784_v2  ;;  %3715 = vst [vmem:[%s8570_s12 + $0xf8] sm:$0xff] %v3650_v21  ;;  %v3648_v18 = vsel %vm3392_vm1, %v5515_v1, 0.0 }
 0x5eb   : >> { %vm3411_vm14 = vcmp.lt.s32.totalorder %v8718_v36, 600  ;;  %5528 = vpow2.f32 %v3587_v3  ;;  %v3286_v0 = vmul.f32 0.088388346, %v8720_v8  ;;  %v3289_v25 = vmul.f32 0.088388346, %v8725_v20  ;;  %3713 = vst [vmem:[%s8570_s12 + $0xe8] sm:$0xff] %v3648_v18  ;;  %v5519_v5 = vpop.eup %5518 }
 0x5ec   : >> { %v3777_v27 = vadd.f32 %v3776_v16, %v3648_v18  ;;  %v8891_v34 = vsel %vm3404_vm2, %v5517_v51, 0.0  ;;  %vm3414_vm9 = vcmp.lt.s32.totalorder %v8756_v39, 600  ;;  %5530 = vpow2.f32 %v3593_v10  ;;  %v10372_v1 = vld [vmem:[#allocation75_spill] sm:$0xff] }
 0x5ed   : >> { %v3287_v30 = vmul.f32 0.088388346, %v8734_v13  ;;  %3725 = vst [vmem:[%s8570_s12 + $0x148] sm:$0xff] %v8891_v34  ;;  %vm3412_vm15 = vcmp.lt.s32.totalorder %v8779_v55, 600  ;;  %5532 = vpow2.f32 %v3589_v14  ;;  %v4782_v8 = vadd.f32 -11.313708, %v3286_v0  ;;  %v5521_v33 = vpop.eup %5520 }
 0x5ee   : >> { %v4785_v20 = vadd.f32 -11.313708, %v3289_v25  ;;  %v3292_v6 = vmul.f32 0.088388346, %v8751_v48  ;;  %v3778_v17 = vadd.f32 %v3777_v27, %v3649_v43  ;;  %v8901_v62 = vsel %vm3409_vm3, %v5519_v5, 0.0  ;;  %v5523_v44 = vpop.eup %5522  ;;  %v10373_v25 = vld [vmem:[#allocation84_spill] sm:$0xff] }
 0x5ef   : >> { %5534 = vpow2.f32 %v3599_v61  ;;  %v4783_v13 = vadd.f32 -11.313708, %v3287_v30  ;;  %3730 = vst [vmem:[%s8570_s12 + $0x170] sm:$0xff] %v8901_v62  ;;  %v8907_v35 = vsel %vm3407_vm13, %v5521_v33, 0.0  ;;  %vm3417_vm0 = vcmp.lt.s32.totalorder %v8801_v56, 600  ;;  %v5525_v11 = vpop.eup %5524  ;;  %v10374_v30 = vld [vmem:[#allocation120_spill] sm:$0xff] }
 0x5f0   : >> { %v3595_v48 = vmul.f32 1.442695, %v4782_v8  ;;  %v3601_v49 = vmul.f32 1.442695, %v4785_v20  ;;  %v3779_v45 = vadd.f32 %v3778_v17, %v3650_v21  ;;  %3728 = vst [vmem:[%s8570_s12 + $0x160] sm:$0xff] %v8907_v35  ;;  %v8914_v7 = vsel %vm3410_vm12, %v5523_v44, 0.0 }
 0x5f1   : >> { %v3597_v41 = vmul.f32 1.442695, %v4783_v13  ;;  %v4788_v53 = vadd.f32 -11.313708, %v3292_v6  ;;  %3731 = vst [vmem:[%s8570_s12 + $0x178] sm:$0xff] %v8914_v7  ;;  %v8920_v22 = vsel %vm3408_vm10, %v5525_v11, 0.0  ;;  %v3357_v27 = vadd.s32 %v8380_v9, %v10373_v25 }
 0x5f2   : >> { %vm3415_vm4 = vcmp.lt.s32.totalorder %v8822_v63, 600  ;;  %5536 = vpow2.f32 %v3595_v48  ;;  %v3290_v43 = vmul.f32 0.088388346, %v8758_v57  ;;  %v3293_v29 = vmul.f32 0.088388346, %v8763_v46  ;;  %3729 = vst [vmem:[%s8570_s12 + $0x168] sm:$0xff] %v8920_v22  ;;  %v5527_v2 = vpop.eup %5526 }
 0x5f3   : >> { %v3780_v40 = vadd.f32 %v3779_v45, %v8618_v15  ;;  %vm3418_vm5 = vcmp.lt.s32.totalorder %v8871_v26, 600  ;;  %5538 = vpow2.f32 %v3601_v49  ;;  %v3607_v50 = vmul.f32 1.442695, %v4788_v53  ;;  %v10375_v13 = vld [vmem:[#allocation80_spill] sm:$0xff]  ;;  %v10376_v44 = vld [vmem:[#allocation85_spill] sm:$0xff] }
 0x5f4   : >> { %v3291_v42 = vmul.f32 0.088388346, %v8772_v24  ;;  %5540 = vpow2.f32 %v3597_v41  ;;  %v4786_v58 = vadd.f32 -11.313708, %v3290_v43  ;;  %v4789_v38 = vadd.f32 -11.313708, %v3293_v29 }
 0x5f5   : >> { %v3296_v3 = vmul.f32 0.088388346, %v8794_v12  ;;  %v3781_v57 = vadd.f32 %v3780_v40, %v8660_v60  ;;  %v8934_v15 = vsel %vm3413_vm11, %v5527_v2, 0.0  ;;  %5542 = vpow2.f32 %v3607_v50  ;;  %v5529_v10 = vpop.eup %5528  ;;  %v10377_v53 = vld [vmem:[#allocation81_spill] sm:$0xff] }
 0x5f6   : >> { %v4787_v46 = vadd.f32 -11.313708, %v3291_v42  ;;  %3734 = vst [vmem:[%s8570_s12 + $0x190] sm:$0xff] %v8934_v15  ;;  %v3352_v24 = vadd.s32 %v8380_v9, %v10372_v1  ;;  %v3603_v16 = vmul.f32 1.442695, %v4786_v58  ;;  %v5531_v12 = vpop.eup %5530  ;;  %v8943_v32 = vsel %vm3411_vm14, %v5529_v10, 0.0 }
 0x5f7   : >> { %v3609_v21 = vmul.f32 1.442695, %v4789_v38  ;;  %v4792_v14 = vadd.f32 -11.313708, %v3296_v3  ;;  %v3782_v60 = vadd.f32 %v3781_v57, %v8611_v19  ;;  %v3294_v51 = vmul.f32 0.088388346, %v8806_v28  ;;  %v5533_v18 = vpop.eup %5532 }
 0x5f8   : >> { %v3605_v61 = vmul.f32 1.442695, %v4787_v46  ;;  %3732 = vst [vmem:[%s8570_s12 + $0x180] sm:$0xff] %v8943_v32  ;;  %v8950_v0 = vsel %vm3414_vm9, %v5531_v12, 0.0  ;;  %5544 = vpow2.f32 %v3603_v16  ;;  %v8959_v28 = vsel %vm3412_vm15, %v5533_v18, 0.0  ;;  %v10378_v50 = vld [vmem:[#allocation121_spill] sm:$0xff] }
 0x5f9   : >> { %v3615_v19 = vmul.f32 1.442695, %v4792_v14  ;;  %v5535_v36 = vpop.eup %5534  ;;  %v3783_v5 = vadd.f32 %v3782_v60, %v10374_v30  ;;  %3735 = vst [vmem:[%s8570_s12 + $0x198] sm:$0xff] %v8950_v0  ;;  %5546 = vpow2.f32 %v3609_v21  ;;  %v4790_v8 = vadd.f32 -11.313708, %v3294_v51  ;;  %3733 = vst [vmem:[%s8570_s12 + $0x188] sm:$0xff] %v8959_v28 }
 0x5fa   : >> { %v8965_v39 = vsel %vm3417_vm0, %v5535_v36, 0.0  ;;  %vm3416_vm6 = vcmp.lt.s32.totalorder %v3352_v24, 600  ;;  %5548 = vpow2.f32 %v3605_v61  ;;  %v3297_v20 = vmul.f32 0.088388346, %v8815_v4  ;;  %v10379_v42 = vld [vmem:[#allocation93_spill] sm:$0xff]  ;;  %v10382_v51 = vld [vmem:[#allocation90_spill] sm:$0xff] }
 0x5fb   : >> { %v3784_v6 = vadd.f32 %v3783_v5, %v8706_v59  ;;  %3738 = vst [vmem:[%s8570_s12 + $0x1b0] sm:$0xff] %v8965_v39  ;;  %5550 = vpow2.f32 %v3615_v19  ;;  %v3611_v55 = vmul.f32 1.442695, %v4790_v8  ;;  %v3295_v33 = vmul.f32 0.088388346, %v8829_v54  ;;  %v10380_v3 = vld [vmem:[#allocation89_spill] sm:$0xff] }
 0x5fc   : >> { %v5537_v17 = vpop.eup %5536  ;;  %vm3421_vm7 = vcmp.lt.s32.totalorder %v3357_v27, 600  ;;  %v3355_v56 = vadd.s32 %v8380_v9, %v10375_v13  ;;  %v3358_v48 = vadd.s32 %v8380_v9, %v10376_v44  ;;  %v4793_v49 = vadd.f32 -11.313708, %v3297_v20 }
 0x5fd   : >> { %v5539_v4 = vpop.eup %5538  ;;  %v3785_v59 = vadd.f32 %v3784_v6, %v8784_v52  ;;  %v8979_v11 = vsel %vm3415_vm4, %v5537_v17, 0.0  ;;  %5552 = vpow2.f32 %v3611_v55  ;;  %v4791_v54 = vadd.f32 -11.313708, %v3295_v33 }
 0x5fe   : >> { %v5541_v45 = vpop.eup %5540  ;;  %3736 = vst [vmem:[%s8570_s12 + $0x1a0] sm:$0xff] %v8979_v11  ;;  %v3674_v41 = vsel %vm3418_vm5, %v5539_v4, 0.0  ;;  %v3356_v43 = vadd.s32 %v8380_v9, %v10377_v53  ;;  %v3617_v29 = vmul.f32 1.442695, %v4793_v49  ;;  %v3361_v2 = vadd.s32 %v8380_v9, %v10379_v42 }
 0x5ff   : >> { %v5543_v40 = vpop.eup %5542  ;;  %v3786_v52 = vadd.f32 %v3785_v59, %v10378_v50  ;;  %3739 = vst [vmem:[%s8570_s12 + $0x1b8] sm:$0xff] %v3674_v41  ;;  %v3672_v63 = vsel %vm3416_vm6, %v5541_v45, 0.0  ;;  %v3613_v58 = vmul.f32 1.442695, %v4791_v54  ;;  %vm3419_vm8 = vcmp.lt.s32.totalorder %v3355_v56, 600 }
 0x600   : >> { %3737 = vst [vmem:[%s8570_s12 + $0x1a8] sm:$0xff] %v3672_v63  ;;  %v3677_v38 = vsel %vm3421_vm7, %v5543_v40, 0.0  ;;  %5554 = vpow2.f32 %v3617_v29  ;;  %vm3422_vm1 = vcmp.lt.s32.totalorder %v3358_v48, 600  ;;  %v3359_v57 = vadd.s32 %v8380_v9, %v10380_v3 }
 0x601   : >> { %v3787_v26 = vadd.f32 %v3786_v52, %v8743_v23  ;;  %3742 = vst [vmem:[%s8570_s12 + $0x1d0] sm:$0xff] %v3677_v38  ;;  %5556 = vpow2.f32 %v3613_v58  ;;  %vm3420_vm2 = vcmp.lt.s32.totalorder %v3356_v43, 600  ;;  %vm3425_vm3 = vcmp.lt.s32.totalorder %v3361_v2, 600  ;;  %v10381_v23 = vld [vmem:[#allocation94_spill] sm:$0xff] }
 0x602   : >> { %v5545_v46 = vpop.eup %5544  ;;  %v3362_v14 = vadd.s32 %v8380_v9, %v10381_v23  ;;  %vm3423_vm13 = vcmp.lt.s32.totalorder %v3359_v57, 600 }
 0x603   : >> { %v5547_v10 = vpop.eup %5546  ;;  %v3788_v1 = vadd.f32 %v3787_v26, %v8827_v31  ;;  %v3675_v24 = vsel %vm3419_vm8, %v5545_v46, 0.0  ;;  %v3360_v31 = vadd.s32 %v8380_v9, %v10382_v51 }
 0x604   : >> { %v5549_v16 = vpop.eup %5548  ;;  %3740 = vst [vmem:[%s8570_s12 + $0x1c0] sm:$0xff] %v3675_v24  ;;  %v3678_v21 = vsel %vm3422_vm1, %v5547_v10, 0.0  ;;  %vm3426_vm12 = vcmp.lt.s32.totalorder %v3362_v14, 600 }
 0x605   : >> { %v5551_v12 = vpop.eup %5550  ;;  %v3789_v60 = vadd.f32 %v3788_v1, %v8891_v34  ;;  %3743 = vst [vmem:[%s8570_s12 + $0x1d8] sm:$0xff] %v3678_v21  ;;  %v3676_v61 = vsel %vm3420_vm2, %v5549_v16, 0.0  ;;  %vm3424_vm10 = vcmp.lt.s32.totalorder %v3360_v31, 600 }
 0x606   : >> { %3741 = vst [vmem:[%s8570_s12 + $0x1c8] sm:$0xff] %v3676_v61  ;;  %v3681_v18 = vsel %vm3425_vm3, %v5551_v12, 0.0 }
 0x607   : >> { %v5553_v25 = vpop.eup %5552  ;;  %v3790_v27 = vadd.f32 %v3789_v60, %v8792_v37  ;;  %3746 = vst [vmem:[%s8570_s12 + $0x1f0] sm:$0xff] %v3681_v18 }
 0x608   : >> { %v3679_v19 = vsel %vm3423_vm13, %v5553_v25, 0.0 }
 0x609   : >> { %v3791_v36 = vadd.f32 %v3790_v27, %v8858_v47  ;;  %3744 = vst [vmem:[%s8570_s12 + $0x1e0] sm:$0xff] %v3679_v19 }
 0x60a   : >> { %v5555_v34 = vpop.eup %5554 }
 0x60b   : >> { %v5557_v30 = vpop.eup %5556  ;;  %v3792_v5 = vadd.f32 %v3791_v36, %v8907_v35  ;;  %v3682_v8 = vsel %vm3426_vm12, %v5555_v34, 0.0 }
 0x60c   : >> { %3747 = vst [vmem:[%s8570_s12 + $0x1f8] sm:$0xff] %v3682_v8  ;;  %v3680_v9 = vsel %vm3424_vm10, %v5557_v30, 0.0 }
 0x60d   : >> { %v3793_v20 = vadd.f32 %v3792_v5, %v8920_v22  ;;  %3745 = vst [vmem:[%s8570_s12 + $0x1e8] sm:$0xff] %v3680_v9 }
 0x60f   : >> { %v3794_v6 = vadd.f32 %v3793_v20, %v8901_v62 }
 0x611   : >> { %v3795_v37 = vadd.f32 %v3794_v6, %v8914_v7 }
 0x613   : >> { %v3796_v55 = vadd.f32 %v3795_v37, %v8943_v32 }
 0x615   : >> { %v3797_v47 = vadd.f32 %v3796_v55, %v8959_v28 }
 0x617   : >> { %v3798_v33 = vadd.f32 %v3797_v47, %v8934_v15 }
 0x619   : >> { %v3799_v17 = vadd.f32 %v3798_v33, %v8950_v0  ;;  %v3748_v0 = vld [vmem:[#allocation6] sm:$0x1] }
 0x61b   : >> { %v3800_v35 = vadd.f32 %v3799_v17, %v8979_v11 }
 0x61d   : >> { %v3801_v13 = vadd.f32 %v3800_v35, %v3672_v63 }
 0x61f   : >> { %v3802_v56 = vadd.f32 %v3801_v13, %v8965_v39 }
 0x621   : >> { %v3803_v44 = vadd.f32 %v3802_v56, %v3674_v41 }
 0x623   : >> { %v3804_v22 = vadd.f32 %v3803_v44, %v3675_v24 }
 0x625   : >> { %v3805_v48 = vadd.f32 %v3804_v22, %v3676_v61 }
 0x627   : >> { %v3806_v49 = vadd.f32 %v3805_v48, %v3677_v38 }
 0x629   : >> { %v3807_v62 = vadd.f32 %v3806_v49, %v3678_v21 }
 0x62b   : >> { %v3808_v4 = vadd.f32 %v3807_v62, %v3679_v19 }
 0x62d   : >> { %v3809_v7 = vadd.f32 %v3808_v4, %v3680_v9 }
 0x62f   : >> { %v3810_v59 = vadd.f32 %v3809_v7, %v3681_v18 }
 0x631   : >> { %v3811_v32 = vadd.f32 %v3810_v59, %v3682_v8 }
 0x633   : >> { %v3812_v54 = vrot.slane %v3811_v32, 4 }
 0x635   : >> { %v3813_v28 = vadd.f32 %v3812_v54, %v3811_v32 }
 0x637   : >> { %v3814_v45 = vrot.slane %v3813_v28, 2 }
 0x639   : >> { %v3815_v15 = vadd.f32 %v3814_v45, %v3813_v28 }
 0x63b   : >> { %v3816_v53 = vrot.slane %v3815_v15, 1  ;;  %2906 = sbr.rel (!%p2904_p7) target bundleno = 1180 (0x49c), region = 118 }
 0x63d   : >> { %v3817_v43 = vadd.f32 %v3816_v53, %v3815_v15 }
 0x63f   : >> { %v3818_v11 = vadd.f32 %v3817_v43, %v3748_v0 }
 0x641   : >> { %3819 = vst [vmem:[#allocation6] sm:$0x1] %v3818_v11 }
 0x648   : > { %v3820_v39 = vld [vmem:[#allocation6] sm:$0x1] }
 0x649   : > { %5558 = vrcp.f32 %v3820_v39 }
 0x653   : > { %v9026_v41 = vpop.eup %5558 }
 0x654 LB: >> { %v10383_v29 = vld [vmem:[#allocation8_spill] sm:$0xff]  ;;  %s4794_s16 = sshll.u32 %s5582_s15, 9  ;;  %s3828_s15 = sadd.s32 1, %s5582_s15   ;;  %s5582_s15 = sphi %s9028_s15, %s3828_s15  }
 0x655   : >> { %v9035_v40 = vrot.slane %v9026_v41, %v10383_v29  ;;  %s9043_s19 = scalar_lea.vmem %s9737_s6, %s4794_s16  ;;  %s9378_s18 = scalar_lea.vmem [#allocation2], %s4794_s16 }
 0x656   : >> { %v3879_v50 = vld [vmem:[%s9043_s19 + $0x180] sm:$0xff]  ;;  %v3880_v52 = vld [vmem:[%s9043_s19 + $0x188] sm:$0xff]  ;;  %v3881_v26 = vld [vmem:[%s9043_s19 + $0x190] sm:$0xff]  ;;  %p3825_p8 = scmp.ge.s32.totalorder %s3828_s15, 2  }
 0x657   : >> { %v3847_v63 = vld [vmem:[%s9043_s19 + $0x80] sm:$0xff]  ;;  %v3949_v42 = vmul.f32 %v9035_v40, %v3879_v50  ;;  %v3950_v2 = vmul.f32 %v9035_v40, %v3880_v52  ;;  %v3848_v58 = vld [vmem:[%s9043_s19 + $0x88] sm:$0xff]  ;;  %v3882_v3 = vld [vmem:[%s9043_s19 + $0x198] sm:$0xff]  ;;  %v3951_v46 = vmul.f32 %v9035_v40, %v3881_v26 }
 0x658   : >> { %v3917_v38 = vmul.f32 %v9035_v40, %v3847_v63  ;;  %v3918_v57 = vmul.f32 %v9035_v40, %v3848_v58  ;;  %v3952_v10 = vmul.f32 %v9035_v40, %v3882_v3  ;;  %v3849_v1 = vld [vmem:[%s9043_s19 + $0x90] sm:$0xff]  ;;  %v3850_v24 = vld [vmem:[%s9043_s19 + $0x98] sm:$0xff]  ;;  %v3883_v16 = vld [vmem:[%s9043_s19 + $0x1a0] sm:$0xff] }
 0x659   : >> { %4014 = vst [vmem:[%s9043_s19 + $0x188] sm:$0xff] %v3950_v2  ;;  %v4085_v21 = vpack.c.bf16 %v3950_v2, %v3949_v42  ;;  %4013 = vst [vmem:[%s9043_s19 + $0x180] sm:$0xff] %v3949_v42  ;;  %v9064_v23 = vmul.f32 %v9035_v40, %v3849_v1  ;;  %v3920_v14 = vmul.f32 %v9035_v40, %v3850_v24  ;;  %v3884_v12 = vld [vmem:[%s9043_s19 + $0x1a8] sm:$0xff]  ;;  %v3851_v61 = vld [vmem:[%s9043_s19 + $0xa0] sm:$0xff] }
 0x65a   : >> { %3981 = vst [vmem:[%s9043_s19 + $0x80] sm:$0xff] %v3917_v38  ;;  %v9069_v60 = vmul.f32 %v9035_v40, %v3883_v16  ;;  %v3852_v51 = vld [vmem:[%s9043_s19 + $0xa8] sm:$0xff]  ;;  %3982 = vst [vmem:[%s9043_s19 + $0x88] sm:$0xff] %v3918_v57  ;;  %v4069_v31 = vpack.c.bf16 %v3918_v57, %v3917_v38  ;;  %v9077_v18 = vmul.f32 %v9035_v40, %v3884_v12  ;;  %v3885_v27 = vld [vmem:[%s9043_s19 + $0x1b0] sm:$0xff] }
 0x65b   : >> { %4015 = vst [vmem:[%s9043_s19 + $0x190] sm:$0xff] %v3951_v46  ;;  %4016 = vst [vmem:[%s9043_s19 + $0x198] sm:$0xff] %v3952_v10  ;;  %v9080_v25 = vmul.f32 %v9035_v40, %v3851_v61  ;;  %v3886_v19 = vld [vmem:[%s9043_s19 + $0x1b8] sm:$0xff]  ;;  %v3853_v36 = vld [vmem:[%s9043_s19 + $0xb0] sm:$0xff]  ;;  %4210 = vxpose.xlu1.c.b16.start [1/8] %v4085_v21, 128  ;;  %v4086_v34 = vpack.c.bf16 %v3952_v10, %v3951_v46  ;;  %v9091_v30 = vmul.f32 %v9035_v40, %v3852_v51 }
 0x65c   : >> { %3983 = vst [vmem:[%s9043_s19 + $0x90] sm:$0xff] %v9064_v23  ;;  %3984 = vst [vmem:[%s9043_s19 + $0x98] sm:$0xff] %v3920_v14  ;;  %v9094_v5 = vmul.f32 %v9035_v40, %v3885_v27  ;;  %v9097_v8 = vmul.f32 %v9035_v40, %v3886_v19  ;;  %v3854_v9 = vld [vmem:[%s9043_s19 + $0xb8] sm:$0xff]  ;;  %v3887_v20 = vld [vmem:[%s9043_s19 + $0x1c0] sm:$0xff]  ;;  %4178 = vxpose.xlu0.c.b16.start [1/8] %v4069_v31, 128  ;;  %v4070_v37 = vpack.c.bf16 %v3920_v14, %v9064_v23 }
 0x65d   : >> { %4017 = vst [vmem:[%s9043_s19 + $0x1a0] sm:$0xff] %v9069_v60  ;;  %v3888_v6 = vld [vmem:[%s9043_s19 + $0x1c8] sm:$0xff]  ;;  %4018 = vst [vmem:[%s9043_s19 + $0x1a8] sm:$0xff] %v9077_v18  ;;  %v9108_v55 = vmul.f32 %v9035_v40, %v3853_v36  ;;  %v9111_v47 = vmul.f32 %v9035_v40, %v3854_v9  ;;  %v9114_v33 = vmul.f32 %v9035_v40, %v3887_v20  ;;  %v3855_v17 = vld [vmem:[%s9043_s19 + $0xc0] sm:$0xff] }
 0x65e   : >> { %3985 = vst [vmem:[%s9043_s19 + $0xa0] sm:$0xff] %v9080_v25  ;;  %v3856_v35 = vld [vmem:[%s9043_s19 + $0xc8] sm:$0xff]  ;;  %v3889_v13 = vld [vmem:[%s9043_s19 + $0x1d0] sm:$0xff]  ;;  %3986 = vst [vmem:[%s9043_s19 + $0xa8] sm:$0xff] %v9091_v30  ;;  %v9126_v56 = vmul.f32 %v9035_v40, %v3888_v6  ;;  %v9129_v44 = vmul.f32 %v9035_v40, %v3855_v17  ;;  %v4087_v28 = vpack.c.bf16 %v9077_v18, %v9069_v60 }
 0x65f   : >> { %4019 = vst [vmem:[%s9043_s19 + $0x1b0] sm:$0xff] %v9094_v5  ;;  %4020 = vst [vmem:[%s9043_s19 + $0x1b8] sm:$0xff] %v9097_v8  ;;  %v3890_v22 = vld [vmem:[%s9043_s19 + $0x1d8] sm:$0xff]  ;;  %v3857_v48 = vld [vmem:[%s9043_s19 + $0xd0] sm:$0xff]  ;;  %v9141_v62 = vmul.f32 %v9035_v40, %v3856_v35  ;;  %v9144_v4 = vmul.f32 %v9035_v40, %v3889_v13  ;;  %4211 = vxpose.xlu1.c.b16.cont [2/8] %v4086_v34, 128  ;;  %v4071_v39 = vpack.c.bf16 %v9091_v30, %v9080_v25 }
 0x660   : >> { %v3858_v49 = vld [vmem:[%s9043_s19 + $0xd8] sm:$0xff]  ;;  %3987 = vst [vmem:[%s9043_s19 + $0xb0] sm:$0xff] %v9108_v55  ;;  %3988 = vst [vmem:[%s9043_s19 + $0xb8] sm:$0xff] %v9111_v47  ;;  %v9147_v7 = vmul.f32 %v9035_v40, %v3890_v22  ;;  %v3891_v59 = vld [vmem:[%s9043_s19 + $0x1e0] sm:$0xff]  ;;  %v9159_v45 = vmul.f32 %v9035_v40, %v3857_v48  ;;  %4179 = vxpose.xlu0.c.b16.cont [2/8] %v4070_v37, 128  ;;  %v4088_v23 = vpack.c.bf16 %v9097_v8, %v9094_v5 }
 0x661   : >> { %4021 = vst [vmem:[%s9043_s19 + $0x1c0] sm:$0xff] %v9114_v33  ;;  %v3892_v32 = vld [vmem:[%s9043_s19 + $0x1e8] sm:$0xff]  ;;  %v3859_v54 = vld [vmem:[%s9043_s19 + $0xe0] sm:$0xff]  ;;  %4022 = vst [vmem:[%s9043_s19 + $0x1c8] sm:$0xff] %v9126_v56  ;;  %v9162_v15 = vmul.f32 %v9035_v40, %v3858_v49  ;;  %v9165_v53 = vmul.f32 %v9035_v40, %v3891_v59  ;;  %v4072_v31 = vpack.c.bf16 %v9111_v47, %v9108_v55 }
 0x662   : >> { %3989 = vst [vmem:[%s9043_s19 + $0xc0] sm:$0xff] %v9129_v44  ;;  %v3860_v0 = vld [vmem:[%s9043_s19 + $0xe8] sm:$0xff]  ;;  %v3893_v43 = vld [vmem:[%s9043_s19 + $0x1f0] sm:$0xff]  ;;  %v3894_v11 = vld [vmem:[%s9043_s19 + $0x1f8] sm:$0xff]  ;;  %v9179_v29 = vmul.f32 %v9035_v40, %v3892_v32  ;;  %v9182_v50 = vmul.f32 %v9035_v40, %v3859_v54  ;;  %v4089_v13 = vpack.c.bf16 %v9126_v56, %v9114_v33  ;;  %v4073_v32 = vpack.c.bf16 %v9141_v62, %v9129_v44 }
 0x663   : >> { %3990 = vst [vmem:[%s9043_s19 + $0xc8] sm:$0xff] %v9141_v62  ;;  %4023 = vst [vmem:[%s9043_s19 + $0x1d0] sm:$0xff] %v9144_v4  ;;  %v3861_v52 = vld [vmem:[%s9043_s19 + $0xf0] sm:$0xff]  ;;  %v3862_v63 = vld [vmem:[%s9043_s19 + $0xf8] sm:$0xff]  ;;  %v9194_v2 = vmul.f32 %v9035_v40, %v3860_v0  ;;  %v9197_v58 = vmul.f32 %v9035_v40, %v3893_v43  ;;  %v9200_v38 = vmul.f32 %v9035_v40, %v3894_v11  ;;  %4212 = vxpose.xlu1.c.b16.cont [3/8] %v4087_v28, 128 }
 0x664   : >> { %4024 = vst [vmem:[%s9043_s19 + $0x1d8] sm:$0xff] %v9147_v7  ;;  %v3863_v42 = vld [vmem:[%s9043_s19 + $0x100] sm:$0xff]  ;;  %3991 = vst [vmem:[%s9043_s19 + $0xd0] sm:$0xff] %v9159_v45  ;;  %v3864_v26 = vld [vmem:[%s9043_s19 + $0x108] sm:$0xff]  ;;  %v9210_v46 = vmul.f32 %v9035_v40, %v3861_v52  ;;  %v9213_v10 = vmul.f32 %v9035_v40, %v3862_v63  ;;  %4180 = vxpose.xlu0.c.b16.cont [3/8] %v4071_v39, 128 }
 0x665   : >> { %3992 = vst [vmem:[%s9043_s19 + $0xd8] sm:$0xff] %v9162_v15  ;;  %4025 = vst [vmem:[%s9043_s19 + $0x1e0] sm:$0xff] %v9165_v53  ;;  %v3831_v3 = vld [vmem:[%s9043_s19] sm:$0xff]  ;;  %v3832_v57 = vld [vmem:[%s9043_s19 + $0x8] sm:$0xff]  ;;  %v9216_v1 = vmul.f32 %v9035_v40, %v3863_v42  ;;  %v9230_v14 = vmul.f32 %v9035_v40, %v3864_v26 }
 0x666   : >> { %4026 = vst [vmem:[%s9043_s19 + $0x1e8] sm:$0xff] %v9179_v29  ;;  %3993 = vst [vmem:[%s9043_s19 + $0xe0] sm:$0xff] %v9182_v50  ;;  %v3865_v24 = vld [vmem:[%s9043_s19 + $0x110] sm:$0xff]  ;;  %v3866_v16 = vld [vmem:[%s9043_s19 + $0x118] sm:$0xff]  ;;  %v9233_v12 = vmul.f32 %v9035_v40, %v3831_v3  ;;  %v9247_v18 = vmul.f32 %v9035_v40, %v3832_v57 }
 0x667   : >> { %v3833_v21 = vld [vmem:[%s9043_s19 + $0x10] sm:$0xff]  ;;  %3994 = vst [vmem:[%s9043_s19 + $0xe8] sm:$0xff] %v9194_v2  ;;  %4027 = vst [vmem:[%s9043_s19 + $0x1f0] sm:$0xff] %v9197_v58  ;;  %v3834_v60 = vld [vmem:[%s9043_s19 + $0x18] sm:$0xff]  ;;  %v9250_v25 = vmul.f32 %v9035_v40, %v3865_v24  ;;  %v9253_v27 = vmul.f32 %v9035_v40, %v3866_v16  ;;  %4213 = vxpose.xlu1.c.b16.cont [4/8] %v4088_v23, 128  ;;  %v4090_v23 = vpack.c.bf16 %v9147_v7, %v9144_v4 }
 0x668   : >> { %4028 = vst [vmem:[%s9043_s19 + $0x1f8] sm:$0xff] %v9200_v38  ;;  %v3867_v61 = vld [vmem:[%s9043_s19 + $0x120] sm:$0xff]  ;;  %v3868_v51 = vld [vmem:[%s9043_s19 + $0x128] sm:$0xff]  ;;  %3995 = vst [vmem:[%s9043_s19 + $0xf0] sm:$0xff] %v9210_v46  ;;  %v9263_v30 = vmul.f32 %v9035_v40, %v3833_v21  ;;  %v9266_v5 = vmul.f32 %v9035_v40, %v3834_v60  ;;  %4181 = vxpose.xlu0.c.b16.cont [4/8] %v4072_v31, 128 }
 0x669   : >> { %3996 = vst [vmem:[%s9043_s19 + $0xf8] sm:$0xff] %v9213_v10  ;;  %3997 = vst [vmem:[%s9043_s19 + $0x100] sm:$0xff] %v9216_v1  ;;  %v3835_v19 = vld [vmem:[%s9043_s19 + $0x20] sm:$0xff]  ;;  %v3836_v36 = vld [vmem:[%s9043_s19 + $0x28] sm:$0xff]  ;;  %v9269_v8 = vmul.f32 %v9035_v40, %v3867_v61  ;;  %v9281_v37 = vmul.f32 %v9035_v40, %v3868_v51 }
 0x66a   : >> { %v3869_v34 = vld [vmem:[%s9043_s19 + $0x130] sm:$0xff]  ;;  %3998 = vst [vmem:[%s9043_s19 + $0x108] sm:$0xff] %v9230_v14  ;;  %3965 = vst [vmem:[%s9043_s19] sm:$0xff] %v9233_v12  ;;  %v3870_v9 = vld [vmem:[%s9043_s19 + $0x138] sm:$0xff]  ;;  %v9284_v55 = vmul.f32 %v9035_v40, %v3835_v19  ;;  %v9298_v22 = vmul.f32 %v9035_v40, %v3836_v36  ;;  %v4074_v19 = vpack.c.bf16 %v9162_v15, %v9159_v45 }
 0x66b   : >> { %v3837_v20 = vld [vmem:[%s9043_s19 + $0x30] sm:$0xff]  ;;  %v3838_v6 = vld [vmem:[%s9043_s19 + $0x38] sm:$0xff]  ;;  %3966 = vst [vmem:[%s9043_s19 + $0x8] sm:$0xff] %v9247_v18  ;;  %3999 = vst [vmem:[%s9043_s19 + $0x110] sm:$0xff] %v9250_v25  ;;  %v9301_v48 = vmul.f32 %v9035_v40, %v3869_v34  ;;  %v9304_v49 = vmul.f32 %v9035_v40, %v3870_v9  ;;  %4214 = vxpose.xlu1.c.b16.cont [5/8] %v4089_v13, 128 }
 0x66c   : >> { %4000 = vst [vmem:[%s9043_s19 + $0x118] sm:$0xff] %v9253_v27  ;;  %v3871_v47 = vld [vmem:[%s9043_s19 + $0x140] sm:$0xff]  ;;  %v3872_v17 = vld [vmem:[%s9043_s19 + $0x148] sm:$0xff]  ;;  %3967 = vst [vmem:[%s9043_s19 + $0x10] sm:$0xff] %v9263_v30  ;;  %v9316_v54 = vmul.f32 %v9035_v40, %v3837_v20  ;;  %v9319_v28 = vmul.f32 %v9035_v40, %v3838_v6  ;;  %4182 = vxpose.xlu0.c.b16.cont [5/8] %v4073_v32, 128  ;;  %v4092_v32 = vpack.c.bf16 %v9200_v38, %v9197_v58 }
 0x66d   : >> { %v3839_v35 = vld [vmem:[%s9043_s19 + $0x40] sm:$0xff]  ;;  %3968 = vst [vmem:[%s9043_s19 + $0x18] sm:$0xff] %v9266_v5  ;;  %4001 = vst [vmem:[%s9043_s19 + $0x120] sm:$0xff] %v9269_v8  ;;  %v3840_v33 = vld [vmem:[%s9043_s19 + $0x48] sm:$0xff]  ;;  %v9322_v0 = vmul.f32 %v9035_v40, %v3871_v47  ;;  %v9334_v62 = vmul.f32 %v9035_v40, %v3872_v17  ;;  %v4077_v58 = vpack.c.bf16 %v9230_v14, %v9216_v1 }
 0x66e   : >> { %v3873_v56 = vld [vmem:[%s9043_s19 + $0x150] sm:$0xff]  ;;  %v3874_v59 = vld [vmem:[%s9043_s19 + $0x158] sm:$0xff]  ;;  %4002 = vst [vmem:[%s9043_s19 + $0x128] sm:$0xff] %v9281_v37  ;;  %3969 = vst [vmem:[%s9043_s19 + $0x20] sm:$0xff] %v9284_v55  ;;  %v9337_v39 = vmul.f32 %v9035_v40, %v3839_v35  ;;  %v9349_v26 = vmul.f32 %v9035_v40, %v3840_v33  ;;  %v4091_v33 = vpack.c.bf16 %v9179_v29, %v9165_v53 }
 0x66f   : >> { %v3841_v43 = vld [vmem:[%s9043_s19 + $0x50] sm:$0xff]  ;;  %v3842_v11 = vld [vmem:[%s9043_s19 + $0x58] sm:$0xff]  ;;  %v3875_v44 = vld [vmem:[%s9043_s19 + $0x160] sm:$0xff]  ;;  %3970 = vst [vmem:[%s9043_s19 + $0x28] sm:$0xff] %v9298_v22  ;;  %v9352_v3 = vmul.f32 %v9035_v40, %v3873_v56  ;;  %v9355_v57 = vmul.f32 %v9035_v40, %v3874_v59  ;;  %4215 = vxpose.xlu1.c.b16.cont [6/8] %v4090_v23, 128  ;;  %v4075_v56 = vpack.c.bf16 %v9194_v2, %v9182_v50 }
 0x670   : >> { %4003 = vst [vmem:[%s9043_s19 + $0x130] sm:$0xff] %v9301_v48  ;;  %4004 = vst [vmem:[%s9043_s19 + $0x138] sm:$0xff] %v9304_v49  ;;  %v3876_v52 = vld [vmem:[%s9043_s19 + $0x168] sm:$0xff]  ;;  %v3843_v63 = vld [vmem:[%s9043_s19 + $0x60] sm:$0xff]  ;;  %v9367_v60 = vmul.f32 %v9035_v40, %v3841_v43  ;;  %v9370_v61 = vmul.f32 %v9035_v40, %v3842_v11  ;;  %v9373_v51 = vmul.f32 %v9035_v40, %v3875_v44  ;;  %4183 = vxpose.xlu0.c.b16.cont [6/8] %v4074_v19, 128 }
 0x671   : >> { %v3844_v42 = vld [vmem:[%s9043_s19 + $0x68] sm:$0xff]  ;;  %3971 = vst [vmem:[%s9043_s19 + $0x30] sm:$0xff] %v9316_v54  ;;  %3972 = vst [vmem:[%s9043_s19 + $0x38] sm:$0xff] %v9319_v28  ;;  %v3877_v24 = vld [vmem:[%s9043_s19 + $0x170] sm:$0xff]  ;;  %v9391_v36 = vmul.f32 %v9035_v40, %v3876_v52  ;;  %v9394_v34 = vmul.f32 %v9035_v40, %v3843_v63  ;;  %v4076_v2 = vpack.c.bf16 %v9213_v10, %v9210_v46 }
 0x672   : >> { %4005 = vst [vmem:[%s9043_s19 + $0x140] sm:$0xff] %v9322_v0  ;;  %v3878_v16 = vld [vmem:[%s9043_s19 + $0x178] sm:$0xff]  ;;  %v3845_v21 = vld [vmem:[%s9043_s19 + $0x70] sm:$0xff]  ;;  %4006 = vst [vmem:[%s9043_s19 + $0x148] sm:$0xff] %v9334_v62  ;;  %v9405_v45 = vmul.f32 %v9035_v40, %v3844_v42  ;;  %v9408_v15 = vmul.f32 %v9035_v40, %v3877_v24  ;;  %v4061_v46 = vpack.c.bf16 %v9247_v18, %v9233_v12 }
 0x673   : >> { %3973 = vst [vmem:[%s9043_s19 + $0x40] sm:$0xff] %v9337_v39  ;;  %v3846_v31 = vld [vmem:[%s9043_s19 + $0x78] sm:$0xff]  ;;  %v4099_v4 = vld [vmem:[%s9378_s18 + $0x8] sm:$0xff]  ;;  %3974 = vst [vmem:[%s9043_s19 + $0x48] sm:$0xff] %v9349_v26  ;;  %v9411_v6 = vmul.f32 %v9035_v40, %v3878_v16  ;;  %v9419_v17 = vmul.f32 %v9035_v40, %v3845_v21  ;;  %4216 = vxpose.xlu1.c.b16.cont [7/8] %v4091_v33, 128  ;;  %v4078_v1 = vpack.c.bf16 %v9253_v27, %v9250_v25 }
 0x674   : >> { %v4131_v7 = vld [vmem:[%s9378_s18 + $0x108] sm:$0xff]  ;;  %4007 = vst [vmem:[%s9043_s19 + $0x150] sm:$0xff] %v9352_v3  ;;  %4008 = vst [vmem:[%s9043_s19 + $0x158] sm:$0xff] %v9355_v57  ;;  %v4098_v9 = vld [vmem:[%s9378_s18] sm:$0xff]  ;;  %4226 = vmatprep.subr.bf16.mxu1 %v4099_v4  ;;  %v9422_v35 = vmul.f32 %v9035_v40, %v3846_v31  ;;  %4184 = vxpose.xlu0.c.b16.cont [7/8] %v4075_v56, 128  ;;  %v4062_v12 = vpack.c.bf16 %v9266_v5, %v9263_v30 }
 0x675   : >> { %v4130_v20 = vld [vmem:[%s9378_s18 + $0x100] sm:$0xff]  ;;  %3975 = vst [vmem:[%s9043_s19 + $0x50] sm:$0xff] %v9367_v60  ;;  %3976 = vst [vmem:[%s9043_s19 + $0x58] sm:$0xff] %v9370_v61  ;;  %v4101_v47 = vld [vmem:[%s9378_s18 + $0x18] sm:$0xff]  ;;  %4339 = vmatprep.subr.bf16.mxu0 %v4131_v7  ;;  %4227 = vmatpush1.bf16.msra.mxu1 %v4098_v9  ;;  %v4079_v25 = vpack.c.bf16 %v9281_v37, %v9269_v8  ;;  %v4063_v30 = vpack.c.bf16 %v9298_v22, %v9284_v55 }
 0x676   : >> { %4009 = vst [vmem:[%s9043_s19 + $0x160] sm:$0xff] %v9373_v51  ;;  %4010 = vst [vmem:[%s9043_s19 + $0x168] sm:$0xff] %v9391_v36  ;;  %v4133_v13 = vld [vmem:[%s9378_s18 + $0x118] sm:$0xff]  ;;  %4340 = vmatpush1.bf16.msra.mxu0 %v4130_v20  ;;  %v4100_v40 = vld [vmem:[%s9378_s18 + $0x10] sm:$0xff]  ;;  %4228 = vmatprep.subr.bf16.mxu1 %v4101_v47  ;;  %v4080_v8 = vpack.c.bf16 %v9304_v49, %v9301_v48  ;;  %v4064_v55 = vpack.c.bf16 %v9319_v28, %v9316_v54 }
 0x677   : >> { %3977 = vst [vmem:[%s9043_s19 + $0x60] sm:$0xff] %v9394_v34  ;;  %3978 = vst [vmem:[%s9043_s19 + $0x68] sm:$0xff] %v9405_v45  ;;  %v4132_v53 = vld [vmem:[%s9378_s18 + $0x110] sm:$0xff]  ;;  %4341 = vmatprep.subr.bf16.mxu0 %v4133_v13  ;;  %v4103_v29 = vld [vmem:[%s9378_s18 + $0x28] sm:$0xff]  ;;  %4217 = vxpose.xlu1.c.b16.end [8/8] %v4092_v32, 128  ;;  %v4081_v48 = vpack.c.bf16 %v9334_v62, %v9322_v0  ;;  %v4065_v54 = vpack.c.bf16 %v9349_v26, %v9337_v39 }
 0x678   : >> { %4011 = vst [vmem:[%s9043_s19 + $0x170] sm:$0xff] %v9408_v15  ;;  %4012 = vst [vmem:[%s9043_s19 + $0x178] sm:$0xff] %v9411_v6  ;;  %v4135_v59 = vld [vmem:[%s9378_s18 + $0x128] sm:$0xff]  ;;  %v4102_v50 = vld [vmem:[%s9378_s18 + $0x20] sm:$0xff]  ;;  %4185 = vxpose.xlu0.c.b16.end [8/8] %v4076_v2, 128  ;;  %v4082_v0 = vpack.c.bf16 %v9355_v57, %v9352_v3  ;;  %v4066_v39 = vpack.c.bf16 %v9370_v61, %v9367_v60  ;;  %v4083_v3 = vpack.c.bf16 %v9391_v36, %v9373_v51 }
 0x679   : >> { %3979 = vst [vmem:[%s9043_s19 + $0x70] sm:$0xff] %v9419_v17  ;;  %3980 = vst [vmem:[%s9043_s19 + $0x78] sm:$0xff] %v9422_v35  ;;  %4229 = vmatpush1.bf16.msra.mxu1 %v4100_v40  ;;  %v4134_v43 = vld [vmem:[%s9378_s18 + $0x120] sm:$0xff]  ;;  %v4105_v11 = vld [vmem:[%s9378_s18 + $0x38] sm:$0xff]  ;;  %v4067_v60 = vpack.c.bf16 %v9405_v45, %v9394_v34  ;;  %v4084_v51 = vpack.c.bf16 %v9411_v6, %v9408_v15  ;;  %v4068_v34 = vpack.c.bf16 %v9422_v35, %v9419_v17 }
 0x67a   : >> { %4342 = vmatpush1.bf16.msra.mxu0 %v4132_v53  ;;  %4230 = vmatprep.subr.bf16.mxu1 %v4103_v29  ;;  %v4137_v44 = vld [vmem:[%s9378_s18 + $0x138] sm:$0xff]  ;;  %v4104_v38 = vld [vmem:[%s9378_s18 + $0x30] sm:$0xff]  ;;  %v4107_v52 = vld [vmem:[%s9378_s18 + $0x48] sm:$0xff] }
 0x67b   : >> { %4343 = vmatprep.subr.bf16.mxu0 %v4135_v59  ;;  %v4136_v10 = vld [vmem:[%s9378_s18 + $0x130] sm:$0xff]  ;;  %v4139_v63 = vld [vmem:[%s9378_s18 + $0x148] sm:$0xff]  ;;  %4194 = vxpose.xlu1.c.b16.start [1/8] %v4077_v58, 128  ;;  %v4106_v14 = vld [vmem:[%s9378_s18 + $0x40] sm:$0xff] }
 0x67c   : >> { %4162 = vxpose.xlu0.c.b16.start [1/8] %v4061_v46, 128  ;;  %v4138_v18 = vld [vmem:[%s9378_s18 + $0x140] sm:$0xff]  ;;  %v4109_v42 = vld [vmem:[%s9378_s18 + $0x58] sm:$0xff]  ;;  %v4108_v27 = vld [vmem:[%s9378_s18 + $0x50] sm:$0xff] }
 0x67d   : >> { %4231 = vmatpush1.bf16.msra.mxu1 %v4102_v50  ;;  %v4141_v24 = vld [vmem:[%s9378_s18 + $0x158] sm:$0xff]  ;;  %v4140_v5 = vld [vmem:[%s9378_s18 + $0x150] sm:$0xff]  ;;  %v4111_v16 = vld [vmem:[%s9378_s18 + $0x68] sm:$0xff] }
 0x67e   : >> { %4344 = vmatpush1.bf16.msra.mxu0 %v4134_v43  ;;  %4232 = vmatprep.subr.bf16.mxu1 %v4105_v11  ;;  %v4143_v21 = vld [vmem:[%s9378_s18 + $0x168] sm:$0xff]  ;;  %v4110_v37 = vld [vmem:[%s9378_s18 + $0x60] sm:$0xff]  ;;  %v4113_v23 = vld [vmem:[%s9378_s18 + $0x78] sm:$0xff] }
 0x67f   : >> { %4345 = vmatprep.subr.bf16.mxu0 %v4137_v44  ;;  %4195 = vxpose.xlu1.c.b16.cont [2/8] %v4078_v1, 128  ;;  %v4142_v22 = vld [vmem:[%s9378_s18 + $0x160] sm:$0xff]  ;;  %v4145_v31 = vld [vmem:[%s9378_s18 + $0x178] sm:$0xff]  ;;  %v4112_v49 = vld [vmem:[%s9378_s18 + $0x70] sm:$0xff] }
 0x680   : >> { %4163 = vxpose.xlu0.c.b16.cont [2/8] %v4062_v12, 128  ;;  %v4144_v28 = vld [vmem:[%s9378_s18 + $0x170] sm:$0xff]  ;;  %v4115_v4 = vld [vmem:[%s9378_s18 + $0x88] sm:$0xff]  ;;  %v4114_v62 = vld [vmem:[%s9378_s18 + $0x80] sm:$0xff] }
 0x681   : >> { %4233 = vmatpush1.bf16.msra.mxu1 %v4104_v38  ;;  %v4147_v7 = vld [vmem:[%s9378_s18 + $0x188] sm:$0xff]  ;;  %v4146_v26 = vld [vmem:[%s9378_s18 + $0x180] sm:$0xff]  ;;  %v4117_v19 = vld [vmem:[%s9378_s18 + $0x98] sm:$0xff] }
 0x682   : >> { %4346 = vmatpush1.bf16.msra.mxu0 %v4136_v10  ;;  %4234 = vmatprep.subr.bf16.mxu1 %v4107_v52  ;;  %v4149_v9 = vld [vmem:[%s9378_s18 + $0x198] sm:$0xff]  ;;  %v4116_v57 = vld [vmem:[%s9378_s18 + $0x90] sm:$0xff]  ;;  %v4119_v20 = vld [vmem:[%s9378_s18 + $0xa8] sm:$0xff] }
 0x683   : >> { %4347 = vmatprep.subr.bf16.mxu0 %v4139_v63  ;;  %4196 = vxpose.xlu1.c.b16.cont [3/8] %v4079_v25, 128  ;;  %v4148_v61 = vld [vmem:[%s9378_s18 + $0x190] sm:$0xff]  ;;  %v4151_v47 = vld [vmem:[%s9378_s18 + $0x1a8] sm:$0xff]  ;;  %v4118_v36 = vld [vmem:[%s9378_s18 + $0xa0] sm:$0xff] }
 0x684   : >> { %4164 = vxpose.xlu0.c.b16.cont [3/8] %v4063_v30, 128  ;;  %v4150_v45 = vld [vmem:[%s9378_s18 + $0x1a0] sm:$0xff]  ;;  %v4121_v13 = vld [vmem:[%s9378_s18 + $0xb8] sm:$0xff]  ;;  %v4120_v15 = vld [vmem:[%s9378_s18 + $0xb0] sm:$0xff] }
 0x685   : >> { %4235 = vmatpush1.bf16.msra.mxu1 %v4106_v14  ;;  %v4153_v33 = vld [vmem:[%s9378_s18 + $0x1b8] sm:$0xff]  ;;  %v4152_v6 = vld [vmem:[%s9378_s18 + $0x1b0] sm:$0xff]  ;;  %v4123_v40 = vld [vmem:[%s9378_s18 + $0xc8] sm:$0xff] }
 0x686   : >> { %4348 = vmatpush1.bf16.msra.mxu0 %v4138_v18  ;;  %4236 = vmatprep.subr.bf16.mxu1 %v4109_v42  ;;  %v4155_v17 = vld [vmem:[%s9378_s18 + $0x1c8] sm:$0xff]  ;;  %v4122_v35 = vld [vmem:[%s9378_s18 + $0xc0] sm:$0xff]  ;;  %v4125_v53 = vld [vmem:[%s9378_s18 + $0xd8] sm:$0xff] }
 0x687   : >> { %4349 = vmatprep.subr.bf16.mxu0 %v4141_v24  ;;  %4197 = vxpose.xlu1.c.b16.cont [4/8] %v4080_v8, 128  ;;  %v4154_v56 = vld [vmem:[%s9378_s18 + $0x1c0] sm:$0xff]  ;;  %v4157_v29 = vld [vmem:[%s9378_s18 + $0x1d8] sm:$0xff]  ;;  %v4124_v59 = vld [vmem:[%s9378_s18 + $0xd0] sm:$0xff] }
 0x688   : >> { %4165 = vxpose.xlu0.c.b16.cont [4/8] %v4064_v55, 128  ;;  %v4156_v32 = vld [vmem:[%s9378_s18 + $0x1d0] sm:$0xff]  ;;  %v4127_v50 = vld [vmem:[%s9378_s18 + $0xe8] sm:$0xff]  ;;  %v4126_v43 = vld [vmem:[%s9378_s18 + $0xe0] sm:$0xff] }
 0x689   : >> { %4237 = vmatpush1.bf16.msra.mxu1 %v4108_v27  ;;  %v4159_v2 = vld [vmem:[%s9378_s18 + $0x1e8] sm:$0xff]  ;;  %v4158_v11 = vld [vmem:[%s9378_s18 + $0x1e0] sm:$0xff]  ;;  %v4129_v44 = vld [vmem:[%s9378_s18 + $0xf8] sm:$0xff] }
 0x68a   : >> { %4350 = vmatpush1.bf16.msra.mxu0 %v4140_v5  ;;  %4238 = vmatprep.subr.bf16.mxu1 %v4111_v16  ;;  %v4161_v58 = vld [vmem:[%s9378_s18 + $0x1f8] sm:$0xff]  ;;  %v4128_v38 = vld [vmem:[%s9378_s18 + $0xf0] sm:$0xff] }
 0x68b   : >> { %4351 = vmatprep.subr.bf16.mxu0 %v4143_v21  ;;  %4198 = vxpose.xlu1.c.b16.cont [5/8] %v4081_v48, 128  ;;  %v4160_v46 = vld [vmem:[%s9378_s18 + $0x1f0] sm:$0xff] }
 0x68c   : >> { %4166 = vxpose.xlu0.c.b16.cont [5/8] %v4065_v54, 128 }
 0x68d   : >> { %4239 = vmatpush1.bf16.msra.mxu1 %v4110_v37 }
 0x68e   : >> { %4352 = vmatpush1.bf16.msra.mxu0 %v4142_v22  ;;  %4240 = vmatprep.subr.bf16.mxu1 %v4113_v23 }
 0x68f   : >> { %4353 = vmatprep.subr.bf16.mxu0 %v4145_v31  ;;  %4199 = vxpose.xlu1.c.b16.cont [6/8] %v4082_v0, 128 }
 0x690   : >> { %4167 = vxpose.xlu0.c.b16.cont [6/8] %v4066_v39, 128 }
 0x691   : >> { %4241 = vmatpush1.bf16.msra.mxu1 %v4112_v49 }
 0x692   : >> { %4354 = vmatpush1.bf16.msra.mxu0 %v4144_v28  ;;  %4242 = vmatprep.subr.bf16.mxu1 %v4115_v4 }
 0x693   : >> { %4355 = vmatprep.subr.bf16.mxu0 %v4147_v7  ;;  %4200 = vxpose.xlu1.c.b16.cont [7/8] %v4083_v3, 128 }
 0x694   : >> { %4168 = vxpose.xlu0.c.b16.cont [7/8] %v4067_v60, 128 }
 0x695   : >> { %4243 = vmatpush1.bf16.msra.mxu1 %v4114_v62 }
 0x696   : >> { %4356 = vmatpush1.bf16.msra.mxu0 %v4146_v26  ;;  %4244 = vmatprep.subr.bf16.mxu1 %v4117_v19 }
 0x697   : >> { %4357 = vmatprep.subr.bf16.mxu0 %v4149_v9  ;;  %4201 = vxpose.xlu1.c.b16.end [8/8] %v4084_v51, 128 }
 0x698   : >> { %4169 = vxpose.xlu0.c.b16.end [8/8] %v4068_v34, 128 }
 0x699   : >> { %4245 = vmatpush1.bf16.msra.mxu1 %v4116_v57  ;;  %v4029_v57 = vld [vmem:[%s9738_s7] sm:$0xff] }
 0x69a   : >> { %4358 = vmatpush1.bf16.msra.mxu0 %v4148_v61  ;;  %4246 = vmatprep.subr.bf16.mxu1 %v4119_v20 }
 0x69b   : >> { %4359 = vmatprep.subr.bf16.mxu0 %v4151_v47  ;;  %v4030_v47 = vld [vmem:[%s9738_s7 + $0x8] sm:$0xff] }
 0x69d   : >> { %4247 = vmatpush1.bf16.msra.mxu1 %v4118_v36 }
 0x69e   : >> { %4360 = vmatpush1.bf16.msra.mxu0 %v4150_v45  ;;  %4248 = vmatprep.subr.bf16.mxu1 %v4121_v13  ;;  %v4031_v45 = vld [vmem:[%s9738_s7 + $0x10] sm:$0xff] }
 0x69f   : >> { %4361 = vmatprep.subr.bf16.mxu0 %v4153_v33 }
 0x6a1   : >> { %4249 = vmatpush1.bf16.msra.mxu1 %v4120_v15 }
 0x6a2   : >> { %4362 = vmatpush1.bf16.msra.mxu0 %v4152_v6  ;;  %4250 = vmatprep.subr.bf16.mxu1 %v4123_v40  ;;  %v4032_v40 = vld [vmem:[%s9738_s7 + $0x18] sm:$0xff] }
 0x6a3   : >> { %4363 = vmatprep.subr.bf16.mxu0 %v4155_v17 }
 0x6a5   : >> { %4251 = vmatpush1.bf16.msra.mxu1 %v4122_v35 }
 0x6a6   : >> { %4364 = vmatpush1.bf16.msra.mxu0 %v4154_v56  ;;  %4252 = vmatprep.subr.bf16.mxu1 %v4125_v53 }
 0x6a7   : >> { %4365 = vmatprep.subr.bf16.mxu0 %v4157_v29 }
 0x6a9   : >> { %4253 = vmatpush1.bf16.msra.mxu1 %v4124_v59 }
 0x6aa   : >> { %4366 = vmatpush1.bf16.msra.mxu0 %v4156_v32  ;;  %4254 = vmatprep.subr.bf16.mxu1 %v4127_v50  ;;  %v4033_v32 = vld [vmem:[%s9738_s7 + $0x20] sm:$0xff] }
 0x6ab   : >> { %4367 = vmatprep.subr.bf16.mxu0 %v4159_v2 }
 0x6ad   : >> { %4255 = vmatpush1.bf16.msra.mxu1 %v4126_v43 }
 0x6ae   : >> { %4368 = vmatpush1.bf16.msra.mxu0 %v4158_v11  ;;  %4256 = vmatprep.subr.bf16.mxu1 %v4129_v44  ;;  %v4034_v11 = vld [vmem:[%s9738_s7 + $0x28] sm:$0xff] }
 0x6af   : >> { %4369 = vmatprep.subr.bf16.mxu0 %v4161_v58 }
 0x6b1   : >> { %4257 = vmatpush1.bf16.msra.mxu1 %v4128_v38 }
 0x6b2   : >> { %4370 = vmatpush1.bf16.msra.mxu0 %v4160_v46  ;;  %v4035_v46 = vld [vmem:[%s9738_s7 + $0x30] sm:$0xff] }
 0x6c1   : >> { %v4218_v10 = vpop.trf.xlu1 }
 0x6c2   : >> { %v4186_v52 = vpop.trf.xlu0  ;;  %4371 = vmatprep.mubr.bf16.mxu0 %v4218_v10 }
 0x6c3   : >> { %4258 = vmatprep.mubr.bf16.mxu1 %v4186_v52 }
 0x6c5   : >> { %v4219_v63 = vpop.trf.xlu1 }
 0x6c6   : >> { %v4187_v1 = vpop.trf.xlu0 }
 0x6c9   : >> { %v4220_v14 = vpop.trf.xlu1 }
 0x6ca   : >> { %v4188_v12 = vpop.trf.xlu0 }
 0x6cd   : >> { %v4221_v18 = vpop.trf.xlu1 }
 0x6ce   : >> { %v4189_v42 = vpop.trf.xlu0 }
 0x6d1   : >> { %v4222_v24 = vpop.trf.xlu1 }
 0x6d2   : >> { %v4190_v25 = vpop.trf.xlu0 }
 0x6d5   : >> { %v4223_v27 = vpop.trf.xlu1 }
 0x6d6   : >> { %v4191_v30 = vpop.trf.xlu0 }
 0x6d9   : >> { %v4224_v5 = vpop.trf.xlu1 }
 0x6da   : >> { %v4192_v16 = vpop.trf.xlu0 }
 0x6dd   : >> { %v4225_v21 = vpop.trf.xlu1 }
 0x6de   : >> { %v4193_v8 = vpop.trf.xlu0 }
 0x6e1   : >> { %v4202_v37 = vpop.trf.xlu1 }
 0x6e2   : >> { %v4170_v55 = vpop.trf.xlu0  ;;  %4372 = vmatmul.mubr.bf16.vlgmr.msra.gmra.mrb[0].mxu0 %v4202_v37 }
 0x6e3   : >> { %4259 = vmatmul.mubr.bf16.vlgmr.msra.gmra.mrb[0].mxu1 %v4170_v55  ;;  %4381 = vmatprep.mubr.bf16.mxu0 %v4219_v63 }
 0x6e4   : >> { %4268 = vmatprep.mubr.bf16.mxu1 %v4187_v1 }
 0x6e5   : >> { %v4203_v22 = vpop.trf.xlu1 }
 0x6e6   : >> { %v4171_v23 = vpop.trf.xlu0 }
 0x6e9   : >> { %v4204_v31 = vpop.trf.xlu1 }
 0x6ea   : >> { %4382 = vmatmul.mubr.bf16.gmra.mrb[4].mxu0 %v4203_v22  ;;  %v4172_v48 = vpop.trf.xlu0 }
 0x6eb   : >> { %4269 = vmatmul.mubr.bf16.gmra.mrb[4].mxu1 %v4171_v23  ;;  %4391 = vmatprep.mubr.bf16.mxu0 %v4220_v14  ;;  %v4036_v14 = vld [vmem:[%s9738_s7 + $0x38] sm:$0xff]  ;;  %v4039_v23 = vld [vmem:[%s9738_s7 + $0x50] sm:$0xff] }
 0x6ec   : >> { %4278 = vmatprep.mubr.bf16.mxu1 %v4188_v12 }
 0x6ed   : >> { %v4205_v49 = vpop.trf.xlu1 }
 0x6ee   : >> { %v4173_v54 = vpop.trf.xlu0 }
 0x6f1   : >> { %v4206_v28 = vpop.trf.xlu1 }
 0x6f2   : >> { %4392 = vmatmul.mubr.bf16.gmra.mrb[8].mxu0 %v4204_v31  ;;  %v4174_v4 = vpop.trf.xlu0 }
 0x6f3   : >> { %4279 = vmatmul.mubr.bf16.gmra.mrb[8].mxu1 %v4172_v48  ;;  %4401 = vmatprep.mubr.bf16.mxu0 %v4221_v18 }
 0x6f4   : >> { %4288 = vmatprep.mubr.bf16.mxu1 %v4189_v42 }
 0x6f5   : >> { %v4207_v7 = vpop.trf.xlu1 }
 0x6f6   : >> { %v4175_v0 = vpop.trf.xlu0 }
 0x6f9   : >> { %v4208_v62 = vpop.trf.xlu1 }
 0x6fa   : >> { %4402 = vmatmul.mubr.bf16.gmra.mrb[12].mxu0 %v4205_v49  ;;  %v4176_v39 = vpop.trf.xlu0 }
 0x6fb   : >> { %4289 = vmatmul.mubr.bf16.gmra.mrb[12].mxu1 %v4173_v54  ;;  %4411 = vmatprep.mubr.bf16.mxu0 %v4222_v24 }
 0x6fc   : >> { %4298 = vmatprep.mubr.bf16.mxu1 %v4190_v25 }
 0x6fd   : >> { %v4209_v26 = vpop.trf.xlu1 }
 0x6fe   : >> { %v4177_v19 = vpop.trf.xlu0 }
 0x702   : >> { %4412 = vmatmul.mubr.bf16.gmra.mrb[16].mxu0 %v4206_v28  ;;  %v4040_v28 = vld [vmem:[%s9738_s7 + $0x58] sm:$0xff] }
 0x703   : >> { %4299 = vmatmul.mubr.bf16.gmra.mrb[16].mxu1 %v4174_v4  ;;  %4421 = vmatprep.mubr.bf16.mxu0 %v4223_v27 }
 0x704   : >> { %4308 = vmatprep.mubr.bf16.mxu1 %v4191_v30  ;;  %v4037_v30 = vld [vmem:[%s9738_s7 + $0x40] sm:$0xff] }
 0x70a   : >> { %4422 = vmatmul.mubr.bf16.gmra.mrb[20].mxu0 %v4207_v7 }
 0x70b   : >> { %4309 = vmatmul.mubr.bf16.gmra.mrb[20].mxu1 %v4175_v0  ;;  %4431 = vmatprep.mubr.bf16.mxu0 %v4224_v5 }
 0x70c   : >> { %4318 = vmatprep.mubr.bf16.mxu1 %v4192_v16 }
 0x712   : >> { %4432 = vmatmul.mubr.bf16.gmra.mrb[24].mxu0 %v4208_v62 }
 0x713   : >> { %4319 = vmatmul.mubr.bf16.gmra.mrb[24].mxu1 %v4176_v39  ;;  %4441 = vmatprep.mubr.bf16.mxu0 %v4225_v21 }
 0x714   : >> { %4328 = vmatprep.mubr.bf16.mxu1 %v4193_v8  ;;  %v4038_v8 = vld [vmem:[%s9738_s7 + $0x48] sm:$0xff] }
 0x71a   : >> { %4442 = vmatmul.mubr.bf16.gmra.mrb[28].mxu0 %v4209_v26 }
 0x71b   : >> { %4329 = vmatmul.mubr.bf16.gmra.mrb[28].mxu1 %v4177_v19  ;;  %v4041_v19 = vld [vmem:[%s9738_s7 + $0x60] sm:$0xff] }
 0x7b5   : >> { %v4373_v9 = vpop.f32.mrb[0].mxu0 }
 0x7b6   : >> { %v4260_v3 = vpop.f32.mrb[0].mxu1  ;;  %v4375_v60 = vpop.f32.mrb[1].mxu0 }
 0x7b7   : >> { %v4374_v61 = vadd.f32 %v4373_v9, %v4260_v3  ;;  %v4262_v20 = vpop.f32.mrb[1].mxu1  ;;  %v4377_v51 = vpop.f32.mrb[2].mxu0 }
 0x7b8   : >> { %v4376_v36 = vadd.f32 %v4375_v60, %v4262_v20  ;;  %v4264_v34 = vpop.f32.mrb[2].mxu1  ;;  %v4379_v13 = vpop.f32.mrb[3].mxu0  ;;  %v4042_v60 = vld [vmem:[%s9738_s7 + $0x68] sm:$0xff] }
 0x7b9   : >> { %v4452_v33 = vadd.f32 %v4374_v61, %v4029_v57  ;;  %v4378_v15 = vadd.f32 %v4377_v51, %v4264_v34  ;;  %v4266_v6 = vpop.f32.mrb[3].mxu1  ;;  %v4043_v51 = vld [vmem:[%s9738_s7 + $0x70] sm:$0xff] }
 0x7ba   : >> { %v4453_v17 = vadd.f32 %v4376_v36, %v4030_v47  ;;  %v4380_v35 = vadd.f32 %v4379_v13, %v4266_v6 }
 0x7bb   : >> { %4484 = vst [vmem:[%s9738_s7] sm:$0xff] %v4452_v33  ;;  %v4454_v56 = vadd.f32 %v4378_v15, %v4031_v45  ;;  %v4044_v33 = vld [vmem:[%s9738_s7 + $0x78] sm:$0xff] }
 0x7bc   : >> { %4485 = vst [vmem:[%s9738_s7 + $0x8] sm:$0xff] %v4453_v17  ;;  %v4455_v53 = vadd.f32 %v4380_v35, %v4032_v40 }
 0x7bd   : >> { %4486 = vst [vmem:[%s9738_s7 + $0x10] sm:$0xff] %v4454_v56  ;;  %v4383_v29 = vpop.f32.mrb[4].mxu0 }
 0x7be   : >> { %4487 = vst [vmem:[%s9738_s7 + $0x18] sm:$0xff] %v4455_v53  ;;  %v4270_v59 = vpop.f32.mrb[4].mxu1  ;;  %v4385_v50 = vpop.f32.mrb[5].mxu0  ;;  %v4045_v53 = vld [vmem:[%s9738_s7 + $0x80] sm:$0xff] }
 0x7bf   : >> { %v4384_v2 = vadd.f32 %v4383_v29, %v4270_v59  ;;  %v4272_v43 = vpop.f32.mrb[5].mxu1  ;;  %v4387_v44 = vpop.f32.mrb[6].mxu0 }
 0x7c0   : >> { %v4386_v58 = vadd.f32 %v4385_v50, %v4272_v43  ;;  %v4274_v38 = vpop.f32.mrb[6].mxu1  ;;  %v4389_v10 = vpop.f32.mrb[7].mxu0  ;;  %v4046_v50 = vld [vmem:[%s9738_s7 + $0x88] sm:$0xff] }
 0x7c1   : >> { %v4456_v52 = vadd.f32 %v4384_v2, %v4033_v32  ;;  %v4388_v63 = vadd.f32 %v4387_v44, %v4274_v38  ;;  %v4276_v1 = vpop.f32.mrb[7].mxu1  ;;  %v4047_v44 = vld [vmem:[%s9738_s7 + $0x90] sm:$0xff] }
 0x7c2   : >> { %v4457_v12 = vadd.f32 %v4386_v58, %v4034_v11  ;;  %v4390_v18 = vadd.f32 %v4389_v10, %v4276_v1 }
 0x7c3   : >> { %4488 = vst [vmem:[%s9738_s7 + $0x20] sm:$0xff] %v4456_v52  ;;  %v4458_v42 = vadd.f32 %v4388_v63, %v4035_v46  ;;  %v4048_v52 = vld [vmem:[%s9738_s7 + $0x98] sm:$0xff] }
 0x7c4   : >> { %4489 = vst [vmem:[%s9738_s7 + $0x28] sm:$0xff] %v4457_v12  ;;  %v4459_v24 = vadd.f32 %v4390_v18, %v4036_v14 }
 0x7c5   : >> { %4490 = vst [vmem:[%s9738_s7 + $0x30] sm:$0xff] %v4458_v42  ;;  %v4393_v25 = vpop.f32.mrb[8].mxu0 }
 0x7c6   : >> { %4491 = vst [vmem:[%s9738_s7 + $0x38] sm:$0xff] %v4459_v24  ;;  %v4280_v27 = vpop.f32.mrb[8].mxu1  ;;  %v4395_v5 = vpop.f32.mrb[9].mxu0  ;;  %v4049_v24 = vld [vmem:[%s9738_s7 + $0xa0] sm:$0xff] }
 0x7c7   : >> { %v4394_v16 = vadd.f32 %v4393_v25, %v4280_v27  ;;  %v4282_v21 = vpop.f32.mrb[9].mxu1  ;;  %v4397_v37 = vpop.f32.mrb[10].mxu0 }
 0x7c8   : >> { %v4396_v55 = vadd.f32 %v4395_v5, %v4282_v21  ;;  %v4284_v22 = vpop.f32.mrb[10].mxu1  ;;  %v4399_v31 = vpop.f32.mrb[11].mxu0  ;;  %v4050_v5 = vld [vmem:[%s9738_s7 + $0xa8] sm:$0xff] }
 0x7c9   : >> { %v4460_v48 = vadd.f32 %v4394_v16, %v4037_v30  ;;  %v4398_v49 = vadd.f32 %v4397_v37, %v4284_v22  ;;  %v4286_v54 = vpop.f32.mrb[11].mxu1  ;;  %v4051_v37 = vld [vmem:[%s9738_s7 + $0xb0] sm:$0xff] }
 0x7ca   : >> { %v4461_v4 = vadd.f32 %v4396_v55, %v4038_v8  ;;  %v4400_v7 = vadd.f32 %v4399_v31, %v4286_v54 }
 0x7cb   : >> { %4492 = vst [vmem:[%s9738_s7 + $0x40] sm:$0xff] %v4460_v48  ;;  %v4462_v0 = vadd.f32 %v4398_v49, %v4039_v23  ;;  %v4052_v48 = vld [vmem:[%s9738_s7 + $0xb8] sm:$0xff] }
 0x7cc   : >> { %4493 = vst [vmem:[%s9738_s7 + $0x48] sm:$0xff] %v4461_v4  ;;  %v4463_v62 = vadd.f32 %v4400_v7, %v4040_v28 }
 0x7cd   : >> { %4494 = vst [vmem:[%s9738_s7 + $0x50] sm:$0xff] %v4462_v0  ;;  %v4403_v39 = vpop.f32.mrb[12].mxu0 }
 0x7ce   : >> { %4495 = vst [vmem:[%s9738_s7 + $0x58] sm:$0xff] %v4463_v62  ;;  %v4290_v26 = vpop.f32.mrb[12].mxu1  ;;  %v4405_v9 = vpop.f32.mrb[13].mxu0  ;;  %v4053_v62 = vld [vmem:[%s9738_s7 + $0xc0] sm:$0xff] }
 0x7cf   : >> { %v4404_v3 = vadd.f32 %v4403_v39, %v4290_v26  ;;  %v4292_v57 = vpop.f32.mrb[13].mxu1  ;;  %v4407_v61 = vpop.f32.mrb[14].mxu0 }
 0x7d0   : >> { %v4406_v20 = vadd.f32 %v4405_v9, %v4292_v57  ;;  %v4294_v47 = vpop.f32.mrb[14].mxu1  ;;  %v4409_v36 = vpop.f32.mrb[15].mxu0  ;;  %v4054_v9 = vld [vmem:[%s9738_s7 + $0xc8] sm:$0xff] }
 0x7d1   : >> { %v4464_v34 = vadd.f32 %v4404_v3, %v4041_v19  ;;  %v4408_v45 = vadd.f32 %v4407_v61, %v4294_v47  ;;  %v4296_v13 = vpop.f32.mrb[15].mxu1  ;;  %v4055_v61 = vld [vmem:[%s9738_s7 + $0xd0] sm:$0xff] }
 0x7d2   : >> { %v4465_v15 = vadd.f32 %v4406_v20, %v4042_v60  ;;  %v4410_v6 = vadd.f32 %v4409_v36, %v4296_v13 }
 0x7d3   : >> { %4496 = vst [vmem:[%s9738_s7 + $0x60] sm:$0xff] %v4464_v34  ;;  %v4466_v40 = vadd.f32 %v4408_v45, %v4043_v51  ;;  %v4056_v34 = vld [vmem:[%s9738_s7 + $0xd8] sm:$0xff] }
 0x7d4   : >> { %4497 = vst [vmem:[%s9738_s7 + $0x68] sm:$0xff] %v4465_v15  ;;  %v4467_v17 = vadd.f32 %v4410_v6, %v4044_v33 }
 0x7d5   : >> { %4498 = vst [vmem:[%s9738_s7 + $0x70] sm:$0xff] %v4466_v40  ;;  %v4413_v35 = vpop.f32.mrb[16].mxu0 }
 0x7d6   : >> { %4499 = vst [vmem:[%s9738_s7 + $0x78] sm:$0xff] %v4467_v17  ;;  %v4300_v56 = vpop.f32.mrb[16].mxu1  ;;  %v4415_v29 = vpop.f32.mrb[17].mxu0  ;;  %v4057_v17 = vld [vmem:[%s9738_s7 + $0xe0] sm:$0xff] }
 0x7d7   : >> { %v4414_v59 = vadd.f32 %v4413_v35, %v4300_v56  ;;  %v4302_v32 = vpop.f32.mrb[17].mxu1  ;;  %v4417_v2 = vpop.f32.mrb[18].mxu0 }
 0x7d8   : >> { %v4416_v43 = vadd.f32 %v4415_v29, %v4302_v32  ;;  %v4304_v11 = vpop.f32.mrb[18].mxu1  ;;  %v4419_v58 = vpop.f32.mrb[19].mxu0  ;;  %v4058_v29 = vld [vmem:[%s9738_s7 + $0xe8] sm:$0xff] }
 0x7d9   : >> { %v4468_v38 = vadd.f32 %v4414_v59, %v4045_v53  ;;  %v4418_v46 = vadd.f32 %v4417_v2, %v4304_v11  ;;  %v4306_v10 = vpop.f32.mrb[19].mxu1  ;;  %v4059_v2 = vld [vmem:[%s9738_s7 + $0xf0] sm:$0xff] }
 0x7da   : >> { %v4469_v63 = vadd.f32 %v4416_v43, %v4046_v50  ;;  %v4420_v1 = vadd.f32 %v4419_v58, %v4306_v10 }
 0x7db   : >> { %4500 = vst [vmem:[%s9738_s7 + $0x80] sm:$0xff] %v4468_v38  ;;  %v4470_v14 = vadd.f32 %v4418_v46, %v4047_v44  ;;  %v4060_v38 = vld [vmem:[%s9738_s7 + $0xf8] sm:$0xff] }
 0x7dc   : >> { %4501 = vst [vmem:[%s9738_s7 + $0x88] sm:$0xff] %v4469_v63  ;;  %v4471_v12 = vadd.f32 %v4420_v1, %v4048_v52 }
 0x7dd   : >> { %4502 = vst [vmem:[%s9738_s7 + $0x90] sm:$0xff] %v4470_v14  ;;  %v4423_v18 = vpop.f32.mrb[20].mxu0 }
 0x7de   : >> { %4503 = vst [vmem:[%s9738_s7 + $0x98] sm:$0xff] %v4471_v12  ;;  %v4310_v42 = vpop.f32.mrb[20].mxu1  ;;  %v4425_v25 = vpop.f32.mrb[21].mxu0 }
 0x7df   : >> { %v4424_v27 = vadd.f32 %v4423_v18, %v4310_v42  ;;  %v4312_v30 = vpop.f32.mrb[21].mxu1  ;;  %v4427_v16 = vpop.f32.mrb[22].mxu0 }
 0x7e0   : >> { %v4426_v21 = vadd.f32 %v4425_v25, %v4312_v30  ;;  %v4314_v8 = vpop.f32.mrb[22].mxu1  ;;  %v4429_v55 = vpop.f32.mrb[23].mxu0 }
 0x7e1   : >> { %v4472_v22 = vadd.f32 %v4424_v27, %v4049_v24  ;;  %v4428_v23 = vadd.f32 %v4427_v16, %v4314_v8  ;;  %v4316_v31 = vpop.f32.mrb[23].mxu1 }
 0x7e2   : >> { %v4473_v49 = vadd.f32 %v4426_v21, %v4050_v5  ;;  %v4430_v54 = vadd.f32 %v4429_v55, %v4316_v31 }
 0x7e3   : >> { %4504 = vst [vmem:[%s9738_s7 + $0xa0] sm:$0xff] %v4472_v22  ;;  %v4474_v28 = vadd.f32 %v4428_v23, %v4051_v37 }
 0x7e4   : >> { %4505 = vst [vmem:[%s9738_s7 + $0xa8] sm:$0xff] %v4473_v49  ;;  %v4475_v4 = vadd.f32 %v4430_v54, %v4052_v48 }
 0x7e5   : >> { %4506 = vst [vmem:[%s9738_s7 + $0xb0] sm:$0xff] %v4474_v28  ;;  %v4433_v7 = vpop.f32.mrb[24].mxu0 }
 0x7e6   : >> { %4507 = vst [vmem:[%s9738_s7 + $0xb8] sm:$0xff] %v4475_v4  ;;  %v4320_v0 = vpop.f32.mrb[24].mxu1  ;;  %v4435_v39 = vpop.f32.mrb[25].mxu0 }
 0x7e7   : >> { %v4434_v26 = vadd.f32 %v4433_v7, %v4320_v0  ;;  %v4322_v19 = vpop.f32.mrb[25].mxu1  ;;  %v4437_v3 = vpop.f32.mrb[26].mxu0 }
 0x7e8   : >> { %v4436_v57 = vadd.f32 %v4435_v39, %v4322_v19  ;;  %v4324_v60 = vpop.f32.mrb[26].mxu1  ;;  %v4439_v20 = vpop.f32.mrb[27].mxu0 }
 0x7e9   : >> { %v4476_v47 = vadd.f32 %v4434_v26, %v4053_v62  ;;  %v4438_v51 = vadd.f32 %v4437_v3, %v4324_v60  ;;  %v4326_v36 = vpop.f32.mrb[27].mxu1 }
 0x7ea   : >> { %v4477_v45 = vadd.f32 %v4436_v57, %v4054_v9  ;;  %v4440_v13 = vadd.f32 %v4439_v20, %v4326_v36 }
 0x7eb   : >> { %4508 = vst [vmem:[%s9738_s7 + $0xc0] sm:$0xff] %v4476_v47  ;;  %v4478_v33 = vadd.f32 %v4438_v51, %v4055_v61 }
 0x7ec   : >> { %4509 = vst [vmem:[%s9738_s7 + $0xc8] sm:$0xff] %v4477_v45  ;;  %v4479_v15 = vadd.f32 %v4440_v13, %v4056_v34 }
 0x7ed   : >> { %4510 = vst [vmem:[%s9738_s7 + $0xd0] sm:$0xff] %v4478_v33  ;;  %v4443_v6 = vpop.f32.mrb[28].mxu0 }
 0x7ee   : >> { %4511 = vst [vmem:[%s9738_s7 + $0xd8] sm:$0xff] %v4479_v15  ;;  %v4330_v40 = vpop.f32.mrb[28].mxu1  ;;  %v4445_v35 = vpop.f32.mrb[29].mxu0 }
 0x7ef   : >> { %v4444_v56 = vadd.f32 %v4443_v6, %v4330_v40  ;;  %v4332_v53 = vpop.f32.mrb[29].mxu1  ;;  %v4447_v59 = vpop.f32.mrb[30].mxu0 }
 0x7f0   : >> { %v4446_v32 = vadd.f32 %v4445_v35, %v4332_v53  ;;  %v4334_v50 = vpop.f32.mrb[30].mxu1  ;;  %v4449_v43 = vpop.f32.mrb[31].mxu0  ;;  %3827 = sbr.rel (!%p3825_p8) target bundleno = 1620 (0x654), region = 129 }
 0x7f1   : >> { %v4480_v11 = vadd.f32 %v4444_v56, %v4057_v17  ;;  %v4448_v44 = vadd.f32 %v4447_v59, %v4334_v50  ;;  %v4336_v58 = vpop.f32.mrb[31].mxu1 }
 0x7f2   : >> { %v4481_v46 = vadd.f32 %v4446_v32, %v4058_v29  ;;  %v4450_v10 = vadd.f32 %v4449_v43, %v4336_v58 }
 0x7f3   : >> { %4512 = vst [vmem:[%s9738_s7 + $0xe0] sm:$0xff] %v4480_v11  ;;  %v4482_v52 = vadd.f32 %v4448_v44, %v4059_v2 }
 0x7f4   : >> { %4513 = vst [vmem:[%s9738_s7 + $0xe8] sm:$0xff] %v4481_v46  ;;  %v4483_v63 = vadd.f32 %v4450_v10, %v4060_v38 }
 0x7f5   : >> { %4514 = vst [vmem:[%s9738_s7 + $0xf0] sm:$0xff] %v4482_v52 }
 0x7f6   : >> { %4515 = vst [vmem:[%s9738_s7 + $0xf8] sm:$0xff] %v4483_v63 }
 0x7f7 PF: > { %s18_s24 = sadd.s32 1, %s5574_s24  }
 0x7f8   : > { %p15_p9 = scmp.ge.s32.totalorder %s18_s24, 4  }
 0x7fa   :  { %17 = sbr.rel (!%p15_p9) target bundleno = 1 (0x1), region = 140 }

</bundles_post_ra>
